<compile_context>
chip_gen: v7x
topology: tpu7x:2x2x1
jax: 0.10.0
libtpu: 0.0.40
codegen_flags: <defaults>
</compile_context>

<pallas_src>
import functools
import math

import jax
import jax.numpy as jnp
from jax import lax
from jax.experimental import pallas as pl
from jax.experimental.pallas import tpu as pltpu


def _sigmoid(x):
    # tanh-based sigmoid: numerically stable and maps onto the EUP tanh slot.
    return 0.5 * (jnp.tanh(0.5 * x) + 1.0)


# ----------------------------------------------------------------------------
# The single fused kernel
# ----------------------------------------------------------------------------
def _fused_kernel(*refs, names, B, T, N, H, heads):
    n_in = len(names)
    p = {k: refs[i][...] for i, k in enumerate(names)}
    out_ref = refs[n_in]
    lstm_scr = refs[n_in + 1]           # (T*B*N, H) VMEM scratch, rows (t, b, n)

    dv = H // heads
    scale = 1.0 / math.sqrt(dv)
    R = B * T * N
    BN = B * N

    def fused_mha(x2d, wqkv, bqkv, wo, bo, bias):
        """Group-folded multi-head self-attention over 2-D (rows, H).

        `bias` is a (rows, rows) additive mask (0 where the pair belongs to the
        same attention group, -1e30 elsewhere), so each head runs one big
        lane-dense score matmul instead of many tiny per-group matmuls.
        """
        qkv = jnp.dot(x2d, wqkv, preferred_element_type=jnp.float32) + bqkv
        ctx_heads = []
        for hh in range(heads):
            q = qkv[:, hh * dv:(hh + 1) * dv]
            k = qkv[:, H + hh * dv:H + (hh + 1) * dv]
            v = qkv[:, 2 * H + hh * dv:2 * H + (hh + 1) * dv]
            s = jnp.einsum("rd,sd->rs", q, k,
                           preferred_element_type=jnp.float32) * scale + bias
            s = s - jnp.max(s, axis=-1, keepdims=True)
            e = jnp.exp(s)
            # exact division (not approx reciprocal) keeps the f32 comparison
            # against the pure-JAX reference tight.
            attn = e / jnp.sum(e, axis=-1, keepdims=True)
            ctx_heads.append(jnp.dot(attn, v, preferred_element_type=jnp.float32))
        ctx = jnp.concatenate(ctx_heads, axis=-1)
        return jnp.dot(ctx, wo, preferred_element_type=jnp.float32) + bo

    def layernorm(y, g, b):
        mu = jnp.mean(y, axis=-1, keepdims=True)
        d = y - mu
        var = jnp.mean(d * d, axis=-1, keepdims=True)
        return d * lax.rsqrt(var + 1e-5) * g + b

    # ---------------- GlobalSpatial: LSTM over time per (batch, object) ------
    # Hoist the input projection off the serial h-chain: one (T*BN,H)@(H,4H)
    # matmul, the recurrence only carries h@Whh.
    gate_x = (jnp.dot(p["x_tbn"], p["lstm_wih"],
                      preferred_element_type=jnp.float32) + p["lstm_b"])
    h = jnp.zeros((BN, H), jnp.float32)
    c = jnp.zeros((BN, H), jnp.float32)
    for t in range(T):                   # small static trip count -> unrolled
        g = gate_x[t * BN:(t + 1) * BN, :] + jnp.dot(
            h, p["lstm_whh"], preferred_element_type=jnp.float32)
        i_g = _sigmoid(g[:, 0 * H:1 * H])
        f_g = _sigmoid(g[:, 1 * H:2 * H])
        g_g = jnp.tanh(g[:, 2 * H:3 * H])
        o_g = _sigmoid(g[:, 3 * H:4 * H])
        c = f_g * c + i_g * g_g
        h = o_g * jnp.tanh(c)
        lstm_scr[pl.ds(t * BN, BN), :] = h          # stays in (t, b, n) order

    # Global spatial MHA over objects on the last hidden state (rows = (b, n)).
    gs = fused_mha(h, p["gsa_wqkv"], p["gsa_bqkv"], p["gsa_wo"], p["gsa_bo"],
                   p["bias_global"])
    # Broadcast gs_out over time into (b, t, n) rows with a one-hot gather
    # matmul (kept in VMEM, no HBM-materialized broadcast).
    gs_b = jnp.dot(p["bcast_gs"], gs, preferred_element_type=jnp.float32)

    # ---------------- SpatialBlock -------------------------------------------
    x_btn = p["x_btn"]
    satt = fused_mha(x_btn, p["satt_wqkv"], p["satt_bqkv"], p["satt_wo"],
                     p["satt_bo"], p["bias_spatial"])

    # DiffusionConv: adjacency hops as single block-diagonal matmuls, then one
    # fused (R, 5H) @ (5H, H) MLP exactly like the reference concat.
    x1a = jnp.dot(p["adj_dist"], x_btn, preferred_element_type=jnp.float32)
    x2a = jnp.dot(p["adj_dist"], x1a, preferred_element_type=jnp.float32)
    x1b = jnp.dot(p["adj_head"], x_btn, preferred_element_type=jnp.float32)
    x2b = jnp.dot(p["adj_head"], x1b, preferred_element_type=jnp.float32)
    hcat = jnp.concatenate([x_btn, x1a, x2a, x1b, x2b], axis=-1)
    gcn = jnp.dot(hcat, p["dc_w"], preferred_element_type=jnp.float32) + p["dc_b"]
    # TODO(synk): DiffusionConv / TemporalMHA dropout is an inference-time no-op.

    # Gated mixes with stacked gate weights: one (R, 2H)@(2H, H) matmul each.
    z = _sigmoid(jnp.dot(jnp.concatenate([gcn, satt], axis=-1), p["fc12_w"],
                         preferred_element_type=jnp.float32) + p["fc12_b"])
    last = z * gcn + (1.0 - z) * satt
    a = _sigmoid(jnp.dot(jnp.concatenate([last, gs_b], axis=-1), p["fc34_w"],
                         preferred_element_type=jnp.float32) + p["fc34_b"])
    spatial_out = a * last + (1.0 - a) * gs_b        # rows (b, t, n)

    # ---------------- TemporalBlock -------------------------------------------
    # Rows stay in (b, t, n) order; attention over frames is expressed via the
    # block mask (same batch, same object), so no transposes are needed.
    # NOTE: the reference defines a causal-mask buffer but never applies it.
    ctx = fused_mha(spatial_out, p["t_wqkv"], p["t_bqkv"], p["t_wo"], p["t_bo"],
                    p["bias_temporal"])
    ctx_ln = layernorm(ctx + spatial_out, p["ln1_g"], p["ln1_b"])
    ffh = jnp.maximum(
        jnp.dot(ctx_ln, p["ff_w1"], preferred_element_type=jnp.float32)
        + p["ff_b1"], 0.0)
    ff = jnp.dot(ffh, p["ff_w2"], preferred_element_type=jnp.float32) + p["ff_b2"]
    temporal_out = layernorm(ff + ctx_ln, p["ln2_g"], p["ln2_b"])

    # ---------------- final residual with LSTM sequence features --------------
    # Reorder lstm outputs from (t, b, n) to (b, t, n) rows with a one-hot
    # permutation matmul (cheap MXU op, no relayout-risky reshape).
    gt_btn = jnp.dot(p["perm_tbn_to_btn"], lstm_scr[...],
                     preferred_element_type=jnp.float32)
    out_ref[...] = temporal_out + gt_btn


# ----------------------------------------------------------------------------
# Wrapper: builds index/mask constants and calls the single fused kernel.
# ----------------------------------------------------------------------------
def spatial_temporal_forward(params, x, dist_adj, heading_adj, *, heads):
    B, T, N, H = x.shape
    R = B * T * N
    BN = B * N

    # Layout / index constants (a few KiB each, fused into the jitted graph).
    x_btn = x.reshape(R, H)                                   # rows (b, t, n)
    x_tbn = jnp.transpose(x, (1, 0, 2, 3)).reshape(R, H)      # rows (t, b, n)
    eye_bt = jnp.eye(B * T, dtype=jnp.float32)
    adj_dist = jnp.kron(eye_bt, dist_adj.astype(jnp.float32))     # (R, R)
    adj_head = jnp.kron(eye_bt, heading_adj.astype(jnp.float32))  # (R, R)

    rows = jnp.arange(R)
    b_i = rows // (T * N)
    t_i = (rows // N) % T
    n_i = rows % N
    perm_tbn_to_btn = jax.nn.one_hot(t_i * BN + b_i * N + n_i, R,
                                     dtype=jnp.float32)        # (R, R)
    bcast_gs = jax.nn.one_hot(b_i * N + n_i, BN, dtype=jnp.float32)  # (R, BN)

    def block_bias(same):
        return jnp.where(same, 0.0, -1e30).astype(jnp.float32)

    bias_spatial = block_bias((b_i[:, None] == b_i[None, :])
                              & (t_i[:, None] == t_i[None, :]))
    bias_temporal = block_bias((b_i[:, None] == b_i[None, :])
                               & (n_i[:, None] == n_i[None, :]))
    g_rows = jnp.arange(BN)
    gb = g_rows // N
    bias_global = block_bias(gb[:, None] == gb[None, :])

    pg, ps, pt = params["gs"], params["spatial"], params["temporal"]
    operands = {
        "x_btn": x_btn, "x_tbn": x_tbn,
        "adj_dist": adj_dist, "adj_head": adj_head,
        "perm_tbn_to_btn": perm_tbn_to_btn, "bcast_gs": bcast_gs,
        "bias_spatial": bias_spatial, "bias_temporal": bias_temporal,
        "bias_global": bias_global,
        "lstm_wih": pg["lstm_wih"], "lstm_whh": pg["lstm_whh"], "lstm_b": pg["lstm_b"],
        "gsa_wqkv": pg["gsa_wqkv"], "gsa_bqkv": pg["gsa_bqkv"],
        "gsa_wo": pg["gsa_wo"], "gsa_bo": pg["gsa_bo"],
        "satt_wqkv": ps["satt_wqkv"], "satt_bqkv": ps["satt_bqkv"],
        "satt_wo": ps["satt_wo"], "satt_bo": ps["satt_bo"],
        "dc_w": ps["dc_w"], "dc_b": ps["dc_b"],
        "fc12_w": ps["fc12_w"], "fc12_b": ps["fc12_b"],
        "fc34_w": ps["fc34_w"], "fc34_b": ps["fc34_b"],
        "t_wqkv": pt["wqkv"], "t_bqkv": pt["bqkv"], "t_wo": pt["wo"], "t_bo": pt["bo"],
        "ln1_g": pt["ln1_g"], "ln1_b": pt["ln1_b"],
        "ln2_g": pt["ln2_g"], "ln2_b": pt["ln2_b"],
        "ff_w1": pt["ff_w1"], "ff_b1": pt["ff_b1"],
        "ff_w2": pt["ff_w2"], "ff_b2": pt["ff_b2"],
    }
    names = tuple(operands.keys())
    kernel = functools.partial(_fused_kernel, names=names,
                               B=B, T=T, N=N, H=H, heads=heads)

    in_bytes = 4 * sum(int(v.size) for v in operands.values())
    out_flat = pl.pallas_call(
        kernel,
        out_shape=jax.ShapeDtypeStruct((R, H), jnp.float32),
        scratch_shapes=[pltpu.VMEM((R, H), jnp.float32)],
        cost_estimate=pl.CostEstimate(
            flops=2 * R * H * (20 * H) + 6 * 2 * R * R * H,
            transcendentals=10 * R * H,
            bytes_accessed=in_bytes + 4 * R * H),
    )(*[operands[n] for n in names])
    # TODO(synk): on v7x a leading "parallel" grid axis over batch would occupy
    # the second TensorCore; skipped here because the whole problem is a few KiB.
    return out_flat.reshape(B, T, N, H)


# ----------------------------------------------------------------------------
# Parameters and pure-JAX reference (mirrors the PyTorch forward, eval mode)
# ----------------------------------------------------------------------------
def init_params(key, H):
    keys = iter(jax.random.split(key, 64))

    def w(shape):
        fan_in = shape[-2]
        return (1.0 / math.sqrt(fan_in)) * jax.random.normal(next(keys), shape, jnp.float32)

    def bias(n):
        return 0.01 * jax.random.normal(next(keys), (1, n), jnp.float32)

    gs = dict(
        lstm_wih=w((H, 4 * H)), lstm_whh=w((H, 4 * H)), lstm_b=bias(4 * H),
        gsa_wqkv=w((H, 3 * H)), gsa_bqkv=bias(3 * H),
        gsa_wo=w((H, H)), gsa_bo=bias(H),
    )
    spatial = dict(
        satt_wqkv=w((H, 3 * H)), satt_bqkv=bias(3 * H),
        satt_wo=w((H, H)), satt_bo=bias(H),
        dc_w=w((5 * H, H)), dc_b=bias(H),
        fc12_w=w((2 * H, H)), fc12_b=bias(H),     # stacked [fc_1; fc_2]
        fc34_w=w((2 * H, H)), fc34_b=bias(H),     # stacked [fc_3; fc_4]
    )
    temporal = dict(
        wqkv=w((H, 3 * H)), bqkv=bias(3 * H),
        wo=w((H, H)), bo=bias(H),
        ln1_g=jnp.ones((1, H), jnp.float32), ln1_b=jnp.zeros((1, H), jnp.float32),
        ln2_g=jnp.ones((1, H), jnp.float32), ln2_b=jnp.zeros((1, H), jnp.float32),
        ff_w1=w((H, H)), ff_b1=bias(H), ff_w2=w((H, H)), ff_b2=bias(H),
    )
    return dict(gs=gs, spatial=spatial, temporal=temporal)


def ref_forward(params, x, dist_adj, heading_adj, heads):
    B, T, N, H = x.shape
    d_v = H // heads
    scale = 1.0 / math.sqrt(d_v)

    def self_attn(xg, wqkv, bqkv, wo, bo):
        G, L, _ = xg.shape
        qkv = (xg.reshape(G * L, H) @ wqkv + bqkv).reshape(G, L, 3, heads, d_v)
        qkv = jnp.transpose(qkv, (2, 0, 3, 1, 4))
        q, k, v = qkv[0], qkv[1], qkv[2]
        s = jnp.einsum("ghqd,ghkd->ghqk", q, k) * scale
        s = s - jnp.max(s, axis=-1, keepdims=True)
        p = jnp.exp(s)
        p = p / jnp.sum(p, axis=-1, keepdims=True)
        ctx = jnp.einsum("ghqk,ghkd->ghqd", p, v)
        ctx = jnp.transpose(ctx, (0, 2, 1, 3)).reshape(G * L, H)
        return (ctx @ wo + bo).reshape(G, L, H)

    pg = params["gs"]
    xr = jnp.transpose(x, (0, 2, 1, 3)).reshape(B * N, T, H)

    def lstm_step(carry, xt):
        h, c = carry
        gates = xt @ pg["lstm_wih"] + h @ pg["lstm_whh"] + pg["lstm_b"]
        i = jax.nn.sigmoid(gates[:, :H])
        f = jax.nn.sigmoid(gates[:, H:2 * H])
        g = jnp.tanh(gates[:, 2 * H:3 * H])
        o = jax.nn.sigmoid(gates[:, 3 * H:4 * H])
        c = f * c + i * g
        h = o * jnp.tanh(c)
        return (h, c), h

    h0 = jnp.zeros((B * N, H), jnp.float32)
    (hT, _), outs = lax.scan(lstm_step, (h0, h0), jnp.transpose(xr, (1, 0, 2)))
    lstm_out = jnp.transpose(outs, (1, 0, 2))
    gs = self_attn(hT.reshape(B, N, H), pg["gsa_wqkv"], pg["gsa_bqkv"],
                   pg["gsa_wo"], pg["gsa_bo"])
    gs_out = gs.reshape(B, 1, N, H)
    gt = jnp.transpose(lstm_out.reshape(B, N, T, H), (0, 2, 1, 3))

    ps = params["spatial"]
    satt = self_attn(x.reshape(B * T, N, H), ps["satt_wqkv"], ps["satt_bqkv"],
                     ps["satt_wo"], ps["satt_bo"]).reshape(B, T, N, H)
    feats = [x]
    for a_mat in (dist_adj, heading_adj):
        x1 = jnp.einsum("mn,btnh->btmh", a_mat, x)
        feats.append(x1)
        x2 = jnp.einsum("mn,btnh->btmh", a_mat, x1)
        feats.append(x2)
    hcat = jnp.concatenate(feats, axis=-1)
    gcn = (hcat.reshape(B * T * N, 5 * H) @ ps["dc_w"] + ps["dc_b"]).reshape(B, T, N, H)

    def gate(xx, yy, wcat, b):
        z = jax.nn.sigmoid(xx.reshape(-1, H) @ wcat[:H]
                           + yy.reshape(-1, H) @ wcat[H:] + b).reshape(xx.shape)
        return z * xx + (1.0 - z) * yy

    last = gate(gcn, satt, ps["fc12_w"], ps["fc12_b"])
    gs_b = jnp.broadcast_to(gs_out, (B, T, N, H))
    last = gate(last, gs_b, ps["fc34_w"], ps["fc34_b"])

    pt = params["temporal"]
    xt = jnp.transpose(last, (0, 2, 1, 3))
    ctx = self_attn(xt.reshape(B * N, T, H), pt["wqkv"], pt["bqkv"],
                    pt["wo"], pt["bo"]).reshape(B, N, T, H)

    def layernorm(y, g, bb):
        mu = jnp.mean(y, -1, keepdims=True)
        var = jnp.mean((y - mu) ** 2, -1, keepdims=True)
        return (y - mu) / jnp.sqrt(var + 1e-5) * g + bb

    ctx_ln = layernorm(ctx + xt, pt["ln1_g"], pt["ln1_b"])
    ffh = jnp.maximum(ctx_ln.reshape(-1, H) @ pt["ff_w1"] + pt["ff_b1"], 0.0)
    ff = (ffh @ pt["ff_w2"] + pt["ff_b2"]).reshape(B, N, T, H)
    out_ln = layernorm(ff + ctx_ln, pt["ln2_g"], pt["ln2_b"])
    tmha = jnp.transpose(out_ln, (0, 2, 1, 3))
    return tmha + gt


# ----------------------------------------------------------------------------
if __name__ == "__main__":
    HIDDEN = 32
    HEADS = 4
    BATCH = 2
    STEP = 8           # history_frames
    NUM_OBJECT = 4

    root = jax.random.PRNGKey(0)
    k_params, k_x, k_d, k_h = jax.random.split(root, 4)

    params = init_params(k_params, HIDDEN)
    x = jax.random.normal(k_x, (BATCH, STEP, NUM_OBJECT, HIDDEN), dtype=jnp.float32)
    dist_adj = jax.nn.softmax(
        jax.random.normal(k_d, (NUM_OBJECT, NUM_OBJECT), dtype=jnp.float32), axis=-1)
    heading_adj = jax.nn.softmax(
        jax.random.normal(k_h, (NUM_OBJECT, NUM_OBJECT), dtype=jnp.float32), axis=-1)

    fwd = jax.jit(functools.partial(spatial_temporal_forward, heads=HEADS))
    out = jax.block_until_ready(fwd(params, x, dist_adj, heading_adj))

    with jax.default_matmul_precision("float32"):
        ref = jax.block_until_ready(
            ref_forward(params, x, dist_adj, heading_adj, HEADS))

    assert out.shape == (BATCH, STEP, NUM_OBJECT, HIDDEN)
    max_diff = float(jnp.max(jnp.abs(out - ref)))
    assert max_diff < 5e-4, f"mismatch vs reference: max |diff| = {max_diff}"

    print("KERNEL_OK")
</pallas_src>

<mosaic_0001>
module attributes {stable_mosaic.version = 11 : i64} {
  func.func @_fused_kernel(%arg0: memref<64x32xf32, #tpu.memory_space<vmem>>, %arg1: memref<64x32xf32, #tpu.memory_space<vmem>>, %arg2: memref<64x64xf32, #tpu.memory_space<vmem>>, %arg3: memref<64x64xf32, #tpu.memory_space<vmem>>, %arg4: memref<64x64xf32, #tpu.memory_space<vmem>>, %arg5: memref<64x8xf32, #tpu.memory_space<vmem>>, %arg6: memref<64x64xf32, #tpu.memory_space<vmem>>, %arg7: memref<64x64xf32, #tpu.memory_space<vmem>>, %arg8: memref<8x8xf32, #tpu.memory_space<vmem>>, %arg9: memref<32x128xf32, #tpu.memory_space<vmem>>, %arg10: memref<32x128xf32, #tpu.memory_space<vmem>>, %arg11: memref<1x128xf32, #tpu.memory_space<vmem>>, %arg12: memref<32x96xf32, #tpu.memory_space<vmem>>, %arg13: memref<1x96xf32, #tpu.memory_space<vmem>>, %arg14: memref<32x32xf32, #tpu.memory_space<vmem>>, %arg15: memref<1x32xf32, #tpu.memory_space<vmem>>, %arg16: memref<32x96xf32, #tpu.memory_space<vmem>>, %arg17: memref<1x96xf32, #tpu.memory_space<vmem>>, %arg18: memref<32x32xf32, #tpu.memory_space<vmem>>, %arg19: memref<1x32xf32, #tpu.memory_space<vmem>>, %arg20: memref<160x32xf32, #tpu.memory_space<vmem>>, %arg21: memref<1x32xf32, #tpu.memory_space<vmem>>, %arg22: memref<64x32xf32, #tpu.memory_space<vmem>>, %arg23: memref<1x32xf32, #tpu.memory_space<vmem>>, %arg24: memref<64x32xf32, #tpu.memory_space<vmem>>, %arg25: memref<1x32xf32, #tpu.memory_space<vmem>>, %arg26: memref<32x96xf32, #tpu.memory_space<vmem>>, %arg27: memref<1x96xf32, #tpu.memory_space<vmem>>, %arg28: memref<32x32xf32, #tpu.memory_space<vmem>>, %arg29: memref<1x32xf32, #tpu.memory_space<vmem>>, %arg30: memref<1x32xf32, #tpu.memory_space<vmem>>, %arg31: memref<1x32xf32, #tpu.memory_space<vmem>>, %arg32: memref<1x32xf32, #tpu.memory_space<vmem>>, %arg33: memref<1x32xf32, #tpu.memory_space<vmem>>, %arg34: memref<32x32xf32, #tpu.memory_space<vmem>>, %arg35: memref<1x32xf32, #tpu.memory_space<vmem>>, %arg36: memref<32x32xf32, #tpu.memory_space<vmem>>, %arg37: memref<1x32xf32, #tpu.memory_space<vmem>>, %arg38: memref<64x32xf32, #tpu.memory_space<vmem>>, %arg39: memref<64x32xf32, #tpu.memory_space<vmem>>) attributes {dimension_semantics = [], scalar_prefetch = 0 : i64, scratch_operands = 1 : i64, tpu.core_type = #tpu.core_type<tc>} {
    %c0 = arith.constant 0 : index
    %c0_0 = arith.constant 0 : index
    %0 = vector.load %arg0[%c0, %c0_0] : memref<64x32xf32, #tpu.memory_space<vmem>>, vector<64x32xf32>
    %c0_1 = arith.constant 0 : index
    %c0_2 = arith.constant 0 : index
    %1 = vector.load %arg1[%c0_1, %c0_2] : memref<64x32xf32, #tpu.memory_space<vmem>>, vector<64x32xf32>
    %c0_3 = arith.constant 0 : index
    %c0_4 = arith.constant 0 : index
    %2 = vector.load %arg2[%c0_3, %c0_4] : memref<64x64xf32, #tpu.memory_space<vmem>>, vector<64x64xf32>
    %c0_5 = arith.constant 0 : index
    %c0_6 = arith.constant 0 : index
    %3 = vector.load %arg3[%c0_5, %c0_6] : memref<64x64xf32, #tpu.memory_space<vmem>>, vector<64x64xf32>
    %c0_7 = arith.constant 0 : index
    %c0_8 = arith.constant 0 : index
    %4 = vector.load %arg4[%c0_7, %c0_8] : memref<64x64xf32, #tpu.memory_space<vmem>>, vector<64x64xf32>
    %c0_9 = arith.constant 0 : index
    %c0_10 = arith.constant 0 : index
    %5 = vector.load %arg5[%c0_9, %c0_10] : memref<64x8xf32, #tpu.memory_space<vmem>>, vector<64x8xf32>
    %c0_11 = arith.constant 0 : index
    %c0_12 = arith.constant 0 : index
    %6 = vector.load %arg6[%c0_11, %c0_12] : memref<64x64xf32, #tpu.memory_space<vmem>>, vector<64x64xf32>
    %c0_13 = arith.constant 0 : index
    %c0_14 = arith.constant 0 : index
    %7 = vector.load %arg7[%c0_13, %c0_14] : memref<64x64xf32, #tpu.memory_space<vmem>>, vector<64x64xf32>
    %c0_15 = arith.constant 0 : index
    %c0_16 = arith.constant 0 : index
    %8 = vector.load %arg8[%c0_15, %c0_16] : memref<8x8xf32, #tpu.memory_space<vmem>>, vector<8x8xf32>
    %c0_17 = arith.constant 0 : index
    %c0_18 = arith.constant 0 : index
    %9 = vector.load %arg9[%c0_17, %c0_18] : memref<32x128xf32, #tpu.memory_space<vmem>>, vector<32x128xf32>
    %c0_19 = arith.constant 0 : index
    %c0_20 = arith.constant 0 : index
    %10 = vector.load %arg10[%c0_19, %c0_20] : memref<32x128xf32, #tpu.memory_space<vmem>>, vector<32x128xf32>
    %c0_21 = arith.constant 0 : index
    %c0_22 = arith.constant 0 : index
    %11 = vector.load %arg11[%c0_21, %c0_22] : memref<1x128xf32, #tpu.memory_space<vmem>>, vector<1x128xf32>
    %c0_23 = arith.constant 0 : index
    %c0_24 = arith.constant 0 : index
    %12 = vector.load %arg12[%c0_23, %c0_24] : memref<32x96xf32, #tpu.memory_space<vmem>>, vector<32x96xf32>
    %c0_25 = arith.constant 0 : index
    %c0_26 = arith.constant 0 : index
    %13 = vector.load %arg13[%c0_25, %c0_26] : memref<1x96xf32, #tpu.memory_space<vmem>>, vector<1x96xf32>
    %c0_27 = arith.constant 0 : index
    %c0_28 = arith.constant 0 : index
    %14 = vector.load %arg14[%c0_27, %c0_28] : memref<32x32xf32, #tpu.memory_space<vmem>>, vector<32x32xf32>
    %c0_29 = arith.constant 0 : index
    %c0_30 = arith.constant 0 : index
    %15 = vector.load %arg15[%c0_29, %c0_30] : memref<1x32xf32, #tpu.memory_space<vmem>>, vector<1x32xf32>
    %c0_31 = arith.constant 0 : index
    %c0_32 = arith.constant 0 : index
    %16 = vector.load %arg16[%c0_31, %c0_32] : memref<32x96xf32, #tpu.memory_space<vmem>>, vector<32x96xf32>
    %c0_33 = arith.constant 0 : index
    %c0_34 = arith.constant 0 : index
    %17 = vector.load %arg17[%c0_33, %c0_34] : memref<1x96xf32, #tpu.memory_space<vmem>>, vector<1x96xf32>
    %c0_35 = arith.constant 0 : index
    %c0_36 = arith.constant 0 : index
    %18 = vector.load %arg18[%c0_35, %c0_36] : memref<32x32xf32, #tpu.memory_space<vmem>>, vector<32x32xf32>
    %c0_37 = arith.constant 0 : index
    %c0_38 = arith.constant 0 : index
    %19 = vector.load %arg19[%c0_37, %c0_38] : memref<1x32xf32, #tpu.memory_space<vmem>>, vector<1x32xf32>
    %c0_39 = arith.constant 0 : index
    %c0_40 = arith.constant 0 : index
    %20 = vector.load %arg20[%c0_39, %c0_40] : memref<160x32xf32, #tpu.memory_space<vmem>>, vector<160x32xf32>
    %c0_41 = arith.constant 0 : index
    %c0_42 = arith.constant 0 : index
    %21 = vector.load %arg21[%c0_41, %c0_42] : memref<1x32xf32, #tpu.memory_space<vmem>>, vector<1x32xf32>
    %c0_43 = arith.constant 0 : index
    %c0_44 = arith.constant 0 : index
    %22 = vector.load %arg22[%c0_43, %c0_44] : memref<64x32xf32, #tpu.memory_space<vmem>>, vector<64x32xf32>
    %c0_45 = arith.constant 0 : index
    %c0_46 = arith.constant 0 : index
    %23 = vector.load %arg23[%c0_45, %c0_46] : memref<1x32xf32, #tpu.memory_space<vmem>>, vector<1x32xf32>
    %c0_47 = arith.constant 0 : index
    %c0_48 = arith.constant 0 : index
    %24 = vector.load %arg24[%c0_47, %c0_48] : memref<64x32xf32, #tpu.memory_space<vmem>>, vector<64x32xf32>
    %c0_49 = arith.constant 0 : index
    %c0_50 = arith.constant 0 : index
    %25 = vector.load %arg25[%c0_49, %c0_50] : memref<1x32xf32, #tpu.memory_space<vmem>>, vector<1x32xf32>
    %c0_51 = arith.constant 0 : index
    %c0_52 = arith.constant 0 : index
    %26 = vector.load %arg26[%c0_51, %c0_52] : memref<32x96xf32, #tpu.memory_space<vmem>>, vector<32x96xf32>
    %c0_53 = arith.constant 0 : index
    %c0_54 = arith.constant 0 : index
    %27 = vector.load %arg27[%c0_53, %c0_54] : memref<1x96xf32, #tpu.memory_space<vmem>>, vector<1x96xf32>
    %c0_55 = arith.constant 0 : index
    %c0_56 = arith.constant 0 : index
    %28 = vector.load %arg28[%c0_55, %c0_56] : memref<32x32xf32, #tpu.memory_space<vmem>>, vector<32x32xf32>
    %c0_57 = arith.constant 0 : index
    %c0_58 = arith.constant 0 : index
    %29 = vector.load %arg29[%c0_57, %c0_58] : memref<1x32xf32, #tpu.memory_space<vmem>>, vector<1x32xf32>
    %c0_59 = arith.constant 0 : index
    %c0_60 = arith.constant 0 : index
    %30 = vector.load %arg30[%c0_59, %c0_60] : memref<1x32xf32, #tpu.memory_space<vmem>>, vector<1x32xf32>
    %c0_61 = arith.constant 0 : index
    %c0_62 = arith.constant 0 : index
    %31 = vector.load %arg31[%c0_61, %c0_62] : memref<1x32xf32, #tpu.memory_space<vmem>>, vector<1x32xf32>
    %c0_63 = arith.constant 0 : index
    %c0_64 = arith.constant 0 : index
    %32 = vector.load %arg32[%c0_63, %c0_64] : memref<1x32xf32, #tpu.memory_space<vmem>>, vector<1x32xf32>
    %c0_65 = arith.constant 0 : index
    %c0_66 = arith.constant 0 : index
    %33 = vector.load %arg33[%c0_65, %c0_66] : memref<1x32xf32, #tpu.memory_space<vmem>>, vector<1x32xf32>
    %c0_67 = arith.constant 0 : index
    %c0_68 = arith.constant 0 : index
    %34 = vector.load %arg34[%c0_67, %c0_68] : memref<32x32xf32, #tpu.memory_space<vmem>>, vector<32x32xf32>
    %c0_69 = arith.constant 0 : index
    %c0_70 = arith.constant 0 : index
    %35 = vector.load %arg35[%c0_69, %c0_70] : memref<1x32xf32, #tpu.memory_space<vmem>>, vector<1x32xf32>
    %c0_71 = arith.constant 0 : index
    %c0_72 = arith.constant 0 : index
    %36 = vector.load %arg36[%c0_71, %c0_72] : memref<32x32xf32, #tpu.memory_space<vmem>>, vector<32x32xf32>
    %c0_73 = arith.constant 0 : index
    %c0_74 = arith.constant 0 : index
    %37 = vector.load %arg37[%c0_73, %c0_74] : memref<1x32xf32, #tpu.memory_space<vmem>>, vector<1x32xf32>
    %cst = arith.constant dense<0.000000e+00> : vector<64x128xf32>
    %38 = tpu.matmul %1, %9, %cst {dimension_numbers = #tpu.dot_dimension_numbers<[1], [0], [0], [1], [0, 0, 1, 1], [], []>} : vector<64x32xf32>, vector<32x128xf32>, vector<64x128xf32> -> vector<64x128xf32>
    %39 = vector.broadcast %11 : vector<1x128xf32> to vector<64x128xf32>
    %40 = arith.addf %38, %39 : vector<64x128xf32>
    %cst_75 = arith.constant 0.000000e+00 : f32
    %41 = vector.broadcast %cst_75 : f32 to vector<8x32xf32>
    %cst_76 = arith.constant 0.000000e+00 : f32
    %42 = vector.broadcast %cst_76 : f32 to vector<8x32xf32>
    %43 = vector.extract_strided_slice %40 {offsets = [0, 0], sizes = [8, 128], strides = [1, 1]} : vector<64x128xf32> to vector<8x128xf32>
    %cst_77 = arith.constant dense<0.000000e+00> : vector<8x128xf32>
    %44 = tpu.matmul %41, %10, %cst_77 {dimension_numbers = #tpu.dot_dimension_numbers<[1], [0], [0], [1], [0, 0, 1, 1], [], []>} : vector<8x32xf32>, vector<32x128xf32>, vector<8x128xf32> -> vector<8x128xf32>
    %45 = arith.addf %43, %44 : vector<8x128xf32>
    %46 = vector.extract_strided_slice %45 {offsets = [0, 0], sizes = [8, 32], strides = [1, 1]} : vector<8x128xf32> to vector<8x32xf32>
    %cst_78 = arith.constant 5.000000e-01 : f32
    %47 = vector.broadcast %cst_78 : f32 to vector<8x32xf32>
    %48 = arith.mulf %47, %46 : vector<8x32xf32>
    %49 = math.tanh %48 : vector<8x32xf32>
    %cst_79 = arith.constant 1.000000e+00 : f32
    %50 = vector.broadcast %cst_79 : f32 to vector<8x32xf32>
    %51 = arith.addf %49, %50 : vector<8x32xf32>
    %cst_80 = arith.constant 5.000000e-01 : f32
    %52 = vector.broadcast %cst_80 : f32 to vector<8x32xf32>
    %53 = arith.mulf %52, %51 : vector<8x32xf32>
    %54 = vector.extract_strided_slice %45 {offsets = [0, 32], sizes = [8, 32], strides = [1, 1]} : vector<8x128xf32> to vector<8x32xf32>
    %cst_81 = arith.constant 5.000000e-01 : f32
    %55 = vector.broadcast %cst_81 : f32 to vector<8x32xf32>
    %56 = arith.mulf %55, %54 : vector<8x32xf32>
    %57 = math.tanh %56 : vector<8x32xf32>
    %cst_82 = arith.constant 1.000000e+00 : f32
    %58 = vector.broadcast %cst_82 : f32 to vector<8x32xf32>
    %59 = arith.addf %57, %58 : vector<8x32xf32>
    %cst_83 = arith.constant 5.000000e-01 : f32
    %60 = vector.broadcast %cst_83 : f32 to vector<8x32xf32>
    %61 = arith.mulf %60, %59 : vector<8x32xf32>
    %62 = vector.extract_strided_slice %45 {offsets = [0, 64], sizes = [8, 32], strides = [1, 1]} : vector<8x128xf32> to vector<8x32xf32>
    %63 = math.tanh %62 : vector<8x32xf32>
    %64 = vector.extract_strided_slice %45 {offsets = [0, 96], sizes = [8, 32], strides = [1, 1]} : vector<8x128xf32> to vector<8x32xf32>
    %cst_84 = arith.constant 5.000000e-01 : f32
    %65 = vector.broadcast %cst_84 : f32 to vector<8x32xf32>
    %66 = arith.mulf %65, %64 : vector<8x32xf32>
    %67 = math.tanh %66 : vector<8x32xf32>
    %cst_85 = arith.constant 1.000000e+00 : f32
    %68 = vector.broadcast %cst_85 : f32 to vector<8x32xf32>
    %69 = arith.addf %67, %68 : vector<8x32xf32>
    %cst_86 = arith.constant 5.000000e-01 : f32
    %70 = vector.broadcast %cst_86 : f32 to vector<8x32xf32>
    %71 = arith.mulf %70, %69 : vector<8x32xf32>
    %72 = arith.mulf %61, %42 : vector<8x32xf32>
    %73 = arith.mulf %53, %63 : vector<8x32xf32>
    %74 = arith.addf %72, %73 : vector<8x32xf32>
    %75 = math.tanh %74 : vector<8x32xf32>
    %76 = arith.mulf %71, %75 : vector<8x32xf32>
    %c0_87 = arith.constant 0 : index
    %c0_88 = arith.constant 0 : index
    %77 = vector.load %arg39[%c0_87, %c0_88] : memref<64x32xf32, #tpu.memory_space<vmem>>, vector<8x32xf32>
    tpu.vector_store %arg39[%c0_87, %c0_88], %76 {strides = array<i32>} : memref<64x32xf32, #tpu.memory_space<vmem>>, vector<8x32xf32>,
    %78 = vector.extract_strided_slice %40 {offsets = [8, 0], sizes = [8, 128], strides = [1, 1]} : vector<64x128xf32> to vector<8x128xf32>
    %cst_89 = arith.constant dense<0.000000e+00> : vector<8x128xf32>
    %79 = tpu.matmul %76, %10, %cst_89 {dimension_numbers = #tpu.dot_dimension_numbers<[1], [0], [0], [1], [0, 0, 1, 1], [], []>} : vector<8x32xf32>, vector<32x128xf32>, vector<8x128xf32> -> vector<8x128xf32>
    %80 = arith.addf %78, %79 : vector<8x128xf32>
    %81 = vector.extract_strided_slice %80 {offsets = [0, 0], sizes = [8, 32], strides = [1, 1]} : vector<8x128xf32> to vector<8x32xf32>
    %cst_90 = arith.constant 5.000000e-01 : f32
    %82 = vector.broadcast %cst_90 : f32 to vector<8x32xf32>
    %83 = arith.mulf %82, %81 : vector<8x32xf32>
    %84 = math.tanh %83 : vector<8x32xf32>
    %cst_91 = arith.constant 1.000000e+00 : f32
    %85 = vector.broadcast %cst_91 : f32 to vector<8x32xf32>
    %86 = arith.addf %84, %85 : vector<8x32xf32>
    %cst_92 = arith.constant 5.000000e-01 : f32
    %87 = vector.broadcast %cst_92 : f32 to vector<8x32xf32>
    %88 = arith.mulf %87, %86 : vector<8x32xf32>
    %89 = vector.extract_strided_slice %80 {offsets = [0, 32], sizes = [8, 32], strides = [1, 1]} : vector<8x128xf32> to vector<8x32xf32>
    %cst_93 = arith.constant 5.000000e-01 : f32
    %90 = vector.broadcast %cst_93 : f32 to vector<8x32xf32>
    %91 = arith.mulf %90, %89 : vector<8x32xf32>
    %92 = math.tanh %91 : vector<8x32xf32>
    %cst_94 = arith.constant 1.000000e+00 : f32
    %93 = vector.broadcast %cst_94 : f32 to vector<8x32xf32>
    %94 = arith.addf %92, %93 : vector<8x32xf32>
    %cst_95 = arith.constant 5.000000e-01 : f32
    %95 = vector.broadcast %cst_95 : f32 to vector<8x32xf32>
    %96 = arith.mulf %95, %94 : vector<8x32xf32>
    %97 = vector.extract_strided_slice %80 {offsets = [0, 64], sizes = [8, 32], strides = [1, 1]} : vector<8x128xf32> to vector<8x32xf32>
    %98 = math.tanh %97 : vector<8x32xf32>
    %99 = vector.extract_strided_slice %80 {offsets = [0, 96], sizes = [8, 32], strides = [1, 1]} : vector<8x128xf32> to vector<8x32xf32>
    %cst_96 = arith.constant 5.000000e-01 : f32
    %100 = vector.broadcast %cst_96 : f32 to vector<8x32xf32>
    %101 = arith.mulf %100, %99 : vector<8x32xf32>
    %102 = math.tanh %101 : vector<8x32xf32>
    %cst_97 = arith.constant 1.000000e+00 : f32
    %103 = vector.broadcast %cst_97 : f32 to vector<8x32xf32>
    %104 = arith.addf %102, %103 : vector<8x32xf32>
    %cst_98 = arith.constant 5.000000e-01 : f32
    %105 = vector.broadcast %cst_98 : f32 to vector<8x32xf32>
    %106 = arith.mulf %105, %104 : vector<8x32xf32>
    %107 = arith.mulf %96, %74 : vector<8x32xf32>
    %108 = arith.mulf %88, %98 : vector<8x32xf32>
    %109 = arith.addf %107, %108 : vector<8x32xf32>
    %110 = math.tanh %109 : vector<8x32xf32>
    %111 = arith.mulf %106, %110 : vector<8x32xf32>
    %c8 = arith.constant 8 : index
    %c0_99 = arith.constant 0 : index
    %112 = vector.load %arg39[%c8, %c0_99] : memref<64x32xf32, #tpu.memory_space<vmem>>, vector<8x32xf32>
    tpu.vector_store %arg39[%c8, %c0_99], %111 {strides = array<i32>} : memref<64x32xf32, #tpu.memory_space<vmem>>, vector<8x32xf32>,
    %113 = vector.extract_strided_slice %40 {offsets = [16, 0], sizes = [8, 128], strides = [1, 1]} : vector<64x128xf32> to vector<8x128xf32>
    %cst_100 = arith.constant dense<0.000000e+00> : vector<8x128xf32>
    %114 = tpu.matmul %111, %10, %cst_100 {dimension_numbers = #tpu.dot_dimension_numbers<[1], [0], [0], [1], [0, 0, 1, 1], [], []>} : vector<8x32xf32>, vector<32x128xf32>, vector<8x128xf32> -> vector<8x128xf32>
    %115 = arith.addf %113, %114 : vector<8x128xf32>
    %116 = vector.extract_strided_slice %115 {offsets = [0, 0], sizes = [8, 32], strides = [1, 1]} : vector<8x128xf32> to vector<8x32xf32>
    %cst_101 = arith.constant 5.000000e-01 : f32
    %117 = vector.broadcast %cst_101 : f32 to vector<8x32xf32>
    %118 = arith.mulf %117, %116 : vector<8x32xf32>
    %119 = math.tanh %118 : vector<8x32xf32>
    %cst_102 = arith.constant 1.000000e+00 : f32
    %120 = vector.broadcast %cst_102 : f32 to vector<8x32xf32>
    %121 = arith.addf %119, %120 : vector<8x32xf32>
    %cst_103 = arith.constant 5.000000e-01 : f32
    %122 = vector.broadcast %cst_103 : f32 to vector<8x32xf32>
    %123 = arith.mulf %122, %121 : vector<8x32xf32>
    %124 = vector.extract_strided_slice %115 {offsets = [0, 32], sizes = [8, 32], strides = [1, 1]} : vector<8x128xf32> to vector<8x32xf32>
    %cst_104 = arith.constant 5.000000e-01 : f32
    %125 = vector.broadcast %cst_104 : f32 to vector<8x32xf32>
    %126 = arith.mulf %125, %124 : vector<8x32xf32>
    %127 = math.tanh %126 : vector<8x32xf32>
    %cst_105 = arith.constant 1.000000e+00 : f32
    %128 = vector.broadcast %cst_105 : f32 to vector<8x32xf32>
    %129 = arith.addf %127, %128 : vector<8x32xf32>
    %cst_106 = arith.constant 5.000000e-01 : f32
    %130 = vector.broadcast %cst_106 : f32 to vector<8x32xf32>
    %131 = arith.mulf %130, %129 : vector<8x32xf32>
    %132 = vector.extract_strided_slice %115 {offsets = [0, 64], sizes = [8, 32], strides = [1, 1]} : vector<8x128xf32> to vector<8x32xf32>
    %133 = math.tanh %132 : vector<8x32xf32>
    %134 = vector.extract_strided_slice %115 {offsets = [0, 96], sizes = [8, 32], strides = [1, 1]} : vector<8x128xf32> to vector<8x32xf32>
    %cst_107 = arith.constant 5.000000e-01 : f32
    %135 = vector.broadcast %cst_107 : f32 to vector<8x32xf32>
    %136 = arith.mulf %135, %134 : vector<8x32xf32>
    %137 = math.tanh %136 : vector<8x32xf32>
    %cst_108 = arith.constant 1.000000e+00 : f32
    %138 = vector.broadcast %cst_108 : f32 to vector<8x32xf32>
    %139 = arith.addf %137, %138 : vector<8x32xf32>
    %cst_109 = arith.constant 5.000000e-01 : f32
    %140 = vector.broadcast %cst_109 : f32 to vector<8x32xf32>
    %141 = arith.mulf %140, %139 : vector<8x32xf32>
    %142 = arith.mulf %131, %109 : vector<8x32xf32>
    %143 = arith.mulf %123, %133 : vector<8x32xf32>
    %144 = arith.addf %142, %143 : vector<8x32xf32>
    %145 = math.tanh %144 : vector<8x32xf32>
    %146 = arith.mulf %141, %145 : vector<8x32xf32>
    %c16 = arith.constant 16 : index
    %c0_110 = arith.constant 0 : index
    %147 = vector.load %arg39[%c16, %c0_110] : memref<64x32xf32, #tpu.memory_space<vmem>>, vector<8x32xf32>
    tpu.vector_store %arg39[%c16, %c0_110], %146 {strides = array<i32>} : memref<64x32xf32, #tpu.memory_space<vmem>>, vector<8x32xf32>,
    %148 = vector.extract_strided_slice %40 {offsets = [24, 0], sizes = [8, 128], strides = [1, 1]} : vector<64x128xf32> to vector<8x128xf32>
    %cst_111 = arith.constant dense<0.000000e+00> : vector<8x128xf32>
    %149 = tpu.matmul %146, %10, %cst_111 {dimension_numbers = #tpu.dot_dimension_numbers<[1], [0], [0], [1], [0, 0, 1, 1], [], []>} : vector<8x32xf32>, vector<32x128xf32>, vector<8x128xf32> -> vector<8x128xf32>
    %150 = arith.addf %148, %149 : vector<8x128xf32>
    %151 = vector.extract_strided_slice %150 {offsets = [0, 0], sizes = [8, 32], strides = [1, 1]} : vector<8x128xf32> to vector<8x32xf32>
    %cst_112 = arith.constant 5.000000e-01 : f32
    %152 = vector.broadcast %cst_112 : f32 to vector<8x32xf32>
    %153 = arith.mulf %152, %151 : vector<8x32xf32>
    %154 = math.tanh %153 : vector<8x32xf32>
    %cst_113 = arith.constant 1.000000e+00 : f32
    %155 = vector.broadcast %cst_113 : f32 to vector<8x32xf32>
    %156 = arith.addf %154, %155 : vector<8x32xf32>
    %cst_114 = arith.constant 5.000000e-01 : f32
    %157 = vector.broadcast %cst_114 : f32 to vector<8x32xf32>
    %158 = arith.mulf %157, %156 : vector<8x32xf32>
    %159 = vector.extract_strided_slice %150 {offsets = [0, 32], sizes = [8, 32], strides = [1, 1]} : vector<8x128xf32> to vector<8x32xf32>
    %cst_115 = arith.constant 5.000000e-01 : f32
    %160 = vector.broadcast %cst_115 : f32 to vector<8x32xf32>
    %161 = arith.mulf %160, %159 : vector<8x32xf32>
    %162 = math.tanh %161 : vector<8x32xf32>
    %cst_116 = arith.constant 1.000000e+00 : f32
    %163 = vector.broadcast %cst_116 : f32 to vector<8x32xf32>
    %164 = arith.addf %162, %163 : vector<8x32xf32>
    %cst_117 = arith.constant 5.000000e-01 : f32
    %165 = vector.broadcast %cst_117 : f32 to vector<8x32xf32>
    %166 = arith.mulf %165, %164 : vector<8x32xf32>
    %167 = vector.extract_strided_slice %150 {offsets = [0, 64], sizes = [8, 32], strides = [1, 1]} : vector<8x128xf32> to vector<8x32xf32>
    %168 = math.tanh %167 : vector<8x32xf32>
    %169 = vector.extract_strided_slice %150 {offsets = [0, 96], sizes = [8, 32], strides = [1, 1]} : vector<8x128xf32> to vector<8x32xf32>
    %cst_118 = arith.constant 5.000000e-01 : f32
    %170 = vector.broadcast %cst_118 : f32 to vector<8x32xf32>
    %171 = arith.mulf %170, %169 : vector<8x32xf32>
    %172 = math.tanh %171 : vector<8x32xf32>
    %cst_119 = arith.constant 1.000000e+00 : f32
    %173 = vector.broadcast %cst_119 : f32 to vector<8x32xf32>
    %174 = arith.addf %172, %173 : vector<8x32xf32>
    %cst_120 = arith.constant 5.000000e-01 : f32
    %175 = vector.broadcast %cst_120 : f32 to vector<8x32xf32>
    %176 = arith.mulf %175, %174 : vector<8x32xf32>
    %177 = arith.mulf %166, %144 : vector<8x32xf32>
    %178 = arith.mulf %158, %168 : vector<8x32xf32>
    %179 = arith.addf %177, %178 : vector<8x32xf32>
    %180 = math.tanh %179 : vector<8x32xf32>
    %181 = arith.mulf %176, %180 : vector<8x32xf32>
    %c24 = arith.constant 24 : index
    %c0_121 = arith.constant 0 : index
    %182 = vector.load %arg39[%c24, %c0_121] : memref<64x32xf32, #tpu.memory_space<vmem>>, vector<8x32xf32>
    tpu.vector_store %arg39[%c24, %c0_121], %181 {strides = array<i32>} : memref<64x32xf32, #tpu.memory_space<vmem>>, vector<8x32xf32>,
    %183 = vector.extract_strided_slice %40 {offsets = [32, 0], sizes = [8, 128], strides = [1, 1]} : vector<64x128xf32> to vector<8x128xf32>
    %cst_122 = arith.constant dense<0.000000e+00> : vector<8x128xf32>
    %184 = tpu.matmul %181, %10, %cst_122 {dimension_numbers = #tpu.dot_dimension_numbers<[1], [0], [0], [1], [0, 0, 1, 1], [], []>} : vector<8x32xf32>, vector<32x128xf32>, vector<8x128xf32> -> vector<8x128xf32>
    %185 = arith.addf %183, %184 : vector<8x128xf32>
    %186 = vector.extract_strided_slice %185 {offsets = [0, 0], sizes = [8, 32], strides = [1, 1]} : vector<8x128xf32> to vector<8x32xf32>
    %cst_123 = arith.constant 5.000000e-01 : f32
    %187 = vector.broadcast %cst_123 : f32 to vector<8x32xf32>
    %188 = arith.mulf %187, %186 : vector<8x32xf32>
    %189 = math.tanh %188 : vector<8x32xf32>
    %cst_124 = arith.constant 1.000000e+00 : f32
    %190 = vector.broadcast %cst_124 : f32 to vector<8x32xf32>
    %191 = arith.addf %189, %190 : vector<8x32xf32>
    %cst_125 = arith.constant 5.000000e-01 : f32
    %192 = vector.broadcast %cst_125 : f32 to vector<8x32xf32>
    %193 = arith.mulf %192, %191 : vector<8x32xf32>
    %194 = vector.extract_strided_slice %185 {offsets = [0, 32], sizes = [8, 32], strides = [1, 1]} : vector<8x128xf32> to vector<8x32xf32>
    %cst_126 = arith.constant 5.000000e-01 : f32
    %195 = vector.broadcast %cst_126 : f32 to vector<8x32xf32>
    %196 = arith.mulf %195, %194 : vector<8x32xf32>
    %197 = math.tanh %196 : vector<8x32xf32>
    %cst_127 = arith.constant 1.000000e+00 : f32
    %198 = vector.broadcast %cst_127 : f32 to vector<8x32xf32>
    %199 = arith.addf %197, %198 : vector<8x32xf32>
    %cst_128 = arith.constant 5.000000e-01 : f32
    %200 = vector.broadcast %cst_128 : f32 to vector<8x32xf32>
    %201 = arith.mulf %200, %199 : vector<8x32xf32>
    %202 = vector.extract_strided_slice %185 {offsets = [0, 64], sizes = [8, 32], strides = [1, 1]} : vector<8x128xf32> to vector<8x32xf32>
    %203 = math.tanh %202 : vector<8x32xf32>
    %204 = vector.extract_strided_slice %185 {offsets = [0, 96], sizes = [8, 32], strides = [1, 1]} : vector<8x128xf32> to vector<8x32xf32>
    %cst_129 = arith.constant 5.000000e-01 : f32
    %205 = vector.broadcast %cst_129 : f32 to vector<8x32xf32>
    %206 = arith.mulf %205, %204 : vector<8x32xf32>
    %207 = math.tanh %206 : vector<8x32xf32>
    %cst_130 = arith.constant 1.000000e+00 : f32
    %208 = vector.broadcast %cst_130 : f32 to vector<8x32xf32>
    %209 = arith.addf %207, %208 : vector<8x32xf32>
    %cst_131 = arith.constant 5.000000e-01 : f32
    %210 = vector.broadcast %cst_131 : f32 to vector<8x32xf32>
    %211 = arith.mulf %210, %209 : vector<8x32xf32>
    %212 = arith.mulf %201, %179 : vector<8x32xf32>
    %213 = arith.mulf %193, %203 : vector<8x32xf32>
    %214 = arith.addf %212, %213 : vector<8x32xf32>
    %215 = math.tanh %214 : vector<8x32xf32>
    %216 = arith.mulf %211, %215 : vector<8x32xf32>
    %c32 = arith.constant 32 : index
    %c0_132 = arith.constant 0 : index
    %217 = vector.load %arg39[%c32, %c0_132] : memref<64x32xf32, #tpu.memory_space<vmem>>, vector<8x32xf32>
    tpu.vector_store %arg39[%c32, %c0_132], %216 {strides = array<i32>} : memref<64x32xf32, #tpu.memory_space<vmem>>, vector<8x32xf32>,
    %218 = vector.extract_strided_slice %40 {offsets = [40, 0], sizes = [8, 128], strides = [1, 1]} : vector<64x128xf32> to vector<8x128xf32>
    %cst_133 = arith.constant dense<0.000000e+00> : vector<8x128xf32>
    %219 = tpu.matmul %216, %10, %cst_133 {dimension_numbers = #tpu.dot_dimension_numbers<[1], [0], [0], [1], [0, 0, 1, 1], [], []>} : vector<8x32xf32>, vector<32x128xf32>, vector<8x128xf32> -> vector<8x128xf32>
    %220 = arith.addf %218, %219 : vector<8x128xf32>
    %221 = vector.extract_strided_slice %220 {offsets = [0, 0], sizes = [8, 32], strides = [1, 1]} : vector<8x128xf32> to vector<8x32xf32>
    %cst_134 = arith.constant 5.000000e-01 : f32
    %222 = vector.broadcast %cst_134 : f32 to vector<8x32xf32>
    %223 = arith.mulf %222, %221 : vector<8x32xf32>
    %224 = math.tanh %223 : vector<8x32xf32>
    %cst_135 = arith.constant 1.000000e+00 : f32
    %225 = vector.broadcast %cst_135 : f32 to vector<8x32xf32>
    %226 = arith.addf %224, %225 : vector<8x32xf32>
    %cst_136 = arith.constant 5.000000e-01 : f32
    %227 = vector.broadcast %cst_136 : f32 to vector<8x32xf32>
    %228 = arith.mulf %227, %226 : vector<8x32xf32>
    %229 = vector.extract_strided_slice %220 {offsets = [0, 32], sizes = [8, 32], strides = [1, 1]} : vector<8x128xf32> to vector<8x32xf32>
    %cst_137 = arith.constant 5.000000e-01 : f32
    %230 = vector.broadcast %cst_137 : f32 to vector<8x32xf32>
    %231 = arith.mulf %230, %229 : vector<8x32xf32>
    %232 = math.tanh %231 : vector<8x32xf32>
    %cst_138 = arith.constant 1.000000e+00 : f32
    %233 = vector.broadcast %cst_138 : f32 to vector<8x32xf32>
    %234 = arith.addf %232, %233 : vector<8x32xf32>
    %cst_139 = arith.constant 5.000000e-01 : f32
    %235 = vector.broadcast %cst_139 : f32 to vector<8x32xf32>
    %236 = arith.mulf %235, %234 : vector<8x32xf32>
    %237 = vector.extract_strided_slice %220 {offsets = [0, 64], sizes = [8, 32], strides = [1, 1]} : vector<8x128xf32> to vector<8x32xf32>
    %238 = math.tanh %237 : vector<8x32xf32>
    %239 = vector.extract_strided_slice %220 {offsets = [0, 96], sizes = [8, 32], strides = [1, 1]} : vector<8x128xf32> to vector<8x32xf32>
    %cst_140 = arith.constant 5.000000e-01 : f32
    %240 = vector.broadcast %cst_140 : f32 to vector<8x32xf32>
    %241 = arith.mulf %240, %239 : vector<8x32xf32>
    %242 = math.tanh %241 : vector<8x32xf32>
    %cst_141 = arith.constant 1.000000e+00 : f32
    %243 = vector.broadcast %cst_141 : f32 to vector<8x32xf32>
    %244 = arith.addf %242, %243 : vector<8x32xf32>
    %cst_142 = arith.constant 5.000000e-01 : f32
    %245 = vector.broadcast %cst_142 : f32 to vector<8x32xf32>
    %246 = arith.mulf %245, %244 : vector<8x32xf32>
    %247 = arith.mulf %236, %214 : vector<8x32xf32>
    %248 = arith.mulf %228, %238 : vector<8x32xf32>
    %249 = arith.addf %247, %248 : vector<8x32xf32>
    %250 = math.tanh %249 : vector<8x32xf32>
    %251 = arith.mulf %246, %250 : vector<8x32xf32>
    %c40 = arith.constant 40 : index
    %c0_143 = arith.constant 0 : index
    %252 = vector.load %arg39[%c40, %c0_143] : memref<64x32xf32, #tpu.memory_space<vmem>>, vector<8x32xf32>
    tpu.vector_store %arg39[%c40, %c0_143], %251 {strides = array<i32>} : memref<64x32xf32, #tpu.memory_space<vmem>>, vector<8x32xf32>,
    %253 = vector.extract_strided_slice %40 {offsets = [48, 0], sizes = [8, 128], strides = [1, 1]} : vector<64x128xf32> to vector<8x128xf32>
    %cst_144 = arith.constant dense<0.000000e+00> : vector<8x128xf32>
    %254 = tpu.matmul %251, %10, %cst_144 {dimension_numbers = #tpu.dot_dimension_numbers<[1], [0], [0], [1], [0, 0, 1, 1], [], []>} : vector<8x32xf32>, vector<32x128xf32>, vector<8x128xf32> -> vector<8x128xf32>
    %255 = arith.addf %253, %254 : vector<8x128xf32>
    %256 = vector.extract_strided_slice %255 {offsets = [0, 0], sizes = [8, 32], strides = [1, 1]} : vector<8x128xf32> to vector<8x32xf32>
    %cst_145 = arith.constant 5.000000e-01 : f32
    %257 = vector.broadcast %cst_145 : f32 to vector<8x32xf32>
    %258 = arith.mulf %257, %256 : vector<8x32xf32>
    %259 = math.tanh %258 : vector<8x32xf32>
    %cst_146 = arith.constant 1.000000e+00 : f32
    %260 = vector.broadcast %cst_146 : f32 to vector<8x32xf32>
    %261 = arith.addf %259, %260 : vector<8x32xf32>
    %cst_147 = arith.constant 5.000000e-01 : f32
    %262 = vector.broadcast %cst_147 : f32 to vector<8x32xf32>
    %263 = arith.mulf %262, %261 : vector<8x32xf32>
    %264 = vector.extract_strided_slice %255 {offsets = [0, 32], sizes = [8, 32], strides = [1, 1]} : vector<8x128xf32> to vector<8x32xf32>
    %cst_148 = arith.constant 5.000000e-01 : f32
    %265 = vector.broadcast %cst_148 : f32 to vector<8x32xf32>
    %266 = arith.mulf %265, %264 : vector<8x32xf32>
    %267 = math.tanh %266 : vector<8x32xf32>
    %cst_149 = arith.constant 1.000000e+00 : f32
    %268 = vector.broadcast %cst_149 : f32 to vector<8x32xf32>
    %269 = arith.addf %267, %268 : vector<8x32xf32>
    %cst_150 = arith.constant 5.000000e-01 : f32
    %270 = vector.broadcast %cst_150 : f32 to vector<8x32xf32>
    %271 = arith.mulf %270, %269 : vector<8x32xf32>
    %272 = vector.extract_strided_slice %255 {offsets = [0, 64], sizes = [8, 32], strides = [1, 1]} : vector<8x128xf32> to vector<8x32xf32>
    %273 = math.tanh %272 : vector<8x32xf32>
    %274 = vector.extract_strided_slice %255 {offsets = [0, 96], sizes = [8, 32], strides = [1, 1]} : vector<8x128xf32> to vector<8x32xf32>
    %cst_151 = arith.constant 5.000000e-01 : f32
    %275 = vector.broadcast %cst_151 : f32 to vector<8x32xf32>
    %276 = arith.mulf %275, %274 : vector<8x32xf32>
    %277 = math.tanh %276 : vector<8x32xf32>
    %cst_152 = arith.constant 1.000000e+00 : f32
    %278 = vector.broadcast %cst_152 : f32 to vector<8x32xf32>
    %279 = arith.addf %277, %278 : vector<8x32xf32>
    %cst_153 = arith.constant 5.000000e-01 : f32
    %280 = vector.broadcast %cst_153 : f32 to vector<8x32xf32>
    %281 = arith.mulf %280, %279 : vector<8x32xf32>
    %282 = arith.mulf %271, %249 : vector<8x32xf32>
    %283 = arith.mulf %263, %273 : vector<8x32xf32>
    %284 = arith.addf %282, %283 : vector<8x32xf32>
    %285 = math.tanh %284 : vector<8x32xf32>
    %286 = arith.mulf %281, %285 : vector<8x32xf32>
    %c48 = arith.constant 48 : index
    %c0_154 = arith.constant 0 : index
    %287 = vector.load %arg39[%c48, %c0_154] : memref<64x32xf32, #tpu.memory_space<vmem>>, vector<8x32xf32>
    tpu.vector_store %arg39[%c48, %c0_154], %286 {strides = array<i32>} : memref<64x32xf32, #tpu.memory_space<vmem>>, vector<8x32xf32>,
    %288 = vector.extract_strided_slice %40 {offsets = [56, 0], sizes = [8, 128], strides = [1, 1]} : vector<64x128xf32> to vector<8x128xf32>
    %cst_155 = arith.constant dense<0.000000e+00> : vector<8x128xf32>
    %289 = tpu.matmul %286, %10, %cst_155 {dimension_numbers = #tpu.dot_dimension_numbers<[1], [0], [0], [1], [0, 0, 1, 1], [], []>} : vector<8x32xf32>, vector<32x128xf32>, vector<8x128xf32> -> vector<8x128xf32>
    %290 = arith.addf %288, %289 : vector<8x128xf32>
    %291 = vector.extract_strided_slice %290 {offsets = [0, 0], sizes = [8, 32], strides = [1, 1]} : vector<8x128xf32> to vector<8x32xf32>
    %cst_156 = arith.constant 5.000000e-01 : f32
    %292 = vector.broadcast %cst_156 : f32 to vector<8x32xf32>
    %293 = arith.mulf %292, %291 : vector<8x32xf32>
    %294 = math.tanh %293 : vector<8x32xf32>
    %cst_157 = arith.constant 1.000000e+00 : f32
    %295 = vector.broadcast %cst_157 : f32 to vector<8x32xf32>
    %296 = arith.addf %294, %295 : vector<8x32xf32>
    %cst_158 = arith.constant 5.000000e-01 : f32
    %297 = vector.broadcast %cst_158 : f32 to vector<8x32xf32>
    %298 = arith.mulf %297, %296 : vector<8x32xf32>
    %299 = vector.extract_strided_slice %290 {offsets = [0, 32], sizes = [8, 32], strides = [1, 1]} : vector<8x128xf32> to vector<8x32xf32>
    %cst_159 = arith.constant 5.000000e-01 : f32
    %300 = vector.broadcast %cst_159 : f32 to vector<8x32xf32>
    %301 = arith.mulf %300, %299 : vector<8x32xf32>
    %302 = math.tanh %301 : vector<8x32xf32>
    %cst_160 = arith.constant 1.000000e+00 : f32
    %303 = vector.broadcast %cst_160 : f32 to vector<8x32xf32>
    %304 = arith.addf %302, %303 : vector<8x32xf32>
    %cst_161 = arith.constant 5.000000e-01 : f32
    %305 = vector.broadcast %cst_161 : f32 to vector<8x32xf32>
    %306 = arith.mulf %305, %304 : vector<8x32xf32>
    %307 = vector.extract_strided_slice %290 {offsets = [0, 64], sizes = [8, 32], strides = [1, 1]} : vector<8x128xf32> to vector<8x32xf32>
    %308 = math.tanh %307 : vector<8x32xf32>
    %309 = vector.extract_strided_slice %290 {offsets = [0, 96], sizes = [8, 32], strides = [1, 1]} : vector<8x128xf32> to vector<8x32xf32>
    %cst_162 = arith.constant 5.000000e-01 : f32
    %310 = vector.broadcast %cst_162 : f32 to vector<8x32xf32>
    %311 = arith.mulf %310, %309 : vector<8x32xf32>
    %312 = math.tanh %311 : vector<8x32xf32>
    %cst_163 = arith.constant 1.000000e+00 : f32
    %313 = vector.broadcast %cst_163 : f32 to vector<8x32xf32>
    %314 = arith.addf %312, %313 : vector<8x32xf32>
    %cst_164 = arith.constant 5.000000e-01 : f32
    %315 = vector.broadcast %cst_164 : f32 to vector<8x32xf32>
    %316 = arith.mulf %315, %314 : vector<8x32xf32>
    %317 = arith.mulf %306, %284 : vector<8x32xf32>
    %318 = arith.mulf %298, %308 : vector<8x32xf32>
    %319 = arith.addf %317, %318 : vector<8x32xf32>
    %320 = math.tanh %319 : vector<8x32xf32>
    %321 = arith.mulf %316, %320 : vector<8x32xf32>
    %c56 = arith.constant 56 : index
    %c0_165 = arith.constant 0 : index
    %322 = vector.load %arg39[%c56, %c0_165] : memref<64x32xf32, #tpu.memory_space<vmem>>, vector<8x32xf32>
    tpu.vector_store %arg39[%c56, %c0_165], %321 {strides = array<i32>} : memref<64x32xf32, #tpu.memory_space<vmem>>, vector<8x32xf32>,
    %cst_166 = arith.constant dense<0.000000e+00> : vector<8x96xf32>
    %323 = tpu.matmul %321, %12, %cst_166 {dimension_numbers = #tpu.dot_dimension_numbers<[1], [0], [0], [1], [0, 0, 1, 1], [], []>} : vector<8x32xf32>, vector<32x96xf32>, vector<8x96xf32> -> vector<8x96xf32>
    %324 = vector.broadcast %13 : vector<1x96xf32> to vector<8x96xf32>
    %325 = arith.addf %323, %324 : vector<8x96xf32>
    %326 = vector.extract_strided_slice %325 {offsets = [0, 0], sizes = [8, 8], strides = [1, 1]} : vector<8x96xf32> to vector<8x8xf32>
    %327 = vector.extract_strided_slice %325 {offsets = [0, 32], sizes = [8, 8], strides = [1, 1]} : vector<8x96xf32> to vector<8x8xf32>
    %328 = vector.extract_strided_slice %325 {offsets = [0, 64], sizes = [8, 8], strides = [1, 1]} : vector<8x96xf32> to vector<8x8xf32>
    "tpu.trace_start"() <{level = 10 : i32, message = "rd,sd->rs"}> : () -> ()
    %cst_167 = arith.constant dense<0.000000e+00> : vector<8x8xf32>
    %329 = tpu.matmul %326, %327, %cst_167 {dimension_numbers = #tpu.dot_dimension_numbers<[1], [1], [0], [0], [0, 0, 1, 0], [], []>} : vector<8x8xf32>, vector<8x8xf32>, vector<8x8xf32> -> vector<8x8xf32>
    "tpu.trace_stop"() : () -> ()
    %cst_168 = arith.constant 0.353553385 : f32
    %330 = vector.broadcast %cst_168 : f32 to vector<8x8xf32>
    %331 = arith.mulf %329, %330 : vector<8x8xf32>
    %332 = arith.addf %331, %8 : vector<8x8xf32>
    %cst_169 = arith.constant dense<0xFF800000> : vector<8xf32>
    %333 = vector.multi_reduction <maximumf>, %332, %cst_169 [1] : vector<8x8xf32> to vector<8xf32>
    %334 = vector.shape_cast %333 : vector<8xf32> to vector<8x1xf32>
    %335 = vector.broadcast %334 : vector<8x1xf32> to vector<8x8xf32>
    %336 = arith.subf %332, %335 : vector<8x8xf32>
    %337 = math.exp %336 : vector<8x8xf32>
    %cst_170 = arith.constant dense<0.000000e+00> : vector<8xf32>
    %338 = vector.multi_reduction <add>, %337, %cst_170 [1] : vector<8x8xf32> to vector<8xf32>
    %339 = vector.shape_cast %338 : vector<8xf32> to vector<8x1xf32>
    %340 = vector.broadcast %339 : vector<8x1xf32> to vector<8x8xf32>
    %341 = arith.divf %337, %340 : vector<8x8xf32>
    %cst_171 = arith.constant dense<0.000000e+00> : vector<8x8xf32>
    %342 = tpu.matmul %341, %328, %cst_171 {dimension_numbers = #tpu.dot_dimension_numbers<[1], [0], [0], [1], [0, 0, 1, 1], [], []>} : vector<8x8xf32>, vector<8x8xf32>, vector<8x8xf32> -> vector<8x8xf32>
    %343 = vector.extract_strided_slice %325 {offsets = [0, 8], sizes = [8, 8], strides = [1, 1]} : vector<8x96xf32> to vector<8x8xf32>
    %344 = vector.extract_strided_slice %325 {offsets = [0, 40], sizes = [8, 8], strides = [1, 1]} : vector<8x96xf32> to vector<8x8xf32>
    %345 = vector.extract_strided_slice %325 {offsets = [0, 72], sizes = [8, 8], strides = [1, 1]} : vector<8x96xf32> to vector<8x8xf32>
    "tpu.trace_start"() <{level = 10 : i32, message = "rd,sd->rs"}> : () -> ()
    %cst_172 = arith.constant dense<0.000000e+00> : vector<8x8xf32>
    %346 = tpu.matmul %343, %344, %cst_172 {dimension_numbers = #tpu.dot_dimension_numbers<[1], [1], [0], [0], [0, 0, 1, 0], [], []>} : vector<8x8xf32>, vector<8x8xf32>, vector<8x8xf32> -> vector<8x8xf32>
    "tpu.trace_stop"() : () -> ()
    %cst_173 = arith.constant 0.353553385 : f32
    %347 = vector.broadcast %cst_173 : f32 to vector<8x8xf32>
    %348 = arith.mulf %346, %347 : vector<8x8xf32>
    %349 = arith.addf %348, %8 : vector<8x8xf32>
    %cst_174 = arith.constant dense<0xFF800000> : vector<8xf32>
    %350 = vector.multi_reduction <maximumf>, %349, %cst_174 [1] : vector<8x8xf32> to vector<8xf32>
    %351 = vector.shape_cast %350 : vector<8xf32> to vector<8x1xf32>
    %352 = vector.broadcast %351 : vector<8x1xf32> to vector<8x8xf32>
    %353 = arith.subf %349, %352 : vector<8x8xf32>
    %354 = math.exp %353 : vector<8x8xf32>
    %cst_175 = arith.constant dense<0.000000e+00> : vector<8xf32>
    %355 = vector.multi_reduction <add>, %354, %cst_175 [1] : vector<8x8xf32> to vector<8xf32>
    %356 = vector.shape_cast %355 : vector<8xf32> to vector<8x1xf32>
    %357 = vector.broadcast %356 : vector<8x1xf32> to vector<8x8xf32>
    %358 = arith.divf %354, %357 : vector<8x8xf32>
    %cst_176 = arith.constant dense<0.000000e+00> : vector<8x8xf32>
    %359 = tpu.matmul %358, %345, %cst_176 {dimension_numbers = #tpu.dot_dimension_numbers<[1], [0], [0], [1], [0, 0, 1, 1], [], []>} : vector<8x8xf32>, vector<8x8xf32>, vector<8x8xf32> -> vector<8x8xf32>
    %360 = vector.extract_strided_slice %325 {offsets = [0, 16], sizes = [8, 8], strides = [1, 1]} : vector<8x96xf32> to vector<8x8xf32>
    %361 = vector.extract_strided_slice %325 {offsets = [0, 48], sizes = [8, 8], strides = [1, 1]} : vector<8x96xf32> to vector<8x8xf32>
    %362 = vector.extract_strided_slice %325 {offsets = [0, 80], sizes = [8, 8], strides = [1, 1]} : vector<8x96xf32> to vector<8x8xf32>
    "tpu.trace_start"() <{level = 10 : i32, message = "rd,sd->rs"}> : () -> ()
    %cst_177 = arith.constant dense<0.000000e+00> : vector<8x8xf32>
    %363 = tpu.matmul %360, %361, %cst_177 {dimension_numbers = #tpu.dot_dimension_numbers<[1], [1], [0], [0], [0, 0, 1, 0], [], []>} : vector<8x8xf32>, vector<8x8xf32>, vector<8x8xf32> -> vector<8x8xf32>
    "tpu.trace_stop"() : () -> ()
    %cst_178 = arith.constant 0.353553385 : f32
    %364 = vector.broadcast %cst_178 : f32 to vector<8x8xf32>
    %365 = arith.mulf %363, %364 : vector<8x8xf32>
    %366 = arith.addf %365, %8 : vector<8x8xf32>
    %cst_179 = arith.constant dense<0xFF800000> : vector<8xf32>
    %367 = vector.multi_reduction <maximumf>, %366, %cst_179 [1] : vector<8x8xf32> to vector<8xf32>
    %368 = vector.shape_cast %367 : vector<8xf32> to vector<8x1xf32>
    %369 = vector.broadcast %368 : vector<8x1xf32> to vector<8x8xf32>
    %370 = arith.subf %366, %369 : vector<8x8xf32>
    %371 = math.exp %370 : vector<8x8xf32>
    %cst_180 = arith.constant dense<0.000000e+00> : vector<8xf32>
    %372 = vector.multi_reduction <add>, %371, %cst_180 [1] : vector<8x8xf32> to vector<8xf32>
    %373 = vector.shape_cast %372 : vector<8xf32> to vector<8x1xf32>
    %374 = vector.broadcast %373 : vector<8x1xf32> to vector<8x8xf32>
    %375 = arith.divf %371, %374 : vector<8x8xf32>
    %cst_181 = arith.constant dense<0.000000e+00> : vector<8x8xf32>
    %376 = tpu.matmul %375, %362, %cst_181 {dimension_numbers = #tpu.dot_dimension_numbers<[1], [0], [0], [1], [0, 0, 1, 1], [], []>} : vector<8x8xf32>, vector<8x8xf32>, vector<8x8xf32> -> vector<8x8xf32>
    %377 = vector.extract_strided_slice %325 {offsets = [0, 24], sizes = [8, 8], strides = [1, 1]} : vector<8x96xf32> to vector<8x8xf32>
    %378 = vector.extract_strided_slice %325 {offsets = [0, 56], sizes = [8, 8], strides = [1, 1]} : vector<8x96xf32> to vector<8x8xf32>
    %379 = vector.extract_strided_slice %325 {offsets = [0, 88], sizes = [8, 8], strides = [1, 1]} : vector<8x96xf32> to vector<8x8xf32>
    "tpu.trace_start"() <{level = 10 : i32, message = "rd,sd->rs"}> : () -> ()
    %cst_182 = arith.constant dense<0.000000e+00> : vector<8x8xf32>
    %380 = tpu.matmul %377, %378, %cst_182 {dimension_numbers = #tpu.dot_dimension_numbers<[1], [1], [0], [0], [0, 0, 1, 0], [], []>} : vector<8x8xf32>, vector<8x8xf32>, vector<8x8xf32> -> vector<8x8xf32>
    "tpu.trace_stop"() : () -> ()
    %cst_183 = arith.constant 0.353553385 : f32
    %381 = vector.broadcast %cst_183 : f32 to vector<8x8xf32>
    %382 = arith.mulf %380, %381 : vector<8x8xf32>
    %383 = arith.addf %382, %8 : vector<8x8xf32>
    %cst_184 = arith.constant dense<0xFF800000> : vector<8xf32>
    %384 = vector.multi_reduction <maximumf>, %383, %cst_184 [1] : vector<8x8xf32> to vector<8xf32>
    %385 = vector.shape_cast %384 : vector<8xf32> to vector<8x1xf32>
    %386 = vector.broadcast %385 : vector<8x1xf32> to vector<8x8xf32>
    %387 = arith.subf %383, %386 : vector<8x8xf32>
    %388 = math.exp %387 : vector<8x8xf32>
    %cst_185 = arith.constant dense<0.000000e+00> : vector<8xf32>
    %389 = vector.multi_reduction <add>, %388, %cst_185 [1] : vector<8x8xf32> to vector<8xf32>
    %390 = vector.shape_cast %389 : vector<8xf32> to vector<8x1xf32>
    %391 = vector.broadcast %390 : vector<8x1xf32> to vector<8x8xf32>
    %392 = arith.divf %388, %391 : vector<8x8xf32>
    %cst_186 = arith.constant dense<0.000000e+00> : vector<8x8xf32>
    %393 = tpu.matmul %392, %379, %cst_186 {dimension_numbers = #tpu.dot_dimension_numbers<[1], [0], [0], [1], [0, 0, 1, 1], [], []>} : vector<8x8xf32>, vector<8x8xf32>, vector<8x8xf32> -> vector<8x8xf32>
    %394 = tpu.concatenate %342, %359, %376, %393 in 1 : vector<8x8xf32>, vector<8x8xf32>, vector<8x8xf32>, vector<8x8xf32> -> vector<8x32xf32>
    %cst_187 = arith.constant dense<0.000000e+00> : vector<8x32xf32>
    %395 = tpu.matmul %394, %14, %cst_187 {dimension_numbers = #tpu.dot_dimension_numbers<[1], [0], [0], [1], [0, 0, 1, 1], [], []>} : vector<8x32xf32>, vector<32x32xf32>, vector<8x32xf32> -> vector<8x32xf32>
    %396 = vector.broadcast %15 : vector<1x32xf32> to vector<8x32xf32>
    %397 = arith.addf %395, %396 : vector<8x32xf32>
    %cst_188 = arith.constant dense<0.000000e+00> : vector<64x32xf32>
    %398 = tpu.matmul %5, %397, %cst_188 {dimension_numbers = #tpu.dot_dimension_numbers<[1], [0], [0], [1], [0, 0, 1, 1], [], []>} : vector<64x8xf32>, vector<8x32xf32>, vector<64x32xf32> -> vector<64x32xf32>
    %cst_189 = arith.constant dense<0.000000e+00> : vector<64x96xf32>
    %399 = tpu.matmul %0, %16, %cst_189 {dimension_numbers = #tpu.dot_dimension_numbers<[1], [0], [0], [1], [0, 0, 1, 1], [], []>} : vector<64x32xf32>, vector<32x96xf32>, vector<64x96xf32> -> vector<64x96xf32>
    %400 = vector.broadcast %17 : vector<1x96xf32> to vector<64x96xf32>
    %401 = arith.addf %399, %400 : vector<64x96xf32>
    %402 = vector.extract_strided_slice %401 {offsets = [0, 0], sizes = [64, 8], strides = [1, 1]} : vector<64x96xf32> to vector<64x8xf32>
    %403 = vector.extract_strided_slice %401 {offsets = [0, 32], sizes = [64, 8], strides = [1, 1]} : vector<64x96xf32> to vector<64x8xf32>
    %404 = vector.extract_strided_slice %401 {offsets = [0, 64], sizes = [64, 8], strides = [1, 1]} : vector<64x96xf32> to vector<64x8xf32>
    "tpu.trace_start"() <{level = 10 : i32, message = "rd,sd->rs"}> : () -> ()
    %cst_190 = arith.constant dense<0.000000e+00> : vector<64x64xf32>
    %405 = tpu.matmul %402, %403, %cst_190 {dimension_numbers = #tpu.dot_dimension_numbers<[1], [1], [0], [0], [0, 0, 1, 0], [], []>} : vector<64x8xf32>, vector<64x8xf32>, vector<64x64xf32> -> vector<64x64xf32>
    "tpu.trace_stop"() : () -> ()
    %cst_191 = arith.constant 0.353553385 : f32
    %406 = vector.broadcast %cst_191 : f32 to vector<64x64xf32>
    %407 = arith.mulf %405, %406 : vector<64x64xf32>
    %408 = arith.addf %407, %6 : vector<64x64xf32>
    %cst_192 = arith.constant dense<0xFF800000> : vector<64xf32>
    %409 = vector.multi_reduction <maximumf>, %408, %cst_192 [1] : vector<64x64xf32> to vector<64xf32>
    %410 = vector.shape_cast %409 : vector<64xf32> to vector<64x1xf32>
    %411 = vector.broadcast %410 : vector<64x1xf32> to vector<64x64xf32>
    %412 = arith.subf %408, %411 : vector<64x64xf32>
    %413 = math.exp %412 : vector<64x64xf32>
    %cst_193 = arith.constant dense<0.000000e+00> : vector<64xf32>
    %414 = vector.multi_reduction <add>, %413, %cst_193 [1] : vector<64x64xf32> to vector<64xf32>
    %415 = vector.shape_cast %414 : vector<64xf32> to vector<64x1xf32>
    %416 = vector.broadcast %415 : vector<64x1xf32> to vector<64x64xf32>
    %417 = arith.divf %413, %416 : vector<64x64xf32>
    %cst_194 = arith.constant dense<0.000000e+00> : vector<64x8xf32>
    %418 = tpu.matmul %417, %404, %cst_194 {dimension_numbers = #tpu.dot_dimension_numbers<[1], [0], [0], [1], [0, 0, 1, 1], [], []>} : vector<64x64xf32>, vector<64x8xf32>, vector<64x8xf32> -> vector<64x8xf32>
    %419 = vector.extract_strided_slice %401 {offsets = [0, 8], sizes = [64, 8], strides = [1, 1]} : vector<64x96xf32> to vector<64x8xf32>
    %420 = vector.extract_strided_slice %401 {offsets = [0, 40], sizes = [64, 8], strides = [1, 1]} : vector<64x96xf32> to vector<64x8xf32>
    %421 = vector.extract_strided_slice %401 {offsets = [0, 72], sizes = [64, 8], strides = [1, 1]} : vector<64x96xf32> to vector<64x8xf32>
    "tpu.trace_start"() <{level = 10 : i32, message = "rd,sd->rs"}> : () -> ()
    %cst_195 = arith.constant dense<0.000000e+00> : vector<64x64xf32>
    %422 = tpu.matmul %419, %420, %cst_195 {dimension_numbers = #tpu.dot_dimension_numbers<[1], [1], [0], [0], [0, 0, 1, 0], [], []>} : vector<64x8xf32>, vector<64x8xf32>, vector<64x64xf32> -> vector<64x64xf32>
    "tpu.trace_stop"() : () -> ()
    %cst_196 = arith.constant 0.353553385 : f32
    %423 = vector.broadcast %cst_196 : f32 to vector<64x64xf32>
    %424 = arith.mulf %422, %423 : vector<64x64xf32>
    %425 = arith.addf %424, %6 : vector<64x64xf32>
    %cst_197 = arith.constant dense<0xFF800000> : vector<64xf32>
    %426 = vector.multi_reduction <maximumf>, %425, %cst_197 [1] : vector<64x64xf32> to vector<64xf32>
    %427 = vector.shape_cast %426 : vector<64xf32> to vector<64x1xf32>
    %428 = vector.broadcast %427 : vector<64x1xf32> to vector<64x64xf32>
    %429 = arith.subf %425, %428 : vector<64x64xf32>
    %430 = math.exp %429 : vector<64x64xf32>
    %cst_198 = arith.constant dense<0.000000e+00> : vector<64xf32>
    %431 = vector.multi_reduction <add>, %430, %cst_198 [1] : vector<64x64xf32> to vector<64xf32>
    %432 = vector.shape_cast %431 : vector<64xf32> to vector<64x1xf32>
    %433 = vector.broadcast %432 : vector<64x1xf32> to vector<64x64xf32>
    %434 = arith.divf %430, %433 : vector<64x64xf32>
    %cst_199 = arith.constant dense<0.000000e+00> : vector<64x8xf32>
    %435 = tpu.matmul %434, %421, %cst_199 {dimension_numbers = #tpu.dot_dimension_numbers<[1], [0], [0], [1], [0, 0, 1, 1], [], []>} : vector<64x64xf32>, vector<64x8xf32>, vector<64x8xf32> -> vector<64x8xf32>
    %436 = vector.extract_strided_slice %401 {offsets = [0, 16], sizes = [64, 8], strides = [1, 1]} : vector<64x96xf32> to vector<64x8xf32>
    %437 = vector.extract_strided_slice %401 {offsets = [0, 48], sizes = [64, 8], strides = [1, 1]} : vector<64x96xf32> to vector<64x8xf32>
    %438 = vector.extract_strided_slice %401 {offsets = [0, 80], sizes = [64, 8], strides = [1, 1]} : vector<64x96xf32> to vector<64x8xf32>
    "tpu.trace_start"() <{level = 10 : i32, message = "rd,sd->rs"}> : () -> ()
    %cst_200 = arith.constant dense<0.000000e+00> : vector<64x64xf32>
    %439 = tpu.matmul %436, %437, %cst_200 {dimension_numbers = #tpu.dot_dimension_numbers<[1], [1], [0], [0], [0, 0, 1, 0], [], []>} : vector<64x8xf32>, vector<64x8xf32>, vector<64x64xf32> -> vector<64x64xf32>
    "tpu.trace_stop"() : () -> ()
    %cst_201 = arith.constant 0.353553385 : f32
    %440 = vector.broadcast %cst_201 : f32 to vector<64x64xf32>
    %441 = arith.mulf %439, %440 : vector<64x64xf32>
    %442 = arith.addf %441, %6 : vector<64x64xf32>
    %cst_202 = arith.constant dense<0xFF800000> : vector<64xf32>
    %443 = vector.multi_reduction <maximumf>, %442, %cst_202 [1] : vector<64x64xf32> to vector<64xf32>
    %444 = vector.shape_cast %443 : vector<64xf32> to vector<64x1xf32>
    %445 = vector.broadcast %444 : vector<64x1xf32> to vector<64x64xf32>
    %446 = arith.subf %442, %445 : vector<64x64xf32>
    %447 = math.exp %446 : vector<64x64xf32>
    %cst_203 = arith.constant dense<0.000000e+00> : vector<64xf32>
    %448 = vector.multi_reduction <add>, %447, %cst_203 [1] : vector<64x64xf32> to vector<64xf32>
    %449 = vector.shape_cast %448 : vector<64xf32> to vector<64x1xf32>
    %450 = vector.broadcast %449 : vector<64x1xf32> to vector<64x64xf32>
    %451 = arith.divf %447, %450 : vector<64x64xf32>
    %cst_204 = arith.constant dense<0.000000e+00> : vector<64x8xf32>
    %452 = tpu.matmul %451, %438, %cst_204 {dimension_numbers = #tpu.dot_dimension_numbers<[1], [0], [0], [1], [0, 0, 1, 1], [], []>} : vector<64x64xf32>, vector<64x8xf32>, vector<64x8xf32> -> vector<64x8xf32>
    %453 = vector.extract_strided_slice %401 {offsets = [0, 24], sizes = [64, 8], strides = [1, 1]} : vector<64x96xf32> to vector<64x8xf32>
    %454 = vector.extract_strided_slice %401 {offsets = [0, 56], sizes = [64, 8], strides = [1, 1]} : vector<64x96xf32> to vector<64x8xf32>
    %455 = vector.extract_strided_slice %401 {offsets = [0, 88], sizes = [64, 8], strides = [1, 1]} : vector<64x96xf32> to vector<64x8xf32>
    "tpu.trace_start"() <{level = 10 : i32, message = "rd,sd->rs"}> : () -> ()
    %cst_205 = arith.constant dense<0.000000e+00> : vector<64x64xf32>
    %456 = tpu.matmul %453, %454, %cst_205 {dimension_numbers = #tpu.dot_dimension_numbers<[1], [1], [0], [0], [0, 0, 1, 0], [], []>} : vector<64x8xf32>, vector<64x8xf32>, vector<64x64xf32> -> vector<64x64xf32>
    "tpu.trace_stop"() : () -> ()
    %cst_206 = arith.constant 0.353553385 : f32
    %457 = vector.broadcast %cst_206 : f32 to vector<64x64xf32>
    %458 = arith.mulf %456, %457 : vector<64x64xf32>
    %459 = arith.addf %458, %6 : vector<64x64xf32>
    %cst_207 = arith.constant dense<0xFF800000> : vector<64xf32>
    %460 = vector.multi_reduction <maximumf>, %459, %cst_207 [1] : vector<64x64xf32> to vector<64xf32>
    %461 = vector.shape_cast %460 : vector<64xf32> to vector<64x1xf32>
    %462 = vector.broadcast %461 : vector<64x1xf32> to vector<64x64xf32>
    %463 = arith.subf %459, %462 : vector<64x64xf32>
    %464 = math.exp %463 : vector<64x64xf32>
    %cst_208 = arith.constant dense<0.000000e+00> : vector<64xf32>
    %465 = vector.multi_reduction <add>, %464, %cst_208 [1] : vector<64x64xf32> to vector<64xf32>
    %466 = vector.shape_cast %465 : vector<64xf32> to vector<64x1xf32>
    %467 = vector.broadcast %466 : vector<64x1xf32> to vector<64x64xf32>
    %468 = arith.divf %464, %467 : vector<64x64xf32>
    %cst_209 = arith.constant dense<0.000000e+00> : vector<64x8xf32>
    %469 = tpu.matmul %468, %455, %cst_209 {dimension_numbers = #tpu.dot_dimension_numbers<[1], [0], [0], [1], [0, 0, 1, 1], [], []>} : vector<64x64xf32>, vector<64x8xf32>, vector<64x8xf32> -> vector<64x8xf32>
    %470 = tpu.concatenate %418, %435, %452, %469 in 1 : vector<64x8xf32>, vector<64x8xf32>, vector<64x8xf32>, vector<64x8xf32> -> vector<64x32xf32>
    %cst_210 = arith.constant dense<0.000000e+00> : vector<64x32xf32>
    %471 = tpu.matmul %470, %18, %cst_210 {dimension_numbers = #tpu.dot_dimension_numbers<[1], [0], [0], [1], [0, 0, 1, 1], [], []>} : vector<64x32xf32>, vector<32x32xf32>, vector<64x32xf32> -> vector<64x32xf32>
    %472 = vector.broadcast %19 : vector<1x32xf32> to vector<64x32xf32>
    %473 = arith.addf %471, %472 : vector<64x32xf32>
    %cst_211 = arith.constant dense<0.000000e+00> : vector<64x32xf32>
    %474 = tpu.matmul %2, %0, %cst_211 {dimension_numbers = #tpu.dot_dimension_numbers<[1], [0], [0], [1], [0, 0, 1, 1], [], []>} : vector<64x64xf32>, vector<64x32xf32>, vector<64x32xf32> -> vector<64x32xf32>
    %cst_212 = arith.constant dense<0.000000e+00> : vector<64x32xf32>
    %475 = tpu.matmul %2, %474, %cst_212 {dimension_numbers = #tpu.dot_dimension_numbers<[1], [0], [0], [1], [0, 0, 1, 1], [], []>} : vector<64x64xf32>, vector<64x32xf32>, vector<64x32xf32> -> vector<64x32xf32>
    %cst_213 = arith.constant dense<0.000000e+00> : vector<64x32xf32>
    %476 = tpu.matmul %3, %0, %cst_213 {dimension_numbers = #tpu.dot_dimension_numbers<[1], [0], [0], [1], [0, 0, 1, 1], [], []>} : vector<64x64xf32>, vector<64x32xf32>, vector<64x32xf32> -> vector<64x32xf32>
    %cst_214 = arith.constant dense<0.000000e+00> : vector<64x32xf32>
    %477 = tpu.matmul %3, %476, %cst_214 {dimension_numbers = #tpu.dot_dimension_numbers<[1], [0], [0], [1], [0, 0, 1, 1], [], []>} : vector<64x64xf32>, vector<64x32xf32>, vector<64x32xf32> -> vector<64x32xf32>
    %478 = tpu.concatenate %0, %474, %475, %476, %477 in 1 : vector<64x32xf32>, vector<64x32xf32>, vector<64x32xf32>, vector<64x32xf32>, vector<64x32xf32> -> vector<64x160xf32>
    %cst_215 = arith.constant dense<0.000000e+00> : vector<64x32xf32>
    %479 = tpu.matmul %478, %20, %cst_215 {dimension_numbers = #tpu.dot_dimension_numbers<[1], [0], [0], [1], [0, 0, 1, 1], [], []>} : vector<64x160xf32>, vector<160x32xf32>, vector<64x32xf32> -> vector<64x32xf32>
    %480 = vector.broadcast %21 : vector<1x32xf32> to vector<64x32xf32>
    %481 = arith.addf %479, %480 : vector<64x32xf32>
    %482 = tpu.concatenate %481, %473 in 1 : vector<64x32xf32>, vector<64x32xf32> -> vector<64x64xf32>
    %cst_216 = arith.constant dense<0.000000e+00> : vector<64x32xf32>
    %483 = tpu.matmul %482, %22, %cst_216 {dimension_numbers = #tpu.dot_dimension_numbers<[1], [0], [0], [1], [0, 0, 1, 1], [], []>} : vector<64x64xf32>, vector<64x32xf32>, vector<64x32xf32> -> vector<64x32xf32>
    %484 = vector.broadcast %23 : vector<1x32xf32> to vector<64x32xf32>
    %485 = arith.addf %483, %484 : vector<64x32xf32>
    %cst_217 = arith.constant 5.000000e-01 : f32
    %486 = vector.broadcast %cst_217 : f32 to vector<64x32xf32>
    %487 = arith.mulf %486, %485 : vector<64x32xf32>
    %488 = math.tanh %487 : vector<64x32xf32>
    %cst_218 = arith.constant 1.000000e+00 : f32
    %489 = vector.broadcast %cst_218 : f32 to vector<64x32xf32>
    %490 = arith.addf %488, %489 : vector<64x32xf32>
    %cst_219 = arith.constant 5.000000e-01 : f32
    %491 = vector.broadcast %cst_219 : f32 to vector<64x32xf32>
    %492 = arith.mulf %491, %490 : vector<64x32xf32>
    %493 = arith.mulf %492, %481 : vector<64x32xf32>
    %cst_220 = arith.constant 1.000000e+00 : f32
    %494 = vector.broadcast %cst_220 : f32 to vector<64x32xf32>
    %495 = arith.subf %494, %492 : vector<64x32xf32>
    %496 = arith.mulf %495, %473 : vector<64x32xf32>
    %497 = arith.addf %493, %496 : vector<64x32xf32>
    %498 = tpu.concatenate %497, %398 in 1 : vector<64x32xf32>, vector<64x32xf32> -> vector<64x64xf32>
    %cst_221 = arith.constant dense<0.000000e+00> : vector<64x32xf32>
    %499 = tpu.matmul %498, %24, %cst_221 {dimension_numbers = #tpu.dot_dimension_numbers<[1], [0], [0], [1], [0, 0, 1, 1], [], []>} : vector<64x64xf32>, vector<64x32xf32>, vector<64x32xf32> -> vector<64x32xf32>
    %500 = vector.broadcast %25 : vector<1x32xf32> to vector<64x32xf32>
    %501 = arith.addf %499, %500 : vector<64x32xf32>
    %cst_222 = arith.constant 5.000000e-01 : f32
    %502 = vector.broadcast %cst_222 : f32 to vector<64x32xf32>
    %503 = arith.mulf %502, %501 : vector<64x32xf32>
    %504 = math.tanh %503 : vector<64x32xf32>
    %cst_223 = arith.constant 1.000000e+00 : f32
    %505 = vector.broadcast %cst_223 : f32 to vector<64x32xf32>
    %506 = arith.addf %504, %505 : vector<64x32xf32>
    %cst_224 = arith.constant 5.000000e-01 : f32
    %507 = vector.broadcast %cst_224 : f32 to vector<64x32xf32>
    %508 = arith.mulf %507, %506 : vector<64x32xf32>
    %509 = arith.mulf %508, %497 : vector<64x32xf32>
    %cst_225 = arith.constant 1.000000e+00 : f32
    %510 = vector.broadcast %cst_225 : f32 to vector<64x32xf32>
    %511 = arith.subf %510, %508 : vector<64x32xf32>
    %512 = arith.mulf %511, %398 : vector<64x32xf32>
    %513 = arith.addf %509, %512 : vector<64x32xf32>
    %cst_226 = arith.constant dense<0.000000e+00> : vector<64x96xf32>
    %514 = tpu.matmul %513, %26, %cst_226 {dimension_numbers = #tpu.dot_dimension_numbers<[1], [0], [0], [1], [0, 0, 1, 1], [], []>} : vector<64x32xf32>, vector<32x96xf32>, vector<64x96xf32> -> vector<64x96xf32>
    %515 = vector.broadcast %27 : vector<1x96xf32> to vector<64x96xf32>
    %516 = arith.addf %514, %515 : vector<64x96xf32>
    %517 = vector.extract_strided_slice %516 {offsets = [0, 0], sizes = [64, 8], strides = [1, 1]} : vector<64x96xf32> to vector<64x8xf32>
    %518 = vector.extract_strided_slice %516 {offsets = [0, 32], sizes = [64, 8], strides = [1, 1]} : vector<64x96xf32> to vector<64x8xf32>
    %519 = vector.extract_strided_slice %516 {offsets = [0, 64], sizes = [64, 8], strides = [1, 1]} : vector<64x96xf32> to vector<64x8xf32>
    "tpu.trace_start"() <{level = 10 : i32, message = "rd,sd->rs"}> : () -> ()
    %cst_227 = arith.constant dense<0.000000e+00> : vector<64x64xf32>
    %520 = tpu.matmul %517, %518, %cst_227 {dimension_numbers = #tpu.dot_dimension_numbers<[1], [1], [0], [0], [0, 0, 1, 0], [], []>} : vector<64x8xf32>, vector<64x8xf32>, vector<64x64xf32> -> vector<64x64xf32>
    "tpu.trace_stop"() : () -> ()
    %cst_228 = arith.constant 0.353553385 : f32
    %521 = vector.broadcast %cst_228 : f32 to vector<64x64xf32>
    %522 = arith.mulf %520, %521 : vector<64x64xf32>
    %523 = arith.addf %522, %7 : vector<64x64xf32>
    %cst_229 = arith.constant dense<0xFF800000> : vector<64xf32>
    %524 = vector.multi_reduction <maximumf>, %523, %cst_229 [1] : vector<64x64xf32> to vector<64xf32>
    %525 = vector.shape_cast %524 : vector<64xf32> to vector<64x1xf32>
    %526 = vector.broadcast %525 : vector<64x1xf32> to vector<64x64xf32>
    %527 = arith.subf %523, %526 : vector<64x64xf32>
    %528 = math.exp %527 : vector<64x64xf32>
    %cst_230 = arith.constant dense<0.000000e+00> : vector<64xf32>
    %529 = vector.multi_reduction <add>, %528, %cst_230 [1] : vector<64x64xf32> to vector<64xf32>
    %530 = vector.shape_cast %529 : vector<64xf32> to vector<64x1xf32>
    %531 = vector.broadcast %530 : vector<64x1xf32> to vector<64x64xf32>
    %532 = arith.divf %528, %531 : vector<64x64xf32>
    %cst_231 = arith.constant dense<0.000000e+00> : vector<64x8xf32>
    %533 = tpu.matmul %532, %519, %cst_231 {dimension_numbers = #tpu.dot_dimension_numbers<[1], [0], [0], [1], [0, 0, 1, 1], [], []>} : vector<64x64xf32>, vector<64x8xf32>, vector<64x8xf32> -> vector<64x8xf32>
    %534 = vector.extract_strided_slice %516 {offsets = [0, 8], sizes = [64, 8], strides = [1, 1]} : vector<64x96xf32> to vector<64x8xf32>
    %535 = vector.extract_strided_slice %516 {offsets = [0, 40], sizes = [64, 8], strides = [1, 1]} : vector<64x96xf32> to vector<64x8xf32>
    %536 = vector.extract_strided_slice %516 {offsets = [0, 72], sizes = [64, 8], strides = [1, 1]} : vector<64x96xf32> to vector<64x8xf32>
    "tpu.trace_start"() <{level = 10 : i32, message = "rd,sd->rs"}> : () -> ()
    %cst_232 = arith.constant dense<0.000000e+00> : vector<64x64xf32>
    %537 = tpu.matmul %534, %535, %cst_232 {dimension_numbers = #tpu.dot_dimension_numbers<[1], [1], [0], [0], [0, 0, 1, 0], [], []>} : vector<64x8xf32>, vector<64x8xf32>, vector<64x64xf32> -> vector<64x64xf32>
    "tpu.trace_stop"() : () -> ()
    %cst_233 = arith.constant 0.353553385 : f32
    %538 = vector.broadcast %cst_233 : f32 to vector<64x64xf32>
    %539 = arith.mulf %537, %538 : vector<64x64xf32>
    %540 = arith.addf %539, %7 : vector<64x64xf32>
    %cst_234 = arith.constant dense<0xFF800000> : vector<64xf32>
    %541 = vector.multi_reduction <maximumf>, %540, %cst_234 [1] : vector<64x64xf32> to vector<64xf32>
    %542 = vector.shape_cast %541 : vector<64xf32> to vector<64x1xf32>
    %543 = vector.broadcast %542 : vector<64x1xf32> to vector<64x64xf32>
    %544 = arith.subf %540, %543 : vector<64x64xf32>
    %545 = math.exp %544 : vector<64x64xf32>
    %cst_235 = arith.constant dense<0.000000e+00> : vector<64xf32>
    %546 = vector.multi_reduction <add>, %545, %cst_235 [1] : vector<64x64xf32> to vector<64xf32>
    %547 = vector.shape_cast %546 : vector<64xf32> to vector<64x1xf32>
    %548 = vector.broadcast %547 : vector<64x1xf32> to vector<64x64xf32>
    %549 = arith.divf %545, %548 : vector<64x64xf32>
    %cst_236 = arith.constant dense<0.000000e+00> : vector<64x8xf32>
    %550 = tpu.matmul %549, %536, %cst_236 {dimension_numbers = #tpu.dot_dimension_numbers<[1], [0], [0], [1], [0, 0, 1, 1], [], []>} : vector<64x64xf32>, vector<64x8xf32>, vector<64x8xf32> -> vector<64x8xf32>
    %551 = vector.extract_strided_slice %516 {offsets = [0, 16], sizes = [64, 8], strides = [1, 1]} : vector<64x96xf32> to vector<64x8xf32>
    %552 = vector.extract_strided_slice %516 {offsets = [0, 48], sizes = [64, 8], strides = [1, 1]} : vector<64x96xf32> to vector<64x8xf32>
    %553 = vector.extract_strided_slice %516 {offsets = [0, 80], sizes = [64, 8], strides = [1, 1]} : vector<64x96xf32> to vector<64x8xf32>
    "tpu.trace_start"() <{level = 10 : i32, message = "rd,sd->rs"}> : () -> ()
    %cst_237 = arith.constant dense<0.000000e+00> : vector<64x64xf32>
    %554 = tpu.matmul %551, %552, %cst_237 {dimension_numbers = #tpu.dot_dimension_numbers<[1], [1], [0], [0], [0, 0, 1, 0], [], []>} : vector<64x8xf32>, vector<64x8xf32>, vector<64x64xf32> -> vector<64x64xf32>
    "tpu.trace_stop"() : () -> ()
    %cst_238 = arith.constant 0.353553385 : f32
    %555 = vector.broadcast %cst_238 : f32 to vector<64x64xf32>
    %556 = arith.mulf %554, %555 : vector<64x64xf32>
    %557 = arith.addf %556, %7 : vector<64x64xf32>
    %cst_239 = arith.constant dense<0xFF800000> : vector<64xf32>
    %558 = vector.multi_reduction <maximumf>, %557, %cst_239 [1] : vector<64x64xf32> to vector<64xf32>
    %559 = vector.shape_cast %558 : vector<64xf32> to vector<64x1xf32>
    %560 = vector.broadcast %559 : vector<64x1xf32> to vector<64x64xf32>
    %561 = arith.subf %557, %560 : vector<64x64xf32>
    %562 = math.exp %561 : vector<64x64xf32>
    %cst_240 = arith.constant dense<0.000000e+00> : vector<64xf32>
    %563 = vector.multi_reduction <add>, %562, %cst_240 [1] : vector<64x64xf32> to vector<64xf32>
    %564 = vector.shape_cast %563 : vector<64xf32> to vector<64x1xf32>
    %565 = vector.broadcast %564 : vector<64x1xf32> to vector<64x64xf32>
    %566 = arith.divf %562, %565 : vector<64x64xf32>
    %cst_241 = arith.constant dense<0.000000e+00> : vector<64x8xf32>
    %567 = tpu.matmul %566, %553, %cst_241 {dimension_numbers = #tpu.dot_dimension_numbers<[1], [0], [0], [1], [0, 0, 1, 1], [], []>} : vector<64x64xf32>, vector<64x8xf32>, vector<64x8xf32> -> vector<64x8xf32>
    %568 = vector.extract_strided_slice %516 {offsets = [0, 24], sizes = [64, 8], strides = [1, 1]} : vector<64x96xf32> to vector<64x8xf32>
    %569 = vector.extract_strided_slice %516 {offsets = [0, 56], sizes = [64, 8], strides = [1, 1]} : vector<64x96xf32> to vector<64x8xf32>
    %570 = vector.extract_strided_slice %516 {offsets = [0, 88], sizes = [64, 8], strides = [1, 1]} : vector<64x96xf32> to vector<64x8xf32>
    "tpu.trace_start"() <{level = 10 : i32, message = "rd,sd->rs"}> : () -> ()
    %cst_242 = arith.constant dense<0.000000e+00> : vector<64x64xf32>
    %571 = tpu.matmul %568, %569, %cst_242 {dimension_numbers = #tpu.dot_dimension_numbers<[1], [1], [0], [0], [0, 0, 1, 0], [], []>} : vector<64x8xf32>, vector<64x8xf32>, vector<64x64xf32> -> vector<64x64xf32>
    "tpu.trace_stop"() : () -> ()
    %cst_243 = arith.constant 0.353553385 : f32
    %572 = vector.broadcast %cst_243 : f32 to vector<64x64xf32>
    %573 = arith.mulf %571, %572 : vector<64x64xf32>
    %574 = arith.addf %573, %7 : vector<64x64xf32>
    %cst_244 = arith.constant dense<0xFF800000> : vector<64xf32>
    %575 = vector.multi_reduction <maximumf>, %574, %cst_244 [1] : vector<64x64xf32> to vector<64xf32>
    %576 = vector.shape_cast %575 : vector<64xf32> to vector<64x1xf32>
    %577 = vector.broadcast %576 : vector<64x1xf32> to vector<64x64xf32>
    %578 = arith.subf %574, %577 : vector<64x64xf32>
    %579 = math.exp %578 : vector<64x64xf32>
    %cst_245 = arith.constant dense<0.000000e+00> : vector<64xf32>
    %580 = vector.multi_reduction <add>, %579, %cst_245 [1] : vector<64x64xf32> to vector<64xf32>
    %581 = vector.shape_cast %580 : vector<64xf32> to vector<64x1xf32>
    %582 = vector.broadcast %581 : vector<64x1xf32> to vector<64x64xf32>
    %583 = arith.divf %579, %582 : vector<64x64xf32>
    %cst_246 = arith.constant dense<0.000000e+00> : vector<64x8xf32>
    %584 = tpu.matmul %583, %570, %cst_246 {dimension_numbers = #tpu.dot_dimension_numbers<[1], [0], [0], [1], [0, 0, 1, 1], [], []>} : vector<64x64xf32>, vector<64x8xf32>, vector<64x8xf32> -> vector<64x8xf32>
    %585 = tpu.concatenate %533, %550, %567, %584 in 1 : vector<64x8xf32>, vector<64x8xf32>, vector<64x8xf32>, vector<64x8xf32> -> vector<64x32xf32>
    %cst_247 = arith.constant dense<0.000000e+00> : vector<64x32xf32>
    %586 = tpu.matmul %585, %28, %cst_247 {dimension_numbers = #tpu.dot_dimension_numbers<[1], [0], [0], [1], [0, 0, 1, 1], [], []>} : vector<64x32xf32>, vector<32x32xf32>, vector<64x32xf32> -> vector<64x32xf32>
    %587 = vector.broadcast %29 : vector<1x32xf32> to vector<64x32xf32>
    %588 = arith.addf %586, %587 : vector<64x32xf32>
    %589 = arith.addf %588, %513 : vector<64x32xf32>
    %cst_248 = arith.constant dense<0.000000e+00> : vector<64xf32>
    %590 = vector.multi_reduction <add>, %589, %cst_248 [1] : vector<64x32xf32> to vector<64xf32>
    %591 = vector.shape_cast %590 : vector<64xf32> to vector<64x1xf32>
    %cst_249 = arith.constant 3.200000e+01 : f32
    %592 = vector.broadcast %cst_249 : f32 to vector<64x1xf32>
    %593 = arith.divf %591, %592 : vector<64x1xf32>
    %594 = vector.broadcast %593 : vector<64x1xf32> to vector<64x32xf32>
    %595 = arith.subf %589, %594 : vector<64x32xf32>
    %596 = arith.mulf %595, %595 : vector<64x32xf32>
    %cst_250 = arith.constant dense<0.000000e+00> : vector<64xf32>
    %597 = vector.multi_reduction <add>, %596, %cst_250 [1] : vector<64x32xf32> to vector<64xf32>
    %598 = vector.shape_cast %597 : vector<64xf32> to vector<64x1xf32>
    %cst_251 = arith.constant 3.200000e+01 : f32
    %599 = vector.broadcast %cst_251 : f32 to vector<64x1xf32>
    %600 = arith.divf %598, %599 : vector<64x1xf32>
    %cst_252 = arith.constant 9.99999974E-6 : f32
    %601 = vector.broadcast %cst_252 : f32 to vector<64x1xf32>
    %602 = arith.addf %600, %601 : vector<64x1xf32>
    %603 = math.rsqrt %602 : vector<64x1xf32>
    %604 = vector.broadcast %603 : vector<64x1xf32> to vector<64x32xf32>
    %605 = arith.mulf %595, %604 : vector<64x32xf32>
    %606 = vector.broadcast %30 : vector<1x32xf32> to vector<64x32xf32>
    %607 = arith.mulf %605, %606 : vector<64x32xf32>
    %608 = vector.broadcast %31 : vector<1x32xf32> to vector<64x32xf32>
    %609 = arith.addf %607, %608 : vector<64x32xf32>
    %cst_253 = arith.constant dense<0.000000e+00> : vector<64x32xf32>
    %610 = tpu.matmul %609, %34, %cst_253 {dimension_numbers = #tpu.dot_dimension_numbers<[1], [0], [0], [1], [0, 0, 1, 1], [], []>} : vector<64x32xf32>, vector<32x32xf32>, vector<64x32xf32> -> vector<64x32xf32>
    %611 = vector.broadcast %35 : vector<1x32xf32> to vector<64x32xf32>
    %612 = arith.addf %610, %611 : vector<64x32xf32>
    %cst_254 = arith.constant 0.000000e+00 : f32
    %613 = vector.broadcast %cst_254 : f32 to vector<64x32xf32>
    %614 = arith.maximumf %612, %613 : vector<64x32xf32>
    %cst_255 = arith.constant dense<0.000000e+00> : vector<64x32xf32>
    %615 = tpu.matmul %614, %36, %cst_255 {dimension_numbers = #tpu.dot_dimension_numbers<[1], [0], [0], [1], [0, 0, 1, 1], [], []>} : vector<64x32xf32>, vector<32x32xf32>, vector<64x32xf32> -> vector<64x32xf32>
    %616 = vector.broadcast %37 : vector<1x32xf32> to vector<64x32xf32>
    %617 = arith.addf %615, %616 : vector<64x32xf32>
    %618 = arith.addf %617, %609 : vector<64x32xf32>
    %cst_256 = arith.constant dense<0.000000e+00> : vector<64xf32>
    %619 = vector.multi_reduction <add>, %618, %cst_256 [1] : vector<64x32xf32> to vector<64xf32>
    %620 = vector.shape_cast %619 : vector<64xf32> to vector<64x1xf32>
    %cst_257 = arith.constant 3.200000e+01 : f32
    %621 = vector.broadcast %cst_257 : f32 to vector<64x1xf32>
    %622 = arith.divf %620, %621 : vector<64x1xf32>
    %623 = vector.broadcast %622 : vector<64x1xf32> to vector<64x32xf32>
    %624 = arith.subf %618, %623 : vector<64x32xf32>
    %625 = arith.mulf %624, %624 : vector<64x32xf32>
    %cst_258 = arith.constant dense<0.000000e+00> : vector<64xf32>
    %626 = vector.multi_reduction <add>, %625, %cst_258 [1] : vector<64x32xf32> to vector<64xf32>
    %627 = vector.shape_cast %626 : vector<64xf32> to vector<64x1xf32>
    %cst_259 = arith.constant 3.200000e+01 : f32
    %628 = vector.broadcast %cst_259 : f32 to vector<64x1xf32>
    %629 = arith.divf %627, %628 : vector<64x1xf32>
    %cst_260 = arith.constant 9.99999974E-6 : f32
    %630 = vector.broadcast %cst_260 : f32 to vector<64x1xf32>
    %631 = arith.addf %629, %630 : vector<64x1xf32>
    %632 = math.rsqrt %631 : vector<64x1xf32>
    %633 = vector.broadcast %632 : vector<64x1xf32> to vector<64x32xf32>
    %634 = arith.mulf %624, %633 : vector<64x32xf32>
    %635 = vector.broadcast %32 : vector<1x32xf32> to vector<64x32xf32>
    %636 = arith.mulf %634, %635 : vector<64x32xf32>
    %637 = vector.broadcast %33 : vector<1x32xf32> to vector<64x32xf32>
    %638 = arith.addf %636, %637 : vector<64x32xf32>
    %c0_261 = arith.constant 0 : index
    %c0_262 = arith.constant 0 : index
    %639 = vector.load %arg39[%c0_261, %c0_262] : memref<64x32xf32, #tpu.memory_space<vmem>>, vector<64x32xf32>
    %cst_263 = arith.constant dense<0.000000e+00> : vector<64x32xf32>
    %640 = tpu.matmul %4, %639, %cst_263 {dimension_numbers = #tpu.dot_dimension_numbers<[1], [0], [0], [1], [0, 0, 1, 1], [], []>} : vector<64x64xf32>, vector<64x32xf32>, vector<64x32xf32> -> vector<64x32xf32>
    %641 = arith.addf %638, %640 : vector<64x32xf32>
    %c0_264 = arith.constant 0 : index
    %c0_265 = arith.constant 0 : index
    %642 = vector.load %arg38[%c0_264, %c0_265] : memref<64x32xf32, #tpu.memory_space<vmem>>, vector<64x32xf32>
    tpu.vector_store %arg38[%c0_264, %c0_265], %641 {strides = array<i32>} : memref<64x32xf32, #tpu.memory_space<vmem>>, vector<64x32xf32>,
    return
  }
}

</mosaic_0001>

<bundles_post_ra>
// kernel: spatial_temporal_forward.1
= control target key start
LH: loop header
LB: loop body
LE: loop exit
PB: predicated region body
PF: predicated region fallthrough
CT: control target
= control target key end

     0   :  { %s11638_s6 = smov 1   ;;  %s11639_s10 = smov 2   ;;  %s14339_s0 = inlined_call_operand.smem [shape: u32[39], index: -1, kind: input, shape index: {}] }
   0x1   :  { %s11704_s5 = sld [smem:[%s14339_s0]]   ;;  %s11640_s14 = smov 3  }
   0x2   :  { %s11709_s9 = sld [smem:[%s14339_s0 + %s11638_s6]]   ;;  %s11641_s18 = smov 4  }
   0x3   :  { %s11714_s13 = sld [smem:[%s14339_s0 + %s11639_s10]]   ;;  %s11642_s22 = smov 5  }
   0x4   :  { %s11719_s17 = sld [smem:[%s14339_s0 + %s11640_s14]]   ;;  %s11643_s26 = smov 6  }
   0x5   :  { %s11724_s21 = sld [smem:[%s14339_s0 + %s11641_s18]]   ;;  %s11644_s30 = smov 7  }
   0x6   :  { %s11729_s25 = sld [smem:[%s14339_s0 + %s11642_s22]]   ;;  %s11645_s4 = smov 8  }
   0x7   :  { %s11734_s29 = sld [smem:[%s14339_s0 + %s11643_s26]]   ;;  %s11646_s10 = smov 9  }
   0x8   :  { %s11739_s3 = sld [smem:[%s14339_s0 + %s11644_s30]]   ;;  %s11647_s15 = smov 10  }
   0x9   :  { %14369 = sst [smem:[#allocation6_spill]] %s11714_s13  ;;  %s11648_s20 = smov 11  }
   0xa   :  { %14370 = sst [smem:[#allocation7_spill]] %s11719_s17  ;;  %s11649_s26 = smov 12  }
   0xb   :  { %14371 = sst [smem:[#allocation8_spill]] %s11724_s21  ;;  %s11650_s1 = smov 13  }
   0xc   :  { %s11744_s8 = sld [smem:[%s14339_s0 + %s11645_s4]]   ;;  %s11651_s7 = smov 14  }
   0xd   :  { %s11749_s14 = sld [smem:[%s14339_s0 + %s11646_s10]]   ;;  %s11653_s22 = smov 16  }
   0xe   :  { %14372 = sst [smem:[#allocation9_spill]] %s11739_s3  ;;  %s11654_s28 = smov 17  }
   0xf   :  { %s11754_s19 = sld [smem:[%s14339_s0 + %s11647_s15]]   ;;  %s11652_s15 = smov 15  }
  0x10   :  { %s11759_s24 = sld [smem:[%s14339_s0 + %s11648_s20]]  }
  0x11   :  { %s11764_s30 = sld [smem:[%s14339_s0 + %s11649_s26]]  }
  0x12   :  { %s11769_s6 = sld [smem:[%s14339_s0 + %s11650_s1]]  }
  0x13   :  { %s11774_s12 = sld [smem:[%s14339_s0 + %s11651_s7]]   ;;  %s11655_s7 = smov 18  }
  0x14   :  { %s11779_s20 = sld [smem:[%s14339_s0 + %s11652_s15]]   ;;  %s11656_s15 = smov 19  }
  0x15   :  { %s11784_s27 = sld [smem:[%s14339_s0 + %s11653_s22]]   ;;  %s11657_s22 = smov 20  }
  0x16   :  { %s11789_s4 = sld [smem:[%s14339_s0 + %s11654_s28]]   ;;  %s11658_s28 = smov 21  }
  0x17   :  { %s11794_s21 = sld [smem:[%s14339_s0 + %s11655_s7]]   ;;  %s11659_s7 = smov 22  }
  0x18   :  { %s11799_s3 = sld [smem:[%s14339_s0 + %s11656_s15]]   ;;  %s11660_s15 = smov 23  }
  0x19   :  { %s11804_s17 = sld [smem:[%s14339_s0 + %s11657_s22]]   ;;  %s11661_s22 = smov 24  }
  0x1a   :  { %s11809_s13 = sld [smem:[%s14339_s0 + %s11658_s28]]   ;;  %s11662_s28 = smov 25  }
  0x1d   :  { %14373 = sst [smem:[#allocation10_spill]] %s11794_s21 }
  0x1e   :  { %14374 = sst [smem:[#allocation11_spill]] %s11799_s3 }
  0x1f   :  { %14375 = sst [smem:[#allocation12_spill]] %s11804_s17 }
  0x20   :  { %14376 = sst [smem:[#allocation13_spill]] %s11809_s13 }
  0x21   :  { %s11814_s21 = sld [smem:[%s14339_s0 + %s11659_s7]]   ;;  %s11663_s7 = smov 26  }
  0x22   :  { %s11819_s3 = sld [smem:[%s14339_s0 + %s11660_s15]]   ;;  %s11664_s15 = smov 27  }
  0x23   :  { %s11824_s17 = sld [smem:[%s14339_s0 + %s11661_s22]]   ;;  %s11665_s22 = smov 28  }
  0x24   :  { %s11829_s13 = sld [smem:[%s14339_s0 + %s11662_s28]]   ;;  %s11666_s28 = smov 29  }
  0x27   :  { %14377 = sst [smem:[#allocation14_spill]] %s11814_s21 }
  0x28   :  { %14378 = sst [smem:[#allocation15_spill]] %s11819_s3 }
  0x29   :  { %14379 = sst [smem:[#allocation16_spill]] %s11824_s17 }
  0x2a   :  { %14380 = sst [smem:[#allocation17_spill]] %s11829_s13 }
  0x2b   :  { %s11834_s21 = sld [smem:[%s14339_s0 + %s11663_s7]]   ;;  %s11667_s7 = smov 30  }
  0x2c   :  { %s11839_s3 = sld [smem:[%s14339_s0 + %s11664_s15]]   ;;  %s11668_s15 = smov 31  }
  0x2d   :  { %s11844_s17 = sld [smem:[%s14339_s0 + %s11665_s22]]   ;;  %s11669_s22 = smov 32  }
  0x2e   :  { %s11849_s13 = sld [smem:[%s14339_s0 + %s11666_s28]]   ;;  %s11670_s28 = smov 33  }
  0x31   :  { %14381 = sst [smem:[#allocation18_spill]] %s11834_s21 }
  0x32   :  { %14382 = sst [smem:[#allocation19_spill]] %s11839_s3 }
  0x33   :  { %14383 = sst [smem:[#allocation20_spill]] %s11844_s17 }
  0x34   :  { %14384 = sst [smem:[#allocation21_spill]] %s11849_s13 }
  0x35   :  { %s11854_s21 = sld [smem:[%s14339_s0 + %s11667_s7]]   ;;  %s11671_s7 = smov 34  }
  0x36   :  { %s11859_s3 = sld [smem:[%s14339_s0 + %s11668_s15]]   ;;  %s11672_s15 = smov 35  }
  0x37   :  { %s11864_s17 = sld [smem:[%s14339_s0 + %s11669_s22]]   ;;  %s11673_s22 = smov 36  }
  0x38   :  { %s11869_s13 = sld [smem:[%s14339_s0 + %s11670_s28]]   ;;  %s11674_s28 = smov 37  }
  0x3b   :  { %14385 = sst [smem:[#allocation22_spill]] %s11854_s21 }
  0x3c   :  { %14386 = sst [smem:[#allocation23_spill]] %s11859_s3 }
  0x3d   :  { %14387 = sst [smem:[#allocation24_spill]] %s11864_s17 }
  0x3e   :  { %14388 = sst [smem:[#allocation25_spill]] %s11869_s13 }
  0x3f   :  { %s11874_s21 = sld [smem:[%s14339_s0 + %s11671_s7]]   ;;  %s11675_s7 = smov 38  }
  0x40   :  { %s11879_s3 = sld [smem:[%s14339_s0 + %s11672_s15]]  }
  0x41   :  { %s11884_s17 = sld [smem:[%s14339_s0 + %s11673_s22]]  }
  0x42   :  { %s11889_s13 = sld [smem:[%s14339_s0 + %s11674_s28]]  }
  0x45   :  { %14389 = sst [smem:[#allocation26_spill]] %s11874_s21 }
  0x46   :  { %s11894_s21 = sld [smem:[%s14339_s0 + %s11675_s7]]  }
  0x47   :  { %v224_v0 = vld [vmem:[%s11749_s14] sm:$0xff]  ;;  %v225_v1 = vld [vmem:[%s11749_s14 + $0x8] sm:$0xff]  ;;  %v226_v2 = vld [vmem:[%s11749_s14 + $0x10] sm:$0xff]  ;;  %vm322_vm0 = vcmask 261120   ;;  %v14351_v6 = vmov 0.0|0.0   ;;  %vm11677_vm1 = vmmov 0  }
  0x48   :  { %v10197_v3 = vpack.c.bf16 %v225_v1, %v224_v0  ;;  %v227_v4 = vld [vmem:[%s11749_s14 + $0x18] sm:$0xff]  ;;  %v167_v5 = vld [vmem:[%s11709_s9] sm:$0xff]  ;;  %10211 = vmatprep.subr.bf16.mxu1 %v14351_v6  ;;  %v229_v9 = vld [vmem:[%s11754_s19 + $0x8] sm:$0xff]  ;;  %v11678_v10 = vmov 0.0  }
  0x49   :  { %v10201_v7 = vpack.c.bf16 %v227_v4, %v226_v2  ;;  %9257 = vmatprep.mubr.msk.f32.mxu0 %vm322_vm0, %v167_v5  ;;  %v228_v8 = vld [vmem:[%s11754_s19] sm:$0xff]  ;;  %9288 = vmatprep.mubr.msk.f32.mxu1 %vm11677_vm1, %v11678_v10  ;;  %v230_v12 = vld [vmem:[%s11754_s19 + $0x10] sm:$0xff]  ;;  %v231_v13 = vld [vmem:[%s11754_s19 + $0x18] sm:$0xff] }
  0x4a   :  { %10198 = vmatprep.subr.bf16.mxu0 %v10197_v3  ;;  %v11907_v11 = vpack.c.bf16 %v229_v9, %v228_v8 }
  0x4b   :  { %10200 = vmatpush3.bf16.msra.mxu0 %v10197_v3 }
  0x4c   :  { %10202 = vmatprep.subr.bf16.mxu0 %v10201_v7  ;;  %10213 = vmatpush3.bf16.msra.mxu1 %v11907_v11 }
  0x4d   :  { %82 = vsyncpa [#allocation4], 0  ;;  %10214 = vmatprep.subr.bf16.mxu1 %v14351_v6  ;;  %v11913_v14 = vpack.c.bf16 %v231_v13, %v230_v12  ;;  %v168_v15 = vld [vmem:[%s11709_s9 + $0x8] sm:$0xff]  ;;  %v169_v16 = vld [vmem:[%s11709_s9 + $0x10] sm:$0xff]  ;;  %s11679_s0 = smov 64   ;;  %s11681_s14 = smov 88  }
  0x4e   :  { %v170_v17 = vld [vmem:[%s11709_s9 + $0x18] sm:$0xff]  ;;  %v171_v18 = vld [vmem:[%s11709_s9 + $0x20] sm:$0xff]  ;;  %v172_v19 = vld [vmem:[%s11709_s9 + $0x28] sm:$0xff]  ;;  %s11682_s19 = smov 96   ;;  %s11686_s15 = smov 112   ;;  %vm1334_vm2 = vcmask 64512  }
  0x4f   :  { %10204 = vmatpush3.bf16.msra.mxu0 %v10201_v7  ;;  %v173_v20 = vld [vmem:[%s11709_s9 + $0x30] sm:$0xff]  ;;  %v174_v21 = vld [vmem:[%s11709_s9 + $0x38] sm:$0xff]  ;;  %v8365_v22 = vld [vmem:[%s11759_s24] ss:$0 sm:$0xff]  ;;  %s11680_s9 = smov 32   ;;  %s11683_s24 = smov 80  }
  0x50   :  { %10205 = vmatprep.subr.bf16.mxu0 %v14351_v6  ;;  %10216 = vmatpush3.bf16.msra.mxu1 %v11913_v14  ;;  %s11687_s16 = smov 104   ;;  %s11689_s18 = smov 48   ;;  %vm2012_vm3 = vcmask 130048   ;;  %vm2014_vm4 = vcmask 195584   ;;  %vm12216_vm5 = vmpackc.low %vm1334_vm2, %vm1334_vm2  ;;  %vm2536_vm6 = vcmask 523264   ;;  %vm4891_vm7 = vcmask 785408  }
  0x51   :  { %10223 = vmatprep.subr.bf16.mxu1 %v14351_v6  ;;  %s11690_s22 = smov 40   ;;  %s11691_s23 = smov 8  }
  0x52   :  { %9258 = vmatmul.mubr.msk.f32.vlgmr.msra.gmra.mrb[0].mxu0 %vm322_vm0, %v168_v15  ;;  %s11692_s26 = smov 16   ;;  %s11693_s28 = smov 24  }
  0x53   :  { %10207 = vmatpush3.bf16.msra.mxu0 %v11907_v11  ;;  %9260 = vmatprep.mubr.msk.f32.mxu0 %vm322_vm0, %v169_v16  ;;  %s14432_s1 = sld [smem:[#allocation13_spill]]  ;;  %s14434_s2 = sld [smem:[#allocation15_spill]] }
  0x54   :  { %10208 = vmatprep.subr.bf16.mxu0 %v14351_v6  ;;  %s14435_s7 = sld [smem:[#allocation18_spill]]  ;;  %s14436_s10 = sld [smem:[#allocation17_spill]] }
  0x55   :  { %s14437_s11 = sld [smem:[#allocation19_spill]] }
  0x56   :  { %9261 = vmatmul.mubr.msk.f32.gmra.mrb[2].mxu0 %vm322_vm0, %v170_v17 }
  0x57   :  { %9263 = vmatprep.mubr.msk.f32.mxu0 %vm322_vm0, %v171_v18  ;;  %10210 = vmatpush3.bf16.msra.mxu0 %v11913_v14 }
  0x58   :  { %10217 = vmatprep.subr.bf16.mxu0 %v14351_v6 }
  0x5a   :  { %9264 = vmatmul.mubr.msk.f32.gmra.mrb[4].mxu0 %vm322_vm0, %v172_v19 }
  0x5b   :  { %9266 = vmatprep.mubr.msk.f32.mxu0 %vm322_vm0, %v173_v20 }
  0x5e   :  { %9267 = vmatmul.mubr.msk.f32.gmra.mrb[6].mxu0 %vm322_vm0, %v174_v21 }
  0x5f   :  { %9277 = vmatprep.mubr.msk.f32.mxu0 %vm11677_vm1, %v11678_v10 }
  0x62   :  { %9278 = vmatmul.mubr.f32.vlgmr.msra.gmra.mrb[8].mxu0 %v11678_v10 }
  0x63   :  { %10219 = vmatpush3.bf16.msra.mxu0 %v11907_v11  ;;  %9299 = vmatprep.mubr.msk.f32.mxu0 %vm11677_vm1, %v11678_v10 }
  0x64   :  { %10220 = vmatprep.subr.bf16.mxu0 %v14351_v6 }
  0x67   :  { %10222 = vmatpush3.bf16.msra.mxu0 %v11913_v14 }
  0x68   :  { %10229 = vmatprep.subr.bf16.mxu0 %v14351_v6 }
 0x125   :  { %v9259_v23 = vpop.f32.mrb[0].mxu0 }
 0x126   :  { %v419_v24 = vadd.f32 %v9259_v23, %v8365_v22  ;;  %v413_v25 = vpop.f32.mrb[1].mxu0 }
 0x127   :  { %v414_v38 = vadd.f32 %v8365_v22, %v413_v25 }
 0x129   :  { %v9262_v26 = vpop.f32.mrb[2].mxu0 }
 0x12a   :  { %v11946_v27 = vadd.f32 %v9262_v26, %v8365_v22  ;;  %v423_v28 = vpop.f32.mrb[3].mxu0 }
 0x12b   :  { %v11948_v29 = vadd.f32 %v8365_v22, %v423_v28 }
 0x12d   :  { %v9265_v30 = vpop.f32.mrb[4].mxu0 }
 0x12e   :  { %v11950_v31 = vadd.f32 %v9265_v30, %v8365_v22  ;;  %v433_v32 = vpop.f32.mrb[5].mxu0 }
 0x12f   :  { %v11952_v33 = vadd.f32 %v8365_v22, %v433_v32 }
 0x131   :  { %v9268_v34 = vpop.f32.mrb[6].mxu0 }
 0x132   :  { %v11954_v35 = vadd.f32 %v9268_v34, %v8365_v22  ;;  %v443_v36 = vpop.f32.mrb[7].mxu0 }
 0x133   :  { %v11956_v37 = vadd.f32 %v8365_v22, %v443_v36 }
 0x135   :  { %v521_v39 = vpop.f32.mrb[8].mxu0 }
 0x136   :  { %v525_v40 = vadd.f32 %v521_v39, %v414_v38  ;;  %v9279_v41 = vpop.f32.mrb[9].mxu0 }
 0x138   :  { %11198 = vtanh.f32 %v525_v40  ;;  %v526_v43 = vmul.f32 0.5, %v525_v40 }
 0x13a   :  { %11200 = vtanh.f32 %v526_v43 }
 0x142   :  { %v11199_v42 = vpop.eup %11198 }
 0x143   :  { %533 = vrot.lane.b32.xlu0 %v11199_v42, %s11679_s0 }
 0x144   :  { %v11201_v44 = vpop.eup %11200 }
 0x145   :  { %v528_v45 = vadd.f32 1.0, %v11201_v44 }
 0x147   :  { %v529_v46 = vmul.f32 0.5, %v528_v45 }
 0x149   :  { %v531_v49 = vmul.f32 0.0, %v529_v46 }
 0x1b5   :  { %v534_v47 = vpop.permute.xlu0 %533 }
 0x1b6   :  { %v536_v48 = vmul.f32 %v534_v47, %v529_v46 }
 0x1b8   :  { %538 = vrot.lane.b32.xlu0 %v536_v48, %s11680_s9 }
 0x22a   :  { %v539_v50 = vpop.permute.xlu0 %538 }
 0x22b   :  { %v541_v51 = vadd.f32 %v539_v50, %v531_v49 }
 0x22d   :  { %11202 = vtanh.f32 %v541_v51 }
 0x237   :  { %v11203_v52 = vpop.eup %11202 }
 0x238   :  { %544 = vrot.lane.b32.xlu1 %v11203_v52, %s11679_s0 }
 0x2aa   :  { %v545_v53 = vpop.permute.xlu1 %544 }
 0x2ab   :  { %v547_v54 = vmul.f32 %v545_v53, %v529_v46 }
 0x2ad   :  { %549 = vrot.lane.b32.xlu1 %v547_v54, %s11680_s9 }
 0x31f   :  { %v550_v55 = vpop.permute.xlu1 %549 }
 0x320   :  { %552 = vst.msk [vmem:[#allocation2] sm:$0xff] %vm322_vm0, %v550_v55  ;;  %9289 = vmatmul.mubr.msk.f32.vlgmr.msra.gmra.mrb[0].mxu1 %vm322_vm0, %v550_v55 }
 0x321   :  { %10225 = vmatpush3.bf16.msra.mxu1 %v11907_v11  ;;  %9310 = vmatprep.mubr.msk.f32.mxu1 %vm11677_vm1, %v11678_v10 }
 0x322   :  { %10226 = vmatprep.subr.bf16.mxu1 %v14351_v6 }
 0x325   :  { %10228 = vmatpush3.bf16.msra.mxu1 %v11913_v14 }
 0x326   :  { %10235 = vmatprep.subr.bf16.mxu1 %v14351_v6 }
 0x3f3   :  { %v621_v56 = vpop.f32.mrb[0].mxu1 }
 0x3f4   :  { %v625_v57 = vadd.f32 %v621_v56, %v419_v24  ;;  %v9290_v58 = vpop.f32.mrb[1].mxu1 }
 0x3f6   :  { %11204 = vtanh.f32 %v625_v57  ;;  %v626_v60 = vmul.f32 0.5, %v625_v57 }
 0x3f8   :  { %11206 = vtanh.f32 %v626_v60 }
 0x400   :  { %v11205_v59 = vpop.eup %11204 }
 0x401   :  { %633 = vrot.lane.b32.xlu0 %v11205_v59, %s11679_s0 }
 0x402   :  { %v11207_v61 = vpop.eup %11206 }
 0x403   :  { %v628_v62 = vadd.f32 1.0, %v11207_v61 }
 0x405   :  { %v629_v63 = vmul.f32 0.5, %v628_v62 }
 0x407   :  { %v631_v2 = vmul.f32 %v629_v63, %v541_v51 }
 0x473   :  { %v634_v0 = vpop.permute.xlu0 %633 }
 0x474   :  { %v636_v1 = vmul.f32 %v634_v0, %v629_v63 }
 0x476   :  { %638 = vrot.lane.b32.xlu1 %v636_v1, %s11680_s9 }
 0x4e8   :  { %v639_v3 = vpop.permute.xlu1 %638 }
 0x4e9   :  { %v641_v4 = vadd.f32 %v639_v3, %v631_v2 }
 0x4eb   :  { %11208 = vtanh.f32 %v641_v4 }
 0x4f5   :  { %v11209_v5 = vpop.eup %11208 }
 0x4f6   :  { %644 = vrot.lane.b32.xlu0 %v11209_v5, %s11679_s0 }
 0x568   :  { %v645_v7 = vpop.permute.xlu0 %644 }
 0x569   :  { %v647_v8 = vmul.f32 %v645_v7, %v629_v63 }
 0x56b   :  { %649 = vrot.lane.b32.xlu1 %v647_v8, %s11680_s9 }
 0x5dd   :  { %v650_v9 = vpop.permute.xlu1 %649 }
 0x5de   :  { %652 = vst.msk [vmem:[#allocation2 + $0x8] sm:$0xff] %vm322_vm0, %v650_v9  ;;  %9300 = vmatmul.mubr.msk.f32.vlgmr.msra.gmra.mrb[10].mxu0 %vm322_vm0, %v650_v9 }
 0x5df   :  { %10231 = vmatpush3.bf16.msra.mxu0 %v11907_v11  ;;  %9321 = vmatprep.mubr.msk.f32.mxu0 %vm11677_vm1, %v11678_v10 }
 0x5e0   :  { %10232 = vmatprep.subr.bf16.mxu0 %v14351_v6 }
 0x5e3   :  { %10234 = vmatpush3.bf16.msra.mxu0 %v11913_v14 }
 0x5e4   :  { %10241 = vmatprep.subr.bf16.mxu0 %v14351_v6 }
 0x6b1   :  { %v721_v12 = vpop.f32.mrb[10].mxu0 }
 0x6b2   :  { %v725_v13 = vadd.f32 %v721_v12, %v11948_v29  ;;  %v9301_v15 = vpop.f32.mrb[11].mxu0 }
 0x6b4   :  { %11210 = vtanh.f32 %v725_v13  ;;  %v726_v17 = vmul.f32 0.5, %v725_v13 }
 0x6b6   :  { %11212 = vtanh.f32 %v726_v17 }
 0x6be   :  { %v11211_v16 = vpop.eup %11210 }
 0x6bf   :  { %733 = vrot.lane.b32.xlu0 %v11211_v16, %s11679_s0 }
 0x6c0   :  { %v11213_v18 = vpop.eup %11212 }
 0x6c1   :  { %v728_v19 = vadd.f32 1.0, %v11213_v18 }
 0x6c3   :  { %v729_v20 = vmul.f32 0.5, %v728_v19 }
 0x6c5   :  { %v731_v23 = vmul.f32 %v729_v20, %v641_v4 }
 0x731   :  { %v734_v21 = vpop.permute.xlu0 %733 }
 0x732   :  { %v736_v22 = vmul.f32 %v734_v21, %v729_v20 }
 0x734   :  { %738 = vrot.lane.b32.xlu1 %v736_v22, %s11680_s9 }
 0x7a6   :  { %v739_v24 = vpop.permute.xlu1 %738 }
 0x7a7   :  { %v741_v25 = vadd.f32 %v739_v24, %v731_v23 }
 0x7a9   :  { %11214 = vtanh.f32 %v741_v25 }
 0x7b3   :  { %v11215_v26 = vpop.eup %11214 }
 0x7b4   :  { %744 = vrot.lane.b32.xlu0 %v11215_v26, %s11679_s0 }
 0x826   :  { %v745_v28 = vpop.permute.xlu0 %744 }
 0x827   :  { %v747_v29 = vmul.f32 %v745_v28, %v729_v20 }
 0x829   :  { %749 = vrot.lane.b32.xlu1 %v747_v29, %s11680_s9 }
 0x89b   :  { %v750_v30 = vpop.permute.xlu1 %749 }
 0x89c   :  { %752 = vst.msk [vmem:[#allocation2 + $0x10] sm:$0xff] %vm322_vm0, %v750_v30  ;;  %9311 = vmatmul.mubr.msk.f32.vlgmr.msra.gmra.mrb[2].mxu1 %vm322_vm0, %v750_v30 }
 0x89d   :  { %10237 = vmatpush3.bf16.msra.mxu1 %v11907_v11  ;;  %9332 = vmatprep.mubr.msk.f32.mxu1 %vm11677_vm1, %v11678_v10 }
 0x89e   :  { %10238 = vmatprep.subr.bf16.mxu1 %v14351_v6 }
 0x8a1   :  { %10240 = vmatpush3.bf16.msra.mxu1 %v11913_v14 }
 0x8a2   :  { %10247 = vmatprep.subr.bf16.mxu1 %v14351_v6 }
 0x96f   :  { %v821_v32 = vpop.f32.mrb[2].mxu1 }
 0x970   :  { %v825_v34 = vadd.f32 %v821_v32, %v11946_v27  ;;  %v9312_v36 = vpop.f32.mrb[3].mxu1 }
 0x972   :  { %11216 = vtanh.f32 %v825_v34  ;;  %v826_v39 = vmul.f32 0.5, %v825_v34 }
 0x974   :  { %11218 = vtanh.f32 %v826_v39 }
 0x97c   :  { %v11217_v38 = vpop.eup %11216 }
 0x97d   :  { %833 = vrot.lane.b32.xlu0 %v11217_v38, %s11679_s0 }
 0x97e   :  { %v11219_v40 = vpop.eup %11218 }
 0x97f   :  { %v828_v41 = vadd.f32 1.0, %v11219_v40 }
 0x981   :  { %v829_v42 = vmul.f32 0.5, %v828_v41 }
 0x983   :  { %v831_v45 = vmul.f32 %v829_v42, %v741_v25 }
 0x9ef   :  { %v834_v43 = vpop.permute.xlu0 %833 }
 0x9f0   :  { %v836_v44 = vmul.f32 %v834_v43, %v829_v42 }
 0x9f2   :  { %838 = vrot.lane.b32.xlu1 %v836_v44, %s11680_s9 }
 0xa64   :  { %v839_v46 = vpop.permute.xlu1 %838 }
 0xa65   :  { %v841_v47 = vadd.f32 %v839_v46, %v831_v45 }
 0xa67   :  { %11220 = vtanh.f32 %v841_v47 }
 0xa71   :  { %v11221_v48 = vpop.eup %11220 }
 0xa72   :  { %844 = vrot.lane.b32.xlu0 %v11221_v48, %s11679_s0 }
 0xae4   :  { %v845_v27 = vpop.permute.xlu0 %844 }
 0xae5   :  { %v847_v49 = vmul.f32 %v845_v27, %v829_v42 }
 0xae7   :  { %849 = vrot.lane.b32.xlu1 %v847_v49, %s11680_s9 }
 0xb59   :  { %v850_v50 = vpop.permute.xlu1 %849 }
 0xb5a   :  { %852 = vst.msk [vmem:[#allocation2 + $0x18] sm:$0xff] %vm322_vm0, %v850_v50  ;;  %9322 = vmatmul.mubr.msk.f32.vlgmr.msra.gmra.mrb[12].mxu0 %vm322_vm0, %v850_v50 }
 0xb5b   :  { %10243 = vmatpush3.bf16.msra.mxu0 %v11907_v11  ;;  %9343 = vmatprep.mubr.msk.f32.mxu0 %vm11677_vm1, %v11678_v10 }
 0xb5c   :  { %10244 = vmatprep.subr.bf16.mxu0 %v14351_v6 }
 0xb5f   :  { %10246 = vmatpush3.bf16.msra.mxu0 %v11913_v14 }
 0xb60   :  { %10253 = vmatprep.subr.bf16.mxu0 %v14351_v6 }
 0xc2d   :  { %v921_v51 = vpop.f32.mrb[12].mxu0 }
 0xc2e   :  { %v925_v52 = vadd.f32 %v921_v51, %v11952_v33  ;;  %v9323_v53 = vpop.f32.mrb[13].mxu0 }
 0xc2f   :  { %v233_v53 = vld [vmem:[%s11764_s30] sm:$0xff] }
 0xc30   :  { %11222 = vtanh.f32 %v925_v52  ;;  %v926_v55 = vmul.f32 0.5, %v925_v52 }
 0xc32   :  { %11224 = vtanh.f32 %v926_v55  ;;  %v235_v55 = vld [vmem:[%s11764_s30 + $0x10] sm:$0xff] }
 0xc3a   :  { %v11223_v54 = vpop.eup %11222 }
 0xc3b   :  { %933 = vrot.lane.b32.xlu0 %v11223_v54, %s11679_s0  ;;  %v234_v54 = vld [vmem:[%s11764_s30 + $0x8] sm:$0xff] }
 0xc3c   :  { %v11225_v56 = vpop.eup %11224 }
 0xc3d   :  { %v928_v57 = vadd.f32 1.0, %v11225_v56  ;;  %v10254_v56 = vpack.c.bf16 %v234_v54, %v233_v53 }
 0xc3f   :  { %v929_v58 = vmul.f32 0.5, %v928_v57  ;;  %v236_v57 = vld [vmem:[%s11764_s30 + $0x18] sm:$0xff]  ;;  %s11684_s30 = smov 120  }
 0xc41   :  { %v931_v61 = vmul.f32 %v929_v58, %v841_v47 }
 0xcad   :  { %v934_v59 = vpop.permute.xlu0 %933 }
 0xcae   :  { %v936_v60 = vmul.f32 %v934_v59, %v929_v58 }
 0xcb0   :  { %938 = vrot.lane.b32.xlu1 %v936_v60, %s11680_s9 }
 0xd22   :  { %v939_v62 = vpop.permute.xlu1 %938 }
 0xd23   :  { %v941_v63 = vadd.f32 %v939_v62, %v931_v61 }
 0xd25   :  { %11226 = vtanh.f32 %v941_v63 }
 0xd2f   :  { %v11227_v0 = vpop.eup %11226 }
 0xd30   :  { %944 = vrot.lane.b32.xlu0 %v11227_v0, %s11679_s0 }
 0xda2   :  { %v945_v33 = vpop.permute.xlu0 %944 }
 0xda3   :  { %v947_v1 = vmul.f32 %v945_v33, %v929_v58  ;;  %v10257_v58 = vpack.c.bf16 %v236_v57, %v235_v55 }
 0xda5   :  { %949 = vrot.lane.b32.xlu1 %v947_v1, %s11680_s9 }
 0xe17   :  { %v950_v2 = vpop.permute.xlu1 %949 }
 0xe18   :  { %952 = vst.msk [vmem:[#allocation2 + $0x20] sm:$0xff] %vm322_vm0, %v950_v2  ;;  %9333 = vmatmul.mubr.msk.f32.vlgmr.msra.gmra.mrb[4].mxu1 %vm322_vm0, %v950_v2 }
 0xe19   :  { %10249 = vmatpush3.bf16.msra.mxu1 %v11907_v11  ;;  %9354 = vmatprep.mubr.msk.f32.mxu1 %vm11677_vm1, %v11678_v10 }
 0xe1a   :  { %10250 = vmatprep.subr.bf16.mxu1 %v14351_v6 }
 0xe1d   :  { %10252 = vmatpush3.bf16.msra.mxu1 %v11913_v14 }
 0xe1e   :  { %9368 = vmatprep.subr.mxu1 %v11678_v10 }
 0xeeb   :  { %v1021_v3 = vpop.f32.mrb[4].mxu1 }
 0xeec   :  { %v1025_v4 = vadd.f32 %v1021_v3, %v11950_v31  ;;  %v9334_v5 = vpop.f32.mrb[5].mxu1 }
 0xeee   :  { %11228 = vtanh.f32 %v1025_v4  ;;  %v1026_v8 = vmul.f32 0.5, %v1025_v4 }
 0xef0   :  { %11230 = vtanh.f32 %v1026_v8 }
 0xef8   :  { %v11229_v7 = vpop.eup %11228 }
 0xef9   :  { %1033 = vrot.lane.b32.xlu0 %v11229_v7, %s11679_s0 }
 0xefa   :  { %v11231_v11 = vpop.eup %11230 }
 0xefb   :  { %v1028_v9 = vadd.f32 1.0, %v11231_v11 }
 0xefd   :  { %v1029_v12 = vmul.f32 0.5, %v1028_v9 }
 0xeff   :  { %v1031_v14 = vmul.f32 %v1029_v12, %v941_v63  ;;  %v8381_v63 = vld [vmem:[%s11769_s6] ss:$0 sm:$0xff]  ;;  %s11685_s6 = smov 72  }
 0xf6b   :  { %v1034_v13 = vpop.permute.xlu0 %1033 }
 0xf6c   :  { %v1036_v15 = vmul.f32 %v1034_v13, %v1029_v12 }
 0xf6e   :  { %1038 = vrot.lane.b32.xlu1 %v1036_v15, %s11680_s9 }
 0xfe0   :  { %v1039_v16 = vpop.permute.xlu1 %1038 }
 0xfe1   :  { %v1041_v17 = vadd.f32 %v1039_v16, %v1031_v14 }
 0xfe3   :  { %11232 = vtanh.f32 %v1041_v17 }
 0xfed   :  { %v11233_v18 = vpop.eup %11232 }
 0xfee   :  { %1044 = vrot.lane.b32.xlu0 %v11233_v18, %s11679_s0 }
0x1060   :  { %v1045_v31 = vpop.permute.xlu0 %1044 }
0x1061   :  { %v1047_v19 = vmul.f32 %v1045_v31, %v1029_v12  ;;  %v223_v12 = vld [vmem:[%s11744_s8] sm:$0xff]  ;;  %s11688_s8 = smov 56  }
0x1063   :  { %1049 = vrot.lane.b32.xlu1 %v1047_v19, %s11680_s9 }
0x10d5   :  { %v1050_v20 = vpop.permute.xlu1 %1049 }
0x10d6   :  { %1052 = vst.msk [vmem:[#allocation2 + $0x28] sm:$0xff] %vm322_vm0, %v1050_v20  ;;  %9344 = vmatmul.mubr.msk.f32.vlgmr.msra.gmra.mrb[14].mxu0 %vm322_vm0, %v1050_v20 }
0x10d7   :  { %9365 = vmatprep.mubr.msk.f32.mxu0 %vm11677_vm1, %v11678_v10  ;;  %10255 = vmatpush3.bf16.msra.mxu0 %v10254_v56 }
0x10d8   :  { %10256 = vmatprep.subr.bf16.mxu0 %v14351_v6 }
0x10db   :  { %10258 = vmatpush3.bf16.msra.mxu0 %v10257_v58 }
0x10dc   :  { %9378 = vmatprep.subr.mxu0 %v11678_v10 }
0x11a9   :  { %v1121_v21 = vpop.f32.mrb[14].mxu0 }
0x11aa   :  { %v1125_v22 = vadd.f32 %v1121_v21, %v11956_v37  ;;  %v9345_v23 = vpop.f32.mrb[15].mxu0 }
0x11ac   :  { %11234 = vtanh.f32 %v1125_v22  ;;  %v1126_v25 = vmul.f32 0.5, %v1125_v22 }
0x11ae   :  { %11236 = vtanh.f32 %v1126_v25 }
0x11b6   :  { %v11235_v24 = vpop.eup %11234 }
0x11b7   :  { %1133 = vrot.lane.b32.xlu0 %v11235_v24, %s11679_s0 }
0x11b8   :  { %v11237_v26 = vpop.eup %11236 }
0x11b9   :  { %v1128_v28 = vadd.f32 1.0, %v11237_v26 }
0x11bb   :  { %v1129_v29 = vmul.f32 0.5, %v1128_v28 }
0x11bd   :  { %v1131_v34 = vmul.f32 %v1129_v29, %v1041_v17 }
0x1229   :  { %v1134_v30 = vpop.permute.xlu0 %1133 }
0x122a   :  { %v1136_v32 = vmul.f32 %v1134_v30, %v1129_v29 }
0x122c   :  { %1138 = vrot.lane.b32.xlu1 %v1136_v32, %s11680_s9 }
0x129e   :  { %v1139_v36 = vpop.permute.xlu1 %1138 }
0x129f   :  { %v1141_v38 = vadd.f32 %v1139_v36, %v1131_v34 }
0x12a1   :  { %11238 = vtanh.f32 %v1141_v38 }
0x12ab   :  { %v11239_v39 = vpop.eup %11238 }
0x12ac   :  { %1144 = vrot.lane.b32.xlu0 %v11239_v39, %s11679_s0 }
0x131e   :  { %v1145_v37 = vpop.permute.xlu0 %1144 }
0x131f   :  { %v1147_v40 = vmul.f32 %v1145_v37, %v1129_v29 }
0x1321   :  { %1149 = vrot.lane.b32.xlu1 %v1147_v40, %s11680_s9 }
0x1393   :  { %v1150_v41 = vpop.permute.xlu1 %1149 }
0x1394   :  { %1152 = vst.msk [vmem:[#allocation2 + $0x30] sm:$0xff] %vm322_vm0, %v1150_v41  ;;  %9355 = vmatmul.mubr.msk.f32.vlgmr.msra.gmra.mrb[6].mxu1 %vm322_vm0, %v1150_v41 }
0x1395   :  { %9370 = vmatprep.mubr.msk.f32.mxu1 %vm11677_vm1, %v11678_v10 }
0x1467   :  { %v1221_v42 = vpop.f32.mrb[6].mxu1 }
0x1468   :  { %v1225_v43 = vadd.f32 %v1221_v42, %v11954_v35  ;;  %v9356_v44 = vpop.f32.mrb[7].mxu1 }
0x146a   :  { %11240 = vtanh.f32 %v1225_v43  ;;  %v1226_v46 = vmul.f32 0.5, %v1225_v43 }
0x146c   :  { %11242 = vtanh.f32 %v1226_v46 }
0x1474   :  { %v11241_v45 = vpop.eup %11240 }
0x1475   :  { %1233 = vrot.lane.b32.xlu0 %v11241_v45, %s11679_s0 }
0x1476   :  { %v11243_v47 = vpop.eup %11242 }
0x1477   :  { %v1228_v48 = vadd.f32 1.0, %v11243_v47 }
0x1479   :  { %v1229_v27 = vmul.f32 0.5, %v1228_v48 }
0x147b   :  { %v1231_v51 = vmul.f32 %v1229_v27, %v1141_v38 }
0x14e7   :  { %v1234_v49 = vpop.permute.xlu0 %1233 }
0x14e8   :  { %v1236_v50 = vmul.f32 %v1234_v49, %v1229_v27 }
0x14ea   :  { %1238 = vrot.lane.b32.xlu1 %v1236_v50, %s11680_s9 }
0x155c   :  { %v1239_v35 = vpop.permute.xlu1 %1238 }
0x155d   :  { %v1241_v52 = vadd.f32 %v1239_v35, %v1231_v51 }
0x155f   :  { %11244 = vtanh.f32 %v1241_v52 }
0x1569   :  { %v11245_v59 = vpop.eup %11244 }
0x156a   :  { %1244 = vrot.lane.b32.xlu0 %v11245_v59, %s11679_s0 }
0x15dc   :  { %v1245_v60 = vpop.permute.xlu0 %1244 }
0x15dd   :  { %v1247_v61 = vmul.f32 %v1245_v60, %v1229_v27 }
0x15df   :  { %1249 = vrot.lane.b32.xlu1 %v1247_v61, %s11680_s9 }
0x1651   :  { %v1250_v62 = vpop.permute.xlu1 %1249 }
0x1652   :  { %1252 = vst.msk [vmem:[#allocation2 + $0x38] sm:$0xff] %vm322_vm0, %v1250_v62  ;;  %9366 = vmatmul.mubr.msk.f32.vlgmr.msra.gmra.mrb[16].mxu0 %vm322_vm0, %v1250_v62 }
0x1653   :  { %9380 = vmatprep.mubr.msk.f32.mxu0 %vm11677_vm1, %v11678_v10 }
0x1725   :  { %v1327_v0 = vpop.f32.mrb[16].mxu0 }
0x1726   :  { %v12055_v33 = vadd.f32 %v8381_v63, %v1327_v0  ;;  %v9367_v1 = vpop.f32.mrb[17].mxu0 }
0x1728   :  { %1500 = vrot.lane.b32.xlu1 %v12055_v33, %s11681_s14  ;;  %1332 = vrot.lane.b32.xlu0 %v12055_v33, %s11682_s19 }
0x172c   :  { %1667 = vrot.lane.b32.xlu1 %v12055_v33, %s11683_s24  ;;  %1498 = vrot.lane.b32.xlu0 %v12055_v33, %s11684_s30 }
0x1730   :  { %1834 = vrot.lane.b32.xlu1 %v12055_v33, %s11685_s6  ;;  %1665 = vrot.lane.b32.xlu0 %v12055_v33, %s11686_s15 }
0x1734   :  { %1832 = vrot.lane.b32.xlu0 %v12055_v33, %s11687_s16 }
0x179a   :  { %v1501_v2 = vpop.permute.xlu1 %1500  ;;  %v1333_v3 = vpop.permute.xlu0 %1332 }
0x179b   :  { %9369 = vmatpush3.xpose.msk.msra.mxu1 %vm1334_vm2, %v1333_v3  ;;  %9379 = vmatpush3.xpose.msk.msra.mxu0 %vm1334_vm2, %v1501_v2 }
0x179c   :  { %9388 = vmatprep.subr.mxu0 %v11678_v10  ;;  %9373 = vmatprep.subr.mxu1 %v11678_v10 }
0x179e   :  { %v1668_v4 = vpop.permute.xlu1 %1667  ;;  %9371 = vmatmul.mubr.msk.f32.vlgmr.msra.gmra.mrb[8].mxu1 %vm1334_vm2, %v12055_v33  ;;  %v1499_v5 = vpop.permute.xlu0 %1498 }
0x179f   :  { %9381 = vmatmul.mubr.msk.f32.vlgmr.msra.gmra.mrb[18].mxu0 %vm1334_vm2, %v1499_v5  ;;  %9375 = vmatprep.mubr.msk.f32.mxu1 %vm11677_vm1, %v11678_v10  ;;  %v239_v5 = vld [vmem:[%s11774_s12 + $0x8] sm:$0xff] }
0x17a0   :  { %9389 = vmatpush3.xpose.msk.msra.mxu0 %vm1334_vm2, %v1668_v4  ;;  %9390 = vmatprep.mubr.msk.f32.mxu0 %vm11677_vm1, %v11678_v10  ;;  %v238_v4 = vld [vmem:[%s11774_s12] sm:$0xff] }
0x17a1   :  { %9398 = vmatprep.subr.mxu0 %v11678_v10 }
0x17a2   :  { %v1835_v7 = vpop.permute.xlu1 %1834  ;;  %v1666_v8 = vpop.permute.xlu0 %1665 }
0x17a3   :  { %9391 = vmatmul.mubr.msk.f32.vlgmr.msra.gmra.mrb[20].mxu0 %vm1334_vm2, %v1666_v8 }
0x17a4   :  { %9399 = vmatpush3.xpose.msk.msra.mxu0 %vm1334_vm2, %v1835_v7  ;;  %9400 = vmatprep.mubr.msk.f32.mxu0 %vm11677_vm1, %v11678_v10  ;;  %v10260_v7 = vpack.c.bf16 %v239_v5, %v238_v4 }
0x17a5   :  { %10259 = vmatprep.subr.bf16.mxu0 %v14351_v6 }
0x17a6   :  { %v1833_v11 = vpop.permute.xlu0 %1832 }
0x17a7   :  { %9401 = vmatmul.mubr.msk.f32.vlgmr.msra.gmra.mrb[22].mxu0 %vm1334_vm2, %v1833_v11 }
0x17a8   :  { %9416 = vmatprep.mubr.msk.f32.mxu0 %vm11677_vm1, %v11678_v10  ;;  %10261 = vmatpush3.bf16.msra.mxu0 %v10260_v7 }
0x17a9   :  { %10262 = vmatprep.subr.bf16.mxu0 %v14351_v6 }
0x1871   :  { %v1405_v9 = vpop.f32.mrb[8].mxu1 }
0x1872   :  { %v1409_v13 = vmul.f32 0.35355338, %v1405_v9  ;;  %v9372_v15 = vpop.f32.mrb[9].mxu1  ;;  %v1572_v14 = vpop.f32.mrb[18].mxu0 }
0x1873   :  { %v1576_v16 = vmul.f32 0.35355338, %v1572_v14  ;;  %v9382_v17 = vpop.f32.mrb[19].mxu0  ;;  %v243_v14 = vld [vmem:[%s11784_s27] sm:$0xff] }
0x1874   :  { %v1410_v18 = vadd.f32 %v1409_v13, %v223_v12  ;;  %v240_v13 = vld [vmem:[%s11774_s12 + $0x10] sm:$0xff] }
0x1875   :  { %v1577_v31 = vadd.f32 %v1576_v16, %v223_v12  ;;  %v244_v16 = vld [vmem:[%s11784_s27 + $0x8] sm:$0xff] }
0x1876   :  { %v1739_v19 = vpop.f32.mrb[20].mxu0  ;;  %v1411_v20 = vsel %vm1334_vm2, %v1410_v18, -inf  ;;  %v10265_v17 = vpack.c.bf16 %v244_v16, %v243_v14 }
0x1877   :  { %v1743_v21 = vmul.f32 0.35355338, %v1739_v19  ;;  %v9392_v22 = vpop.f32.mrb[21].mxu0  ;;  %1412 = vmax.xlane.f32.xlu1 %v1411_v20  ;;  %v1578_v23 = vsel %vm1334_vm2, %v1577_v31, -inf }
0x1878   :  { %1579 = vmax.xlane.f32.xlu0 %v1578_v23  ;;  %v245_v23 = vld [vmem:[%s11784_s27 + $0x10] sm:$0xff] }
0x1879   :  { %v1744_v24 = vadd.f32 %v1743_v21, %v223_v12 }
0x187a   :  { %v1906_v25 = vpop.f32.mrb[22].mxu0 }
0x187b   :  { %v1910_v26 = vmul.f32 0.35355338, %v1906_v25  ;;  %v9402_v28 = vpop.f32.mrb[23].mxu0  ;;  %v1745_v29 = vsel %vm1334_vm2, %v1744_v24, -inf }
0x187c   :  { %1746 = vmax.xlane.f32.xlu0 %v1745_v29 }
0x187d   :  { %v1911_v30 = vadd.f32 %v1910_v26, %v223_v12 }
0x187f   :  { %v1912_v32 = vsel %vm1334_vm2, %v1911_v30, -inf }
0x1880   :  { %1913 = vmax.xlane.f32.xlu1 %v1912_v32 }
0x1891   :  { %1589 = vrot.lane.b32.xlu1 %v12055_v33, %s11688_s8 }
0x1904   :  { %v1413_v34 = vpop.xlane.xlu1 %1412 }
0x1905   :  { %v1414_v36 = vsub.f32 %v1410_v18, %v1413_v34  ;;  %v1580_v38 = vpop.xlane.xlu0 %1579  ;;  %v160_v34 = vld [vmem:[%s11704_s5 + $0x8] sm:$0xff] }
0x1906   :  { %v1581_v39 = vsub.f32 %v1577_v31, %v1580_v38  ;;  %v162_v38 = vld [vmem:[%s11704_s5 + $0x18] sm:$0xff] }
0x1907   :  { %v1415_v37 = vmul.f32 1.442695, %v1414_v36  ;;  %v161_v36 = vld [vmem:[%s11704_s5 + $0x10] sm:$0xff] }
0x1908   :  { %v1582_v40 = vmul.f32 1.442695, %v1581_v39  ;;  %v163_v39 = vld [vmem:[%s11704_s5 + $0x20] sm:$0xff] }
0x1909   :  { %11246 = vpow2.f32 %v1415_v37  ;;  %v1747_v49 = vpop.xlane.xlu0 %1746  ;;  %v164_v37 = vld [vmem:[%s11704_s5 + $0x28] sm:$0xff] }
0x190a   :  { %11248 = vpow2.f32 %v1582_v40  ;;  %v1748_v50 = vsub.f32 %v1744_v24, %v1747_v49  ;;  %v246_v24 = vld [vmem:[%s11784_s27 + $0x18] sm:$0xff]  ;;  %v165_v40 = vld [vmem:[%s11704_s5 + $0x30] sm:$0xff]  ;;  %s14416_s27 = sld [smem:[#allocation11_spill]] }
0x190b   :  { %v10269_v29 = vpack.c.bf16 %v246_v24, %v245_v23  ;;  %v202_v49 = vld [vmem:[%s11729_s25 + $0x18] sm:$0xff] }
0x190c   :  { %v1749_v51 = vmul.f32 1.442695, %v1748_v50  ;;  %v203_v50 = vld [vmem:[%s11729_s25 + $0x20] sm:$0xff] }
0x190d   :  { %v1914_v41 = vpop.xlane.xlu1 %1913 }
0x190e   :  { %v1915_v42 = vsub.f32 %v1911_v30, %v1914_v41  ;;  %v159_v30 = vld [vmem:[%s11704_s5] sm:$0xff]  ;;  %v166_v41 = vld [vmem:[%s11704_s5 + $0x38] sm:$0xff] }
0x1910   :  { %v1916_v43 = vmul.f32 1.442695, %v1915_v42  ;;  %v199_v42 = vld [vmem:[%s11729_s25] sm:$0xff] }
0x1911   :  { %v1590_v53 = vpop.permute.xlu1 %1589 }
0x1912   :  { %11250 = vpow2.f32 %v1916_v43  ;;  %v8395_v43 = vld [vmem:[%s11779_s20] ss:$0 sm:$0xff]  ;;  %s14411_s20 = sld [smem:[#allocation12_spill]] }
0x1913   :  { %v11247_v44 = vpop.eup %11246  ;;  %11252 = vpow2.f32 %v1749_v51 }
0x1914   :  { %v11249_v45 = vpop.eup %11248  ;;  %v1417_v46 = vsel %vm1334_vm2, %v11247_v44, 0.0 }
0x1915   :  { %1418 = vadd.xlane.f32.xlu0 %v1417_v46  ;;  %v1584_v47 = vsel %vm1334_vm2, %v11249_v45, 0.0 }
0x1916   :  { %1585 = vadd.xlane.f32.xlu1 %v1584_v47  ;;  %v200_v47 = vld [vmem:[%s11729_s25 + $0x8] sm:$0xff] }
0x191c   :  { %v11251_v48 = vpop.eup %11250 }
0x191d   :  { %v1918_v27 = vsel %vm1334_vm2, %v11251_v48, 0.0  ;;  %v11253_v35 = vpop.eup %11252 }
0x191e   :  { %1919 = vadd.xlane.f32.xlu1 %v1918_v27  ;;  %v1751_v52 = vsel %vm1334_vm2, %v11253_v35, 0.0  ;;  %v8405_v27 = vld [vmem:[%s11789_s4] ss:$0 sm:$0xff]  ;;  %s14423_s4 = sld [smem:[#allocation14_spill]] }
0x192b   :  { %1422 = vrot.lane.b32.xlu0 %v12055_v33, %s11679_s0 }
0x192f   :  { %1756 = vrot.lane.b32.xlu1 %v12055_v33, %s11689_s18 }
0x194a   :  { %1752 = vadd.xlane.f32.xlu0 %v1751_v52 }
0x1960   :  { %1923 = vrot.lane.b32.xlu0 %v12055_v33, %s11690_s22 }
0x19a2   :  { %v1419_v54 = vpop.xlane.xlu0 %1418 }
0x19a3   :  { %11254 = vrcp.f32 %v1419_v54  ;;  %v1586_v55 = vpop.xlane.xlu1 %1585  ;;  %v204_v54 = vld [vmem:[%s11729_s25 + $0x28] sm:$0xff] }
0x19a4   :  { %11256 = vrcp.f32 %v1586_v55  ;;  %v205_v55 = vld [vmem:[%s11729_s25 + $0x30] sm:$0xff] }
0x19a6   :  { %v1423_v56 = vpop.permute.xlu0 %1422 }
0x19a7   :  { %9374 = vmatpush3.msra.mxu1 %v1423_v56 }
0x19a8   :  { %9383 = vmatprep.subr.mxu1 %v11678_v10 }
0x19ab   :  { %v1920_v58 = vpop.xlane.xlu1 %1919 }
0x19ad   :  { %v11255_v57 = vpop.eup %11254 }
0x19ae   :  { %v1421_v59 = vmul.f32 %v11255_v57, %v11247_v44  ;;  %v11257_v60 = vpop.eup %11256 }
0x19af   :  { %v1588_v61 = vmul.f32 %v11257_v60, %v11249_v45  ;;  %v1757_v62 = vpop.permute.xlu1 %1756 }
0x19b0   :  { %9376 = vmatmul.mubr.msk.f32.vlgmr.msra.gmra.mrb[10].mxu1 %vm1334_vm2, %v1421_v59 }
0x19b1   :  { %9384 = vmatpush3.msra.mxu1 %v1590_v53  ;;  %9385 = vmatprep.mubr.msk.f32.mxu1 %vm11677_vm1, %v11678_v10 }
0x19b2   :  { %9393 = vmatprep.subr.mxu1 %v11678_v10 }
0x19b4   :  { %9386 = vmatmul.mubr.msk.f32.vlgmr.msra.gmra.mrb[12].mxu1 %vm1334_vm2, %v1588_v61  ;;  %v206_v61 = vld [vmem:[%s11729_s25 + $0x38] sm:$0xff] }
0x19b5   :  { %9394 = vmatpush3.msra.mxu1 %v1757_v62  ;;  %9395 = vmatprep.mubr.msk.f32.mxu1 %vm11677_vm1, %v11678_v10 }
0x19b6   :  { %9403 = vmatprep.subr.mxu1 %v11678_v10 }
0x19d7   :  { %v1753_v63 = vpop.xlane.xlu0 %1752 }
0x19d8   :  { %11258 = vrcp.f32 %v1753_v63 }
0x19d9   :  { %11260 = vrcp.f32 %v1920_v58 }
0x19db   :  { %v1924_v2 = vpop.permute.xlu0 %1923 }
0x19e2   :  { %v11259_v0 = vpop.eup %11258 }
0x19e3   :  { %v1755_v33 = vmul.f32 %v11259_v0, %v11253_v35  ;;  %v11261_v1 = vpop.eup %11260 }
0x19e4   :  { %v1922_v3 = vmul.f32 %v11261_v1, %v11251_v48  ;;  %v201_v48 = vld [vmem:[%s11729_s25 + $0x10] sm:$0xff]  ;;  %s14401_s25 = sld [smem:[#allocation6_spill]] }
0x19e5   :  { %9396 = vmatmul.mubr.msk.f32.vlgmr.msra.gmra.mrb[14].mxu1 %vm1334_vm2, %v1755_v33 }
0x19e6   :  { %9404 = vmatpush3.msra.mxu1 %v1924_v2  ;;  %9405 = vmatprep.mubr.msk.f32.mxu1 %vm11677_vm1, %v11678_v10  ;;  %v241_v10 = vld [vmem:[%s11774_s12 + $0x18] sm:$0xff]  ;;  %s14404_s12 = sld [smem:[#allocation10_spill]] }
0x19e7   :  { %v10263_v15 = vpack.c.bf16 %v241_v10, %v240_v13  ;;  %v14390_v13 = vmov 0 }
0x19e8   :  { %v14391_v13 = vsel %vm12216_vm5, 4294967295, %v14390_v13 }
0x19e9   :  { %9406 = vmatmul.mubr.msk.f32.vlgmr.msra.gmra.mrb[16].mxu1 %vm1334_vm2, %v1922_v3  ;;  %10264 = vmatpush3.bf16.msra.mxu0 %v10263_v15  ;;  %14392 = vst [vmem:[#allocation27_spill] sm:$0xff] %v14391_v13 }
0x19ea   :  { %10266 = vmatprep.subr.bf16.mxu0 %v10265_v17  ;;  %9421 = vmatprep.mubr.msk.f32.mxu1 %vm1334_vm2, %v199_v42 }
0x1a83   :  { %v1494_v8 = vpop.f32.mrb[10].mxu1 }
0x1a84   :  { %v9377_v11 = vpop.f32.mrb[11].mxu1 }
0x1a87   :  { %v1661_v9 = vpop.f32.mrb[12].mxu1 }
0x1a88   :  { %2000 = vrot.lane.b32.xlu1 %v1661_v9, %s11691_s23  ;;  %v9387_v12 = vpop.f32.mrb[13].mxu1 }
0x1ab8   :  { %v1828_v18 = vpop.f32.mrb[14].mxu1 }
0x1ab9   :  { %2004 = vrot.lane.b32.xlu0 %v1828_v18, %s11692_s26  ;;  %v9397_v31 = vpop.f32.mrb[15].mxu1 }
0x1abc   :  { %v1995_v19 = vpop.f32.mrb[16].mxu1 }
0x1abd   :  { %2008 = vrot.lane.b32.xlu1 %v1995_v19, %s11693_s28  ;;  %v9407_v20 = vpop.f32.mrb[17].mxu1 }
0x1afa   :  { %v2001_v21 = vpop.permute.xlu1 %2000 }
0x1afb   :  { %v2011_v25 = vsel %vm1334_vm2, %v1494_v8, %v2001_v21 }
0x1b2b   :  { %v2005_v22 = vpop.permute.xlu0 %2004 }
0x1b2c   :  { %v2013_v26 = vsel %vm2012_vm3, %v2011_v25, %v2005_v22 }
0x1b2f   :  { %v2009_v28 = vpop.permute.xlu1 %2008 }
0x1b30   :  { %v2015_v32 = vsel %vm2014_vm4, %v2013_v26, %v2009_v28 }
0x1b31   :  { %9417 = vmatmul.mubr.msk.f32.vlgmr.msra.gmra.mrb[24].mxu0 %vm322_vm0, %v2015_v32 }
0x1b32   :  { %10268 = vmatpush3.bf16.msra.mxu0 %v10265_v17  ;;  %9441 = vmatprep.mubr.msk.f32.mxu0 %vm322_vm0, %v159_v30 }
0x1b33   :  { %10270 = vmatprep.subr.bf16.mxu0 %v10269_v29 }
0x1b36   :  { %10272 = vmatpush3.bf16.msra.mxu0 %v10269_v29 }
0x1b39   :  { %9442 = vmatmul.mubr.msk.f32.vlgmr.msra.gmra.mrb[26].mxu0 %vm322_vm0, %v160_v34 }
0x1b3a   :  { %9444 = vmatprep.mubr.msk.f32.mxu0 %vm322_vm0, %v161_v36 }
0x1b3d   :  { %9445 = vmatmul.mubr.msk.f32.gmra.mrb[28].mxu0 %vm322_vm0, %v162_v38 }
0x1b3e   :  { %9447 = vmatprep.mubr.msk.f32.mxu0 %vm322_vm0, %v163_v39  ;;  %v12267_v39 = vld [vmem:[%s11734_s29 + $0x8] sm:$0xff] }
0x1b41   :  { %9448 = vmatmul.mubr.msk.f32.gmra.mrb[30].mxu0 %vm322_vm0, %v164_v37 }
0x1b42   :  { %9450 = vmatprep.mubr.msk.f32.mxu0 %vm322_vm0, %v165_v40 }
0x1b45   :  { %9451 = vmatmul.mubr.msk.f32.gmra.mrb[32].mxu0 %vm322_vm0, %v166_v41  ;;  %v12270_v41 = vld [vmem:[%s11734_s29] sm:$0xff] }
0x1c04   :  { %v2091_v44 = vpop.f32.mrb[24].mxu0 }
0x1c05   :  { %v2092_v45 = vadd.f32 %v8395_v43, %v2091_v44  ;;  %v9418_v46 = vpop.f32.mrb[25].mxu0 }
0x1c06   :  { %v12275_v46 = vld [vmem:[%s11734_s29 + $0x18] sm:$0xff] }
0x1c07   :  { %9419 = vmatprep.subr.mxu1 %v2092_v45 }
0x1c08   :  { %9420 = vmatpush3.msra.mxu1 %v2092_v45 }
0x1c09   :  { %9422 = vmatmul.mubr.msk.f32.vlgmr.msra.gmra.mrb[18].mxu1 %vm1334_vm2, %v200_v47 }
0x1c0a   :  { %9424 = vmatprep.mubr.msk.f32.mxu1 %vm1334_vm2, %v201_v48 }
0x1c0c   :  { %v9443_v51 = vpop.f32.mrb[26].mxu0 }
0x1c0d   :  { %v12164_v35 = vadd.f32 %v9443_v51, %v8405_v27  ;;  %v2320_v52 = vpop.f32.mrb[27].mxu0  ;;  %9425 = vmatmul.mubr.msk.f32.gmra.mrb[20].mxu1 %vm1334_vm2, %v202_v49 }
0x1c0e   :  { %v12167_v53 = vadd.f32 %v8405_v27, %v2320_v52  ;;  %9427 = vmatprep.mubr.msk.f32.mxu1 %vm1334_vm2, %v203_v50  ;;  %v12283_v52 = vld [vmem:[%s11734_s29 + $0x10] sm:$0xff] }
0x1c10   :  { %v12174_v56 = vpack.i.bf16 %v12164_v35, %v12167_v53  ;;  %v9446_v57 = vpop.f32.mrb[28].mxu0 }
0x1c11   :  { %9428 = vmatmul.mubr.msk.f32.gmra.mrb[22].mxu1 %vm1334_vm2, %v204_v54  ;;  %v12177_v58 = vadd.f32 %v9446_v57, %v8405_v27  ;;  %v2330_v59 = vpop.f32.mrb[29].mxu0 }
0x1c12   :  { %10834 = vrot.lane.b32.xlu0 %v12174_v56, %s11682_s19  ;;  %v12181_v60 = vadd.f32 %v8405_v27, %v2330_v59  ;;  %9430 = vmatprep.mubr.msk.f32.mxu1 %vm1334_vm2, %v205_v55 }
0x1c14   :  { %v12187_v62 = vpack.i.bf16 %v12177_v58, %v12181_v60  ;;  %v9449_v63 = vpop.f32.mrb[30].mxu0 }
0x1c15   :  { %9431 = vmatmul.mubr.msk.f32.gmra.mrb[24].mxu1 %vm1334_vm2, %v206_v61  ;;  %v12190_v0 = vadd.f32 %v9449_v63, %v8405_v27  ;;  %v2340_v33 = vpop.f32.mrb[31].mxu0  ;;  %v12289_v63 = vld [vmem:[%s11734_s29 + $0x28] sm:$0xff] }
0x1c16   :  { %9469 = vmatprep.mubr.msk.f32.mxu1 %vm1334_vm2, %v12167_v53  ;;  %10839 = vrot.lane.b32.xlu1 %v12187_v62, %s11682_s19  ;;  %v12196_v1 = vadd.f32 %v8405_v27, %v2340_v33 }
0x1c18   :  { %v12200_v2 = vpack.i.bf16 %v12190_v0, %v12196_v1  ;;  %v9452_v3 = vpop.f32.mrb[32].mxu0 }
0x1c19   :  { %v12202_v4 = vadd.f32 %v9452_v3, %v8405_v27  ;;  %v2350_v5 = vpop.f32.mrb[33].mxu0 }
0x1c1a   :  { %10844 = vrot.lane.b32.xlu0 %v12200_v2, %s11682_s19  ;;  %v12206_v7 = vadd.f32 %v8405_v27, %v2350_v5 }
0x1c1c   :  { %v12210_v8 = vpack.i.bf16 %v12202_v4, %v12206_v7 }
0x1c1e   :  { %10849 = vrot.lane.b32.xlu1 %v12210_v8, %s11682_s19 }
0x1c84   :  { %v10835_v11 = vpop.permute.xlu0 %10834 }
0x1c85   :  { %v10837_v9 = vunpack.i.h.bf16 %v10835_v11  ;;  %v10836_v12 = vunpack.i.l.bf16 %v10835_v11 }
0x1c87   :  { %v10273_v10 = vpack.c.bf16 %v10837_v9, %v10836_v12  ;;  %v12294_v12 = vld [vmem:[%s11734_s29 + $0x38] sm:$0xff] }
0x1c88   :  { %v10840_v15 = vpop.permute.xlu1 %10839 }
0x1c89   :  { %10275 = vmatprep.subr.msk.bf16.mxu1 %vm12216_vm5, %v10273_v10  ;;  %v10842_v14 = vunpack.i.h.bf16 %v10840_v15  ;;  %v10841_v16 = vunpack.i.l.bf16 %v10840_v15 }
0x1c8a   :  { %10278 = vmatpush3.bf16.xpose.msk.msra.mxu1 %vm12216_vm5, %v10273_v10 }
0x1c8b   :  { %v10279_v17 = vpack.c.bf16 %v10842_v14, %v10841_v16 }
0x1c8c   :  { %v10845_v18 = vpop.permute.xlu0 %10844 }
0x1c8d   :  { %10281 = vmatprep.subr.msk.bf16.mxu1 %vm12216_vm5, %v10279_v17  ;;  %v10847_v31 = vunpack.i.h.bf16 %v10845_v18  ;;  %v10846_v19 = vunpack.i.l.bf16 %v10845_v18 }
0x1c8f   :  { %v10285_v20 = vpack.c.bf16 %v10847_v31, %v10846_v19 }
0x1c90   :  { %v10850_v21 = vpop.permute.xlu1 %10849 }
0x1c91   :  { %v10852_v22 = vunpack.i.h.bf16 %v10850_v21  ;;  %v10851_v23 = vunpack.i.l.bf16 %v10850_v21 }
0x1c92   :  { %10284 = vmatpush3.bf16.xpose.msk.msra.mxu1 %vm12216_vm5, %v10279_v17  ;;  %v12307_v17 = vld [vmem:[%s11734_s29 + $0x20] sm:$0xff] }
0x1c93   :  { %10287 = vmatprep.subr.msk.bf16.mxu1 %vm12216_vm5, %v10285_v20  ;;  %v10291_v24 = vpack.c.bf16 %v10852_v22, %v10851_v23 }
0x1c9a   :  { %10290 = vmatpush3.bf16.xpose.msk.msra.mxu1 %vm12216_vm5, %v10285_v20  ;;  %v12314_v20 = vld [vmem:[%s11734_s29 + $0x30] sm:$0xff] }
0x1c9b   :  { %10293 = vmatprep.subr.msk.bf16.mxu1 %vm12216_vm5, %v10291_v24 }
0x1ca2   :  { %10296 = vmatpush3.bf16.xpose.msk.msra.mxu1 %vm12216_vm5, %v10291_v24 }
0x1ca9   :  { %9470 = vmatmul.mubr.msk.f32.vlgmr.msra.gmra.mrb[26].mxu1 %vm1334_vm2, %v12164_v35 }
0x1caa   :  { %9472 = vmatprep.mubr.msk.f32.mxu1 %vm1334_vm2, %v12181_v60 }
0x1cad   :  { %9473 = vmatmul.mubr.msk.f32.gmra.mrb[28].mxu1 %vm1334_vm2, %v12177_v58 }
0x1cae   :  { %9475 = vmatprep.mubr.msk.f32.mxu1 %vm1334_vm2, %v12196_v1 }
0x1cb1   :  { %9476 = vmatmul.mubr.msk.f32.gmra.mrb[30].mxu1 %vm1334_vm2, %v12190_v0 }
0x1cb2   :  { %9478 = vmatprep.mubr.msk.f32.mxu1 %vm1334_vm2, %v12206_v7 }
0x1cb5   :  { %9479 = vmatmul.mubr.msk.f32.gmra.mrb[32].mxu1 %vm1334_vm2, %v12202_v4 }
0x1cdc   :  { %v12250_v25 = vpop.f32.mrb[18].mxu1 }
0x1cdd   :  { %14393 = vst [vmem:[#allocation28_spill] sm:$0xff] %v12250_v25  ;;  %v12252_v26 = vpop.f32.mrb[19].mxu1 }
0x1cde   :  { %14394 = vst [vmem:[#allocation29_spill] sm:$0xff] %v12252_v26 }
0x1ce0   :  { %v12254_v28 = vpop.f32.mrb[20].mxu1 }
0x1ce1   :  { %14395 = vst [vmem:[#allocation30_spill] sm:$0xff] %v12254_v28  ;;  %v12256_v29 = vpop.f32.mrb[21].mxu1 }
0x1ce2   :  { %14396 = vst [vmem:[#allocation31_spill] sm:$0xff] %v12256_v29 }
0x1ce4   :  { %v12258_v30 = vpop.f32.mrb[22].mxu1 }
0x1ce5   :  { %14397 = vst [vmem:[#allocation32_spill] sm:$0xff] %v12258_v30  ;;  %v12260_v32 = vpop.f32.mrb[23].mxu1 }
0x1ce6   :  { %14398 = vst [vmem:[#allocation33_spill] sm:$0xff] %v12260_v32 }
0x1ce8   :  { %v12262_v34 = vpop.f32.mrb[24].mxu1 }
0x1ce9   :  { %14399 = vst [vmem:[#allocation34_spill] sm:$0xff] %v12262_v34  ;;  %v12264_v36 = vpop.f32.mrb[25].mxu1 }
0x1cea   :  { %14400 = vst [vmem:[#allocation35_spill] sm:$0xff] %v12264_v36 }
0x1d7c   :  { %v9471_v38 = vpop.f32.mrb[26].mxu1 }
0x1d7d   :  { %v2521_v37 = vmul.f32 0.35355338, %v9471_v38  ;;  %v2481_v40 = vpop.f32.mrb[27].mxu1 }
0x1d7e   :  { %v2520_v42 = vmul.f32 0.35355338, %v2481_v40 }
0x1d7f   :  { %v2529_v43 = vadd.f32 %v2521_v37, %v12267_v39 }
0x1d80   :  { %v9474_v44 = vpop.f32.mrb[28].mxu1  ;;  %v2528_v45 = vadd.f32 %v2520_v42, %v12270_v41 }
0x1d81   :  { %v2523_v47 = vmul.f32 0.35355338, %v9474_v44  ;;  %v2491_v48 = vpop.f32.mrb[29].mxu1  ;;  %v2540_v27 = vsel %vm2536_vm6, %v2529_v43, -inf }
0x1d82   :  { %v2522_v49 = vmul.f32 0.35355338, %v2491_v48  ;;  %2541 = vmax.xlane.f32.xlu1 %v2540_v27  ;;  %v2537_v50 = vsel %vm2536_vm6, %v2528_v45, -inf }
0x1d83   :  { %2538 = vmax.xlane.f32.xlu0 %v2537_v50  ;;  %v12280_v51 = vadd.f32 %v2523_v47, %v12275_v46 }
0x1d84   :  { %v9477_v54 = vpop.f32.mrb[30].mxu1  ;;  %v2530_v61 = vadd.f32 %v2522_v49, %v12283_v52 }
0x1d85   :  { %v2501_v55 = vpop.f32.mrb[31].mxu1  ;;  %v2546_v57 = vsel %vm2536_vm6, %v12280_v51, -inf  ;;  %v2525_v59 = vmul.f32 0.35355338, %v9477_v54 }
0x1d86   :  { %v2543_v11 = vsel %vm2536_vm6, %v2530_v61, -inf  ;;  %v2524_v16 = vmul.f32 0.35355338, %v2501_v55 }
0x1d87   :  { %2547 = vmax.xlane.f32.xlu0 %v2546_v57  ;;  %v2533_v9 = vadd.f32 %v2525_v59, %v12289_v63 }
0x1d88   :  { %v9480_v33 = vpop.f32.mrb[32].mxu1  ;;  %v2532_v18 = vadd.f32 %v2524_v16, %v12307_v17 }
0x1d89   :  { %v2511_v3 = vpop.f32.mrb[33].mxu1  ;;  %v2527_v5 = vmul.f32 0.35355338, %v9480_v33  ;;  %v2552_v10 = vsel %vm2536_vm6, %v2533_v9, -inf }
0x1d8a   :  { %v2549_v31 = vsel %vm2536_vm6, %v2532_v18, -inf  ;;  %v2526_v19 = vmul.f32 0.35355338, %v2511_v3 }
0x1d8b   :  { %2544 = vmax.xlane.f32.xlu0 %v2543_v11  ;;  %v12298_v15 = vadd.f32 %v2527_v5, %v12294_v12 }
0x1d8c   :  { %v12317_v21 = vadd.f32 %v2526_v19, %v12314_v20 }
0x1d8d   :  { %v2558_v14 = vsel %vm2536_vm6, %v12298_v15, -inf }
0x1d8e   :  { %v2555_v22 = vsel %vm2536_vm6, %v12317_v21, -inf }
0x1d8f   :  { %2553 = vmax.xlane.f32.xlu0 %v2552_v10 }
0x1d93   :  { %10854 = vrot.lane.b32.xlu1 %v12174_v56, %s11679_s0  ;;  %2559 = vmax.xlane.f32.xlu0 %v2558_v14 }
0x1da9   :  { %10859 = vrot.lane.b32.xlu0 %v12187_v62, %s11679_s0 }
0x1db7   :  { %2550 = vmax.xlane.f32.xlu1 %v2549_v31 }
0x1dc8   :  { %10864 = vrot.lane.b32.xlu1 %v12200_v2, %s11679_s0 }
0x1dec   :  { %2556 = vmax.xlane.f32.xlu1 %v2555_v22 }
0x1dfd   :  { %10869 = vrot.lane.b32.xlu1 %v12210_v8, %s11679_s0 }
0x1e0f   :  { %v2542_v23 = vpop.xlane.xlu1 %2541 }
0x1e10   :  { %v2562_v24 = vsub.f32 %v2529_v43, %v2542_v23  ;;  %v2539_v38 = vpop.xlane.xlu0 %2538 }
0x1e11   :  { %v2561_v37 = vsub.f32 %v2528_v45, %v2539_v38 }
0x1e12   :  { %v2571_v40 = vmul.f32 1.442695, %v2562_v24 }
0x1e13   :  { %v2569_v42 = vmul.f32 1.442695, %v2561_v37  ;;  %v10855_v44 = vpop.permute.xlu1 %10854 }
0x1e14   :  { %11262 = vpow2.f32 %v2571_v40  ;;  %v10857_v47 = vunpack.i.h.bf16 %v10855_v44  ;;  %v10856_v48 = vunpack.i.l.bf16 %v10855_v44  ;;  %v2548_v27 = vpop.xlane.xlu0 %2547 }
0x1e15   :  { %11264 = vpow2.f32 %v2569_v42  ;;  %v2564_v23 = vsub.f32 %v12280_v51, %v2548_v27 }
0x1e16   :  { %v10297_v49 = vpack.c.bf16 %v10857_v47, %v10856_v48 }
0x1e17   :  { %v2575_v38 = vmul.f32 1.442695, %v2564_v23 }
0x1e18   :  { %10298 = vmatprep.subr.bf16.mxu0 %v10297_v49  ;;  %v2545_v50 = vpop.xlane.xlu0 %2544 }
0x1e19   :  { %v2563_v54 = vsub.f32 %v2530_v61, %v2545_v50  ;;  %10300 = vmatpush3.bf16.msra.mxu0 %v10297_v49 }
0x1e1b   :  { %v2573_v55 = vmul.f32 1.442695, %v2563_v54 }
0x1e1c   :  { %v2554_v57 = vpop.xlane.xlu0 %2553 }
0x1e1d   :  { %11266 = vpow2.f32 %v2573_v55  ;;  %v2566_v59 = vsub.f32 %v2533_v9, %v2554_v57 }
0x1e1e   :  { %v12323_v43 = vpop.eup %11262 }
0x1e1f   :  { %v12325_v45 = vpop.eup %11264  ;;  %v2579_v33 = vmul.f32 1.442695, %v2566_v59  ;;  %v2588_v3 = vsel %vm2536_vm6, %v12323_v43, 0.0 }
0x1e20   :  { %2589 = vadd.xlane.f32.xlu0 %v2588_v3  ;;  %v2560_v5 = vpop.xlane.xlu0 %2559  ;;  %v2585_v11 = vsel %vm2536_vm6, %v12325_v45, 0.0 }
0x1e21   :  { %11268 = vpow2.f32 %v2579_v33  ;;  %2586 = vadd.xlane.f32.xlu1 %v2585_v11  ;;  %v2568_v24 = vsub.f32 %v12298_v15, %v2560_v5 }
0x1e22   :  { %11270 = vpow2.f32 %v2575_v38 }
0x1e23   :  { %v2583_v42 = vmul.f32 1.442695, %v2568_v24 }
0x1e24   :  { %v10860_v61 = vpop.permute.xlu0 %10859 }
0x1e25   :  { %v10862_v10 = vunpack.i.h.bf16 %v10860_v61  ;;  %v10861_v14 = vunpack.i.l.bf16 %v10860_v61 }
0x1e27   :  { %v12331_v16 = vpop.eup %11266  ;;  %v10301_v9 = vpack.c.bf16 %v10862_v10, %v10861_v14 }
0x1e28   :  { %v2591_v31 = vsel %vm2536_vm6, %v12331_v16, 0.0 }
0x1e29   :  { %2592 = vadd.xlane.f32.xlu0 %v2591_v31  ;;  %10302 = vmatprep.subr.bf16.mxu0 %v10301_v9 }
0x1e2a   :  { %10304 = vmatpush3.bf16.msra.mxu0 %v10301_v9 }
0x1e2b   :  { %v12335_v19 = vpop.eup %11268 }
0x1e2c   :  { %v2600_v22 = vsel %vm2536_vm6, %v12335_v19, 0.0  ;;  %v11271_v54 = vpop.eup %11270 }
0x1e2d   :  { %2601 = vadd.xlane.f32.xlu0 %v2600_v22 }
0x1e32   :  { %10874 = vrot.lane.b32.xlu1 %v12174_v56, %s11681_s14 }
0x1e44   :  { %v2551_v37 = vpop.xlane.xlu1 %2550 }
0x1e45   :  { %v2565_v40 = vsub.f32 %v2532_v18, %v2551_v37  ;;  %v2594_v18 = vsel %vm2536_vm6, %v11271_v54, 0.0 }
0x1e47   :  { %v2577_v44 = vmul.f32 1.442695, %v2565_v40 }
0x1e48   :  { %v10865_v47 = vpop.permute.xlu1 %10864 }
0x1e49   :  { %11272 = vpow2.f32 %v2577_v44  ;;  %v10867_v48 = vunpack.i.h.bf16 %v10865_v47  ;;  %v10866_v49 = vunpack.i.l.bf16 %v10865_v47 }
0x1e4a   :  { %11274 = vpow2.f32 %v2583_v42 }
0x1e4b   :  { %v10305_v50 = vpack.c.bf16 %v10867_v48, %v10866_v49 }
0x1e4d   :  { %10306 = vmatprep.subr.bf16.mxu0 %v10305_v50 }
0x1e4e   :  { %10308 = vmatpush3.bf16.msra.mxu0 %v10305_v50 }
0x1e53   :  { %v12343_v55 = vpop.eup %11272 }
0x1e54   :  { %v2597_v51 = vsel %vm2536_vm6, %v12343_v55, 0.0  ;;  %v12347_v15 = vpop.eup %11274 }
0x1e55   :  { %2598 = vadd.xlane.f32.xlu0 %v2597_v51  ;;  %v2606_v27 = vsel %vm2536_vm6, %v12347_v15, 0.0 }
0x1e56   :  { %2595 = vadd.xlane.f32.xlu1 %v2594_v18 }
0x1e59   :  { %2607 = vadd.xlane.f32.xlu0 %v2606_v27 }
0x1e67   :  { %10884 = vrot.lane.b32.xlu1 %v12200_v2, %s11681_s14 }
0x1e6b   :  { %10889 = vrot.lane.b32.xlu1 %v12210_v8, %s11681_s14 }
0x1e6f   :  { %2778 = vrot.lane.b32.xlu1 %v12167_v53, %s11684_s30 }
0x1e73   :  { %2780 = vrot.lane.b32.xlu1 %v12164_v35, %s11684_s30 }
0x1e77   :  { %2784 = vrot.lane.b32.xlu1 %v12177_v58, %s11684_s30 }
0x1e79   :  { %v2557_v57 = vpop.xlane.xlu1 %2556 }
0x1e7a   :  { %v2567_v59 = vsub.f32 %v12317_v21, %v2557_v57 }
0x1e7b   :  { %2788 = vrot.lane.b32.xlu1 %v12190_v0, %s11684_s30 }
0x1e7c   :  { %v2581_v33 = vmul.f32 1.442695, %v2567_v59 }
0x1e7d   :  { %v10870_v3 = vpop.permute.xlu1 %10869 }
0x1e7e   :  { %11276 = vpow2.f32 %v2581_v33  ;;  %v10872_v5 = vunpack.i.h.bf16 %v10870_v3  ;;  %v10871_v11 = vunpack.i.l.bf16 %v10870_v3 }
0x1e7f   :  { %2792 = vrot.lane.b32.xlu1 %v12202_v4, %s11684_s30 }
0x1e80   :  { %v10309_v61 = vpack.c.bf16 %v10872_v5, %v10871_v11 }
0x1e82   :  { %10310 = vmatprep.subr.bf16.mxu0 %v10309_v61 }
0x1e83   :  { %10312 = vmatpush3.bf16.msra.mxu0 %v10309_v61 }
0x1e88   :  { %v11277_v10 = vpop.eup %11276 }
0x1e89   :  { %v2603_v14 = vsel %vm2536_vm6, %v11277_v10, 0.0 }
0x1e8a   :  { %2604 = vadd.xlane.f32.xlu0 %v2603_v14 }
0x1ea0   :  { %10879 = vrot.lane.b32.xlu0 %v12187_v62, %s11681_s14 }
0x1ea4   :  { %2782 = vrot.lane.b32.xlu0 %v12181_v60, %s11684_s30 }
0x1ea8   :  { %2786 = vrot.lane.b32.xlu0 %v12196_v1, %s11684_s30 }
0x1eac   :  { %2790 = vrot.lane.b32.xlu0 %v12206_v7, %s11684_s30 }
0x1ead   :  { %v2590_v21 = vpop.xlane.xlu0 %2589 }
0x1eae   :  { %11278 = vrcp.f32 %v2590_v21  ;;  %v2587_v9 = vpop.xlane.xlu1 %2586 }
0x1eaf   :  { %11280 = vrcp.f32 %v2587_v9 }
0x1eb2   :  { %v10875_v31 = vpop.permute.xlu1 %10874 }
0x1eb3   :  { %v10877_v22 = vunpack.i.h.bf16 %v10875_v31  ;;  %v10876_v23 = vunpack.i.l.bf16 %v10875_v31 }
0x1eb5   :  { %v10313_v24 = vpack.c.bf16 %v10877_v22, %v10876_v23 }
0x1eb6   :  { %v2593_v38 = vpop.xlane.xlu0 %2592 }
0x1eb7   :  { %11282 = vrcp.f32 %v2593_v38  ;;  %10315 = vmatprep.subr.msk.bf16.mxu0 %vm12216_vm5, %v10313_v24 }
0x1eb8   :  { %v11279_v37 = vpop.eup %11278 }
0x1eb9   :  { %v11281_v40 = vpop.eup %11280  ;;  %v2612_v44 = vmul.f32 %v11279_v37, %v12323_v43 }
0x1eba   :  { %v2610_v42 = vmul.f32 %v11281_v40, %v12325_v45  ;;  %v2602_v49 = vpop.xlane.xlu0 %2601 }
0x1ebc   :  { %9497 = vmatprep.mubr.msk.f32.mxu0 %vm2536_vm6, %v2610_v42 }
0x1ebd   :  { %9498 = vmatmul.mubr.msk.f32.vlgmr.msra.gmra.mrb[34].mxu0 %vm2536_vm6, %v2612_v44 }
0x1ebe   :  { %10318 = vmatpush3.bf16.xpose.msk.msra.mxu0 %vm12216_vm5, %v10313_v24 }
0x1ec1   :  { %v11283_v47 = vpop.eup %11282 }
0x1ec2   :  { %v2614_v48 = vmul.f32 %v11283_v47, %v12331_v16 }
0x1ec4   :  { %9500 = vmatprep.mubr.msk.f32.mxu0 %vm2536_vm6, %v2614_v48 }
0x1ee2   :  { %v2599_v50 = vpop.xlane.xlu0 %2598 }
0x1ee3   :  { %11284 = vrcp.f32 %v2599_v50  ;;  %v2596_v51 = vpop.xlane.xlu1 %2595 }
0x1ee4   :  { %11286 = vrcp.f32 %v2596_v51 }
0x1ee5   :  { %11288 = vrcp.f32 %v2602_v49 }
0x1ee6   :  { %v2608_v59 = vpop.xlane.xlu0 %2607 }
0x1ee7   :  { %11290 = vrcp.f32 %v2608_v59  ;;  %v10885_v3 = vpop.permute.xlu1 %10884 }
0x1ee8   :  { %v10887_v11 = vunpack.i.h.bf16 %v10885_v3  ;;  %v10886_v61 = vunpack.i.l.bf16 %v10885_v3 }
0x1eeb   :  { %v10890_v9 = vpop.permute.xlu1 %10889 }
0x1eec   :  { %v10892_v23 = vunpack.i.h.bf16 %v10890_v9  ;;  %v10891_v24 = vunpack.i.l.bf16 %v10890_v9 }
0x1eed   :  { %v11285_v45 = vpop.eup %11284 }
0x1eee   :  { %v11287_v43 = vpop.eup %11286  ;;  %v2618_v57 = vmul.f32 %v11285_v45, %v12343_v55  ;;  %v10325_v55 = vpack.c.bf16 %v10887_v11, %v10886_v61  ;;  %v10331_v40 = vpack.c.bf16 %v10892_v23, %v10891_v24 }
0x1eef   :  { %v2616_v18 = vmul.f32 %v11287_v43, %v11271_v54  ;;  %v11289_v27 = vpop.eup %11288  ;;  %v2779_v37 = vpop.permute.xlu1 %2778 }
0x1ef0   :  { %v2620_v16 = vmul.f32 %v11289_v27, %v12335_v19 }
0x1ef1   :  { %9501 = vmatmul.mubr.msk.f32.gmra.mrb[36].mxu0 %vm2536_vm6, %v2616_v18  ;;  %v11291_v31 = vpop.eup %11290 }
0x1ef2   :  { %9503 = vmatprep.mubr.msk.f32.mxu0 %vm2536_vm6, %v2618_v57  ;;  %v2624_v38 = vmul.f32 %v11291_v31, %v12347_v15 }
0x1ef3   :  { %v2781_v42 = vpop.permute.xlu1 %2780 }
0x1ef5   :  { %9504 = vmatmul.mubr.msk.f32.gmra.mrb[38].mxu0 %vm2536_vm6, %v2620_v16 }
0x1ef7   :  { %v2785_v15 = vpop.permute.xlu1 %2784 }
0x1efb   :  { %v2789_v47 = vpop.permute.xlu1 %2788 }
0x1eff   :  { %v2793_v49 = vpop.permute.xlu1 %2792 }
0x1f17   :  { %v2605_v33 = vpop.xlane.xlu0 %2604 }
0x1f18   :  { %11292 = vrcp.f32 %v2605_v33 }
0x1f1b   :  { %v10880_v5 = vpop.permute.xlu0 %10879 }
0x1f1c   :  { %v10882_v54 = vunpack.i.h.bf16 %v10880_v5  ;;  %v10881_v14 = vunpack.i.l.bf16 %v10880_v5 }
0x1f1e   :  { %v10319_v21 = vpack.c.bf16 %v10882_v54, %v10881_v14 }
0x1f20   :  { %10321 = vmatprep.subr.msk.bf16.mxu0 %vm12216_vm5, %v10319_v21 }
0x1f21   :  { %10324 = vmatpush3.bf16.xpose.msk.msra.mxu0 %vm12216_vm5, %v10319_v21 }
0x1f22   :  { %v11293_v19 = vpop.eup %11292  ;;  %10327 = vmatprep.subr.msk.bf16.mxu0 %vm12216_vm5, %v10325_v55 }
0x1f23   :  { %v2622_v22 = vmul.f32 %v11293_v19, %v11277_v10  ;;  %v2783_v10 = vpop.permute.xlu0 %2782 }
0x1f25   :  { %9506 = vmatprep.mubr.msk.f32.mxu0 %vm2536_vm6, %v2622_v22 }
0x1f26   :  { %9507 = vmatmul.mubr.msk.f32.gmra.mrb[40].mxu0 %vm2536_vm6, %v2624_v38 }
0x1f27   :  { %9525 = vmatprep.mubr.msk.f32.mxu0 %vm1334_vm2, %v2779_v37  ;;  %v2787_v44 = vpop.permute.xlu0 %2786 }
0x1f29   :  { %10330 = vmatpush3.bf16.xpose.msk.msra.mxu0 %vm12216_vm5, %v10325_v55 }
0x1f2a   :  { %10333 = vmatprep.subr.msk.bf16.mxu0 %vm12216_vm5, %v10331_v40 }
0x1f2b   :  { %v2791_v48 = vpop.permute.xlu0 %2790 }
0x1f31   :  { %10336 = vmatpush3.bf16.xpose.msk.msra.mxu0 %vm12216_vm5, %v10331_v40 }
0x1f38   :  { %9526 = vmatmul.mubr.msk.f32.vlgmr.msra.gmra.mrb[42].mxu0 %vm1334_vm2, %v2781_v42 }
0x1f39   :  { %9528 = vmatprep.mubr.msk.f32.mxu0 %vm1334_vm2, %v2783_v10 }
0x1f3c   :  { %9529 = vmatmul.mubr.msk.f32.gmra.mrb[44].mxu0 %vm1334_vm2, %v2785_v15 }
0x1f3d   :  { %9531 = vmatprep.mubr.msk.f32.mxu0 %vm1334_vm2, %v2787_v44 }
0x1f40   :  { %9532 = vmatmul.mubr.msk.f32.gmra.mrb[46].mxu0 %vm1334_vm2, %v2789_v47 }
0x1f41   :  { %9534 = vmatprep.mubr.msk.f32.mxu0 %vm1334_vm2, %v2791_v48 }
0x1f44   :  { %9535 = vmatmul.mubr.msk.f32.gmra.mrb[48].mxu0 %vm1334_vm2, %v2793_v49 }
0x1f90   :  { %v12414_v50 = vpop.f32.mrb[34].mxu0 }
0x1f91   :  { %v12416_v51 = vpop.f32.mrb[35].mxu0 }
0x1fc4   :  { %v12418_v45 = vpop.f32.mrb[36].mxu0 }
0x1fc5   :  { %v12420_v43 = vpop.f32.mrb[37].mxu0 }
0x1fc8   :  { %v12422_v18 = vpop.f32.mrb[38].mxu0 }
0x1fc9   :  { %v12424_v27 = vpop.f32.mrb[39].mxu0 }
0x1ff9   :  { %v12426_v57 = vpop.f32.mrb[40].mxu0 }
0x1ffa   :  { %v12428_v16 = vpop.f32.mrb[41].mxu0 }
0x200b   :  { %v9527_v59 = vpop.f32.mrb[42].mxu0 }
0x200c   :  { %v2948_v33 = vmul.f32 0.35355338, %v9527_v59  ;;  %v2908_v3 = vpop.f32.mrb[43].mxu0 }
0x200d   :  { %v2947_v5 = vmul.f32 0.35355338, %v2908_v3 }
0x200e   :  { %v2956_v11 = vadd.f32 %v2948_v33, %v12267_v39 }
0x200f   :  { %v9530_v61 = vpop.f32.mrb[44].mxu0  ;;  %v2955_v54 = vadd.f32 %v2947_v5, %v12270_v41 }
0x2010   :  { %v2950_v14 = vmul.f32 0.35355338, %v9530_v61  ;;  %v2918_v21 = vpop.f32.mrb[45].mxu0  ;;  %v2966_v55 = vsel %vm2536_vm6, %v2956_v11, -inf }
0x2011   :  { %v2949_v9 = vmul.f32 0.35355338, %v2918_v21  ;;  %2967 = vmax.xlane.f32.xlu1 %v2966_v55  ;;  %v2963_v31 = vsel %vm2536_vm6, %v2955_v54, -inf }
0x2012   :  { %2964 = vmax.xlane.f32.xlu0 %v2963_v31  ;;  %v12435_v19 = vadd.f32 %v2950_v14, %v12275_v46 }
0x2013   :  { %v9533_v22 = vpop.f32.mrb[46].mxu0  ;;  %v2957_v37 = vadd.f32 %v2949_v9, %v12283_v52 }
0x2014   :  { %v2928_v23 = vpop.f32.mrb[47].mxu0  ;;  %v2972_v24 = vsel %vm2536_vm6, %v12435_v19, -inf  ;;  %v2952_v38 = vmul.f32 0.35355338, %v9533_v22 }
0x2015   :  { %v2969_v15 = vsel %vm2536_vm6, %v2957_v37, -inf  ;;  %v2951_v59 = vmul.f32 0.35355338, %v2928_v23 }
0x2016   :  { %2973 = vmax.xlane.f32.xlu0 %v2972_v24  ;;  %v2960_v44 = vadd.f32 %v2952_v38, %v12289_v63 }
0x2017   :  { %v9536_v40 = vpop.f32.mrb[48].mxu0  ;;  %v2959_v33 = vadd.f32 %v2951_v59, %v12307_v17 }
0x2018   :  { %v2938_v42 = vpop.f32.mrb[49].mxu0  ;;  %v2954_v10 = vmul.f32 0.35355338, %v9536_v40  ;;  %v2978_v48 = vsel %vm2536_vm6, %v2960_v44, -inf }
0x2019   :  { %v2975_v3 = vsel %vm2536_vm6, %v2959_v33, -inf  ;;  %v2953_v5 = vmul.f32 0.35355338, %v2938_v42 }
0x201a   :  { %2970 = vmax.xlane.f32.xlu0 %v2969_v15  ;;  %v12443_v47 = vadd.f32 %v2954_v10, %v12294_v12 }
0x201b   :  { %v12457_v61 = vadd.f32 %v2953_v5, %v12314_v20 }
0x201c   :  { %v2984_v49 = vsel %vm2536_vm6, %v12443_v47, -inf }
0x201d   :  { %v2981_v14 = vsel %vm2536_vm6, %v12457_v61, -inf }
0x201e   :  { %2979 = vmax.xlane.f32.xlu0 %v2978_v48 }
0x2022   :  { %10894 = vrot.lane.b32.xlu1 %v12174_v56, %s11688_s8  ;;  %2985 = vmax.xlane.f32.xlu0 %v2984_v49 }
0x2038   :  { %10899 = vrot.lane.b32.xlu0 %v12187_v62, %s11688_s8 }
0x2046   :  { %2976 = vmax.xlane.f32.xlu1 %v2975_v3 }
0x2057   :  { %10904 = vrot.lane.b32.xlu1 %v12200_v2, %s11688_s8 }
0x207b   :  { %2982 = vmax.xlane.f32.xlu1 %v2981_v14 }
0x208c   :  { %10909 = vrot.lane.b32.xlu1 %v12210_v8, %s11688_s8 }
0x209e   :  { %v2968_v21 = vpop.xlane.xlu1 %2967 }
0x209f   :  { %v2988_v55 = vsub.f32 %v2956_v11, %v2968_v21  ;;  %v2965_v9 = vpop.xlane.xlu0 %2964 }
0x20a0   :  { %v2987_v31 = vsub.f32 %v2955_v54, %v2965_v9 }
0x20a1   :  { %v2997_v22 = vmul.f32 1.442695, %v2988_v55 }
0x20a2   :  { %v2995_v23 = vmul.f32 1.442695, %v2987_v31  ;;  %v10895_v24 = vpop.permute.xlu1 %10894 }
0x20a3   :  { %11294 = vpow2.f32 %v2997_v22  ;;  %v10897_v38 = vunpack.i.h.bf16 %v10895_v24  ;;  %v10896_v40 = vunpack.i.l.bf16 %v10895_v24  ;;  %v2974_v42 = vpop.xlane.xlu0 %2973 }
0x20a4   :  { %11296 = vpow2.f32 %v2995_v23 }
0x20a5   :  { %v10337_v10 = vpack.c.bf16 %v10897_v38, %v10896_v40  ;;  %v2990_v40 = vsub.f32 %v12435_v19, %v2974_v42 }
0x20a7   :  { %10338 = vmatprep.subr.bf16.mxu1 %v10337_v10  ;;  %v2971_v15 = vpop.xlane.xlu0 %2970 }
0x20a8   :  { %v2989_v48 = vsub.f32 %v2957_v37, %v2971_v15  ;;  %10340 = vmatpush3.bf16.msra.mxu1 %v10337_v10  ;;  %v3001_v15 = vmul.f32 1.442695, %v2990_v40 }
0x20aa   :  { %v2999_v49 = vmul.f32 1.442695, %v2989_v48 }
0x20ab   :  { %v2980_v59 = vpop.xlane.xlu0 %2979 }
0x20ac   :  { %11298 = vpow2.f32 %v2999_v49  ;;  %v2992_v3 = vsub.f32 %v2960_v44, %v2980_v59 }
0x20ad   :  { %v12463_v11 = vpop.eup %11294 }
0x20ae   :  { %v12465_v54 = vpop.eup %11296  ;;  %v3005_v5 = vmul.f32 1.442695, %v2992_v3  ;;  %v3014_v14 = vsel %vm2536_vm6, %v12463_v11, 0.0 }
0x20af   :  { %3015 = vadd.xlane.f32.xlu0 %v3014_v14  ;;  %v2986_v21 = vpop.xlane.xlu0 %2985  ;;  %v3011_v55 = vsel %vm2536_vm6, %v12465_v54, 0.0 }
0x20b0   :  { %11300 = vpow2.f32 %v3005_v5  ;;  %3012 = vadd.xlane.f32.xlu1 %v3011_v55  ;;  %v2994_v10 = vsub.f32 %v12443_v47, %v2986_v21 }
0x20b1   :  { %11302 = vpow2.f32 %v3001_v15 }
0x20b2   :  { %v3009_v59 = vmul.f32 1.442695, %v2994_v10 }
0x20b3   :  { %v10900_v37 = vpop.permute.xlu0 %10899 }
0x20b4   :  { %v10902_v9 = vunpack.i.h.bf16 %v10900_v37  ;;  %v10901_v31 = vunpack.i.l.bf16 %v10900_v37 }
0x20b6   :  { %v12471_v22 = vpop.eup %11298  ;;  %v10341_v44 = vpack.c.bf16 %v10902_v9, %v10901_v31 }
0x20b7   :  { %v3017_v23 = vsel %vm2536_vm6, %v12471_v22, 0.0 }
0x20b8   :  { %3018 = vadd.xlane.f32.xlu0 %v3017_v23  ;;  %10342 = vmatprep.subr.bf16.mxu1 %v10341_v44 }
0x20b9   :  { %10344 = vmatpush3.bf16.msra.mxu1 %v10341_v44 }
0x20ba   :  { %v12475_v24 = vpop.eup %11300 }
0x20bb   :  { %v3026_v38 = vsel %vm2536_vm6, %v12475_v24, 0.0  ;;  %v11303_v9 = vpop.eup %11302 }
0x20bc   :  { %3027 = vadd.xlane.f32.xlu0 %v3026_v38 }
0x20c1   :  { %10914 = vrot.lane.b32.xlu1 %v12174_v56, %s11683_s24 }
0x20d3   :  { %v2977_v48 = vpop.xlane.xlu1 %2976 }
0x20d4   :  { %v2991_v49 = vsub.f32 %v2959_v33, %v2977_v48  ;;  %v3020_v33 = vsel %vm2536_vm6, %v11303_v9, 0.0 }
0x20d6   :  { %v3003_v3 = vmul.f32 1.442695, %v2991_v49 }
0x20d7   :  { %v10905_v5 = vpop.permute.xlu1 %10904 }
0x20d8   :  { %11304 = vpow2.f32 %v3003_v3  ;;  %v10907_v14 = vunpack.i.h.bf16 %v10905_v5  ;;  %v10906_v55 = vunpack.i.l.bf16 %v10905_v5 }
0x20d9   :  { %11306 = vpow2.f32 %v3009_v59 }
0x20da   :  { %v10345_v37 = vpack.c.bf16 %v10907_v14, %v10906_v55 }
0x20dc   :  { %10346 = vmatprep.subr.bf16.mxu1 %v10345_v37 }
0x20dd   :  { %10348 = vmatpush3.bf16.msra.mxu1 %v10345_v37 }
0x20e2   :  { %v12483_v31 = vpop.eup %11304 }
0x20e3   :  { %v3023_v19 = vsel %vm2536_vm6, %v12483_v31, 0.0  ;;  %v12487_v47 = vpop.eup %11306 }
0x20e4   :  { %3024 = vadd.xlane.f32.xlu0 %v3023_v19  ;;  %v3032_v42 = vsel %vm2536_vm6, %v12487_v47, 0.0 }
0x20e5   :  { %3021 = vadd.xlane.f32.xlu1 %v3020_v33 }
0x20e8   :  { %3033 = vadd.xlane.f32.xlu0 %v3032_v42 }
0x20f6   :  { %10924 = vrot.lane.b32.xlu1 %v12200_v2, %s11683_s24 }
0x20fa   :  { %10929 = vrot.lane.b32.xlu1 %v12210_v8, %s11683_s24 }
0x20fe   :  { %3204 = vrot.lane.b32.xlu1 %v12167_v53, %s11686_s15 }
0x2102   :  { %3206 = vrot.lane.b32.xlu1 %v12164_v35, %s11686_s15 }
0x2106   :  { %3210 = vrot.lane.b32.xlu1 %v12177_v58, %s11686_s15 }
0x2108   :  { %v2983_v21 = vpop.xlane.xlu1 %2982 }
0x2109   :  { %v2993_v44 = vsub.f32 %v12457_v61, %v2983_v21 }
0x210a   :  { %3214 = vrot.lane.b32.xlu1 %v12190_v0, %s11686_s15 }
0x210b   :  { %v3007_v23 = vmul.f32 1.442695, %v2993_v44 }
0x210c   :  { %v10910_v38 = vpop.permute.xlu1 %10909 }
0x210d   :  { %11308 = vpow2.f32 %v3007_v23  ;;  %v10912_v40 = vunpack.i.h.bf16 %v10910_v38  ;;  %v10911_v10 = vunpack.i.l.bf16 %v10910_v38 }
0x210e   :  { %3218 = vrot.lane.b32.xlu1 %v12202_v4, %s11686_s15 }
0x210f   :  { %v10349_v15 = vpack.c.bf16 %v10912_v40, %v10911_v10 }
0x2111   :  { %10350 = vmatprep.subr.bf16.mxu1 %v10349_v15 }
0x2112   :  { %10352 = vmatpush3.bf16.msra.mxu1 %v10349_v15 }
0x2117   :  { %v11309_v48 = vpop.eup %11308 }
0x2118   :  { %v3029_v49 = vsel %vm2536_vm6, %v11309_v48, 0.0 }
0x2119   :  { %3030 = vadd.xlane.f32.xlu0 %v3029_v49 }
0x212f   :  { %10919 = vrot.lane.b32.xlu0 %v12187_v62, %s11683_s24 }
0x2133   :  { %3208 = vrot.lane.b32.xlu0 %v12181_v60, %s11686_s15 }
0x2137   :  { %3212 = vrot.lane.b32.xlu0 %v12196_v1, %s11686_s15 }
0x213b   :  { %3216 = vrot.lane.b32.xlu0 %v12206_v7, %s11686_s15 }
0x213c   :  { %v3016_v61 = vpop.xlane.xlu0 %3015 }
0x213d   :  { %11310 = vrcp.f32 %v3016_v61  ;;  %v3013_v59 = vpop.xlane.xlu1 %3012 }
0x213e   :  { %11312 = vrcp.f32 %v3013_v59 }
0x2141   :  { %v10915_v3 = vpop.permute.xlu1 %10914 }
0x2142   :  { %v10917_v5 = vunpack.i.h.bf16 %v10915_v3  ;;  %v10916_v14 = vunpack.i.l.bf16 %v10915_v3 }
0x2144   :  { %v10353_v55 = vpack.c.bf16 %v10917_v5, %v10916_v14 }
0x2145   :  { %v3019_v37 = vpop.xlane.xlu0 %3018 }
0x2146   :  { %11314 = vrcp.f32 %v3019_v37  ;;  %10355 = vmatprep.subr.msk.bf16.mxu1 %vm12216_vm5, %v10353_v55 }
0x2147   :  { %v11311_v19 = vpop.eup %11310 }
0x2148   :  { %v11313_v33 = vpop.eup %11312  ;;  %v3038_v21 = vmul.f32 %v11311_v19, %v12463_v11 }
0x2149   :  { %v3036_v42 = vmul.f32 %v11313_v33, %v12465_v54  ;;  %v3028_v38 = vpop.xlane.xlu0 %3027 }
0x214b   :  { %9553 = vmatprep.mubr.msk.f32.mxu1 %vm2536_vm6, %v3036_v42 }
0x214c   :  { %9554 = vmatmul.mubr.msk.f32.vlgmr.msra.gmra.mrb[34].mxu1 %vm2536_vm6, %v3038_v21 }
0x214d   :  { %10358 = vmatpush3.bf16.xpose.msk.msra.mxu1 %vm12216_vm5, %v10353_v55 }
0x2150   :  { %v11315_v44 = vpop.eup %11314 }
0x2151   :  { %v3040_v23 = vmul.f32 %v11315_v44, %v12471_v22 }
0x2153   :  { %9556 = vmatprep.mubr.msk.f32.mxu1 %vm2536_vm6, %v3040_v23 }
0x2171   :  { %v3025_v40 = vpop.xlane.xlu0 %3024 }
0x2172   :  { %11316 = vrcp.f32 %v3025_v40  ;;  %v3022_v10 = vpop.xlane.xlu1 %3021 }
0x2173   :  { %11318 = vrcp.f32 %v3022_v10 }
0x2174   :  { %11320 = vrcp.f32 %v3028_v38 }
0x2175   :  { %v3034_v59 = vpop.xlane.xlu0 %3033 }
0x2176   :  { %11322 = vrcp.f32 %v3034_v59  ;;  %v10925_v5 = vpop.permute.xlu1 %10924 }
0x2177   :  { %v10927_v55 = vunpack.i.h.bf16 %v10925_v5  ;;  %v10926_v37 = vunpack.i.l.bf16 %v10925_v5 }
0x217a   :  { %v10930_v42 = vpop.permute.xlu1 %10929 }
0x217b   :  { %v10932_v23 = vunpack.i.h.bf16 %v10930_v42  ;;  %v10931_v38 = vunpack.i.l.bf16 %v10930_v42 }
0x217c   :  { %v11317_v54 = vpop.eup %11316 }
0x217d   :  { %v11319_v11 = vpop.eup %11318  ;;  %v3044_v61 = vmul.f32 %v11317_v54, %v12483_v31  ;;  %v10365_v31 = vpack.c.bf16 %v10927_v55, %v10926_v37  ;;  %v10371_v54 = vpack.c.bf16 %v10932_v23, %v10931_v38 }
0x217e   :  { %v3042_v15 = vmul.f32 %v11319_v11, %v11303_v9  ;;  %v11321_v49 = vpop.eup %11320  ;;  %v3205_v10 = vpop.permute.xlu1 %3204 }
0x217f   :  { %v3046_v22 = vmul.f32 %v11321_v49, %v12475_v24 }
0x2180   :  { %9557 = vmatmul.mubr.msk.f32.gmra.mrb[36].mxu1 %vm2536_vm6, %v3042_v15  ;;  %v11323_v21 = vpop.eup %11322 }
0x2181   :  { %9559 = vmatprep.mubr.msk.f32.mxu1 %vm2536_vm6, %v3044_v61  ;;  %v3050_v40 = vmul.f32 %v11323_v21, %v12487_v47 }
0x2182   :  { %v3207_v11 = vpop.permute.xlu1 %3206 }
0x2184   :  { %9560 = vmatmul.mubr.msk.f32.gmra.mrb[38].mxu1 %vm2536_vm6, %v3046_v22 }
0x2186   :  { %v3211_v47 = vpop.permute.xlu1 %3210 }
0x218a   :  { %v3215_v49 = vpop.permute.xlu1 %3214 }
0x218e   :  { %v3219_v22 = vpop.permute.xlu1 %3218 }
0x21a6   :  { %v3031_v3 = vpop.xlane.xlu0 %3030 }
0x21a7   :  { %11324 = vrcp.f32 %v3031_v3 }
0x21aa   :  { %v10920_v14 = vpop.permute.xlu0 %10919 }
0x21ab   :  { %v10922_v9 = vunpack.i.h.bf16 %v10920_v14  ;;  %v10921_v19 = vunpack.i.l.bf16 %v10920_v14 }
0x21ad   :  { %v10359_v33 = vpack.c.bf16 %v10922_v9, %v10921_v19 }
0x21af   :  { %10361 = vmatprep.subr.msk.bf16.mxu1 %vm12216_vm5, %v10359_v33 }
0x21b0   :  { %10364 = vmatpush3.bf16.xpose.msk.msra.mxu1 %vm12216_vm5, %v10359_v33 }
0x21b1   :  { %v11325_v24 = vpop.eup %11324  ;;  %10367 = vmatprep.subr.msk.bf16.mxu1 %vm12216_vm5, %v10365_v31 }
0x21b2   :  { %v3048_v44 = vmul.f32 %v11325_v24, %v11309_v48  ;;  %v3209_v48 = vpop.permute.xlu0 %3208 }
0x21b4   :  { %9562 = vmatprep.mubr.msk.f32.mxu1 %vm2536_vm6, %v3048_v44 }
0x21b5   :  { %9563 = vmatmul.mubr.msk.f32.gmra.mrb[40].mxu1 %vm2536_vm6, %v3050_v40 }
0x21b6   :  { %9581 = vmatprep.mubr.msk.f32.mxu1 %vm1334_vm2, %v3205_v10  ;;  %v3213_v15 = vpop.permute.xlu0 %3212 }
0x21b8   :  { %10370 = vmatpush3.bf16.xpose.msk.msra.mxu1 %vm12216_vm5, %v10365_v31 }
0x21b9   :  { %10373 = vmatprep.subr.msk.bf16.mxu1 %vm12216_vm5, %v10371_v54 }
0x21ba   :  { %v3217_v61 = vpop.permute.xlu0 %3216 }
0x21c0   :  { %10376 = vmatpush3.bf16.xpose.msk.msra.mxu1 %vm12216_vm5, %v10371_v54 }
0x21c7   :  { %9582 = vmatmul.mubr.msk.f32.vlgmr.msra.gmra.mrb[42].mxu1 %vm1334_vm2, %v3207_v11 }
0x21c8   :  { %9584 = vmatprep.mubr.msk.f32.mxu1 %vm1334_vm2, %v3209_v48 }
0x21cb   :  { %9585 = vmatmul.mubr.msk.f32.gmra.mrb[44].mxu1 %vm1334_vm2, %v3211_v47 }
0x21cc   :  { %9587 = vmatprep.mubr.msk.f32.mxu1 %vm1334_vm2, %v3213_v15 }
0x21cf   :  { %9588 = vmatmul.mubr.msk.f32.gmra.mrb[46].mxu1 %vm1334_vm2, %v3215_v49 }
0x21d0   :  { %9590 = vmatprep.mubr.msk.f32.mxu1 %vm1334_vm2, %v3217_v61 }
0x21d3   :  { %9591 = vmatmul.mubr.msk.f32.gmra.mrb[48].mxu1 %vm1334_vm2, %v3219_v22 }
0x221f   :  { %v12554_v59 = vpop.f32.mrb[34].mxu1 }
0x2220   :  { %v12556_v3 = vpop.f32.mrb[35].mxu1 }
0x2253   :  { %v12558_v5 = vpop.f32.mrb[36].mxu1 }
0x2254   :  { %v12560_v14 = vpop.f32.mrb[37].mxu1 }
0x2257   :  { %v12562_v55 = vpop.f32.mrb[38].mxu1 }
0x2258   :  { %v12564_v37 = vpop.f32.mrb[39].mxu1 }
0x2288   :  { %v12566_v9 = vpop.f32.mrb[40].mxu1 }
0x2289   :  { %v12568_v19 = vpop.f32.mrb[41].mxu1 }
0x229a   :  { %v9583_v33 = vpop.f32.mrb[42].mxu1 }
0x229b   :  { %v3374_v31 = vmul.f32 0.35355338, %v9583_v33  ;;  %v3334_v42 = vpop.f32.mrb[43].mxu1 }
0x229c   :  { %v3373_v21 = vmul.f32 0.35355338, %v3334_v42 }
0x229d   :  { %v3382_v24 = vadd.f32 %v3374_v31, %v12267_v39 }
0x229e   :  { %v3381_v44 = vadd.f32 %v3373_v21, %v12270_v41  ;;  %v9586_v23 = vpop.f32.mrb[44].mxu1 }
0x229f   :  { %v3376_v38 = vmul.f32 0.35355338, %v9586_v23  ;;  %v3344_v40 = vpop.f32.mrb[45].mxu1  ;;  %v3392_v10 = vsel %vm2536_vm6, %v3382_v24, -inf }
0x22a0   :  { %v3375_v54 = vmul.f32 0.35355338, %v3344_v40  ;;  %3393 = vmax.xlane.f32.xlu1 %v3392_v10  ;;  %v3389_v11 = vsel %vm2536_vm6, %v3381_v44, -inf }
0x22a1   :  { %v12575_v48 = vadd.f32 %v3376_v38, %v12275_v46  ;;  %3390 = vmax.xlane.f32.xlu0 %v3389_v11 }
0x22a2   :  { %v9589_v47 = vpop.f32.mrb[46].mxu1  ;;  %v3383_v41 = vadd.f32 %v3375_v54, %v12283_v52 }
0x22a3   :  { %v3354_v15 = vpop.f32.mrb[47].mxu1  ;;  %v3398_v39 = vsel %vm2536_vm6, %v12575_v48, -inf  ;;  %v3378_v49 = vmul.f32 0.35355338, %v9589_v47 }
0x22a4   :  { %v3395_v42 = vsel %vm2536_vm6, %v3383_v41, -inf  ;;  %v3377_v52 = vmul.f32 0.35355338, %v3354_v15 }
0x22a5   :  { %3399 = vmax.xlane.f32.xlu0 %v3398_v39  ;;  %v3386_v33 = vadd.f32 %v3378_v49, %v12289_v63 }
0x22a6   :  { %v9592_v61 = vpop.f32.mrb[48].mxu1  ;;  %v3385_v63 = vadd.f32 %v3377_v52, %v12307_v17 }
0x22a7   :  { %v3364_v22 = vpop.f32.mrb[49].mxu1  ;;  %v3380_v31 = vmul.f32 0.35355338, %v9592_v61  ;;  %v3404_v21 = vsel %vm2536_vm6, %v3386_v33, -inf }
0x22a8   :  { %v3401_v38 = vsel %vm2536_vm6, %v3385_v63, -inf }
0x22a9   :  { %3396 = vmax.xlane.f32.xlu0 %v3395_v42  ;;  %v12583_v46 = vadd.f32 %v3380_v31, %v12294_v12  ;;  %v3379_v12 = vmul.f32 0.35355338, %v3364_v22 }
0x22ab   :  { %v3410_v23 = vsel %vm2536_vm6, %v12583_v46, -inf  ;;  %v12597_v40 = vadd.f32 %v3379_v12, %v12314_v20 }
0x22ad   :  { %3405 = vmax.xlane.f32.xlu0 %v3404_v21  ;;  %v3407_v10 = vsel %vm2536_vm6, %v12597_v40, -inf }
0x22b1   :  { %10934 = vrot.lane.b32.xlu1 %v12174_v56, %s11689_s18  ;;  %3411 = vmax.xlane.f32.xlu0 %v3410_v23 }
0x22c7   :  { %10939 = vrot.lane.b32.xlu0 %v12187_v62, %s11689_s18 }
0x22d5   :  { %3402 = vmax.xlane.f32.xlu1 %v3401_v38 }
0x22e6   :  { %10944 = vrot.lane.b32.xlu1 %v12200_v2, %s11689_s18 }
0x230a   :  { %3408 = vmax.xlane.f32.xlu1 %v3407_v10 }
0x231b   :  { %10949 = vrot.lane.b32.xlu1 %v12210_v8, %s11689_s18 }
0x232d   :  { %v3394_v54 = vpop.xlane.xlu1 %3393 }
0x232e   :  { %v3414_v11 = vsub.f32 %v3382_v24, %v3394_v54  ;;  %v3391_v17 = vpop.xlane.xlu0 %3390 }
0x232f   :  { %v3413_v47 = vsub.f32 %v3381_v44, %v3391_v17 }
0x2330   :  { %v3423_v15 = vmul.f32 1.442695, %v3414_v11 }
0x2331   :  { %v3421_v39 = vmul.f32 1.442695, %v3413_v47  ;;  %v10935_v49 = vpop.permute.xlu1 %10934 }
0x2332   :  { %11326 = vpow2.f32 %v3423_v15  ;;  %v10937_v61 = vunpack.i.h.bf16 %v10935_v49  ;;  %v10936_v22 = vunpack.i.l.bf16 %v10935_v49  ;;  %v3400_v31 = vpop.xlane.xlu0 %3399 }
0x2333   :  { %11328 = vpow2.f32 %v3421_v39 }
0x2334   :  { %v10377_v20 = vpack.c.bf16 %v10937_v61, %v10936_v22  ;;  %v3416_v22 = vsub.f32 %v12575_v48, %v3400_v31 }
0x2336   :  { %10378 = vmatprep.subr.bf16.mxu0 %v10377_v20  ;;  %v3397_v42 = vpop.xlane.xlu0 %3396 }
0x2337   :  { %v3415_v21 = vsub.f32 %v3383_v41, %v3397_v42  ;;  %10380 = vmatpush3.bf16.msra.mxu0 %v10377_v20  ;;  %v3427_v42 = vmul.f32 1.442695, %v3416_v22 }
0x2339   :  { %v3425_v23 = vmul.f32 1.442695, %v3415_v21 }
0x233a   :  { %v3406_v52 = vpop.xlane.xlu0 %3405 }
0x233b   :  { %11330 = vpow2.f32 %v3425_v23  ;;  %v3418_v38 = vsub.f32 %v3386_v33, %v3406_v52 }
0x233c   :  { %v12603_v24 = vpop.eup %11326 }
0x233d   :  { %v12605_v44 = vpop.eup %11328  ;;  %v3431_v12 = vmul.f32 1.442695, %v3418_v38  ;;  %v3440_v10 = vsel %vm2536_vm6, %v12603_v24, 0.0 }
0x233e   :  { %3441 = vadd.xlane.f32.xlu0 %v3440_v10  ;;  %v3412_v54 = vpop.xlane.xlu0 %3411  ;;  %v3437_v11 = vsel %vm2536_vm6, %v12605_v44, 0.0 }
0x233f   :  { %11332 = vpow2.f32 %v3431_v12  ;;  %3438 = vadd.xlane.f32.xlu1 %v3437_v11  ;;  %v3420_v20 = vsub.f32 %v12583_v46, %v3412_v54 }
0x2340   :  { %11334 = vpow2.f32 %v3427_v42 }
0x2341   :  { %v3435_v52 = vmul.f32 1.442695, %v3420_v20 }
0x2342   :  { %v10940_v41 = vpop.permute.xlu0 %10939 }
0x2343   :  { %v10942_v17 = vunpack.i.h.bf16 %v10940_v41  ;;  %v10941_v47 = vunpack.i.l.bf16 %v10940_v41 }
0x2345   :  { %v12611_v15 = vpop.eup %11330  ;;  %v10381_v33 = vpack.c.bf16 %v10942_v17, %v10941_v47 }
0x2346   :  { %v3443_v39 = vsel %vm2536_vm6, %v12611_v15, 0.0 }
0x2347   :  { %3444 = vadd.xlane.f32.xlu0 %v3443_v39  ;;  %10382 = vmatprep.subr.bf16.mxu0 %v10381_v33 }
0x2348   :  { %10384 = vmatpush3.bf16.msra.mxu0 %v10381_v33 }
0x2349   :  { %v12615_v49 = vpop.eup %11332 }
0x234a   :  { %v3452_v61 = vsel %vm2536_vm6, %v12615_v49, 0.0  ;;  %v11335_v17 = vpop.eup %11334 }
0x234b   :  { %3453 = vadd.xlane.f32.xlu0 %v3452_v61 }
0x2350   :  { %10954 = vrot.lane.b32.xlu1 %v12174_v56, %s11685_s6 }
0x2362   :  { %v3403_v21 = vpop.xlane.xlu1 %3402 }
0x2363   :  { %v3417_v23 = vsub.f32 %v3385_v63, %v3403_v21  ;;  %v3446_v63 = vsel %vm2536_vm6, %v11335_v17, 0.0 }
0x2365   :  { %v3429_v38 = vmul.f32 1.442695, %v3417_v23 }
0x2366   :  { %v10945_v12 = vpop.permute.xlu1 %10944 }
0x2367   :  { %11336 = vpow2.f32 %v3429_v38  ;;  %v10947_v10 = vunpack.i.h.bf16 %v10945_v12  ;;  %v10946_v11 = vunpack.i.l.bf16 %v10945_v12 }
0x2368   :  { %11338 = vpow2.f32 %v3435_v52 }
0x2369   :  { %v10385_v41 = vpack.c.bf16 %v10947_v10, %v10946_v11 }
0x236b   :  { %10386 = vmatprep.subr.bf16.mxu0 %v10385_v41 }
0x236c   :  { %10388 = vmatpush3.bf16.msra.mxu0 %v10385_v41 }
0x2371   :  { %v12623_v47 = vpop.eup %11336 }
0x2372   :  { %v3449_v48 = vsel %vm2536_vm6, %v12623_v47, 0.0  ;;  %v12627_v46 = vpop.eup %11338 }
0x2373   :  { %3450 = vadd.xlane.f32.xlu0 %v3449_v48  ;;  %v3458_v31 = vsel %vm2536_vm6, %v12627_v46, 0.0 }
0x2374   :  { %3447 = vadd.xlane.f32.xlu1 %v3446_v63 }
0x2377   :  { %3459 = vadd.xlane.f32.xlu0 %v3458_v31 }
0x2385   :  { %10964 = vrot.lane.b32.xlu1 %v12200_v2, %s11685_s6 }
0x2389   :  { %10969 = vrot.lane.b32.xlu1 %v12210_v8, %s11685_s6 }
0x238d   :  { %3630 = vrot.lane.b32.xlu1 %v12167_v53, %s11687_s16 }
0x2391   :  { %3632 = vrot.lane.b32.xlu1 %v12164_v35, %s11687_s16 }
0x2395   :  { %3636 = vrot.lane.b32.xlu1 %v12177_v58, %s11687_s16 }
0x2397   :  { %v3409_v54 = vpop.xlane.xlu1 %3408 }
0x2398   :  { %v3419_v33 = vsub.f32 %v12597_v40, %v3409_v54 }
0x2399   :  { %3640 = vrot.lane.b32.xlu1 %v12190_v0, %s11687_s16 }
0x239a   :  { %v3433_v39 = vmul.f32 1.442695, %v3419_v33 }
0x239b   :  { %v10950_v61 = vpop.permute.xlu1 %10949 }
0x239c   :  { %11340 = vpow2.f32 %v3433_v39  ;;  %v10952_v22 = vunpack.i.h.bf16 %v10950_v61  ;;  %v10951_v20 = vunpack.i.l.bf16 %v10950_v61 }
0x239d   :  { %3644 = vrot.lane.b32.xlu1 %v12202_v4, %s11687_s16 }
0x239e   :  { %v10389_v53 = vpack.c.bf16 %v10952_v22, %v10951_v20 }
0x23a0   :  { %10390 = vmatprep.subr.bf16.mxu0 %v10389_v53 }
0x23a1   :  { %10392 = vmatpush3.bf16.msra.mxu0 %v10389_v53 }
0x23a6   :  { %v11341_v35 = vpop.eup %11340 }
0x23a7   :  { %v3455_v58 = vsel %vm2536_vm6, %v11341_v35, 0.0 }
0x23a8   :  { %3456 = vadd.xlane.f32.xlu0 %v3455_v58 }
0x23be   :  { %10959 = vrot.lane.b32.xlu0 %v12187_v62, %s11685_s6 }
0x23c2   :  { %3634 = vrot.lane.b32.xlu0 %v12181_v60, %s11687_s16 }
0x23c6   :  { %3638 = vrot.lane.b32.xlu0 %v12196_v1, %s11687_s16 }
0x23ca   :  { %3642 = vrot.lane.b32.xlu0 %v12206_v7, %s11687_s16 }
0x23cb   :  { %v3442_v0 = vpop.xlane.xlu0 %3441 }
0x23cc   :  { %11342 = vrcp.f32 %v3442_v0  ;;  %v3439_v4 = vpop.xlane.xlu1 %3438 }
0x23cd   :  { %11344 = vrcp.f32 %v3439_v4 }
0x23d0   :  { %v10955_v40 = vpop.permute.xlu1 %10954 }
0x23d1   :  { %v10957_v42 = vunpack.i.h.bf16 %v10955_v40  ;;  %v10956_v21 = vunpack.i.l.bf16 %v10955_v40 }
0x23d3   :  { %v10393_v23 = vpack.c.bf16 %v10957_v42, %v10956_v21 }
0x23d4   :  { %v3445_v52 = vpop.xlane.xlu0 %3444 }
0x23d5   :  { %11346 = vrcp.f32 %v3445_v52  ;;  %10395 = vmatprep.subr.msk.bf16.mxu0 %vm12216_vm5, %v10393_v23 }
0x23d6   :  { %v11343_v60 = vpop.eup %11342 }
0x23d7   :  { %v11345_v38 = vpop.eup %11344  ;;  %v3464_v12 = vmul.f32 %v11343_v60, %v12603_v24 }
0x23d8   :  { %v3462_v1 = vmul.f32 %v11345_v38, %v12605_v44  ;;  %v3454_v11 = vpop.xlane.xlu0 %3453 }
0x23da   :  { %9609 = vmatprep.mubr.msk.f32.mxu0 %vm2536_vm6, %v3462_v1  ;;  %v11583_v1 = vld [vmem:[%s11704_s5 + $0x8] sm:$0xff] }
0x23db   :  { %9610 = vmatmul.mubr.msk.f32.vlgmr.msra.gmra.mrb[50].mxu0 %vm2536_vm6, %v3464_v12 }
0x23dc   :  { %10398 = vmatpush3.bf16.xpose.msk.msra.mxu0 %vm12216_vm5, %v10393_v23 }
0x23df   :  { %v11347_v7 = vpop.eup %11346 }
0x23e0   :  { %v3466_v10 = vmul.f32 %v11347_v7, %v12611_v15 }
0x23e2   :  { %9612 = vmatprep.mubr.msk.f32.mxu0 %vm2536_vm6, %v3466_v10  ;;  %v11584_v10 = vld [vmem:[%s11704_s5 + $0x10] sm:$0xff] }
0x2400   :  { %v3451_v41 = vpop.xlane.xlu0 %3450 }
0x2401   :  { %11348 = vrcp.f32 %v3451_v41  ;;  %v3448_v48 = vpop.xlane.xlu1 %3447 }
0x2402   :  { %11350 = vrcp.f32 %v3448_v48 }
0x2403   :  { %11352 = vrcp.f32 %v3454_v11  ;;  %v11585_v11 = vld [vmem:[%s11704_s5 + $0x18] sm:$0xff] }
0x2404   :  { %v3460_v33 = vpop.xlane.xlu0 %3459  ;;  %v12694_v41 = vpack.c.bf16 %v11585_v11, %v11584_v10 }
0x2405   :  { %11354 = vrcp.f32 %v3460_v33  ;;  %v10965_v61 = vpop.permute.xlu1 %10964  ;;  %v11589_v33 = vld [vmem:[%s11704_s5 + $0x38] sm:$0xff] }
0x2406   :  { %v10967_v20 = vunpack.i.h.bf16 %v10965_v61  ;;  %v10966_v53 = vunpack.i.l.bf16 %v10965_v61 }
0x2409   :  { %v10970_v4 = vpop.permute.xlu1 %10969 }
0x240a   :  { %v10972_v21 = vunpack.i.h.bf16 %v10970_v4  ;;  %v10971_v23 = vunpack.i.l.bf16 %v10970_v4 }
0x240b   :  { %v11349_v44 = vpop.eup %11348 }
0x240c   :  { %v11351_v24 = vpop.eup %11350  ;;  %v3470_v54 = vmul.f32 %v11349_v44, %v12623_v47  ;;  %v10405_v47 = vpack.c.bf16 %v10967_v20, %v10966_v53  ;;  %v10411_v38 = vpack.c.bf16 %v10972_v21, %v10971_v23  ;;  %v11586_v44 = vld [vmem:[%s11704_s5 + $0x20] sm:$0xff] }
0x240d   :  { %v3468_v63 = vmul.f32 %v11351_v24, %v11335_v17  ;;  %v11353_v31 = vpop.eup %11352  ;;  %v3631_v60 = vpop.permute.xlu1 %3630  ;;  %v11587_v24 = vld [vmem:[%s11704_s5 + $0x28] sm:$0xff] }
0x240e   :  { %v3472_v15 = vmul.f32 %v11353_v31, %v12615_v49 }
0x240f   :  { %9613 = vmatmul.mubr.msk.f32.gmra.mrb[52].mxu0 %vm2536_vm6, %v3468_v63  ;;  %v11355_v49 = vpop.eup %11354  ;;  %v12701_v63 = vpack.c.bf16 %v11587_v24, %v11586_v44  ;;  %v11592_v44 = vld [vmem:[%s11734_s29 + $0x10] sm:$0xff] }
0x2410   :  { %9615 = vmatprep.mubr.msk.f32.mxu0 %vm2536_vm6, %v3470_v54  ;;  %v3476_v52 = vmul.f32 %v11355_v49, %v12627_v46 }
0x2411   :  { %v3633_v12 = vpop.permute.xlu1 %3632 }
0x2413   :  { %9616 = vmatmul.mubr.msk.f32.gmra.mrb[54].mxu0 %vm2536_vm6, %v3472_v15  ;;  %v11588_v15 = vld [vmem:[%s11704_s5 + $0x30] sm:$0xff] }
0x2415   :  { %v3637_v48 = vpop.permute.xlu1 %3636 }
0x2419   :  { %v3641_v54 = vpop.permute.xlu1 %3640 }
0x2435   :  { %v3457_v39 = vpop.xlane.xlu0 %3456 }
0x2436   :  { %11356 = vrcp.f32 %v3457_v39  ;;  %v12709_v39 = vpack.c.bf16 %v11589_v33, %v11588_v15 }
0x2439   :  { %v10960_v22 = vpop.permute.xlu0 %10959 }
0x243a   :  { %v10962_v17 = vunpack.i.h.bf16 %v10960_v22  ;;  %v10961_v58 = vunpack.i.l.bf16 %v10960_v22  ;;  %v3645_v22 = vpop.permute.xlu1 %3644 }
0x243c   :  { %v10399_v0 = vpack.c.bf16 %v10962_v17, %v10961_v58 }
0x243d   :  { %v3635_v7 = vpop.permute.xlu0 %3634 }
0x243e   :  { %10401 = vmatprep.subr.msk.bf16.mxu0 %vm12216_vm5, %v10399_v0 }
0x243f   :  { %10404 = vmatpush3.bf16.xpose.msk.msra.mxu0 %vm12216_vm5, %v10399_v0 }
0x2440   :  { %v11357_v40 = vpop.eup %11356  ;;  %10407 = vmatprep.subr.msk.bf16.mxu0 %vm12216_vm5, %v10405_v47 }
0x2441   :  { %v3474_v42 = vmul.f32 %v11357_v40, %v11341_v35  ;;  %v11582_v35 = vld [vmem:[%s11704_s5] sm:$0xff]  ;;  %v3639_v31 = vpop.permute.xlu0 %3638 }
0x2442   :  { %v12687_v46 = vpack.c.bf16 %v11583_v1, %v11582_v35 }
0x2443   :  { %9618 = vmatprep.mubr.msk.f32.mxu0 %vm2536_vm6, %v3474_v42 }
0x2444   :  { %9619 = vmatmul.mubr.msk.f32.gmra.mrb[56].mxu0 %vm2536_vm6, %v3476_v52  ;;  %v11590_v52 = vld [vmem:[%s11734_s29 + $0x8] sm:$0xff] }
0x2445   :  { %9637 = vmatprep.mubr.msk.f32.mxu0 %vm1334_vm2, %v3631_v60  ;;  %v3643_v61 = vpop.permute.xlu0 %3642 }
0x2447   :  { %10410 = vmatpush3.bf16.xpose.msk.msra.mxu0 %vm12216_vm5, %v10405_v47 }
0x2448   :  { %10413 = vmatprep.subr.msk.bf16.mxu0 %vm12216_vm5, %v10411_v38 }
0x244f   :  { %10416 = vmatpush3.bf16.xpose.msk.msra.mxu0 %vm12216_vm5, %v10411_v38  ;;  %v11591_v38 = vld [vmem:[%s11734_s29] sm:$0xff] }
0x2450   :  { %10442 = vmatprep.subr.bf16.mxu0 %v12687_v46 }
0x2456   :  { %9638 = vmatmul.mubr.msk.f32.vlgmr.msra.gmra.mrb[58].mxu0 %vm1334_vm2, %v3633_v12 }
0x2457   :  { %9640 = vmatprep.mubr.msk.f32.mxu0 %vm1334_vm2, %v3635_v7  ;;  %10444 = vmatpush3.bf16.msra.mxu0 %v12687_v46 }
0x2458   :  { %10446 = vmatprep.subr.bf16.mxu0 %v12694_v41 }
0x245a   :  { %9641 = vmatmul.mubr.msk.f32.gmra.mrb[60].mxu0 %vm1334_vm2, %v3637_v48 }
0x245b   :  { %9643 = vmatprep.mubr.msk.f32.mxu0 %vm1334_vm2, %v3639_v31  ;;  %10448 = vmatpush3.bf16.msra.mxu0 %v12694_v41 }
0x245c   :  { %10450 = vmatprep.subr.bf16.mxu0 %v12701_v63 }
0x245e   :  { %9644 = vmatmul.mubr.msk.f32.gmra.mrb[62].mxu0 %vm1334_vm2, %v3641_v54  ;;  %v11593_v54 = vld [vmem:[%s11734_s29 + $0x18] sm:$0xff] }
0x245f   :  { %9646 = vmatprep.mubr.msk.f32.mxu0 %vm1334_vm2, %v3643_v61  ;;  %10452 = vmatpush3.bf16.msra.mxu0 %v12701_v63 }
0x2460   :  { %10454 = vmatprep.subr.bf16.mxu0 %v12709_v39 }
0x2462   :  { %9647 = vmatmul.mubr.msk.f32.gmra.mrb[64].mxu0 %vm1334_vm2, %v3645_v22 }
0x2463   :  { %10456 = vmatpush3.bf16.msra.mxu0 %v12709_v39 }
0x2464   :  { %10474 = vmatprep.subr.bf16.mxu0 %v12687_v46 }
0x24ae   :  { %v12719_v20 = vpop.f32.mrb[50].mxu0 }
0x24af   :  { %v12721_v53 = vpop.f32.mrb[51].mxu0 }
0x24e2   :  { %v12723_v17 = vpop.f32.mrb[52].mxu0 }
0x24e3   :  { %v12725_v58 = vpop.f32.mrb[53].mxu0 }
0x24e6   :  { %v12727_v0 = vpop.f32.mrb[54].mxu0 }
0x24e7   :  { %v12729_v47 = vpop.f32.mrb[55].mxu0 }
0x2517   :  { %v12731_v4 = vpop.f32.mrb[56].mxu0 }
0x2518   :  { %v12733_v49 = vpop.f32.mrb[57].mxu0 }
0x2529   :  { %v9639_v40 = vpop.f32.mrb[58].mxu0 }
0x252a   :  { %v3800_v42 = vmul.f32 0.35355338, %v9639_v40  ;;  %v3760_v21 = vpop.f32.mrb[59].mxu0 }
0x252b   :  { %v3799_v23 = vmul.f32 0.35355338, %v3760_v21 }
0x252c   :  { %v3808_v60 = vadd.f32 %v11590_v52, %v3800_v42  ;;  %v11594_v42 = vld [vmem:[%s11734_s29 + $0x20] sm:$0xff] }
0x252d   :  { %v3807_v35 = vadd.f32 %v11591_v38, %v3799_v23  ;;  %v9642_v1 = vpop.f32.mrb[60].mxu0 }
0x252e   :  { %v3802_v12 = vmul.f32 0.35355338, %v9642_v1  ;;  %v3770_v7 = vpop.f32.mrb[61].mxu0  ;;  %v3818_v10 = vsel %vm2536_vm6, %v3808_v60, -inf  ;;  %v11595_v1 = vld [vmem:[%s11734_s29 + $0x28] sm:$0xff] }
0x252f   :  { %v3801_v11 = vmul.f32 0.35355338, %v3770_v7  ;;  %3819 = vmax.xlane.f32.xlu1 %v3818_v10  ;;  %v3815_v48 = vsel %vm2536_vm6, %v3807_v35, -inf }
0x2530   :  { %3816 = vmax.xlane.f32.xlu0 %v3815_v48  ;;  %v3810_v15 = vadd.f32 %v11593_v54, %v3802_v12  ;;  %v11596_v48 = vld [vmem:[%s11734_s29 + $0x30] sm:$0xff] }
0x2531   :  { %v3809_v24 = vadd.f32 %v11592_v44, %v3801_v11  ;;  %v9645_v31 = vpop.f32.mrb[62].mxu0 }
0x2532   :  { %v3780_v33 = vpop.f32.mrb[63].mxu0  ;;  %v3804_v61 = vmul.f32 0.35355338, %v9645_v31  ;;  %v3824_v38 = vsel %vm2536_vm6, %v3810_v15, -inf  ;;  %v11597_v31 = vld [vmem:[%s11734_s29 + $0x38] sm:$0xff]  ;;  %s14403_s29 = sld [smem:[#allocation7_spill]] }
0x2533   :  { %v3803_v22 = vmul.f32 0.35355338, %v3780_v33  ;;  %v3821_v40 = vsel %vm2536_vm6, %v3809_v24, -inf }
0x2534   :  { %3822 = vmax.xlane.f32.xlu0 %v3821_v40  ;;  %v3812_v7 = vadd.f32 %v11595_v1, %v3804_v61 }
0x2535   :  { %v3811_v21 = vadd.f32 %v11594_v42, %v3803_v22  ;;  %v9648_v23 = vpop.f32.mrb[64].mxu0 }
0x2536   :  { %v3790_v52 = vpop.f32.mrb[65].mxu0  ;;  %v3806_v10 = vmul.f32 0.35355338, %v9648_v23  ;;  %v3830_v33 = vsel %vm2536_vm6, %v3812_v7, -inf }
0x2537   :  { %v3805_v11 = vmul.f32 0.35355338, %v3790_v52  ;;  %v3827_v12 = vsel %vm2536_vm6, %v3811_v21, -inf }
0x2538   :  { %3825 = vmax.xlane.f32.xlu0 %v3824_v38  ;;  %3828 = vmax.xlane.f32.xlu1 %v3827_v12  ;;  %v3814_v54 = vadd.f32 %v11597_v31, %v3806_v10 }
0x2539   :  { %v3813_v44 = vadd.f32 %v11596_v48, %v3805_v11 }
0x253a   :  { %v3836_v40 = vsel %vm2536_vm6, %v3814_v54, -inf }
0x253b   :  { %v3833_v22 = vsel %vm2536_vm6, %v3813_v44, -inf }
0x253c   :  { %3831 = vmax.xlane.f32.xlu0 %v3830_v33  ;;  %3834 = vmax.xlane.f32.xlu1 %v3833_v22 }
0x2540   :  { %3837 = vmax.xlane.f32.xlu0 %v3836_v40 }
0x254d   :  { %10974 = vrot.lane.b32.xlu1 %v12174_v56, %s11690_s22 }
0x25bc   :  { %v3820_v61 = vpop.xlane.xlu1 %3819 }
0x25bd   :  { %v3840_v42 = vsub.f32 %v3808_v60, %v3820_v61  ;;  %v3817_v23 = vpop.xlane.xlu0 %3816 }
0x25be   :  { %v3839_v52 = vsub.f32 %v3807_v35, %v3817_v23 }
0x25bf   :  { %v3849_v38 = vmul.f32 1.442695, %v3840_v42 }
0x25c0   :  { %v3847_v1 = vmul.f32 1.442695, %v3839_v52 }
0x25c1   :  { %11358 = vpow2.f32 %v3849_v38  ;;  %v3823_v10 = vpop.xlane.xlu0 %3822 }
0x25c2   :  { %11360 = vpow2.f32 %v3847_v1  ;;  %v3841_v11 = vsub.f32 %v3809_v24, %v3823_v10 }
0x25c4   :  { %v3851_v12 = vmul.f32 1.442695, %v3841_v11 }
0x25c5   :  { %v3826_v48 = vpop.xlane.xlu0 %3825  ;;  %v3829_v31 = vpop.xlane.xlu1 %3828 }
0x25c6   :  { %11362 = vpow2.f32 %v3851_v12  ;;  %v3842_v33 = vsub.f32 %v3810_v15, %v3826_v48  ;;  %v3843_v22 = vsub.f32 %v3811_v21, %v3829_v31 }
0x25c8   :  { %v3853_v40 = vmul.f32 1.442695, %v3842_v33  ;;  %v3855_v6 = vmul.f32 1.442695, %v3843_v22 }
0x25c9   :  { %v3832_v13 = vpop.xlane.xlu0 %3831  ;;  %v3835_v56 = vpop.xlane.xlu1 %3834 }
0x25ca   :  { %11364 = vpow2.f32 %v3853_v40  ;;  %v3844_v60 = vsub.f32 %v3812_v7, %v3832_v13  ;;  %v3845_v23 = vsub.f32 %v3813_v44, %v3835_v56 }
0x25cb   :  { %v12753_v61 = vpop.eup %11358  ;;  %11366 = vpow2.f32 %v3855_v6 }
0x25cc   :  { %v12755_v35 = vpop.eup %11360  ;;  %v3857_v42 = vmul.f32 1.442695, %v3844_v60  ;;  %v3866_v24 = vsel %vm2536_vm6, %v12753_v61, 0.0  ;;  %v3859_v6 = vmul.f32 1.442695, %v3845_v23 }
0x25cd   :  { %3867 = vadd.xlane.f32.xlu0 %v3866_v24  ;;  %v3838_v52 = vpop.xlane.xlu0 %3837  ;;  %v10975_v15 = vpop.permute.xlu1 %10974  ;;  %v3863_v21 = vsel %vm2536_vm6, %v12755_v35, 0.0 }
0x25ce   :  { %11368 = vpow2.f32 %v3857_v42  ;;  %v3846_v38 = vsub.f32 %v3814_v54, %v3838_v52  ;;  %v10977_v1 = vunpack.i.h.bf16 %v10975_v15  ;;  %v10976_v13 = vunpack.i.l.bf16 %v10975_v15  ;;  %3864 = vadd.xlane.f32.xlu1 %v3863_v21 }
0x25d0   :  { %v12761_v7 = vpop.eup %11362  ;;  %v3861_v10 = vmul.f32 1.442695, %v3846_v38  ;;  %v10417_v11 = vpack.c.bf16 %v10977_v1, %v10976_v13 }
0x25d1   :  { %v3869_v44 = vsel %vm2536_vm6, %v12761_v7, 0.0 }
0x25d2   :  { %11370 = vpow2.f32 %v3861_v10  ;;  %3870 = vadd.xlane.f32.xlu1 %v3869_v44  ;;  %10418 = vmatprep.subr.bf16.mxu1 %v10417_v11 }
0x25d3   :  { %10420 = vmatpush3.bf16.msra.mxu1 %v10417_v11  ;;  %11372 = vpow2.f32 %v3859_v6 }
0x25d4   :  { %v12765_v12 = vpop.eup %11364 }
0x25d5   :  { %v12767_v48 = vpop.eup %11366  ;;  %v3872_v54 = vsel %vm2536_vm6, %v12765_v12, 0.0 }
0x25d6   :  { %3873 = vadd.xlane.f32.xlu0 %v3872_v54  ;;  %v3875_v31 = vsel %vm2536_vm6, %v12767_v48, 0.0 }
0x25d7   :  { %3876 = vadd.xlane.f32.xlu1 %v3875_v31 }
0x25d8   :  { %v12773_v33 = vpop.eup %11368 }
0x25d9   :  { %v3878_v22 = vsel %vm2536_vm6, %v12773_v33, 0.0 }
0x25da   :  { %3879 = vadd.xlane.f32.xlu0 %v3878_v22 }
0x25dc   :  { %v12777_v40 = vpop.eup %11370 }
0x25dd   :  { %v3884_v56 = vsel %vm2536_vm6, %v12777_v40, 0.0  ;;  %v12781_v60 = vpop.eup %11372 }
0x25de   :  { %3885 = vadd.xlane.f32.xlu0 %v3884_v56  ;;  %v3881_v42 = vsel %vm2536_vm6, %v12781_v60, 0.0 }
0x25e2   :  { %3882 = vadd.xlane.f32.xlu0 %v3881_v42 }
0x25e8   :  { %10984 = vrot.lane.b32.xlu1 %v12200_v2, %s11690_s22  ;;  %v12825_v2 = vld [vmem:[%s14401_s25 + $0x8] sm:$0xff] }
0x25ec   :  { %10989 = vrot.lane.b32.xlu1 %v12210_v8, %s11690_s22  ;;  %v12828_v8 = vld [vmem:[%s14401_s25 + $0x10] sm:$0xff] }
0x25f0   :  { %4064 = vrot.lane.b32.xlu1 %v12556_v3, %s11691_s23  ;;  %v12842_v3 = vld [vmem:[%s14401_s25 + $0x20] sm:$0xff] }
0x25f4   :  { %4066 = vrot.lane.b32.xlu1 %v12554_v59, %s11691_s23  ;;  %v12839_v59 = vld [vmem:[%s14401_s25 + $0x18] sm:$0xff] }
0x25f8   :  { %4098 = vrot.lane.b32.xlu1 %v12719_v20, %s11692_s26  ;;  %10979 = vrot.lane.b32.xlu0 %v12187_v62, %s11690_s22  ;;  %v12822_v62 = vld [vmem:[%s14401_s25] sm:$0xff] }
0x25f9   :  { %9713 = vmatprep.mubr.msk.f32.mxu0 %vm2536_vm6, %v12822_v62 }
0x25fa   :  { %9714 = vmatmul.mubr.msk.f32.vlgmr.msra.gmra.mrb[66].mxu0 %vm2536_vm6, %v12825_v2 }
0x25fb   :  { %9716 = vmatprep.mubr.msk.f32.mxu0 %vm2536_vm6, %v12828_v8  ;;  %10476 = vmatpush3.bf16.msra.mxu0 %v12687_v46 }
0x25fc   :  { %4070 = vrot.lane.b32.xlu1 %v12558_v5, %s11691_s23  ;;  %4096 = vrot.lane.b32.xlu0 %v12721_v53, %s11692_s26  ;;  %v12851_v5 = vld [vmem:[%s14401_s25 + $0x28] sm:$0xff] }
0x25fd   :  { %10478 = vmatprep.subr.bf16.mxu0 %v12694_v41 }
0x25fe   :  { %9717 = vmatmul.mubr.msk.f32.gmra.mrb[68].mxu0 %vm2536_vm6, %v12839_v59 }
0x25ff   :  { %9719 = vmatprep.mubr.msk.f32.mxu0 %vm2536_vm6, %v12842_v3  ;;  %10480 = vmatpush3.bf16.msra.mxu0 %v12694_v41 }
0x2600   :  { %4102 = vrot.lane.b32.xlu1 %v12723_v17, %s11692_s26  ;;  %4068 = vrot.lane.b32.xlu0 %v12560_v14, %s11691_s23  ;;  %v12854_v14 = vld [vmem:[%s14401_s25 + $0x30] sm:$0xff] }
0x2601   :  { %10482 = vmatprep.subr.bf16.mxu0 %v12701_v63 }
0x2602   :  { %9720 = vmatmul.mubr.msk.f32.gmra.mrb[70].mxu0 %vm2536_vm6, %v12851_v5 }
0x2603   :  { %9722 = vmatprep.mubr.msk.f32.mxu0 %vm2536_vm6, %v12854_v14  ;;  %10484 = vmatpush3.bf16.msra.mxu0 %v12701_v63 }
0x2604   :  { %4074 = vrot.lane.b32.xlu1 %v12562_v55, %s11691_s23  ;;  %4100 = vrot.lane.b32.xlu0 %v12725_v58, %s11692_s26  ;;  %v12863_v55 = vld [vmem:[%s14401_s25 + $0x38] sm:$0xff] }
0x2605   :  { %10486 = vmatprep.subr.bf16.mxu0 %v12709_v39 }
0x2606   :  { %9723 = vmatmul.mubr.msk.f32.gmra.mrb[72].mxu0 %vm2536_vm6, %v12863_v55 }
0x2607   :  { %10488 = vmatpush3.bf16.msra.mxu0 %v12709_v39 }
0x2608   :  { %4106 = vrot.lane.b32.xlu1 %v12727_v0, %s11692_s26  ;;  %4072 = vrot.lane.b32.xlu0 %v12564_v37, %s11691_s23  ;;  %v14402_v37 = vmov 0.0|0.0  }
0x2609   :  { %10505 = vmatprep.subr.bf16.mxu0 %v14402_v37 }
0x260c   :  { %4078 = vrot.lane.b32.xlu1 %v12566_v9, %s11691_s23  ;;  %4104 = vrot.lane.b32.xlu0 %v12729_v47, %s11692_s26 }
0x2610   :  { %4110 = vrot.lane.b32.xlu1 %v12731_v4, %s11692_s26  ;;  %4076 = vrot.lane.b32.xlu0 %v12568_v19, %s11691_s23 }
0x2614   :  { %4108 = vrot.lane.b32.xlu0 %v12733_v49, %s11692_s26 }
0x265a   :  { %v3868_v19 = vpop.xlane.xlu0 %3867 }
0x265b   :  { %v3865_v9 = vpop.xlane.xlu1 %3864 }
0x265c   :  { %11374 = vrcp.f32 %v3865_v9 }
0x265d   :  { %11376 = vrcp.f32 %v3868_v19  ;;  %v12891_v19 = vld [vmem:[%s14403_s29 + $0x8] sm:$0xff] }
0x265f   :  { %v3871_v46 = vpop.xlane.xlu1 %3870 }
0x2660   :  { %11378 = vrcp.f32 %v3871_v46  ;;  %v12901_v46 = vld [vmem:[%s14403_s29 + $0x18] sm:$0xff] }
0x2663   :  { %v3874_v41 = vpop.xlane.xlu0 %3873 }
0x2664   :  { %v3877_v58 = vpop.xlane.xlu1 %3876  ;;  %11380 = vrcp.f32 %v3874_v41 }
0x2665   :  { %11382 = vrcp.f32 %v3877_v58 }
0x2666   :  { %v11375_v20 = vpop.eup %11374 }
0x2667   :  { %v3880_v53 = vpop.xlane.xlu0 %3879  ;;  %v3888_v17 = vmul.f32 %v11375_v20, %v12755_v35  ;;  %v11377_v13 = vpop.eup %11376  ;;  %v249_v20 = vld [vmem:[%s14404_s12 + $0x8] sm:$0xff] }
0x2668   :  { %v10985_v0 = vpop.permute.xlu1 %10984  ;;  %11384 = vrcp.f32 %v3880_v53  ;;  %v3890_v10 = vmul.f32 %v11377_v13, %v12753_v61  ;;  %v250_v53 = vld [vmem:[%s14404_s12 + $0x10] sm:$0xff] }
0x2669   :  { %9665 = vmatprep.mubr.msk.f32.mxu1 %vm2536_vm6, %v3888_v17  ;;  %v10987_v49 = vunpack.i.h.bf16 %v10985_v0  ;;  %v10986_v39 = vunpack.i.l.bf16 %v10985_v0  ;;  %v251_v17 = vld [vmem:[%s14404_s12 + $0x18] sm:$0xff]  ;;  %v12912_v0 = vld [vmem:[%s14403_s29 + $0x20] sm:$0xff] }
0x266a   :  { %v11379_v6 = vpop.eup %11378 }
0x266b   :  { %v3886_v63 = vpop.xlane.xlu0 %3885  ;;  %v10425_v1 = vpack.c.bf16 %v10987_v49, %v10986_v39  ;;  %v3892_v44 = vmul.f32 %v11379_v6, %v12761_v7  ;;  %v12919_v49 = vld [vmem:[%s14403_s29 + $0x28] sm:$0xff]  ;;  %v12922_v39 = vld [vmem:[%s14403_s29 + $0x30] sm:$0xff] }
0x266c   :  { %v10990_v52 = vpop.permute.xlu1 %10989 }
0x266d   :  { %v10992_v21 = vunpack.i.h.bf16 %v10990_v52  ;;  %v10991_v38 = vunpack.i.l.bf16 %v10990_v52 }
0x266e   :  { %v11381_v11 = vpop.eup %11380 }
0x266f   :  { %v3883_v47 = vpop.xlane.xlu0 %3882  ;;  %v10429_v35 = vpack.c.bf16 %v10992_v21, %v10991_v38  ;;  %v11383_v54 = vpop.eup %11382  ;;  %v3894_v31 = vmul.f32 %v11381_v11, %v12765_v12 }
0x2670   :  { %11386 = vrcp.f32 %v3883_v47  ;;  %v3896_v56 = vmul.f32 %v11383_v54, %v12767_v48  ;;  %v12888_v48 = vld [vmem:[%s14403_s29] sm:$0xff] }
0x2671   :  { %11388 = vrcp.f32 %v3886_v63  ;;  %9769 = vmatprep.mubr.msk.f32.mxu0 %vm2536_vm6, %v12888_v48 }
0x2672   :  { %v11385_v22 = vpop.eup %11384  ;;  %9770 = vmatmul.mubr.msk.f32.vlgmr.msra.gmra.mrb[74].mxu0 %vm2536_vm6, %v12891_v19 }
0x2673   :  { %v10980_v4 = vpop.permute.xlu0 %10979  ;;  %v3898_v61 = vmul.f32 %v11385_v22, %v12773_v33  ;;  %v12894_v33 = vld [vmem:[%s14403_s29 + $0x10] sm:$0xff] }
0x2674   :  { %v10982_v23 = vunpack.i.h.bf16 %v10980_v4  ;;  %v10981_v24 = vunpack.i.l.bf16 %v10980_v4  ;;  %9772 = vmatprep.mubr.msk.f32.mxu0 %vm2536_vm6, %v12894_v33  ;;  %v10437_v4 = vpack.c.bf16 %v251_v17, %v250_v53 }
0x2676   :  { %v10421_v15 = vpack.c.bf16 %v10982_v23, %v10981_v24  ;;  %9773 = vmatmul.mubr.msk.f32.gmra.mrb[76].mxu0 %vm2536_vm6, %v12901_v46  ;;  %v12929_v23 = vld [vmem:[%s14403_s29 + $0x38] sm:$0xff] }
0x2677   :  { %9775 = vmatprep.mubr.msk.f32.mxu0 %vm2536_vm6, %v12912_v0 }
0x2678   :  { %10422 = vmatprep.subr.bf16.mxu1 %v10421_v15 }
0x2679   :  { %10424 = vmatpush3.bf16.msra.mxu1 %v10421_v15 }
0x267a   :  { %10426 = vmatprep.subr.bf16.mxu1 %v10425_v1  ;;  %v11387_v42 = vpop.eup %11386  ;;  %9776 = vmatmul.mubr.msk.f32.gmra.mrb[78].mxu0 %vm2536_vm6, %v12919_v49 }
0x267b   :  { %v11389_v7 = vpop.eup %11388  ;;  %v3900_v9 = vmul.f32 %v11387_v42, %v12781_v60  ;;  %9778 = vmatprep.mubr.msk.f32.mxu0 %vm2536_vm6, %v12922_v39 }
0x267c   :  { %v3902_v12 = vmul.f32 %v11389_v7, %v12777_v40  ;;  %v248_v40 = vld [vmem:[%s14404_s12] sm:$0xff] }
0x267d   :  { %10428 = vmatpush3.bf16.msra.mxu1 %v10425_v1  ;;  %v10433_v47 = vpack.c.bf16 %v249_v20, %v248_v40  ;;  %v4097_v40 = vpop.permute.xlu0 %4096 }
0x267e   :  { %10430 = vmatprep.subr.bf16.mxu1 %v10429_v35  ;;  %9779 = vmatmul.mubr.msk.f32.gmra.mrb[80].mxu0 %vm2536_vm6, %v12929_v23 }
0x2681   :  { %10432 = vmatpush3.bf16.msra.mxu1 %v10429_v35  ;;  %v4069_v20 = vpop.permute.xlu0 %4068 }
0x2682   :  { %10434 = vmatprep.subr.bf16.mxu1 %v10433_v47 }
0x2684   :  { %9666 = vmatmul.mubr.msk.f32.vlgmr.msra.gmra.mrb[50].mxu1 %vm2536_vm6, %v3890_v10 }
0x2685   :  { %9668 = vmatprep.mubr.msk.f32.mxu1 %vm2536_vm6, %v3892_v44  ;;  %10436 = vmatpush3.bf16.msra.mxu1 %v10433_v47  ;;  %v4101_v17 = vpop.permute.xlu0 %4100 }
0x2686   :  { %10438 = vmatprep.subr.bf16.mxu1 %v10437_v4 }
0x2688   :  { %9669 = vmatmul.mubr.msk.f32.gmra.mrb[52].mxu1 %vm2536_vm6, %v3894_v31 }
0x2689   :  { %9671 = vmatprep.mubr.msk.f32.mxu1 %vm2536_vm6, %v3896_v56  ;;  %10440 = vmatpush3.bf16.msra.mxu1 %v10437_v4  ;;  %v4073_v4 = vpop.permute.xlu0 %4072 }
0x268c   :  { %9672 = vmatmul.mubr.msk.f32.gmra.mrb[54].mxu1 %vm2536_vm6, %v3898_v61 }
0x268d   :  { %9674 = vmatprep.mubr.msk.f32.mxu1 %vm2536_vm6, %v3900_v9  ;;  %v4065_v9 = vpop.permute.xlu1 %4064 }
0x268e   :  { %v4152_v26 = vsel %vm1334_vm2, %v12416_v51, %v4065_v9 }
0x2690   :  { %9675 = vmatmul.mubr.msk.f32.gmra.mrb[56].mxu1 %vm2536_vm6, %v3902_v12 }
0x2691   :  { %v4067_v12 = vpop.permute.xlu1 %4066 }
0x26cd   :  { %v9715_v60 = vpop.f32.mrb[66].mxu0 }
0x26ce   :  { %v4401_v41 = vpop.f32.mrb[67].mxu0 }
0x26cf   :  { %v10993_v58 = vpack.i.bf16 %v9715_v60, %v4401_v41  ;;  %v12909_v63 = vpack.c.bf16 %v9715_v60, %v4401_v41  ;;  %v4099_v60 = vpop.permute.xlu1 %4098 }
0x26d1   :  { %10458 = vmatprep.subr.bf16.mxu1 %v12909_v63  ;;  %v12934_v24 = vpop.f32.mrb[68].mxu0 }
0x26d2   :  { %v12936_v52 = vpop.f32.mrb[69].mxu0 }
0x26d3   :  { %v12942_v21 = vpack.c.bf16 %v12934_v24, %v12936_v52  ;;  %v4071_v41 = vpop.permute.xlu1 %4070 }
0x26d5   :  { %v12944_v38 = vpop.f32.mrb[70].mxu0 }
0x26d6   :  { %v12946_v1 = vpop.f32.mrb[71].mxu0 }
0x26d7   :  { %14405 = vst [vmem:[#allocation36_spill] sm:$0xff] %v12946_v1  ;;  %v12952_v13 = vpack.c.bf16 %v12944_v38, %v12946_v1  ;;  %v4103_v53 = vpop.permute.xlu1 %4102 }
0x26d9   :  { %v12954_v6 = vpop.f32.mrb[72].mxu0 }
0x26da   :  { %14406 = vst [vmem:[#allocation37_spill] sm:$0xff] %v12954_v6  ;;  %v12956_v10 = vpop.f32.mrb[73].mxu0 }
0x26db   :  { %14407 = vst [vmem:[#allocation38_spill] sm:$0xff] %v12956_v10  ;;  %v12960_v44 = vpack.c.bf16 %v12954_v6, %v12956_v10  ;;  %v4075_v47 = vpop.permute.xlu1 %4074  ;;  %v4160_v6 = vsel %vm2012_vm3, %v4152_v26, %v4097_v40 }
0x2757   :  { %v9667_v11 = vpop.f32.mrb[50].mxu1 }
0x2758   :  { %4130 = vrot.lane.b32.xlu1 %v9667_v11, %s11693_s28  ;;  %v4017_v54 = vpop.f32.mrb[51].mxu1  ;;  %v4107_v11 = vpop.permute.xlu1 %4106 }
0x2759   :  { %4128 = vrot.lane.b32.xlu0 %v4017_v54, %s11693_s28  ;;  %v9771_v54 = vpop.f32.mrb[74].mxu0 }
0x275b   :  { %v9670_v31 = vpop.f32.mrb[52].mxu1 }
0x275c   :  { %4134 = vrot.lane.b32.xlu1 %v9670_v31, %s11693_s28  ;;  %v4027_v22 = vpop.f32.mrb[53].mxu1  ;;  %v4105_v31 = vpop.permute.xlu0 %4104 }
0x275d   :  { %4132 = vrot.lane.b32.xlu0 %v4027_v22, %s11693_s28  ;;  %v4635_v22 = vpop.f32.mrb[75].mxu0 }
0x275f   :  { %v9673_v56 = vpop.f32.mrb[54].mxu1 }
0x2760   :  { %4138 = vrot.lane.b32.xlu1 %v9673_v56, %s11693_s28  ;;  %v4037_v42 = vpop.f32.mrb[55].mxu1  ;;  %v11003_v56 = vpack.i.bf16 %v9771_v54, %v4635_v22  ;;  %v4077_v36 = vpop.permute.xlu0 %4076 }
0x2761   :  { %4136 = vrot.lane.b32.xlu0 %v4037_v42, %s11693_s28  ;;  %v12971_v42 = vpack.c.bf16 %v9771_v54, %v4635_v22  ;;  %v4153_v54 = vsel %vm1334_vm2, %v12414_v50, %v4067_v12  ;;  %v4155_v50 = vsel %vm1334_vm2, %v12418_v45, %v4071_v41 }
0x2763   :  { %v9676_v61 = vpop.f32.mrb[56].mxu1 }
0x2764   :  { %4142 = vrot.lane.b32.xlu1 %v9676_v61, %s11693_s28  ;;  %v4047_v7 = vpop.f32.mrb[57].mxu1  ;;  %v12973_v61 = vpop.f32.mrb[76].mxu0 }
0x2765   :  { %4140 = vrot.lane.b32.xlu0 %v4047_v7, %s11693_s28  ;;  %v4079_v7 = vpop.permute.xlu1 %4078  ;;  %v4109_v35 = vpop.permute.xlu0 %4108 }
0x2769   :  { %10994 = vrot.lane.b32.xlu0 %v10993_v58, %s11680_s9  ;;  %v12976_v58 = vpop.f32.mrb[77].mxu0 }
0x276a   :  { %v12982_v15 = vpack.c.bf16 %v12973_v61, %v12976_v58  ;;  %v12984_v34 = vpop.f32.mrb[78].mxu0 }
0x276b   :  { %14408 = vst [vmem:[#allocation39_spill] sm:$0xff] %v12984_v34  ;;  %v12986_v32 = vpop.f32.mrb[79].mxu0 }
0x276c   :  { %14409 = vst [vmem:[#allocation40_spill] sm:$0xff] %v12986_v32  ;;  %v12992_v22 = vpack.c.bf16 %v12984_v34, %v12986_v32  ;;  %v12994_v30 = vpop.f32.mrb[80].mxu0  ;;  %v4161_v32 = vsel %vm2012_vm3, %v4153_v54, %v4099_v60  ;;  %v271_v54 = vld [vmem:[%s14411_s20 + $0x90] sm:$0xff] }
0x276d   :  { %11004 = vrot.lane.b32.xlu0 %v11003_v56, %s11682_s19  ;;  %v4111_v56 = vpop.permute.xlu1 %4110  ;;  %14410 = vst [vmem:[#allocation41_spill] sm:$0xff] %v12994_v30  ;;  %v12996_v29 = vpop.f32.mrb[81].mxu0 }
0x276e   :  { %v13000_v28 = vpack.c.bf16 %v12994_v30, %v12996_v29  ;;  %v4154_v30 = vsel %vm1334_vm2, %v12420_v43, %v4069_v20 }
0x276f   :  { %v4162_v26 = vsel %vm2012_vm3, %v4154_v30, %v4101_v17  ;;  %v4157_v30 = vsel %vm1334_vm2, %v12422_v18, %v4075_v47  ;;  %v269_v17 = vld [vmem:[%s14411_s20 + $0x80] sm:$0xff]  ;;  %v270_v47 = vld [vmem:[%s14411_s20 + $0x88] sm:$0xff] }
0x27ca   :  { %v4131_v25 = vpop.permute.xlu1 %4130 }
0x27cb   :  { %v4129_v10 = vpop.permute.xlu0 %4128  ;;  %v4169_v1 = vsel %vm2014_vm4, %v4161_v32, %v4131_v25 }
0x27cc   :  { %v4168_v34 = vsel %vm2014_vm4, %v4160_v6, %v4129_v10  ;;  %v4163_v6 = vsel %vm2012_vm3, %v4155_v50, %v4103_v53 }
0x27cd   :  { %9685 = vmatprep.mubr.msk.f32.mxu1 %vm322_vm0, %v4168_v34  ;;  %v4156_v34 = vsel %vm1334_vm2, %v12424_v27, %v4073_v4  ;;  %v4158_v27 = vsel %vm1334_vm2, %v12428_v16, %v4077_v36  ;;  %v254_v36 = vld [vmem:[%s14411_s20 + $0x8] sm:$0xff]  ;;  %v10530_v4 = vpack.c.bf16 %v270_v47, %v269_v17  ;;  %v14430_v17 = vld [vmem:[#allocation34_spill] sm:$0xff]  ;;  %v14431_v47 = vld [vmem:[#allocation35_spill] sm:$0xff] }
0x27ce   :  { %9686 = vmatmul.mubr.msk.f32.vlgmr.msra.gmra.mrb[58].mxu1 %vm322_vm0, %v4169_v1  ;;  %v4135_v51 = vpop.permute.xlu1 %4134  ;;  %v4164_v43 = vsel %vm2012_vm3, %v4156_v34, %v4105_v31  ;;  %v4165_v1 = vsel %vm2012_vm3, %v4157_v30, %v4107_v11  ;;  %v4166_v60 = vsel %vm2012_vm3, %v4158_v27, %v4109_v35  ;;  %v267_v35 = vld [vmem:[%s14411_s20 + $0x70] sm:$0xff]  ;;  %v14412_v30 = vpack.i.bf16 %v12934_v24, %v12936_v52  ;;  %v14417_v24 = vld [vmem:[#allocation39_spill] sm:$0xff]  ;;  %v14418_v52 = vld [vmem:[#allocation40_spill] sm:$0xff] }
0x27cf   :  { %10460 = vmatpush3.bf16.msra.mxu1 %v12909_v63  ;;  %v4133_v9 = vpop.permute.xlu0 %4132  ;;  %v4171_v32 = vsel %vm2014_vm4, %v4163_v6, %v4135_v51 }
0x27d0   :  { %v4170_v25 = vsel %vm2014_vm4, %v4162_v26, %v4133_v9  ;;  %10462 = vmatprep.subr.bf16.mxu1 %v12942_v21 }
0x27d1   :  { %9688 = vmatprep.mubr.msk.f32.mxu1 %vm322_vm0, %v4170_v25 }
0x27d2   :  { %9689 = vmatmul.mubr.msk.f32.gmra.mrb[60].mxu1 %vm322_vm0, %v4171_v32  ;;  %v4139_v45 = vpop.permute.xlu1 %4138 }
0x27d3   :  { %10464 = vmatpush3.bf16.msra.mxu1 %v12942_v21  ;;  %v4137_v63 = vpop.permute.xlu0 %4136  ;;  %v4173_v12 = vsel %vm2014_vm4, %v4165_v1, %v4139_v45  ;;  %v4159_v21 = vsel %vm1334_vm2, %v12426_v57, %v4079_v7  ;;  %v255_v57 = vld [vmem:[%s14411_s20 + $0x10] sm:$0xff] }
0x27d4   :  { %v4172_v10 = vsel %vm2014_vm4, %v4164_v43, %v4137_v63  ;;  %10466 = vmatprep.subr.bf16.mxu1 %v12952_v13  ;;  %v4167_v41 = vsel %vm2012_vm3, %v4159_v21, %v4111_v56 }
0x27d5   :  { %9691 = vmatprep.mubr.msk.f32.mxu1 %vm322_vm0, %v4172_v10  ;;  %v14413_v10 = vpack.i.bf16 %v12973_v61, %v12976_v58  ;;  %v14420_v61 = vld [vmem:[#allocation38_spill] sm:$0xff] }
0x27d6   :  { %9692 = vmatmul.mubr.msk.f32.gmra.mrb[62].mxu1 %vm322_vm0, %v4173_v12  ;;  %v4143_v18 = vpop.permute.xlu1 %4142  ;;  %v14414_v12 = vld [vmem:[#allocation36_spill] sm:$0xff] }
0x27d7   :  { %10468 = vmatpush3.bf16.msra.mxu1 %v12952_v13  ;;  %v4141_v40 = vpop.permute.xlu0 %4140  ;;  %v4175_v53 = vsel %vm2014_vm4, %v4167_v41, %v4143_v18  ;;  %v268_v13 = vld [vmem:[%s14411_s20 + $0x78] sm:$0xff]  ;;  %v14415_v27 = vpack.i.bf16 %v12944_v38, %v14414_v12 }
0x27d8   :  { %v4174_v20 = vsel %vm2014_vm4, %v4166_v60, %v4141_v40  ;;  %10470 = vmatprep.subr.bf16.mxu1 %v12960_v44  ;;  %v14419_v60 = vpack.i.bf16 %v14417_v24, %v14418_v52 }
0x27d9   :  { %9694 = vmatprep.mubr.msk.f32.mxu1 %vm322_vm0, %v4174_v20  ;;  %v14421_v20 = vld [vmem:[#allocation37_spill] sm:$0xff] }
0x27da   :  { %9695 = vmatmul.mubr.msk.f32.gmra.mrb[64].mxu1 %vm322_vm0, %v4175_v53 }
0x27db   :  { %10472 = vmatpush3.bf16.msra.mxu1 %v12960_v44  ;;  %9741 = vmatprep.mubr.msk.f32.mxu1 %vm2536_vm6, %v12822_v62  ;;  %v256_v62 = vld [vmem:[%s14411_s20 + $0x18] sm:$0xff]  ;;  %v10527_v44 = vpack.c.bf16 %v268_v13, %v267_v35  ;;  %v14427_v35 = vld [vmem:[#allocation31_spill] sm:$0xff]  ;;  %v14428_v13 = vld [vmem:[#allocation32_spill] sm:$0xff] }
0x27dc   :  { %10490 = vmatprep.subr.bf16.mxu1 %v12971_v42 }
0x27de   :  { %9742 = vmatmul.mubr.msk.f32.vlgmr.msra.gmra.mrb[66].mxu1 %vm2536_vm6, %v12825_v2  ;;  %v10509_v2 = vpack.c.bf16 %v256_v62, %v255_v57  ;;  %v14422_v57 = vld [vmem:[#allocation41_spill] sm:$0xff] }
0x27df   :  { %9744 = vmatprep.mubr.msk.f32.mxu1 %vm2536_vm6, %v12828_v8  ;;  %10492 = vmatpush3.bf16.msra.mxu1 %v12971_v42  ;;  %v257_v8 = vld [vmem:[%s14411_s20 + $0x20] sm:$0xff] }
0x27e0   :  { %10494 = vmatprep.subr.bf16.mxu1 %v12982_v15 }
0x27e2   :  { %9745 = vmatmul.mubr.msk.f32.gmra.mrb[68].mxu1 %vm2536_vm6, %v12839_v59  ;;  %v258_v59 = vld [vmem:[%s14411_s20 + $0x28] sm:$0xff] }
0x27e3   :  { %9747 = vmatprep.mubr.msk.f32.mxu1 %vm2536_vm6, %v12842_v3  ;;  %10496 = vmatpush3.bf16.msra.mxu1 %v12982_v15  ;;  %v10512_v3 = vpack.c.bf16 %v258_v59, %v257_v8 }
0x27e4   :  { %10498 = vmatprep.subr.bf16.mxu1 %v12992_v22 }
0x27e6   :  { %9748 = vmatmul.mubr.msk.f32.gmra.mrb[70].mxu1 %vm2536_vm6, %v12851_v5  ;;  %v259_v5 = vld [vmem:[%s14411_s20 + $0x30] sm:$0xff] }
0x27e7   :  { %9750 = vmatprep.mubr.msk.f32.mxu1 %vm2536_vm6, %v12854_v14  ;;  %10500 = vmatpush3.bf16.msra.mxu1 %v12992_v22  ;;  %v260_v14 = vld [vmem:[%s14411_s20 + $0x38] sm:$0xff] }
0x27e8   :  { %10502 = vmatprep.subr.bf16.mxu1 %v13000_v28  ;;  %v272_v22 = vld [vmem:[%s14411_s20 + $0x98] sm:$0xff] }
0x27e9   :  { %v10533_v51 = vpack.c.bf16 %v272_v22, %v271_v54 }
0x27ea   :  { %9751 = vmatmul.mubr.msk.f32.gmra.mrb[72].mxu1 %vm2536_vm6, %v12863_v55  ;;  %v10515_v55 = vpack.c.bf16 %v260_v14, %v259_v5 }
0x27eb   :  { %10504 = vmatpush3.bf16.msra.mxu1 %v13000_v28  ;;  %9797 = vmatprep.mubr.msk.f32.mxu1 %vm2536_vm6, %v12888_v48  ;;  %v253_v28 = vld [vmem:[%s14411_s20] sm:$0xff] }
0x27ec   :  { %v10506_v16 = vpack.c.bf16 %v254_v36, %v253_v28  ;;  %v261_v48 = vld [vmem:[%s14411_s20 + $0x40] sm:$0xff] }
0x27ed   :  { %v8510_v36 = vld [vmem:[%s14416_s27] ss:$0 sm:$0xff] }
0x27ee   :  { %9798 = vmatmul.mubr.msk.f32.vlgmr.msra.gmra.mrb[74].mxu1 %vm2536_vm6, %v12891_v19  ;;  %10507 = vmatpush1.bf16.msra.mxu0 %v10506_v16  ;;  %v262_v19 = vld [vmem:[%s14411_s20 + $0x48] sm:$0xff] }
0x27ef   :  { %9800 = vmatprep.mubr.msk.f32.mxu1 %vm2536_vm6, %v12894_v33  ;;  %10508 = vmatprep.subr.bf16.mxu0 %v14402_v37  ;;  %v10518_v33 = vpack.c.bf16 %v262_v19, %v261_v48  ;;  %v274_v48 = vld [vmem:[%s14423_s4] sm:$0xff]  ;;  %v275_v19 = vld [vmem:[%s14423_s4 + $0x8] sm:$0xff] }
0x27f2   :  { %9801 = vmatmul.mubr.msk.f32.gmra.mrb[76].mxu1 %vm2536_vm6, %v12901_v46  ;;  %10510 = vmatpush1.bf16.msra.mxu0 %v10509_v2  ;;  %v263_v46 = vld [vmem:[%s14411_s20 + $0x50] sm:$0xff] }
0x27f3   :  { %9803 = vmatprep.mubr.msk.f32.mxu1 %vm2536_vm6, %v12912_v0  ;;  %10511 = vmatprep.subr.bf16.mxu0 %v14402_v37  ;;  %v264_v0 = vld [vmem:[%s14411_s20 + $0x58] sm:$0xff] }
0x27f6   :  { %9804 = vmatmul.mubr.msk.f32.gmra.mrb[78].mxu1 %vm2536_vm6, %v12919_v49  ;;  %10513 = vmatpush1.bf16.msra.mxu0 %v10512_v3  ;;  %v10521_v49 = vpack.c.bf16 %v264_v0, %v263_v46  ;;  %v10535_v46 = vpack.c.bf16 %v275_v19, %v274_v48  ;;  %v277_v0 = vld [vmem:[%s14423_s4 + $0x18] sm:$0xff] }
0x27f7   :  { %9806 = vmatprep.mubr.msk.f32.mxu1 %vm2536_vm6, %v12922_v39  ;;  %10514 = vmatprep.subr.bf16.mxu0 %v14402_v37  ;;  %v265_v39 = vld [vmem:[%s14411_s20 + $0x60] sm:$0xff] }
0x27f8   :  { %10536 = vmatprep.subr.bf16.mxu1 %v10535_v46 }
0x27f9   :  { %10538 = vmatpush3.bf16.msra.mxu1 %v10535_v46 }
0x27fa   :  { %9807 = vmatmul.mubr.msk.f32.gmra.mrb[80].mxu1 %vm2536_vm6, %v12929_v23  ;;  %10516 = vmatpush1.bf16.msra.mxu0 %v10515_v55  ;;  %v266_v23 = vld [vmem:[%s14411_s20 + $0x68] sm:$0xff] }
0x27fb   :  { %10517 = vmatprep.subr.bf16.mxu0 %v14402_v37  ;;  %v10524_v15 = vpack.c.bf16 %v266_v23, %v265_v39  ;;  %v14425_v39 = vld [vmem:[#allocation29_spill] sm:$0xff] }
0x27fe   :  { %10519 = vmatpush1.bf16.msra.mxu0 %v10518_v33  ;;  %v276_v33 = vld [vmem:[%s14423_s4 + $0x10] sm:$0xff] }
0x27ff   :  { %10520 = vmatprep.subr.bf16.mxu0 %v14402_v37  ;;  %v10539_v23 = vpack.c.bf16 %v277_v0, %v276_v33 }
0x2801   :  { %10540 = vmatprep.subr.bf16.mxu1 %v10539_v23 }
0x2802   :  { %10522 = vmatpush1.bf16.msra.mxu0 %v10521_v49  ;;  %v14424_v49 = vld [vmem:[#allocation28_spill] sm:$0xff]  ;;  %10542 = vmatpush3.bf16.msra.mxu1 %v10539_v23  ;;  %v11602_v23 = vld [vmem:[%s11704_s5 + $0x20] sm:$0xff] }
0x2803   :  { %10523 = vmatprep.subr.bf16.mxu0 %v14402_v37 }
0x2806   :  { %10525 = vmatpush1.bf16.msra.mxu0 %v10524_v15  ;;  %v14426_v15 = vld [vmem:[#allocation30_spill] sm:$0xff] }
0x2807   :  { %10526 = vmatprep.subr.bf16.mxu0 %v14402_v37 }
0x280a   :  { %10528 = vmatpush1.bf16.msra.mxu0 %v10527_v44  ;;  %v14429_v44 = vld [vmem:[#allocation33_spill] sm:$0xff] }
0x280b   :  { %10529 = vmatprep.subr.bf16.mxu0 %v14402_v37 }
0x280e   :  { %10531 = vmatpush1.bf16.msra.mxu0 %v10530_v4  ;;  %v10995_v4 = vpop.permute.xlu0 %10994 }
0x280f   :  { %10532 = vmatprep.subr.bf16.mxu0 %v14402_v37 }
0x2812   :  { %10534 = vmatpush1.bf16.msra.mxu0 %v10533_v51 }
0x28a1   :  { %v9687_v11 = vpop.f32.mrb[58].mxu1 }
0x28a2   :  { %v4272_v31 = vpop.f32.mrb[59].mxu1  ;;  %v13163_v2 = vadd.f32 %v9687_v11, %v8510_v36  ;;  %v10996_v11 = vunpack.i.l.bf16 %v10995_v4 }
0x28a5   :  { %v9690_v42 = vpop.f32.mrb[60].mxu1 }
0x28a6   :  { %v4282_v7 = vpop.f32.mrb[61].mxu1  ;;  %v13171_v8 = vadd.f32 %v9690_v42, %v8510_v36  ;;  %v10997_v42 = vunpack.i.h.bf16 %v10995_v4 }
0x28a7   :  { %v13173_v59 = vadd.f32 %v8510_v36, %v4282_v7 }
0x28a9   :  { %v9693_v56 = vpop.f32.mrb[62].mxu1 }
0x28aa   :  { %v4292_v50 = vpop.f32.mrb[63].mxu1  ;;  %v13179_v3 = vadd.f32 %v9693_v56, %v8510_v36  ;;  %v11598_v56 = vld [vmem:[%s11704_s5] sm:$0xff] }
0x28ab   :  { %v13181_v5 = vadd.f32 %v8510_v36, %v4292_v50  ;;  %v4875_v51 = vsel %vm322_vm0, %v11598_v56, %v10996_v11 }
0x28ad   :  { %v9696_v26 = vpop.f32.mrb[64].mxu1 }
0x28ae   :  { %v4302_v9 = vpop.f32.mrb[65].mxu1  ;;  %v13187_v14 = vadd.f32 %v9696_v26, %v8510_v36 }
0x28af   :  { %v13189_v55 = vadd.f32 %v8510_v36, %v4302_v9 }
0x28b1   :  { %v9743_v6 = vpop.f32.mrb[66].mxu1 }
0x28b2   :  { %v4506_v25 = vpop.f32.mrb[67].mxu1 }
0x28b3   :  { %v10998_v32 = vpack.i.bf16 %v9743_v6, %v4506_v25 }
0x28b5   :  { %10999 = vrot.lane.b32.xlu1 %v10998_v32, %s11679_s0  ;;  %v9746_v34 = vpop.f32.mrb[68].mxu1  ;;  %v11599_v32 = vld [vmem:[%s11704_s5 + $0x8] sm:$0xff] }
0x28b6   :  { %v4516_v45 = vpop.f32.mrb[69].mxu1 }
0x28b7   :  { %v11013_v37 = vpack.i.bf16 %v9746_v34, %v4516_v45  ;;  %v4876_v34 = vsel %vm322_vm0, %v11599_v32, %v10997_v42  ;;  %v11605_v32 = vld [vmem:[%s11704_s5 + $0x38] sm:$0xff] }
0x28b9   :  { %11009 = vrot.lane.b32.xlu1 %v14412_v30, %s11680_s9  ;;  %11014 = vrot.lane.b32.xlu0 %v11013_v37, %s11679_s0  ;;  %v9749_v43 = vpop.f32.mrb[70].mxu1 }
0x28ba   :  { %v4526_v63 = vpop.f32.mrb[71].mxu1 }
0x28bb   :  { %v11033_v1 = vpack.i.bf16 %v9749_v43, %v4526_v63  ;;  %v11600_v63 = vld [vmem:[%s11704_s5 + $0x10] sm:$0xff] }
0x28bd   :  { %11019 = vrot.lane.b32.xlu1 %v14413_v10, %s11682_s19  ;;  %11024 = vrot.lane.b32.xlu0 %v14415_v27, %s11680_s9  ;;  %v9752_v18 = vpop.f32.mrb[72].mxu1 }
0x28be   :  { %v4536_v21 = vpop.f32.mrb[73].mxu1 }
0x28c1   :  { %11029 = vrot.lane.b32.xlu0 %v14419_v60, %s11682_s19  ;;  %11034 = vrot.lane.b32.xlu1 %v11033_v1, %s11679_s0  ;;  %v13137_v40 = vpop.f32.mrb[74].mxu1 }
0x28c2   :  { %v4740_v41 = vpop.f32.mrb[75].mxu1 }
0x28c3   :  { %8552 = vmatprep.mubr.msk.f32.mxu0 %vm322_vm0, %v4740_v41 }
0x28c5   :  { %4799 = vrot.lane.b32.xlu1 %v14420_v61, %s11680_s9  ;;  %4831 = vrot.lane.b32.xlu0 %v4536_v21, %s11679_s0  ;;  %v13143_v38 = vpop.f32.mrb[76].mxu1 }
0x28c6   :  { %v13145_v58 = vpop.f32.mrb[77].mxu1 }
0x28c9   :  { %4863 = vrot.lane.b32.xlu1 %v12996_v29, %s11682_s19  ;;  %4801 = vrot.lane.b32.xlu0 %v14421_v20, %s11680_s9  ;;  %v13151_v53 = vpop.f32.mrb[78].mxu1  ;;  %v13165_v29 = vadd.f32 %v8510_v36, %v4272_v31  ;;  %v11005_v31 = vpop.permute.xlu0 %11004  ;;  %v11601_v36 = vld [vmem:[%s11704_s5 + $0x18] sm:$0xff] }
0x28ca   :  { %v13153_v28 = vpop.f32.mrb[79].mxu1  ;;  %v11006_v50 = vunpack.i.l.bf16 %v11005_v31  ;;  %v11007_v30 = vunpack.i.h.bf16 %v11005_v31 }
0x28cd   :  { %4833 = vrot.lane.b32.xlu1 %v9752_v18, %s11679_s0  ;;  %4865 = vrot.lane.b32.xlu0 %v14422_v57, %s11682_s19  ;;  %v13159_v16 = vpop.f32.mrb[80].mxu1 }
0x28ce   :  { %v13161_v62 = vpop.f32.mrb[81].mxu1 }
0x28d1   :  { %5045 = vrot.lane.b32.xlu0 %v13163_v2, %s11680_s9  ;;  %5043 = vrot.lane.b32.xlu1 %v13165_v29, %s11680_s9 }
0x28d5   :  { %5049 = vrot.lane.b32.xlu0 %v13171_v8, %s11680_s9  ;;  %5047 = vrot.lane.b32.xlu1 %v13173_v59, %s11680_s9 }
0x28d9   :  { %5053 = vrot.lane.b32.xlu0 %v13179_v3, %s11680_s9  ;;  %5051 = vrot.lane.b32.xlu1 %v13181_v5, %s11680_s9 }
0x28dd   :  { %5057 = vrot.lane.b32.xlu0 %v13187_v14, %s11680_s9  ;;  %5055 = vrot.lane.b32.xlu1 %v13189_v55, %s11680_s9 }
0x28e1   :  { %5284 = vrot.lane.b32.xlu0 %v14424_v49, %s11680_s9  ;;  %5282 = vrot.lane.b32.xlu1 %v14425_v39, %s11680_s9 }
0x28e5   :  { %5288 = vrot.lane.b32.xlu0 %v14426_v15, %s11680_s9  ;;  %5286 = vrot.lane.b32.xlu1 %v14427_v35, %s11680_s9 }
0x28e9   :  { %5292 = vrot.lane.b32.xlu0 %v14428_v13, %s11680_s9  ;;  %5290 = vrot.lane.b32.xlu1 %v14429_v44, %s11680_s9 }
0x28ed   :  { %5296 = vrot.lane.b32.xlu0 %v14430_v17, %s11680_s9  ;;  %5294 = vrot.lane.b32.xlu1 %v14431_v47, %s11680_s9  ;;  %s14439_s9 = sld [smem:[#allocation9_spill]] }
0x2927   :  { %v11000_v7 = vpop.permute.xlu1 %10999 }
0x2928   :  { %v11002_v54 = vunpack.i.h.bf16 %v11000_v7  ;;  %v11001_v22 = vunpack.i.l.bf16 %v11000_v7 }
0x292a   :  { %v4883_v26 = vsel %vm2536_vm6, %v4875_v51, %v11001_v22  ;;  %v4884_v37 = vsel %vm2536_vm6, %v4876_v34, %v11002_v54  ;;  %v11603_v22 = vld [vmem:[%s11704_s5 + $0x28] sm:$0xff] }
0x292b   :  { %v11010_v9 = vpop.permute.xlu1 %11009  ;;  %v11015_v6 = vpop.permute.xlu0 %11014  ;;  %v4892_v25 = vsel %vm4891_vm7, %v4883_v26, %v11006_v50  ;;  %v4893_v18 = vsel %vm4891_vm7, %v4884_v37, %v11007_v30  ;;  %v11604_v26 = vld [vmem:[%s11704_s5 + $0x30] sm:$0xff]  ;;  %s14433_s5 = sld [smem:[#allocation16_spill]] }
0x292c   :  { %v11011_v45 = vunpack.i.l.bf16 %v11010_v9  ;;  %4995 = vmatmul.mubr.f32.vlgmr.msra.gmra.mrb[82].mxu0 %v4892_v25  ;;  %v11016_v43 = vunpack.i.l.bf16 %v11015_v6  ;;  %v11012_v10 = vunpack.i.h.bf16 %v11010_v9  ;;  %v11017_v52 = vunpack.i.h.bf16 %v11015_v6 }
0x292d   :  { %8553 = vmatprep.mubr.msk.f32.mxu0 %vm322_vm0, %v13137_v40 }
0x292e   :  { %v4877_v1 = vsel %vm322_vm0, %v11600_v63, %v11011_v45  ;;  %v4878_v57 = vsel %vm322_vm0, %v11601_v36, %v11012_v10  ;;  %v281_v10 = vld [vmem:[%s14423_s4 + $0x38] sm:$0xff] }
0x292f   :  { %v11020_v12 = vpop.permute.xlu1 %11019  ;;  %v11025_v27 = vpop.permute.xlu0 %11024  ;;  %v4885_v24 = vsel %vm2536_vm6, %v4877_v1, %v11016_v43  ;;  %v279_v43 = vld [vmem:[%s14423_s4 + $0x28] sm:$0xff]  ;;  %v280_v1 = vld [vmem:[%s14423_s4 + $0x30] sm:$0xff] }
0x2930   :  { %v11021_v21 = vunpack.i.l.bf16 %v11020_v12  ;;  %5000 = vmatmul.mubr.f32.gmra.mrb[84].mxu0 %v4893_v18  ;;  %v11022_v40 = vunpack.i.h.bf16 %v11020_v12  ;;  %v11026_v41 = vunpack.i.l.bf16 %v11025_v27  ;;  %v11027_v19 = vunpack.i.h.bf16 %v11025_v27  ;;  %v8551_v27 = vld [vmem:[%s14432_s1] ss:$0 sm:$0xff] }
0x2931   :  { %8554 = vmatprep.mubr.msk.f32.mxu0 %vm322_vm0, %v13145_v58  ;;  %v4886_v58 = vsel %vm2536_vm6, %v4878_v57, %v11017_v52  ;;  %v10547_v12 = vpack.c.bf16 %v281_v10, %v280_v1  ;;  %v286_v1 = vld [vmem:[%s14433_s5 + $0x18] sm:$0xff] }
0x2932   :  { %v4894_v60 = vsel %vm4891_vm7, %v4885_v24, %v11021_v21  ;;  %v4895_v0 = vsel %vm4891_vm7, %v4886_v58, %v11022_v40  ;;  %v4879_v4 = vsel %vm322_vm0, %v11602_v23, %v11026_v41  ;;  %v4880_v56 = vsel %vm322_vm0, %v11603_v22, %v11027_v19 }
0x2933   :  { %v11030_v61 = vpop.permute.xlu0 %11029  ;;  %v11035_v20 = vpop.permute.xlu1 %11034 }
0x2934   :  { %v11036_v48 = vunpack.i.l.bf16 %v11035_v20  ;;  %5005 = vmatmul.mubr.f32.gmra.mrb[86].mxu0 %v4894_v60  ;;  %v11031_v33 = vunpack.i.l.bf16 %v11030_v61  ;;  %v11037_v11 = vunpack.i.h.bf16 %v11035_v20 }
0x2935   :  { %8555 = vmatprep.mubr.msk.f32.mxu0 %vm322_vm0, %v13143_v38  ;;  %v11032_v38 = vunpack.i.h.bf16 %v11030_v61 }
0x2936   :  { %v4887_v42 = vsel %vm2536_vm6, %v4879_v4, %v11036_v48  ;;  %v4888_v51 = vsel %vm2536_vm6, %v4880_v56, %v11037_v11 }
0x2937   :  { %v4800_v46 = vpop.permute.xlu1 %4799  ;;  %v4832_v31 = vpop.permute.xlu0 %4831  ;;  %v4896_v54 = vsel %vm4891_vm7, %v4887_v42, %v11031_v33 }
0x2938   :  { %5010 = vmatmul.mubr.f32.gmra.mrb[88].mxu0 %v4895_v0  ;;  %v4881_v9 = vsel %vm322_vm0, %v11604_v26, %v4800_v46 }
0x2939   :  { %8556 = vmatprep.mubr.msk.f32.mxu0 %vm322_vm0, %v13153_v28  ;;  %v4897_v28 = vsel %vm4891_vm7, %v4888_v51, %v11032_v38  ;;  %v4889_v25 = vsel %vm2536_vm6, %v4881_v9, %v4832_v31 }
0x293b   :  { %v4864_v7 = vpop.permute.xlu1 %4863  ;;  %v4802_v50 = vpop.permute.xlu0 %4801 }
0x293c   :  { %5015 = vmatmul.mubr.f32.gmra.mrb[90].mxu0 %v4896_v54  ;;  %v4898_v34 = vsel %vm4891_vm7, %v4889_v25, %v4864_v7 }
0x293d   :  { %8557 = vmatprep.mubr.msk.f32.mxu0 %vm322_vm0, %v13151_v53  ;;  %v4882_v53 = vsel %vm322_vm0, %v11605_v32, %v4802_v50 }
0x293f   :  { %v4834_v6 = vpop.permute.xlu1 %4833  ;;  %v4866_v37 = vpop.permute.xlu0 %4865 }
0x2940   :  { %5020 = vmatmul.mubr.f32.gmra.mrb[92].mxu0 %v4897_v28  ;;  %v4890_v45 = vsel %vm2536_vm6, %v4882_v53, %v4834_v6 }
0x2941   :  { %8558 = vmatprep.mubr.msk.f32.mxu0 %vm322_vm0, %v13161_v62  ;;  %v4899_v30 = vsel %vm4891_vm7, %v4890_v45, %v4866_v37  ;;  %v278_v62 = vld [vmem:[%s14423_s4 + $0x20] sm:$0xff] }
0x2942   :  { %v10543_v63 = vpack.c.bf16 %v279_v43, %v278_v62  ;;  %v284_v62 = vld [vmem:[%s14433_s5 + $0x8] sm:$0xff] }
0x2943   :  { %v5044_v52 = vpop.permute.xlu1 %5043  ;;  %v5046_v61 = vpop.permute.xlu0 %5045 }
0x2944   :  { %5025 = vmatmul.mubr.f32.gmra.mrb[94].mxu0 %v4898_v34  ;;  %10544 = vmatprep.subr.bf16.mxu1 %v10543_v63 }
0x2945   :  { %8559 = vmatprep.mubr.msk.f32.mxu0 %vm322_vm0, %v13159_v16  ;;  %10546 = vmatpush3.bf16.msra.mxu1 %v10543_v63  ;;  %v285_v63 = vld [vmem:[%s14433_s5 + $0x10] sm:$0xff] }
0x2946   :  { %10548 = vmatprep.subr.bf16.mxu1 %v10547_v12  ;;  %v10555_v10 = vpack.c.bf16 %v286_v1, %v285_v63 }
0x2947   :  { %v5048_v58 = vpop.permute.xlu1 %5047  ;;  %v5050_v23 = vpop.permute.xlu0 %5049 }
0x2948   :  { %5030 = vmatmul.mubr.f32.gmra.mrb[96].mxu0 %v4899_v30  ;;  %v283_v30 = vld [vmem:[%s14433_s5] sm:$0xff] }
0x2949   :  { %10550 = vmatpush3.bf16.msra.mxu1 %v10547_v12  ;;  %v10551_v43 = vpack.c.bf16 %v284_v62, %v283_v30  ;;  %v287_v12 = vld [vmem:[%s14433_s5 + $0x20] sm:$0xff] }
0x294b   :  { %v5052_v38 = vpop.permute.xlu1 %5051  ;;  %v5054_v51 = vpop.permute.xlu0 %5053  ;;  %10552 = vmatprep.subr.bf16.mxu1 %v10551_v43 }
0x294f   :  { %v5056_v6 = vpop.permute.xlu1 %5055  ;;  %v5058_v45 = vpop.permute.xlu0 %5057 }
0x29ff   :  { %v4996_v18 = vpop.f32.mrb[82].mxu0 }
0x2a00   :  { %v13266_v21 = vadd.f32 %v8551_v27, %v4996_v18  ;;  %v4998_v24 = vpop.f32.mrb[83].mxu0 }
0x2a01   :  { %v289_v24 = vld [vmem:[%s14433_s5 + $0x30] sm:$0xff] }
0x2a02   :  { %v5067_v16 = vsel %vm322_vm0, %v13266_v21, %v5044_v52  ;;  %v290_v52 = vld [vmem:[%s14433_s5 + $0x38] sm:$0xff] }
0x2a03   :  { %v5001_v60 = vpop.f32.mrb[84].mxu0  ;;  %9825 = vmatprep.mubr.msk.f32.mxu1 %vm2536_vm6, %v5067_v16  ;;  %v10563_v16 = vpack.c.bf16 %v290_v52, %v289_v24 }
0x2a04   :  { %v13271_v40 = vadd.f32 %v8551_v27, %v5001_v60  ;;  %v5003_v41 = vpop.f32.mrb[85].mxu0  ;;  %v8560_v60 = vld [vmem:[%s14434_s2] ss:$0 sm:$0xff] }
0x2a06   :  { %v5068_v20 = vsel %vm322_vm0, %v13271_v40, %v5046_v61 }
0x2a07   :  { %v5006_v36 = vpop.f32.mrb[86].mxu0  ;;  %9826 = vmatmul.mubr.msk.f32.vlgmr.msra.gmra.mrb[82].mxu1 %vm2536_vm6, %v5068_v20 }
0x2a08   :  { %v13276_v57 = vadd.f32 %v8551_v27, %v5006_v36  ;;  %v5008_v48 = vpop.f32.mrb[87].mxu0  ;;  %10554 = vmatpush3.bf16.msra.mxu1 %v10551_v43 }
0x2a09   :  { %10556 = vmatprep.subr.bf16.mxu1 %v10555_v10 }
0x2a0a   :  { %v5069_v19 = vsel %vm322_vm0, %v13276_v57, %v5048_v58 }
0x2a0b   :  { %v5011_v33 = vpop.f32.mrb[88].mxu0  ;;  %9828 = vmatprep.mubr.msk.f32.mxu1 %vm2536_vm6, %v5069_v19 }
0x2a0c   :  { %v13281_v46 = vadd.f32 %v8551_v27, %v5011_v33  ;;  %v5013_v0 = vpop.f32.mrb[89].mxu0  ;;  %10558 = vmatpush3.bf16.msra.mxu1 %v10555_v10 }
0x2a0e   :  { %v5070_v4 = vsel %vm322_vm0, %v13281_v46, %v5050_v23 }
0x2a0f   :  { %v5016_v11 = vpop.f32.mrb[90].mxu0  ;;  %9829 = vmatmul.mubr.msk.f32.gmra.mrb[84].mxu1 %vm2536_vm6, %v5070_v4 }
0x2a10   :  { %v13286_v31 = vadd.f32 %v8551_v27, %v5016_v11  ;;  %v5018_v42 = vpop.f32.mrb[91].mxu0 }
0x2a12   :  { %v5071_v7 = vsel %vm322_vm0, %v13286_v31, %v5052_v38 }
0x2a13   :  { %v5021_v54 = vpop.f32.mrb[92].mxu0  ;;  %9831 = vmatprep.mubr.msk.f32.mxu1 %vm2536_vm6, %v5071_v7 }
0x2a14   :  { %v13291_v22 = vadd.f32 %v8551_v27, %v5021_v54  ;;  %v5023_v56 = vpop.f32.mrb[93].mxu0 }
0x2a16   :  { %v5072_v50 = vsel %vm322_vm0, %v13291_v22, %v5054_v51 }
0x2a17   :  { %v5026_v26 = vpop.f32.mrb[94].mxu0  ;;  %9832 = vmatmul.mubr.msk.f32.gmra.mrb[86].mxu1 %vm2536_vm6, %v5072_v50 }
0x2a18   :  { %v13296_v9 = vadd.f32 %v8551_v27, %v5026_v26  ;;  %v5028_v28 = vpop.f32.mrb[95].mxu0 }
0x2a1a   :  { %v5073_v25 = vsel %vm322_vm0, %v13296_v9, %v5056_v6 }
0x2a1b   :  { %v5031_v32 = vpop.f32.mrb[96].mxu0  ;;  %9834 = vmatprep.mubr.msk.f32.mxu1 %vm2536_vm6, %v5073_v25 }
0x2a1c   :  { %v13301_v53 = vadd.f32 %v8551_v27, %v5031_v32  ;;  %v5033_v34 = vpop.f32.mrb[97].mxu0  ;;  %v288_v27 = vld [vmem:[%s14433_s5 + $0x28] sm:$0xff] }
0x2a1d   :  { %v10559_v18 = vpack.c.bf16 %v288_v27, %v287_v12 }
0x2a1e   :  { %v5074_v37 = vsel %vm322_vm0, %v13301_v53, %v5058_v45 }
0x2a1f   :  { %9835 = vmatmul.mubr.msk.f32.gmra.mrb[88].mxu1 %vm2536_vm6, %v5074_v37  ;;  %10560 = vmatprep.subr.bf16.mxu1 %v10559_v18 }
0x2a20   :  { %10562 = vmatpush3.bf16.msra.mxu1 %v10559_v18 }
0x2a21   :  { %10564 = vmatprep.subr.bf16.mxu1 %v10563_v16 }
0x2a24   :  { %10566 = vmatpush3.bf16.msra.mxu1 %v10563_v16 }
0x2ada   :  { %v9827_v41 = vpop.f32.mrb[82].mxu1 }
0x2adb   :  { %v5177_v61 = vadd.f32 %v9827_v41, %v8560_v60  ;;  %v5171_v20 = vpop.f32.mrb[83].mxu1  ;;  %v5283_v41 = vpop.permute.xlu1 %5282 }
0x2adc   :  { %v5172_v36 = vadd.f32 %v8560_v60, %v5171_v20 }
0x2add   :  { %v5211_v48 = vmul.f32 0.5, %v5177_v61 }
0x2ade   :  { %v5210_v58 = vmul.f32 0.5, %v5172_v36 }
0x2adf   :  { %11390 = vtanh.f32 %v5211_v48 }
0x2ae0   :  { %11392 = vtanh.f32 %v5210_v58 }
0x2ae2   :  { %v9830_v19 = vpop.f32.mrb[84].mxu1 }
0x2ae3   :  { %v5187_v33 = vadd.f32 %v9830_v19, %v8560_v60  ;;  %v5181_v0 = vpop.f32.mrb[85].mxu1 }
0x2ae4   :  { %v5182_v23 = vadd.f32 %v8560_v60, %v5181_v0 }
0x2ae5   :  { %v5213_v4 = vmul.f32 0.5, %v5187_v33 }
0x2ae6   :  { %v5212_v11 = vmul.f32 0.5, %v5182_v23 }
0x2ae7   :  { %11394 = vtanh.f32 %v5213_v4 }
0x2ae8   :  { %11396 = vtanh.f32 %v5212_v11 }
0x2ae9   :  { %v11391_v42 = vpop.eup %11390 }
0x2aea   :  { %v11393_v38 = vpop.eup %11392  ;;  %v5227_v7 = vadd.f32 1.0, %v11391_v42  ;;  %v9833_v54 = vpop.f32.mrb[86].mxu1 }
0x2aeb   :  { %v5226_v56 = vadd.f32 1.0, %v11393_v38  ;;  %v5197_v51 = vadd.f32 %v9833_v54, %v8560_v60  ;;  %v5191_v50 = vpop.f32.mrb[87].mxu1 }
0x2aec   :  { %v5235_v26 = vmul.f32 0.5, %v5227_v7  ;;  %v5192_v28 = vadd.f32 %v8560_v60, %v5191_v50 }
0x2aed   :  { %v5234_v6 = vmul.f32 0.5, %v5226_v56  ;;  %v5215_v25 = vmul.f32 0.5, %v5197_v51  ;;  %v5287_v56 = vpop.permute.xlu1 %5286 }
0x2aee   :  { %v5251_v32 = vsub.f32 1.0, %v5235_v26  ;;  %v5214_v34 = vmul.f32 0.5, %v5192_v28  ;;  %v5243_v37 = vmul.f32 %v5235_v26, %v13271_v40 }
0x2aef   :  { %v5250_v45 = vsub.f32 1.0, %v5234_v6  ;;  %11398 = vtanh.f32 %v5215_v25  ;;  %v5242_v43 = vmul.f32 %v5234_v6, %v13266_v21 }
0x2af0   :  { %v5259_v30 = vmul.f32 %v5251_v32, %v13163_v2  ;;  %11400 = vtanh.f32 %v5214_v34  ;;  %v5285_v2 = vpop.permute.xlu0 %5284 }
0x2af1   :  { %v11395_v62 = vpop.eup %11394  ;;  %v5258_v63 = vmul.f32 %v5250_v45, %v13165_v29 }
0x2af2   :  { %v11397_v1 = vpop.eup %11396  ;;  %v13319_v10 = vadd.f32 %v5259_v30, %v5243_v37  ;;  %v5229_v12 = vadd.f32 1.0, %v11395_v62  ;;  %v9836_v27 = vpop.f32.mrb[88].mxu1 }
0x2af3   :  { %v5228_v18 = vadd.f32 1.0, %v11397_v1  ;;  %v5207_v24 = vadd.f32 %v9836_v27, %v8560_v60  ;;  %v5201_v52 = vpop.f32.mrb[89].mxu1  ;;  %v13321_v16 = vadd.f32 %v5258_v63, %v5242_v43  ;;  %v5291_v63 = vpop.permute.xlu1 %5290 }
0x2af4   :  { %v5237_v40 = vmul.f32 0.5, %v5229_v12  ;;  %v5202_v61 = vadd.f32 %v8560_v60, %v5201_v52  ;;  %v5307_v58 = vsel %vm322_vm0, %v13319_v10, %v5285_v2  ;;  %v5289_v50 = vpop.permute.xlu0 %5288 }
0x2af5   :  { %v5236_v20 = vmul.f32 0.5, %v5228_v18  ;;  %v5217_v36 = vmul.f32 0.5, %v5207_v24  ;;  %v5306_v21 = vsel %vm322_vm0, %v13321_v16, %v5283_v41 }
0x2af6   :  { %v5253_v29 = vsub.f32 1.0, %v5237_v40  ;;  %v5216_v48 = vmul.f32 0.5, %v5202_v61  ;;  %9853 = vmatprep.mubr.msk.f32.mxu1 %vm2536_vm6, %v5306_v21  ;;  %v5245_v33 = vmul.f32 %v5237_v40, %v13281_v46  ;;  %v294_v21 = vld [vmem:[%s14435_s7 + $0x10] sm:$0xff] }
0x2af7   :  { %v5252_v19 = vsub.f32 1.0, %v5236_v20  ;;  %11402 = vtanh.f32 %v5217_v36  ;;  %9854 = vmatmul.mubr.msk.f32.vlgmr.msra.gmra.mrb[90].mxu1 %vm2536_vm6, %v5307_v58  ;;  %v5244_v23 = vmul.f32 %v5236_v20, %v13276_v57  ;;  %v5295_v2 = vpop.permute.xlu1 %5294  ;;  %v8569_v58 = vld [vmem:[%s14436_s10] ss:$0 sm:$0xff] }
0x2af8   :  { %v5261_v60 = vmul.f32 %v5253_v29, %v13171_v8  ;;  %11404 = vtanh.f32 %v5216_v48  ;;  %v5293_v12 = vpop.permute.xlu0 %5292  ;;  %v295_v29 = vld [vmem:[%s14435_s7 + $0x18] sm:$0xff] }
0x2af9   :  { %v11399_v0 = vpop.eup %11398  ;;  %v5260_v4 = vmul.f32 %v5252_v19, %v13173_v59  ;;  %v10571_v48 = vpack.c.bf16 %v295_v29, %v294_v21 }
0x2afa   :  { %v11401_v11 = vpop.eup %11400  ;;  %v5231_v42 = vadd.f32 1.0, %v11399_v0  ;;  %v13333_v38 = vadd.f32 %v5261_v60, %v5245_v33 }
0x2afb   :  { %v5230_v7 = vadd.f32 1.0, %v11401_v11  ;;  %v13335_v54 = vadd.f32 %v5260_v4, %v5244_v23 }
0x2afc   :  { %v5239_v51 = vmul.f32 0.5, %v5231_v42  ;;  %v5309_v59 = vsel %vm322_vm0, %v13333_v38, %v5289_v50  ;;  %v5297_v20 = vpop.permute.xlu0 %5296 }
0x2afd   :  { %v5238_v26 = vmul.f32 0.5, %v5230_v7  ;;  %v5308_v8 = vsel %vm322_vm0, %v13335_v54, %v5287_v56 }
0x2afe   :  { %v5255_v46 = vsub.f32 1.0, %v5239_v51  ;;  %9856 = vmatprep.mubr.msk.f32.mxu1 %vm2536_vm6, %v5308_v8  ;;  %v5247_v28 = vmul.f32 %v5239_v51, %v13291_v22 }
0x2aff   :  { %v5254_v57 = vsub.f32 1.0, %v5238_v26  ;;  %9857 = vmatmul.mubr.msk.f32.gmra.mrb[92].mxu1 %vm2536_vm6, %v5309_v59  ;;  %v5246_v32 = vmul.f32 %v5238_v26, %v13286_v31 }
0x2b00   :  { %v5263_v6 = vmul.f32 %v5255_v46, %v13179_v3 }
0x2b01   :  { %v11403_v25 = vpop.eup %11402  ;;  %v5262_v34 = vmul.f32 %v5254_v57, %v13181_v5 }
0x2b02   :  { %v11405_v45 = vpop.eup %11404  ;;  %v5233_v37 = vadd.f32 1.0, %v11403_v25  ;;  %v13347_v30 = vadd.f32 %v5263_v6, %v5247_v28 }
0x2b03   :  { %v5232_v62 = vadd.f32 1.0, %v11405_v45  ;;  %v13349_v43 = vadd.f32 %v5262_v34, %v5246_v32 }
0x2b04   :  { %v5241_v1 = vmul.f32 0.5, %v5233_v37  ;;  %v5311_v5 = vsel %vm322_vm0, %v13347_v30, %v5293_v12 }
0x2b05   :  { %v5240_v27 = vmul.f32 0.5, %v5232_v62  ;;  %v5310_v22 = vsel %vm322_vm0, %v13349_v43, %v5291_v63 }
0x2b06   :  { %v5257_v3 = vsub.f32 1.0, %v5241_v1  ;;  %9859 = vmatprep.mubr.msk.f32.mxu1 %vm2536_vm6, %v5310_v22  ;;  %v5249_v18 = vmul.f32 %v5241_v1, %v13301_v53  ;;  %v293_v53 = vld [vmem:[%s14435_s7 + $0x8] sm:$0xff] }
0x2b07   :  { %v5256_v31 = vsub.f32 1.0, %v5240_v27  ;;  %9860 = vmatmul.mubr.msk.f32.gmra.mrb[94].mxu1 %vm2536_vm6, %v5311_v5  ;;  %v5248_v52 = vmul.f32 %v5240_v27, %v13296_v9  ;;  %v292_v9 = vld [vmem:[%s14435_s7] sm:$0xff] }
0x2b08   :  { %v5265_v24 = vmul.f32 %v5257_v3, %v13187_v14 }
0x2b09   :  { %v5264_v41 = vmul.f32 %v5256_v31, %v13189_v55  ;;  %v10567_v55 = vpack.c.bf16 %v293_v53, %v292_v9 }
0x2b0a   :  { %v13361_v40 = vadd.f32 %v5265_v24, %v5249_v18 }
0x2b0b   :  { %v13363_v61 = vadd.f32 %v5264_v41, %v5248_v52  ;;  %10568 = vmatprep.subr.bf16.mxu1 %v10567_v55 }
0x2b0c   :  { %v5313_v14 = vsel %vm322_vm0, %v13361_v40, %v5297_v20  ;;  %10570 = vmatpush3.bf16.msra.mxu1 %v10567_v55 }
0x2b0d   :  { %v5312_v36 = vsel %vm322_vm0, %v13363_v61, %v5295_v2  ;;  %10572 = vmatprep.subr.bf16.mxu1 %v10571_v48 }
0x2b0e   :  { %9862 = vmatprep.mubr.msk.f32.mxu1 %vm2536_vm6, %v5312_v36 }
0x2b0f   :  { %9863 = vmatmul.mubr.msk.f32.gmra.mrb[96].mxu1 %vm2536_vm6, %v5313_v14 }
0x2b10   :  { %10574 = vmatpush3.bf16.msra.mxu1 %v10571_v48 }
0x2bca   :  { %v9855_v19 = vpop.f32.mrb[90].mxu1 }
0x2bcb   :  { %v5416_v33 = vadd.f32 %v9855_v19, %v8569_v58  ;;  %v5410_v60 = vpop.f32.mrb[91].mxu1 }
0x2bcc   :  { %v5411_v0 = vadd.f32 %v8569_v58, %v5410_v60 }
0x2bcd   :  { %v5450_v23 = vmul.f32 0.5, %v5416_v33 }
0x2bce   :  { %v5449_v4 = vmul.f32 0.5, %v5411_v0 }
0x2bcf   :  { %11406 = vtanh.f32 %v5450_v23 }
0x2bd0   :  { %11408 = vtanh.f32 %v5449_v4 }
0x2bd2   :  { %v9858_v11 = vpop.f32.mrb[92].mxu1 }
0x2bd3   :  { %v5426_v42 = vadd.f32 %v9858_v11, %v8569_v58  ;;  %v5420_v7 = vpop.f32.mrb[93].mxu1 }
0x2bd4   :  { %v5421_v56 = vadd.f32 %v8569_v58, %v5420_v7 }
0x2bd5   :  { %v5452_v51 = vmul.f32 0.5, %v5426_v42 }
0x2bd6   :  { %v5451_v50 = vmul.f32 0.5, %v5421_v56 }
0x2bd7   :  { %11410 = vtanh.f32 %v5452_v51 }
0x2bd8   :  { %11412 = vtanh.f32 %v5451_v50 }
0x2bd9   :  { %v11407_v26 = vpop.eup %11406 }
0x2bda   :  { %v11409_v8 = vpop.eup %11408  ;;  %v5466_v46 = vadd.f32 1.0, %v11407_v26  ;;  %v9861_v59 = vpop.f32.mrb[94].mxu1 }
0x2bdb   :  { %v5465_v57 = vadd.f32 1.0, %v11409_v8  ;;  %v5436_v28 = vadd.f32 %v9861_v59, %v8569_v58  ;;  %v5430_v6 = vpop.f32.mrb[95].mxu1 }
0x2bdc   :  { %v5474_v25 = vmul.f32 0.5, %v5466_v46  ;;  %v5431_v32 = vadd.f32 %v8569_v58, %v5430_v6 }
0x2bdd   :  { %v5473_v34 = vmul.f32 0.5, %v5465_v57  ;;  %v5454_v45 = vmul.f32 0.5, %v5436_v28 }
0x2bde   :  { %v5490_v37 = vsub.f32 1.0, %v5474_v25  ;;  %v5453_v62 = vmul.f32 0.5, %v5431_v32  ;;  %v5482_v1 = vmul.f32 %v5474_v25, %v13319_v10  ;;  %v8578_v32 = vld [vmem:[%s14437_s11] ss:$0 sm:$0xff] }
0x2bdf   :  { %v5489_v63 = vsub.f32 1.0, %v5473_v34  ;;  %11414 = vtanh.f32 %v5454_v45  ;;  %v5481_v22 = vmul.f32 %v5473_v34, %v13321_v16 }
0x2be0   :  { %v5498_v12 = vmul.f32 %v14424_v49, %v5490_v37  ;;  %11416 = vtanh.f32 %v5453_v62 }
0x2be1   :  { %v11411_v27 = vpop.eup %11410  ;;  %v5497_v3 = vmul.f32 %v5489_v63, %v14425_v39 }
0x2be2   :  { %v11413_v5 = vpop.eup %11412  ;;  %v13380_v31 = vadd.f32 %v5498_v12, %v5482_v1  ;;  %v5468_v18 = vadd.f32 1.0, %v11411_v27  ;;  %v9864_v24 = vpop.f32.mrb[96].mxu1 }
0x2be3   :  { %v5467_v52 = vadd.f32 1.0, %v11413_v5  ;;  %v5446_v41 = vadd.f32 %v9864_v24, %v8569_v58  ;;  %v5440_v2 = vpop.f32.mrb[97].mxu1  ;;  %v13382_v20 = vadd.f32 %v5497_v3, %v5481_v22 }
0x2be4   :  { %v5476_v36 = vmul.f32 0.5, %v5468_v18  ;;  %v5441_v10 = vadd.f32 %v8569_v58, %v5440_v2 }
0x2be5   :  { %v5475_v14 = vmul.f32 0.5, %v5467_v52  ;;  %v5456_v49 = vmul.f32 0.5, %v5446_v41  ;;  %9873 = vmatprep.mubr.msk.f32.mxu1 %vm322_vm0, %v13382_v20 }
0x2be6   :  { %v5492_v16 = vsub.f32 1.0, %v5476_v36  ;;  %v5455_v9 = vmul.f32 0.5, %v5441_v10  ;;  %9874 = vmatmul.mubr.msk.f32.vlgmr.msra.gmra.mrb[98].mxu1 %vm322_vm0, %v13380_v31  ;;  %v5484_v53 = vmul.f32 %v5476_v36, %v13333_v38 }
0x2be7   :  { %v5491_v39 = vsub.f32 1.0, %v5475_v14  ;;  %11418 = vtanh.f32 %v5456_v49  ;;  %v5483_v29 = vmul.f32 %v5475_v14, %v13335_v54 }
0x2be8   :  { %v5500_v55 = vmul.f32 %v14426_v15, %v5492_v16  ;;  %11420 = vtanh.f32 %v5455_v9 }
0x2be9   :  { %v11415_v21 = vpop.eup %11414  ;;  %v5499_v48 = vmul.f32 %v5491_v39, %v14427_v35 }
0x2bea   :  { %v11417_v58 = vpop.eup %11416  ;;  %v5470_v19 = vadd.f32 1.0, %v11415_v21  ;;  %v13392_v33 = vadd.f32 %v5500_v55, %v5484_v53 }
0x2beb   :  { %v5469_v60 = vadd.f32 1.0, %v11417_v58  ;;  %v13394_v0 = vadd.f32 %v5499_v48, %v5483_v29 }
0x2bec   :  { %v5478_v23 = vmul.f32 0.5, %v5470_v19 }
0x2bed   :  { %v5477_v4 = vmul.f32 0.5, %v5469_v60  ;;  %9876 = vmatprep.mubr.msk.f32.mxu1 %vm322_vm0, %v13394_v0 }
0x2bee   :  { %v5494_v38 = vsub.f32 1.0, %v5478_v23  ;;  %9877 = vmatmul.mubr.msk.f32.gmra.mrb[100].mxu1 %vm322_vm0, %v13392_v33  ;;  %v5486_v54 = vmul.f32 %v5478_v23, %v13347_v30 }
0x2bef   :  { %v5493_v15 = vsub.f32 1.0, %v5477_v4  ;;  %v5485_v42 = vmul.f32 %v5477_v4, %v13349_v43 }
0x2bf0   :  { %v5502_v35 = vmul.f32 %v14428_v13, %v5494_v38 }
0x2bf1   :  { %v11419_v11 = vpop.eup %11418  ;;  %v5501_v7 = vmul.f32 %v5493_v15, %v14429_v44 }
0x2bf2   :  { %v11421_v56 = vpop.eup %11420  ;;  %v5472_v51 = vadd.f32 1.0, %v11419_v11  ;;  %v13404_v50 = vadd.f32 %v5502_v35, %v5486_v54 }
0x2bf3   :  { %v5471_v26 = vadd.f32 1.0, %v11421_v56  ;;  %v13406_v8 = vadd.f32 %v5501_v7, %v5485_v42 }
0x2bf4   :  { %v5480_v46 = vmul.f32 0.5, %v5472_v51  ;;  %v13502_v51 = vld [vmem:[%s14439_s9 + $0x8] sm:$0xff] }
0x2bf5   :  { %v5479_v59 = vmul.f32 0.5, %v5471_v26  ;;  %9879 = vmatprep.mubr.msk.f32.mxu1 %vm322_vm0, %v13406_v8 }
0x2bf6   :  { %v5496_v30 = vsub.f32 1.0, %v5480_v46  ;;  %9880 = vmatmul.mubr.msk.f32.gmra.mrb[102].mxu1 %vm322_vm0, %v13404_v50  ;;  %v5488_v44 = vmul.f32 %v5480_v46, %v13361_v40 }
0x2bf7   :  { %v5495_v13 = vsub.f32 1.0, %v5479_v59  ;;  %v5487_v57 = vmul.f32 %v5479_v59, %v13363_v61  ;;  %v13505_v59 = vld [vmem:[%s14439_s9] sm:$0xff] }
0x2bf8   :  { %v5504_v43 = vmul.f32 %v14430_v17, %v5496_v30 }
0x2bf9   :  { %v5503_v28 = vmul.f32 %v5495_v13, %v14431_v47 }
0x2bfa   :  { %v13416_v6 = vadd.f32 %v5504_v43, %v5488_v44 }
0x2bfb   :  { %v13418_v25 = vadd.f32 %v5503_v28, %v5487_v57  ;;  %v13510_v57 = vld [vmem:[%s14439_s9 + $0x18] sm:$0xff] }
0x2bfd   :  { %9882 = vmatprep.mubr.msk.f32.mxu1 %vm322_vm0, %v13418_v25 }
0x2bfe   :  { %9883 = vmatmul.mubr.msk.f32.gmra.mrb[104].mxu1 %vm322_vm0, %v13416_v6 }
0x2cb9   :  { %v9875_v34 = vpop.f32.mrb[98].mxu1 }
0x2cba   :  { %v13425_v45 = vadd.f32 %v9875_v34, %v8578_v32  ;;  %v5609_v40 = vpop.f32.mrb[99].mxu1  ;;  %v13513_v34 = vld [vmem:[%s14439_s9 + $0x10] sm:$0xff] }
0x2cbb   :  { %v13427_v17 = vadd.f32 %v8578_v32, %v5609_v40 }
0x2cbd   :  { %9901 = vmatprep.mubr.msk.f32.mxu0 %vm1334_vm2, %v13427_v17  ;;  %v13433_v47 = vpack.i.bf16 %v13425_v45, %v13427_v17 }
0x2cbf   :  { %11039 = vrot.lane.b32.xlu1 %v13433_v47, %s11682_s19 }
0x2cc1   :  { %v9878_v61 = vpop.f32.mrb[100].mxu1 }
0x2cc2   :  { %v13437_v37 = vadd.f32 %v9878_v61, %v8578_v32  ;;  %v5619_v62 = vpop.f32.mrb[101].mxu1 }
0x2cc3   :  { %v13439_v63 = vadd.f32 %v8578_v32, %v5619_v62 }
0x2cc5   :  { %v13443_v1 = vpack.i.bf16 %v13437_v37, %v13439_v63 }
0x2cc7   :  { %11044 = vrot.lane.b32.xlu0 %v13443_v1, %s11682_s19 }
0x2cc9   :  { %v9881_v12 = vpop.f32.mrb[102].mxu1 }
0x2cca   :  { %v13447_v27 = vadd.f32 %v9881_v12, %v8578_v32  ;;  %v5629_v22 = vpop.f32.mrb[103].mxu1 }
0x2ccb   :  { %v13449_v3 = vadd.f32 %v8578_v32, %v5629_v22 }
0x2ccd   :  { %v13453_v5 = vpack.i.bf16 %v13447_v27, %v13449_v3 }
0x2ccf   :  { %11049 = vrot.lane.b32.xlu1 %v13453_v5, %s11682_s19 }
0x2cd1   :  { %v9884_v18 = vpop.f32.mrb[104].mxu1 }
0x2cd2   :  { %v13457_v24 = vadd.f32 %v9884_v18, %v8578_v32  ;;  %v5639_v52 = vpop.f32.mrb[105].mxu1 }
0x2cd3   :  { %v13459_v41 = vadd.f32 %v8578_v32, %v5639_v52  ;;  %11064 = vrot.lane.b32.xlu1 %v13443_v1, %s11679_s0  ;;  %v13524_v52 = vld [vmem:[%s14439_s9 + $0x28] sm:$0xff] }
0x2cd5   :  { %v13465_v2 = vpack.i.bf16 %v13457_v24, %v13459_v41 }
0x2cd7   :  { %11054 = vrot.lane.b32.xlu0 %v13465_v2, %s11682_s19  ;;  %s14442_s19 = sld [smem:[#allocation21_spill]] }
0x2cdb   :  { %11059 = vrot.lane.b32.xlu0 %v13433_v47, %s11679_s0 }
0x2d31   :  { %v11040_v36 = vpop.permute.xlu1 %11039 }
0x2d32   :  { %v11042_v10 = vunpack.i.h.bf16 %v11040_v36  ;;  %v11041_v14 = vunpack.i.l.bf16 %v11040_v36 }
0x2d34   :  { %v10575_v49 = vpack.c.bf16 %v11042_v10, %v11041_v14  ;;  %v13527_v14 = vld [vmem:[%s14439_s9 + $0x20] sm:$0xff] }
0x2d36   :  { %10577 = vmatprep.subr.msk.bf16.mxu0 %vm12216_vm5, %v10575_v49 }
0x2d37   :  { %10580 = vmatpush3.bf16.xpose.msk.msra.mxu0 %vm12216_vm5, %v10575_v49 }
0x2d39   :  { %v11045_v9 = vpop.permute.xlu0 %11044 }
0x2d3a   :  { %v11047_v39 = vunpack.i.h.bf16 %v11045_v9  ;;  %v11046_v53 = vunpack.i.l.bf16 %v11045_v9 }
0x2d3c   :  { %v10581_v55 = vpack.c.bf16 %v11047_v39, %v11046_v53 }
0x2d3e   :  { %10583 = vmatprep.subr.msk.bf16.mxu0 %vm12216_vm5, %v10581_v55 }
0x2d3f   :  { %10586 = vmatpush3.bf16.xpose.msk.msra.mxu0 %vm12216_vm5, %v10581_v55 }
0x2d41   :  { %v11050_v21 = vpop.permute.xlu1 %11049 }
0x2d42   :  { %v11052_v29 = vunpack.i.h.bf16 %v11050_v21  ;;  %v11051_v48 = vunpack.i.l.bf16 %v11050_v21 }
0x2d44   :  { %v10587_v58 = vpack.c.bf16 %v11052_v29, %v11051_v48  ;;  %v13540_v29 = vld [vmem:[%s14439_s9 + $0x38] sm:$0xff] }
0x2d45   :  { %v11065_v4 = vpop.permute.xlu1 %11064 }
0x2d46   :  { %10589 = vmatprep.subr.msk.bf16.mxu0 %vm12216_vm5, %v10587_v58  ;;  %v11067_v54 = vunpack.i.h.bf16 %v11065_v4  ;;  %v11066_v35 = vunpack.i.l.bf16 %v11065_v4 }
0x2d47   :  { %10592 = vmatpush3.bf16.xpose.msk.msra.mxu0 %vm12216_vm5, %v10587_v58 }
0x2d48   :  { %v10603_v56 = vpack.c.bf16 %v11067_v54, %v11066_v35  ;;  %v13553_v54 = vld [vmem:[%s14439_s9 + $0x30] sm:$0xff] }
0x2d49   :  { %v11055_v19 = vpop.permute.xlu0 %11054 }
0x2d4a   :  { %v11057_v60 = vunpack.i.h.bf16 %v11055_v19  ;;  %v11056_v23 = vunpack.i.l.bf16 %v11055_v19 }
0x2d4c   :  { %v10593_v38 = vpack.c.bf16 %v11057_v60, %v11056_v23 }
0x2d4d   :  { %v11060_v15 = vpop.permute.xlu0 %11059 }
0x2d4e   :  { %v11062_v11 = vunpack.i.h.bf16 %v11060_v15  ;;  %v11061_v42 = vunpack.i.l.bf16 %v11060_v15  ;;  %10595 = vmatprep.subr.msk.bf16.mxu0 %vm12216_vm5, %v10593_v38 }
0x2d4f   :  { %10598 = vmatpush3.bf16.xpose.msk.msra.mxu0 %vm12216_vm5, %v10593_v38 }
0x2d50   :  { %v10599_v7 = vpack.c.bf16 %v11062_v11, %v11061_v42 }
0x2d52   :  { %10600 = vmatprep.subr.bf16.mxu1 %v10599_v7 }
0x2d53   :  { %10602 = vmatpush3.bf16.msra.mxu1 %v10599_v7 }
0x2d54   :  { %10604 = vmatprep.subr.bf16.mxu1 %v10603_v56 }
0x2d56   :  { %9902 = vmatmul.mubr.msk.f32.vlgmr.msra.gmra.mrb[98].mxu0 %vm1334_vm2, %v13425_v45 }
0x2d57   :  { %9904 = vmatprep.mubr.msk.f32.mxu0 %vm1334_vm2, %v13439_v63  ;;  %10606 = vmatpush3.bf16.msra.mxu1 %v10603_v56 }
0x2d5a   :  { %9905 = vmatmul.mubr.msk.f32.gmra.mrb[100].mxu0 %vm1334_vm2, %v13437_v37 }
0x2d5b   :  { %9907 = vmatprep.mubr.msk.f32.mxu0 %vm1334_vm2, %v13449_v3 }
0x2d5e   :  { %9908 = vmatmul.mubr.msk.f32.gmra.mrb[102].mxu0 %vm1334_vm2, %v13447_v27 }
0x2d5f   :  { %9910 = vmatprep.mubr.msk.f32.mxu0 %vm1334_vm2, %v13459_v41 }
0x2d62   :  { %9911 = vmatmul.mubr.msk.f32.gmra.mrb[104].mxu0 %vm1334_vm2, %v13457_v24 }
0x2e29   :  { %v9903_v26 = vpop.f32.mrb[98].mxu0 }
0x2e2a   :  { %v5810_v46 = vmul.f32 0.35355338, %v9903_v26  ;;  %v5770_v30 = vpop.f32.mrb[99].mxu0 }
0x2e2b   :  { %v5809_v13 = vmul.f32 0.35355338, %v5770_v30 }
0x2e2c   :  { %v5818_v44 = vadd.f32 %v5810_v46, %v13502_v51 }
0x2e2d   :  { %v5817_v43 = vadd.f32 %v5809_v13, %v13505_v59  ;;  %v9906_v28 = vpop.f32.mrb[100].mxu0 }
0x2e2e   :  { %v5812_v32 = vmul.f32 0.35355338, %v9906_v28  ;;  %v5780_v40 = vpop.f32.mrb[101].mxu0  ;;  %v5828_v61 = vsel %vm2536_vm6, %v5818_v44, -inf }
0x2e2f   :  { %v5811_v62 = vmul.f32 0.35355338, %v5780_v40  ;;  %5829 = vmax.xlane.f32.xlu0 %v5828_v61  ;;  %v5825_v12 = vsel %vm2536_vm6, %v5817_v43, -inf }
0x2e30   :  { %v13518_v22 = vadd.f32 %v5812_v32, %v13510_v57  ;;  %5826 = vmax.xlane.f32.xlu1 %v5825_v12 }
0x2e31   :  { %v13521_v18 = vadd.f32 %v5811_v62, %v13513_v34  ;;  %v9909_v36 = vpop.f32.mrb[102].mxu0 }
0x2e32   :  { %v5814_v10 = vmul.f32 0.35355338, %v9909_v36  ;;  %v5790_v49 = vpop.f32.mrb[103].mxu0  ;;  %v5834_v9 = vsel %vm2536_vm6, %v13518_v22, -inf }
0x2e33   :  { %v5813_v39 = vmul.f32 0.35355338, %v5790_v49  ;;  %v5831_v53 = vsel %vm2536_vm6, %v13521_v18, -inf }
0x2e34   :  { %v13534_v55 = vadd.f32 %v5814_v10, %v13524_v52  ;;  %5835 = vmax.xlane.f32.xlu1 %v5834_v9  ;;  %5832 = vmax.xlane.f32.xlu0 %v5831_v53 }
0x2e35   :  { %v13537_v21 = vadd.f32 %v5813_v39, %v13527_v14  ;;  %v9912_v48 = vpop.f32.mrb[104].mxu0 }
0x2e36   :  { %v5816_v58 = vmul.f32 0.35355338, %v9912_v48  ;;  %v5800_v19 = vpop.f32.mrb[105].mxu0  ;;  %v5840_v60 = vsel %vm2536_vm6, %v13534_v55, -inf }
0x2e37   :  { %v5837_v23 = vsel %vm2536_vm6, %v13537_v21, -inf  ;;  %v5815_v15 = vmul.f32 0.35355338, %v5800_v19 }
0x2e38   :  { %v5824_v4 = vadd.f32 %v5816_v58, %v13540_v29  ;;  %5841 = vmax.xlane.f32.xlu1 %v5840_v60  ;;  %5838 = vmax.xlane.f32.xlu0 %v5837_v23 }
0x2e39   :  { %v5823_v35 = vadd.f32 %v5815_v15, %v13553_v54 }
0x2e3a   :  { %v5846_v38 = vsel %vm2536_vm6, %v5824_v4, -inf }
0x2e3b   :  { %v5843_v11 = vsel %vm2536_vm6, %v5823_v35, -inf }
0x2e3c   :  { %5847 = vmax.xlane.f32.xlu1 %v5846_v38 }
0x2e4d   :  { %11069 = vrot.lane.b32.xlu1 %v13453_v5, %s11679_s0 }
0x2e4e   :  { %11074 = vrot.lane.b32.xlu0 %v13465_v2, %s11679_s0  ;;  %s14440_s0 = sld [smem:[#allocation26_spill]] }
0x2e54   :  { %v308_v16 = vld [vmem:[%s14440_s0 + $0x10] sm:$0xff] }
0x2e6d   :  { %5844 = vmax.xlane.f32.xlu0 %v5843_v11 }
0x2e83   :  { %11079 = vrot.lane.b32.xlu0 %v13433_v47, %s11681_s14 }
0x2ebc   :  { %v5830_v42 = vpop.xlane.xlu0 %5829 }
0x2ebd   :  { %v5850_v7 = vsub.f32 %v5818_v44, %v5830_v42  ;;  %v5827_v56 = vpop.xlane.xlu1 %5826 }
0x2ebe   :  { %v5849_v26 = vsub.f32 %v5817_v43, %v5827_v56 }
0x2ebf   :  { %v5859_v46 = vmul.f32 1.442695, %v5850_v7 }
0x2ec0   :  { %v5857_v30 = vmul.f32 1.442695, %v5849_v26 }
0x2ec1   :  { %11422 = vpow2.f32 %v5859_v46  ;;  %v5836_v13 = vpop.xlane.xlu1 %5835  ;;  %v5833_v28 = vpop.xlane.xlu0 %5832 }
0x2ec2   :  { %11424 = vpow2.f32 %v5857_v30  ;;  %v5851_v19 = vsub.f32 %v13521_v18, %v5833_v28  ;;  %v5852_v60 = vsub.f32 %v13518_v22, %v5836_v13 }
0x2ec4   :  { %v5861_v23 = vmul.f32 1.442695, %v5851_v19  ;;  %v5863_v15 = vmul.f32 1.442695, %v5852_v60 }
0x2ec5   :  { %v5842_v32 = vpop.xlane.xlu1 %5841  ;;  %v5839_v40 = vpop.xlane.xlu0 %5838 }
0x2ec6   :  { %v5854_v38 = vsub.f32 %v13534_v55, %v5842_v32  ;;  %v5853_v11 = vsub.f32 %v13537_v21, %v5839_v40  ;;  %11426 = vpow2.f32 %v5861_v23 }
0x2ec7   :  { %11428 = vpow2.f32 %v5863_v15 }
0x2ec8   :  { %v5867_v42 = vmul.f32 1.442695, %v5854_v38  ;;  %v5865_v56 = vmul.f32 1.442695, %v5853_v11 }
0x2ec9   :  { %v5848_v61 = vpop.xlane.xlu1 %5847  ;;  %v11075_v12 = vpop.permute.xlu0 %11074 }
0x2eca   :  { %v11077_v49 = vunpack.i.h.bf16 %v11075_v12  ;;  %v11076_v9 = vunpack.i.l.bf16 %v11075_v12  ;;  %v5856_v7 = vsub.f32 %v5824_v4, %v5848_v61  ;;  %11430 = vpow2.f32 %v5867_v42 }
0x2ecb   :  { %v13559_v62 = vpop.eup %11422  ;;  %11432 = vpow2.f32 %v5865_v56 }
0x2ecc   :  { %v13561_v36 = vpop.eup %11424  ;;  %v5876_v10 = vsel %vm2536_vm6, %v13559_v62, 0.0  ;;  %v10611_v58 = vpack.c.bf16 %v11077_v49, %v11076_v9  ;;  %v5871_v26 = vmul.f32 1.442695, %v5856_v7 }
0x2ecd   :  { %5877 = vadd.xlane.f32.xlu1 %v5876_v10  ;;  %v11070_v44 = vpop.permute.xlu1 %11069  ;;  %v5873_v43 = vsel %vm2536_vm6, %v13561_v36, 0.0 }
0x2ece   :  { %v11072_v39 = vunpack.i.h.bf16 %v11070_v44  ;;  %v11071_v53 = vunpack.i.l.bf16 %v11070_v44  ;;  %5874 = vadd.xlane.f32.xlu0 %v5873_v43  ;;  %11434 = vpow2.f32 %v5871_v26 }
0x2ed0   :  { %v10607_v48 = vpack.c.bf16 %v11072_v39, %v11071_v53  ;;  %v13575_v28 = vpop.eup %11426 }
0x2ed1   :  { %v13577_v13 = vpop.eup %11428  ;;  %v5879_v4 = vsel %vm2536_vm6, %v13575_v28, 0.0 }
0x2ed2   :  { %10608 = vmatprep.subr.bf16.mxu1 %v10607_v48 }
0x2ed3   :  { %10610 = vmatpush3.bf16.msra.mxu1 %v10607_v48 }
0x2ed4   :  { %10612 = vmatprep.subr.bf16.mxu1 %v10611_v58  ;;  %v13581_v40 = vpop.eup %11430 }
0x2ed5   :  { %v13585_v61 = vpop.eup %11432  ;;  %v5888_v12 = vsel %vm2536_vm6, %v13581_v40, 0.0 }
0x2ed6   :  { %v5885_v44 = vsel %vm2536_vm6, %v13585_v61, 0.0 }
0x2ed7   :  { %10614 = vmatpush3.bf16.msra.mxu1 %v10611_v58 }
0x2ed8   :  { %v13591_v10 = vpop.eup %11434 }
0x2ed9   :  { %v5894_v43 = vsel %vm2536_vm6, %v13591_v10, 0.0 }
0x2ede   :  { %11084 = vrot.lane.b32.xlu1 %v13443_v1, %s11681_s14 }
0x2ee4   :  { %11089 = vrot.lane.b32.xlu0 %v13453_v5, %s11681_s14 }
0x2efa   :  { %v5845_v46 = vpop.xlane.xlu0 %5844 }
0x2efb   :  { %v5855_v30 = vsub.f32 %v5823_v35, %v5845_v46  ;;  %v5882_v35 = vsel %vm2536_vm6, %v13577_v13, 0.0 }
0x2efd   :  { %v5869_v18 = vmul.f32 1.442695, %v5855_v30 }
0x2efe   :  { %v11080_v22 = vpop.permute.xlu0 %11079 }
0x2eff   :  { %v11082_v55 = vunpack.i.h.bf16 %v11080_v22  ;;  %v11081_v32 = vunpack.i.l.bf16 %v11080_v22  ;;  %11436 = vpow2.f32 %v5869_v18 }
0x2f01   :  { %v10615_v21 = vpack.c.bf16 %v11082_v55, %v11081_v32 }
0x2f02   :  { %5880 = vadd.xlane.f32.xlu1 %v5879_v4 }
0x2f03   :  { %5883 = vadd.xlane.f32.xlu0 %v5882_v35  ;;  %10617 = vmatprep.subr.msk.bf16.mxu1 %vm12216_vm5, %v10615_v21 }
0x2f06   :  { %5889 = vadd.xlane.f32.xlu1 %v5888_v12 }
0x2f07   :  { %5886 = vadd.xlane.f32.xlu0 %v5885_v44 }
0x2f09   :  { %v13597_v49 = vpop.eup %11436 }
0x2f0a   :  { %5895 = vadd.xlane.f32.xlu1 %v5894_v43  ;;  %v5891_v9 = vsel %vm2536_vm6, %v13597_v49, 0.0 }
0x2f0e   :  { %5892 = vadd.xlane.f32.xlu1 %v5891_v9 }
0x2f1d   :  { %11094 = vrot.lane.b32.xlu0 %v13465_v2, %s11681_s14  ;;  %s14441_s14 = sld [smem:[#allocation20_spill]] }
0x2f1f   :  { %6066 = vrot.lane.b32.xlu1 %v13427_v17, %s11684_s30 }
0x2f21   :  { %6068 = vrot.lane.b32.xlu0 %v13425_v45, %s11684_s30 }
0x2f23   :  { %6070 = vrot.lane.b32.xlu1 %v13439_v63, %s11684_s30 }
0x2f25   :  { %6072 = vrot.lane.b32.xlu0 %v13437_v37, %s11684_s30 }
0x2f27   :  { %6074 = vrot.lane.b32.xlu1 %v13449_v3, %s11684_s30 }
0x2f29   :  { %6076 = vrot.lane.b32.xlu0 %v13447_v27, %s11684_s30 }
0x2f2b   :  { %6078 = vrot.lane.b32.xlu1 %v13459_v41, %s11684_s30 }
0x2f2d   :  { %6080 = vrot.lane.b32.xlu0 %v13457_v24, %s11684_s30  ;;  %s14447_s30 = sld [smem:[#allocation25_spill]] }
0x2f2f   :  { %11104 = vrot.lane.b32.xlu1 %v13443_v1, %s11688_s8 }
0x2f31   :  { %11099 = vrot.lane.b32.xlu0 %v13433_v47, %s11688_s8 }
0x2f5a   :  { %v5878_v39 = vpop.xlane.xlu1 %5877 }
0x2f5b   :  { %11438 = vrcp.f32 %v5878_v39  ;;  %v5875_v53 = vpop.xlane.xlu0 %5874 }
0x2f5c   :  { %11440 = vrcp.f32 %v5875_v53 }
0x2f5e   :  { %v11085_v48 = vpop.permute.xlu1 %11084 }
0x2f5f   :  { %v11087_v60 = vunpack.i.h.bf16 %v11085_v48  ;;  %v11086_v23 = vunpack.i.l.bf16 %v11085_v48  ;;  %v11090_v42 = vpop.permute.xlu0 %11089 }
0x2f60   :  { %v11092_v7 = vunpack.i.h.bf16 %v11090_v42  ;;  %v11091_v56 = vunpack.i.l.bf16 %v11090_v42 }
0x2f61   :  { %v10621_v11 = vpack.c.bf16 %v11087_v60, %v11086_v23 }
0x2f62   :  { %v10627_v26 = vpack.c.bf16 %v11092_v7, %v11091_v56 }
0x2f65   :  { %v11439_v58 = vpop.eup %11438 }
0x2f66   :  { %v11441_v19 = vpop.eup %11440  ;;  %v5900_v15 = vmul.f32 %v11439_v58, %v13559_v62 }
0x2f67   :  { %v5898_v38 = vmul.f32 %v11441_v19, %v13561_v36 }
0x2f69   :  { %9929 = vmatprep.mubr.msk.f32.mxu1 %vm2536_vm6, %v5898_v38 }
0x2f6a   :  { %9930 = vmatmul.mubr.msk.f32.vlgmr.msra.gmra.mrb[106].mxu1 %vm2536_vm6, %v5900_v15 }
0x2f6b   :  { %10620 = vmatpush3.bf16.xpose.msk.msra.mxu1 %vm12216_vm5, %v10615_v21 }
0x2f6c   :  { %10623 = vmatprep.subr.msk.bf16.mxu1 %vm12216_vm5, %v10621_v11 }
0x2f73   :  { %10626 = vmatpush3.bf16.xpose.msk.msra.mxu1 %vm12216_vm5, %v10621_v11 }
0x2f74   :  { %10629 = vmatprep.subr.msk.bf16.mxu1 %vm12216_vm5, %v10627_v26 }
0x2f7b   :  { %10632 = vmatpush3.bf16.xpose.msk.msra.mxu1 %vm12216_vm5, %v10627_v26 }
0x2f8f   :  { %v5881_v62 = vpop.xlane.xlu1 %5880 }
0x2f90   :  { %11442 = vrcp.f32 %v5881_v62  ;;  %v5884_v36 = vpop.xlane.xlu0 %5883 }
0x2f91   :  { %11444 = vrcp.f32 %v5884_v36 }
0x2f93   :  { %v5890_v46 = vpop.xlane.xlu1 %5889 }
0x2f94   :  { %11446 = vrcp.f32 %v5890_v46  ;;  %v5887_v30 = vpop.xlane.xlu0 %5886 }
0x2f95   :  { %11448 = vrcp.f32 %v5887_v30 }
0x2f97   :  { %v5896_v18 = vpop.xlane.xlu1 %5895 }
0x2f98   :  { %v11095_v22 = vpop.permute.xlu0 %11094  ;;  %11450 = vrcp.f32 %v5896_v18 }
0x2f99   :  { %v11097_v55 = vunpack.i.h.bf16 %v11095_v22  ;;  %v11096_v32 = vunpack.i.l.bf16 %v11095_v22 }
0x2f9a   :  { %v11443_v21 = vpop.eup %11442 }
0x2f9b   :  { %v11445_v4 = vpop.eup %11444  ;;  %v10633_v35 = vpack.c.bf16 %v11097_v55, %v11096_v32  ;;  %v5893_v12 = vpop.xlane.xlu1 %5892  ;;  %v5902_v44 = vmul.f32 %v11443_v21, %v13575_v28 }
0x2f9c   :  { %11452 = vrcp.f32 %v5893_v12  ;;  %v6069_v43 = vpop.permute.xlu0 %6068  ;;  %v5904_v9 = vmul.f32 %v11445_v4, %v13577_v13 }
0x2f9d   :  { %9932 = vmatprep.mubr.msk.f32.mxu1 %vm2536_vm6, %v5902_v44  ;;  %10635 = vmatprep.subr.msk.bf16.mxu1 %vm12216_vm5, %v10633_v35 }
0x2f9e   :  { %v11447_v39 = vpop.eup %11446  ;;  %9933 = vmatmul.mubr.msk.f32.gmra.mrb[108].mxu1 %vm2536_vm6, %v5904_v9 }
0x2f9f   :  { %v11449_v53 = vpop.eup %11448  ;;  %10638 = vmatpush3.bf16.xpose.msk.msra.mxu1 %vm12216_vm5, %v10633_v35  ;;  %v6067_v48 = vpop.permute.xlu1 %6066  ;;  %v5908_v19 = vmul.f32 %v11447_v39, %v13581_v40 }
0x2fa0   :  { %v6073_v58 = vpop.permute.xlu0 %6072  ;;  %v5906_v28 = vmul.f32 %v11449_v53, %v13585_v61 }
0x2fa2   :  { %9935 = vmatprep.mubr.msk.f32.mxu1 %vm2536_vm6, %v5906_v28  ;;  %v11451_v23 = vpop.eup %11450 }
0x2fa3   :  { %v6071_v13 = vpop.permute.xlu1 %6070  ;;  %9936 = vmatmul.mubr.msk.f32.gmra.mrb[110].mxu1 %vm2536_vm6, %v5908_v19  ;;  %v5912_v7 = vmul.f32 %v11451_v23, %v13591_v10 }
0x2fa4   :  { %v6077_v60 = vpop.permute.xlu0 %6076 }
0x2fa6   :  { %v11453_v38 = vpop.eup %11452 }
0x2fa7   :  { %v6075_v15 = vpop.permute.xlu1 %6074  ;;  %v5910_v11 = vmul.f32 %v11453_v38, %v13597_v49 }
0x2fa8   :  { %v6081_v42 = vpop.permute.xlu0 %6080 }
0x2fa9   :  { %9938 = vmatprep.mubr.msk.f32.mxu1 %vm2536_vm6, %v5910_v11 }
0x2faa   :  { %9939 = vmatmul.mubr.msk.f32.gmra.mrb[112].mxu1 %vm2536_vm6, %v5912_v7 }
0x2fab   :  { %v6079_v61 = vpop.permute.xlu1 %6078  ;;  %9957 = vmatprep.mubr.msk.f32.mxu1 %vm1334_vm2, %v6067_v48 }
0x2fac   :  { %v11100_v40 = vpop.permute.xlu0 %11099 }
0x2fad   :  { %v11102_v56 = vunpack.i.h.bf16 %v11100_v40  ;;  %v11101_v26 = vunpack.i.l.bf16 %v11100_v40 }
0x2fae   :  { %9958 = vmatmul.mubr.msk.f32.vlgmr.msra.gmra.mrb[114].mxu1 %vm1334_vm2, %v6069_v43 }
0x2faf   :  { %v11105_v62 = vpop.permute.xlu1 %11104  ;;  %9960 = vmatprep.mubr.msk.f32.mxu1 %vm1334_vm2, %v6071_v13  ;;  %v10639_v36 = vpack.c.bf16 %v11102_v56, %v11101_v26 }
0x2fb0   :  { %v11107_v49 = vunpack.i.h.bf16 %v11105_v62  ;;  %v11106_v46 = vunpack.i.l.bf16 %v11105_v62 }
0x2fb1   :  { %10640 = vmatprep.subr.bf16.mxu0 %v10639_v36 }
0x2fb2   :  { %9961 = vmatmul.mubr.msk.f32.gmra.mrb[116].mxu1 %vm1334_vm2, %v6073_v58  ;;  %10642 = vmatpush3.bf16.msra.mxu0 %v10639_v36  ;;  %v10643_v10 = vpack.c.bf16 %v11107_v49, %v11106_v46 }
0x2fb3   :  { %9963 = vmatprep.mubr.msk.f32.mxu1 %vm1334_vm2, %v6075_v15 }
0x2fb4   :  { %10644 = vmatprep.subr.bf16.mxu0 %v10643_v10 }
0x2fb6   :  { %9964 = vmatmul.mubr.msk.f32.gmra.mrb[118].mxu1 %vm1334_vm2, %v6077_v60  ;;  %10646 = vmatpush3.bf16.msra.mxu0 %v10643_v10 }
0x2fb7   :  { %9966 = vmatprep.mubr.msk.f32.mxu1 %vm1334_vm2, %v6079_v61 }
0x2fba   :  { %9967 = vmatmul.mubr.msk.f32.gmra.mrb[120].mxu1 %vm1334_vm2, %v6081_v42 }
0x303d   :  { %v13661_v30 = vpop.f32.mrb[106].mxu1 }
0x303e   :  { %v13663_v18 = vpop.f32.mrb[107].mxu1 }
0x3071   :  { %v13665_v22 = vpop.f32.mrb[108].mxu1 }
0x3072   :  { %v13667_v55 = vpop.f32.mrb[109].mxu1 }
0x3076   :  { %v13669_v32 = vpop.f32.mrb[110].mxu1 }
0x3077   :  { %v13671_v21 = vpop.f32.mrb[111].mxu1 }
0x307d   :  { %v13673_v4 = vpop.f32.mrb[112].mxu1 }
0x307e   :  { %v13675_v35 = vpop.f32.mrb[113].mxu1 }
0x3081   :  { %v9959_v12 = vpop.f32.mrb[114].mxu1 }
0x3082   :  { %v6236_v44 = vmul.f32 0.35355338, %v9959_v12  ;;  %v6196_v43 = vpop.f32.mrb[115].mxu1 }
0x3083   :  { %v6235_v9 = vmul.f32 0.35355338, %v6196_v43 }
0x3084   :  { %v6244_v39 = vadd.f32 %v6236_v44, %v13502_v51 }
0x3085   :  { %v6243_v53 = vadd.f32 %v6235_v9, %v13505_v59  ;;  %v9962_v48 = vpop.f32.mrb[116].mxu1 }
0x3086   :  { %v6238_v58 = vmul.f32 0.35355338, %v9962_v48  ;;  %v6206_v28 = vpop.f32.mrb[117].mxu1  ;;  %v6254_v19 = vsel %vm2536_vm6, %v6244_v39, -inf }
0x3087   :  { %v6237_v13 = vmul.f32 0.35355338, %v6206_v28  ;;  %6255 = vmax.xlane.f32.xlu0 %v6254_v19  ;;  %v6251_v60 = vsel %vm2536_vm6, %v6243_v53, -inf }
0x3088   :  { %v13682_v23 = vadd.f32 %v6238_v58, %v13510_v57  ;;  %6252 = vmax.xlane.f32.xlu1 %v6251_v60 }
0x3089   :  { %v13685_v38 = vadd.f32 %v6237_v13, %v13513_v34  ;;  %v9965_v15 = vpop.f32.mrb[118].mxu1 }
0x308a   :  { %v6240_v11 = vmul.f32 0.35355338, %v9965_v15  ;;  %v6216_v42 = vpop.f32.mrb[119].mxu1  ;;  %v6260_v7 = vsel %vm2536_vm6, %v13682_v23, -inf }
0x308b   :  { %v6239_v61 = vmul.f32 0.35355338, %v6216_v42  ;;  %v6257_v40 = vsel %vm2536_vm6, %v13685_v38, -inf }
0x308c   :  { %v6248_v56 = vadd.f32 %v6240_v11, %v13524_v52  ;;  %6261 = vmax.xlane.f32.xlu1 %v6260_v7  ;;  %6258 = vmax.xlane.f32.xlu0 %v6257_v40 }
0x308d   :  { %v6247_v26 = vadd.f32 %v6239_v61, %v13527_v14  ;;  %v9968_v62 = vpop.f32.mrb[120].mxu1 }
0x308e   :  { %v6242_v36 = vmul.f32 0.35355338, %v9968_v62  ;;  %v6226_v49 = vpop.f32.mrb[121].mxu1  ;;  %v6266_v46 = vsel %vm2536_vm6, %v6248_v56, -inf }
0x308f   :  { %v6263_v10 = vsel %vm2536_vm6, %v6247_v26, -inf  ;;  %v6241_v43 = vmul.f32 0.35355338, %v6226_v49 }
0x3090   :  { %v6250_v12 = vadd.f32 %v6242_v36, %v13540_v29  ;;  %6267 = vmax.xlane.f32.xlu1 %v6266_v46  ;;  %6264 = vmax.xlane.f32.xlu0 %v6263_v10 }
0x3091   :  { %v6249_v9 = vadd.f32 %v6241_v43, %v13553_v54 }
0x3092   :  { %v6272_v44 = vsel %vm2536_vm6, %v6250_v12, -inf }
0x3093   :  { %v6269_v48 = vsel %vm2536_vm6, %v6249_v9, -inf }
0x3094   :  { %6273 = vmax.xlane.f32.xlu1 %v6272_v44 }
0x30a5   :  { %11109 = vrot.lane.b32.xlu1 %v13453_v5, %s11688_s8 }
0x30a6   :  { %11114 = vrot.lane.b32.xlu0 %v13465_v2, %s11688_s8 }
0x30c5   :  { %6270 = vmax.xlane.f32.xlu0 %v6269_v48 }
0x30db   :  { %11119 = vrot.lane.b32.xlu0 %v13433_v47, %s11683_s24 }
0x3114   :  { %v6256_v58 = vpop.xlane.xlu0 %6255 }
0x3115   :  { %v6276_v28 = vsub.f32 %v6244_v39, %v6256_v58  ;;  %v6253_v19 = vpop.xlane.xlu1 %6252 }
0x3116   :  { %v6275_v13 = vsub.f32 %v6243_v53, %v6253_v19 }
0x3117   :  { %v6285_v60 = vmul.f32 1.442695, %v6276_v28 }
0x3118   :  { %v6283_v15 = vmul.f32 1.442695, %v6275_v13 }
0x3119   :  { %11454 = vpow2.f32 %v6285_v60  ;;  %v6262_v11 = vpop.xlane.xlu1 %6261  ;;  %v6259_v42 = vpop.xlane.xlu0 %6258 }
0x311a   :  { %11456 = vpow2.f32 %v6283_v15  ;;  %v6277_v19 = vsub.f32 %v13685_v38, %v6259_v42  ;;  %v6278_v13 = vsub.f32 %v13682_v23, %v6262_v11 }
0x311c   :  { %v6287_v60 = vmul.f32 1.442695, %v6277_v19 }
0x311d   :  { %v6268_v7 = vpop.xlane.xlu1 %6267  ;;  %v6265_v61 = vpop.xlane.xlu0 %6264 }
0x311e   :  { %v6280_v15 = vsub.f32 %v6248_v56, %v6268_v7  ;;  %11458 = vpow2.f32 %v6287_v60 }
0x3121   :  { %v6274_v40 = vpop.xlane.xlu1 %6273  ;;  %v11115_v36 = vpop.permute.xlu0 %11114 }
0x3122   :  { %v11117_v10 = vunpack.i.h.bf16 %v11115_v36  ;;  %v11116_v44 = vunpack.i.l.bf16 %v11115_v36  ;;  %v6289_v36 = vmul.f32 1.442695, %v6278_v13 }
0x3123   :  { %v13705_v62 = vpop.eup %11454 }
0x3124   :  { %v13707_v49 = vpop.eup %11456  ;;  %v6302_v46 = vsel %vm2536_vm6, %v13705_v62, 0.0  ;;  %v10651_v28 = vpack.c.bf16 %v11117_v10, %v11116_v44  ;;  %11460 = vpow2.f32 %v6289_v36 }
0x3125   :  { %6303 = vadd.xlane.f32.xlu1 %v6302_v46  ;;  %v11110_v39 = vpop.permute.xlu1 %11109  ;;  %v6299_v53 = vsel %vm2536_vm6, %v13707_v49, 0.0  ;;  %v6279_v46 = vsub.f32 %v6247_v26, %v6265_v61 }
0x3126   :  { %v11112_v43 = vunpack.i.h.bf16 %v11110_v39  ;;  %v11111_v48 = vunpack.i.l.bf16 %v11110_v39  ;;  %6300 = vadd.xlane.f32.xlu0 %v6299_v53  ;;  %v6293_v39 = vmul.f32 1.442695, %v6280_v15  ;;  %v6282_v53 = vsub.f32 %v6250_v12, %v6274_v40 }
0x3127   :  { %v6291_v10 = vmul.f32 1.442695, %v6279_v46 }
0x3128   :  { %v10647_v58 = vpack.c.bf16 %v11112_v43, %v11111_v48  ;;  %11462 = vpow2.f32 %v6293_v39  ;;  %v6297_v44 = vmul.f32 1.442695, %v6282_v53 }
0x3129   :  { %11464 = vpow2.f32 %v6291_v10 }
0x312a   :  { %10648 = vmatprep.subr.bf16.mxu0 %v10647_v58  ;;  %11466 = vpow2.f32 %v6297_v44 }
0x312b   :  { %10650 = vmatpush3.bf16.msra.mxu0 %v10647_v58 }
0x312c   :  { %10652 = vmatprep.subr.bf16.mxu0 %v10651_v28 }
0x312f   :  { %10654 = vmatpush3.bf16.msra.mxu0 %v10651_v28  ;;  %v13719_v28 = vpop.eup %11458 }
0x3130   :  { %v13721_v23 = vpop.eup %11460  ;;  %v6305_v12 = vsel %vm2536_vm6, %v13719_v28, 0.0 }
0x3132   :  { %v13725_v42 = vpop.eup %11462 }
0x3133   :  { %v13729_v7 = vpop.eup %11464  ;;  %v6314_v61 = vsel %vm2536_vm6, %v13725_v42, 0.0 }
0x3134   :  { %v13735_v40 = vpop.eup %11466  ;;  %v6311_v19 = vsel %vm2536_vm6, %v13729_v7, 0.0 }
0x3135   :  { %v6320_v13 = vsel %vm2536_vm6, %v13735_v40, 0.0 }
0x3136   :  { %11124 = vrot.lane.b32.xlu1 %v13443_v1, %s11683_s24 }
0x313c   :  { %11129 = vrot.lane.b32.xlu0 %v13453_v5, %s11683_s24 }
0x3152   :  { %v6271_v43 = vpop.xlane.xlu0 %6270 }
0x3153   :  { %v6281_v48 = vsub.f32 %v6249_v9, %v6271_v43  ;;  %v6308_v9 = vsel %vm2536_vm6, %v13721_v23, 0.0 }
0x3155   :  { %v6295_v58 = vmul.f32 1.442695, %v6281_v48 }
0x3156   :  { %v11120_v38 = vpop.permute.xlu0 %11119 }
0x3157   :  { %v11122_v56 = vunpack.i.h.bf16 %v11120_v38  ;;  %v11121_v11 = vunpack.i.l.bf16 %v11120_v38  ;;  %11468 = vpow2.f32 %v6295_v58 }
0x3159   :  { %v10655_v26 = vpack.c.bf16 %v11122_v56, %v11121_v11 }
0x315a   :  { %6306 = vadd.xlane.f32.xlu1 %v6305_v12 }
0x315b   :  { %6309 = vadd.xlane.f32.xlu0 %v6308_v9  ;;  %10657 = vmatprep.subr.msk.bf16.mxu0 %vm12216_vm5, %v10655_v26 }
0x315e   :  { %6315 = vadd.xlane.f32.xlu1 %v6314_v61 }
0x315f   :  { %6312 = vadd.xlane.f32.xlu0 %v6311_v19 }
0x3161   :  { %v13741_v60 = vpop.eup %11468 }
0x3162   :  { %6321 = vadd.xlane.f32.xlu1 %v6320_v13  ;;  %v6317_v15 = vsel %vm2536_vm6, %v13741_v60, 0.0 }
0x3166   :  { %6318 = vadd.xlane.f32.xlu1 %v6317_v15 }
0x3175   :  { %11134 = vrot.lane.b32.xlu0 %v13465_v2, %s11683_s24  ;;  %s14443_s24 = sld [smem:[#allocation22_spill]] }
0x3177   :  { %6492 = vrot.lane.b32.xlu1 %v13427_v17, %s11686_s15 }
0x3179   :  { %6494 = vrot.lane.b32.xlu0 %v13425_v45, %s11686_s15 }
0x317b   :  { %6496 = vrot.lane.b32.xlu1 %v13439_v63, %s11686_s15 }
0x317d   :  { %6498 = vrot.lane.b32.xlu0 %v13437_v37, %s11686_s15 }
0x317f   :  { %6500 = vrot.lane.b32.xlu1 %v13449_v3, %s11686_s15 }
0x3181   :  { %6502 = vrot.lane.b32.xlu0 %v13447_v27, %s11686_s15 }
0x3183   :  { %6504 = vrot.lane.b32.xlu1 %v13459_v41, %s11686_s15 }
0x3185   :  { %6506 = vrot.lane.b32.xlu0 %v13457_v24, %s11686_s15 }
0x3187   :  { %11144 = vrot.lane.b32.xlu1 %v13443_v1, %s11689_s18 }
0x3189   :  { %11139 = vrot.lane.b32.xlu0 %v13433_v47, %s11689_s18 }
0x318b   :  { %11149 = vrot.lane.b32.xlu1 %v13453_v5, %s11689_s18 }
0x318d   :  { %11154 = vrot.lane.b32.xlu0 %v13465_v2, %s11689_s18 }
0x31b2   :  { %v6304_v36 = vpop.xlane.xlu1 %6303 }
0x31b3   :  { %11470 = vrcp.f32 %v6304_v36  ;;  %v6301_v46 = vpop.xlane.xlu0 %6300 }
0x31b4   :  { %11472 = vrcp.f32 %v6301_v46 }
0x31b6   :  { %v11125_v39 = vpop.permute.xlu1 %11124 }
0x31b7   :  { %v11127_v44 = vunpack.i.h.bf16 %v11125_v39  ;;  %v11126_v43 = vunpack.i.l.bf16 %v11125_v39  ;;  %v11130_v56 = vpop.permute.xlu0 %11129 }
0x31b8   :  { %v11132_v11 = vunpack.i.h.bf16 %v11130_v56  ;;  %v11131_v12 = vunpack.i.l.bf16 %v11130_v56 }
0x31b9   :  { %v10661_v38 = vpack.c.bf16 %v11127_v44, %v11126_v43 }
0x31ba   :  { %v10667_v9 = vpack.c.bf16 %v11132_v11, %v11131_v12 }
0x31bd   :  { %v11471_v53 = vpop.eup %11470 }
0x31be   :  { %v11473_v10 = vpop.eup %11472  ;;  %v6326_v58 = vmul.f32 %v11471_v53, %v13705_v62 }
0x31bf   :  { %v6324_v48 = vmul.f32 %v11473_v10, %v13707_v49 }
0x31c1   :  { %9985 = vmatprep.mubr.msk.f32.mxu0 %vm2536_vm6, %v6324_v48 }
0x31c2   :  { %9986 = vmatmul.mubr.msk.f32.vlgmr.msra.gmra.mrb[106].mxu0 %vm2536_vm6, %v6326_v58 }
0x31c3   :  { %10660 = vmatpush3.bf16.xpose.msk.msra.mxu0 %vm12216_vm5, %v10655_v26 }
0x31c4   :  { %10663 = vmatprep.subr.msk.bf16.mxu0 %vm12216_vm5, %v10661_v38 }
0x31cb   :  { %10666 = vmatpush3.bf16.xpose.msk.msra.mxu0 %vm12216_vm5, %v10661_v38 }
0x31cc   :  { %10669 = vmatprep.subr.msk.bf16.mxu0 %vm12216_vm5, %v10667_v9 }
0x31d3   :  { %10672 = vmatpush3.bf16.xpose.msk.msra.mxu0 %vm12216_vm5, %v10667_v9 }
0x31e7   :  { %v6307_v62 = vpop.xlane.xlu1 %6306 }
0x31e8   :  { %11474 = vrcp.f32 %v6307_v62  ;;  %v6310_v49 = vpop.xlane.xlu0 %6309 }
0x31e9   :  { %11476 = vrcp.f32 %v6310_v49 }
0x31eb   :  { %v6316_v26 = vpop.xlane.xlu1 %6315 }
0x31ec   :  { %11478 = vrcp.f32 %v6316_v26  ;;  %v6313_v61 = vpop.xlane.xlu0 %6312 }
0x31ed   :  { %11480 = vrcp.f32 %v6313_v61 }
0x31ef   :  { %v6322_v19 = vpop.xlane.xlu1 %6321 }
0x31f0   :  { %v11135_v13 = vpop.permute.xlu0 %11134  ;;  %11482 = vrcp.f32 %v6322_v19 }
0x31f1   :  { %v11137_v15 = vunpack.i.h.bf16 %v11135_v13  ;;  %v11136_v36 = vunpack.i.l.bf16 %v11135_v13 }
0x31f2   :  { %v11475_v46 = vpop.eup %11474 }
0x31f3   :  { %v11477_v39 = vpop.eup %11476  ;;  %v10673_v53 = vpack.c.bf16 %v11137_v15, %v11136_v36  ;;  %v6319_v10 = vpop.xlane.xlu1 %6318  ;;  %v6328_v44 = vmul.f32 %v11475_v46, %v13719_v28 }
0x31f4   :  { %11484 = vrcp.f32 %v6319_v10  ;;  %v6495_v43 = vpop.permute.xlu0 %6494  ;;  %v6330_v48 = vmul.f32 %v11477_v39, %v13721_v23 }
0x31f5   :  { %9988 = vmatprep.mubr.msk.f32.mxu0 %vm2536_vm6, %v6328_v44  ;;  %10675 = vmatprep.subr.msk.bf16.mxu0 %vm12216_vm5, %v10673_v53 }
0x31f6   :  { %v11479_v58 = vpop.eup %11478  ;;  %9989 = vmatmul.mubr.msk.f32.gmra.mrb[108].mxu0 %vm2536_vm6, %v6330_v48 }
0x31f7   :  { %v11481_v38 = vpop.eup %11480  ;;  %10678 = vmatpush3.bf16.xpose.msk.msra.mxu0 %vm12216_vm5, %v10673_v53  ;;  %v6493_v56 = vpop.permute.xlu1 %6492  ;;  %v6334_v12 = vmul.f32 %v11479_v58, %v13725_v42 }
0x31f8   :  { %v6499_v11 = vpop.permute.xlu0 %6498  ;;  %v6332_v28 = vmul.f32 %v11481_v38, %v13729_v7 }
0x31fa   :  { %9991 = vmatprep.mubr.msk.f32.mxu0 %vm2536_vm6, %v6332_v28  ;;  %v11483_v62 = vpop.eup %11482 }
0x31fb   :  { %v6497_v23 = vpop.permute.xlu1 %6496  ;;  %9992 = vmatmul.mubr.msk.f32.gmra.mrb[110].mxu0 %vm2536_vm6, %v6334_v12  ;;  %v6338_v13 = vmul.f32 %v11483_v62, %v13735_v40 }
0x31fc   :  { %v6503_v9 = vpop.permute.xlu0 %6502 }
0x31fe   :  { %v11485_v49 = vpop.eup %11484 }
0x31ff   :  { %v6501_v26 = vpop.permute.xlu1 %6500  ;;  %v6336_v61 = vmul.f32 %v11485_v49, %v13741_v60 }
0x3200   :  { %v6507_v19 = vpop.permute.xlu0 %6506 }
0x3201   :  { %9994 = vmatprep.mubr.msk.f32.mxu0 %vm2536_vm6, %v6336_v61 }
0x3202   :  { %9995 = vmatmul.mubr.msk.f32.gmra.mrb[112].mxu0 %vm2536_vm6, %v6338_v13 }
0x3203   :  { %v6505_v7 = vpop.permute.xlu1 %6504  ;;  %10013 = vmatprep.mubr.msk.f32.mxu0 %vm1334_vm2, %v6493_v56 }
0x3204   :  { %v11140_v42 = vpop.permute.xlu0 %11139 }
0x3205   :  { %v11142_v15 = vunpack.i.h.bf16 %v11140_v42  ;;  %v11141_v36 = vunpack.i.l.bf16 %v11140_v42 }
0x3206   :  { %10014 = vmatmul.mubr.msk.f32.vlgmr.msra.gmra.mrb[114].mxu0 %vm1334_vm2, %v6495_v43 }
0x3207   :  { %v11145_v46 = vpop.permute.xlu1 %11144  ;;  %10016 = vmatprep.mubr.msk.f32.mxu0 %vm1334_vm2, %v6497_v23  ;;  %v10679_v39 = vpack.c.bf16 %v11142_v15, %v11141_v36 }
0x3208   :  { %v11147_v60 = vunpack.i.h.bf16 %v11145_v46  ;;  %v11146_v53 = vunpack.i.l.bf16 %v11145_v46  ;;  %v11155_v40 = vpop.permute.xlu0 %11154 }
0x3209   :  { %10680 = vmatprep.subr.bf16.mxu1 %v10679_v39  ;;  %v11157_v38 = vunpack.i.h.bf16 %v11155_v40  ;;  %v11156_v43 = vunpack.i.l.bf16 %v11155_v40 }
0x320a   :  { %10017 = vmatmul.mubr.msk.f32.gmra.mrb[116].mxu0 %vm1334_vm2, %v6499_v11  ;;  %10682 = vmatpush3.bf16.msra.mxu1 %v10679_v39  ;;  %v10683_v10 = vpack.c.bf16 %v11147_v60, %v11146_v53 }
0x320b   :  { %v11150_v44 = vpop.permute.xlu1 %11149  ;;  %10019 = vmatprep.mubr.msk.f32.mxu0 %vm1334_vm2, %v6501_v26  ;;  %v10691_v28 = vpack.c.bf16 %v11157_v38, %v11156_v43 }
0x320c   :  { %v11152_v48 = vunpack.i.h.bf16 %v11150_v44  ;;  %v11151_v58 = vunpack.i.l.bf16 %v11150_v44  ;;  %10684 = vmatprep.subr.bf16.mxu1 %v10683_v10 }
0x320e   :  { %10020 = vmatmul.mubr.msk.f32.gmra.mrb[118].mxu0 %vm1334_vm2, %v6503_v9  ;;  %10686 = vmatpush3.bf16.msra.mxu1 %v10683_v10  ;;  %v10687_v56 = vpack.c.bf16 %v11152_v48, %v11151_v58 }
0x320f   :  { %10022 = vmatprep.mubr.msk.f32.mxu0 %vm1334_vm2, %v6505_v7 }
0x3210   :  { %10688 = vmatprep.subr.bf16.mxu1 %v10687_v56 }
0x3212   :  { %10023 = vmatmul.mubr.msk.f32.gmra.mrb[120].mxu0 %vm1334_vm2, %v6507_v19  ;;  %10690 = vmatpush3.bf16.msra.mxu1 %v10687_v56 }
0x3213   :  { %10692 = vmatprep.subr.bf16.mxu1 %v10691_v28 }
0x3216   :  { %10694 = vmatpush3.bf16.msra.mxu1 %v10691_v28 }
0x3295   :  { %v13809_v11 = vpop.f32.mrb[106].mxu0 }
0x3296   :  { %v13811_v12 = vpop.f32.mrb[107].mxu0 }
0x32c9   :  { %v13813_v23 = vpop.f32.mrb[108].mxu0 }
0x32ca   :  { %v13815_v62 = vpop.f32.mrb[109].mxu0 }
0x32ce   :  { %v13817_v9 = vpop.f32.mrb[110].mxu0 }
0x32cf   :  { %v13819_v49 = vpop.f32.mrb[111].mxu0 }
0x32d5   :  { %v13821_v26 = vpop.f32.mrb[112].mxu0 }
0x32d6   :  { %v13823_v61 = vpop.f32.mrb[113].mxu0 }
0x32d9   :  { %v10015_v19 = vpop.f32.mrb[114].mxu0 }
0x32da   :  { %v6662_v13 = vmul.f32 0.35355338, %v10015_v19  ;;  %v6622_v7 = vpop.f32.mrb[115].mxu0 }
0x32db   :  { %v6661_v42 = vmul.f32 0.35355338, %v6622_v7 }
0x32dc   :  { %v6670_v15 = vadd.f32 %v6662_v13, %v13502_v51 }
0x32dd   :  { %v6669_v36 = vadd.f32 %v6661_v42, %v13505_v59  ;;  %v10018_v46 = vpop.f32.mrb[116].mxu0 }
0x32de   :  { %v6664_v39 = vmul.f32 0.35355338, %v10018_v46  ;;  %v6632_v60 = vpop.f32.mrb[117].mxu0  ;;  %v6680_v53 = vsel %vm2536_vm6, %v6670_v15, -inf }
0x32df   :  { %v6663_v40 = vmul.f32 0.35355338, %v6632_v60  ;;  %6681 = vmax.xlane.f32.xlu0 %v6680_v53  ;;  %v6677_v10 = vsel %vm2536_vm6, %v6669_v36, -inf }
0x32e0   :  { %v13830_v44 = vadd.f32 %v6664_v39, %v13510_v57  ;;  %6678 = vmax.xlane.f32.xlu1 %v6677_v10 }
0x32e1   :  { %v6671_v48 = vadd.f32 %v6663_v40, %v13513_v34  ;;  %v10021_v58 = vpop.f32.mrb[118].mxu0 }
0x32e2   :  { %v6666_v38 = vmul.f32 0.35355338, %v10021_v58  ;;  %v6642_v51 = vpop.f32.mrb[119].mxu0  ;;  %v6686_v59 = vsel %vm2536_vm6, %v13830_v44, -inf }
0x32e3   :  { %v6665_v43 = vmul.f32 0.35355338, %v6642_v51  ;;  %v6683_v56 = vsel %vm2536_vm6, %v6671_v48, -inf }
0x32e4   :  { %v6674_v28 = vadd.f32 %v6666_v38, %v13524_v52  ;;  %6687 = vmax.xlane.f32.xlu1 %v6686_v59  ;;  %6684 = vmax.xlane.f32.xlu0 %v6683_v56 }
0x32e5   :  { %v6673_v19 = vadd.f32 %v6665_v43, %v13527_v14  ;;  %v10024_v57 = vpop.f32.mrb[120].mxu0 }
0x32e6   :  { %v6668_v13 = vmul.f32 0.35355338, %v10024_v57  ;;  %v6652_v7 = vpop.f32.mrb[121].mxu0  ;;  %v6692_v34 = vsel %vm2536_vm6, %v6674_v28, -inf }
0x32e7   :  { %v6667_v42 = vmul.f32 0.35355338, %v6652_v7  ;;  %v6689_v46 = vsel %vm2536_vm6, %v6673_v19, -inf }
0x32e8   :  { %v6676_v39 = vadd.f32 %v6668_v13, %v13540_v29  ;;  %6693 = vmax.xlane.f32.xlu1 %v6692_v34  ;;  %6690 = vmax.xlane.f32.xlu0 %v6689_v46 }
0x32e9   :  { %v6675_v60 = vadd.f32 %v6667_v42, %v13553_v54 }
0x32ea   :  { %v6698_v52 = vsel %vm2536_vm6, %v6676_v39, -inf }
0x32eb   :  { %v6695_v53 = vsel %vm2536_vm6, %v6675_v60, -inf }
0x32ec   :  { %6699 = vmax.xlane.f32.xlu1 %v6698_v52  ;;  %6696 = vmax.xlane.f32.xlu0 %v6695_v53 }
0x32fd   :  { %11164 = vrot.lane.b32.xlu1 %v13443_v1, %s11685_s6 }
0x3302   :  { %11159 = vrot.lane.b32.xlu0 %v13433_v47, %s11685_s6 }
0x336c   :  { %v6682_v14 = vpop.xlane.xlu0 %6681 }
0x336d   :  { %v6702_v40 = vsub.f32 %v6670_v15, %v6682_v14  ;;  %v6679_v10 = vpop.xlane.xlu1 %6678 }
0x336e   :  { %v6701_v29 = vsub.f32 %v6669_v36, %v6679_v10 }
0x336f   :  { %v6711_v58 = vmul.f32 1.442695, %v6702_v40 }
0x3370   :  { %v6709_v38 = vmul.f32 1.442695, %v6701_v29 }
0x3371   :  { %11486 = vpow2.f32 %v6711_v58  ;;  %v6688_v54 = vpop.xlane.xlu1 %6687  ;;  %v6685_v51 = vpop.xlane.xlu0 %6684 }
0x3372   :  { %11488 = vpow2.f32 %v6709_v38  ;;  %v6703_v59 = vsub.f32 %v6671_v48, %v6685_v51  ;;  %v6704_v58 = vsub.f32 %v13830_v44, %v6688_v54 }
0x3374   :  { %v6713_v43 = vmul.f32 1.442695, %v6703_v59  ;;  %v6715_v38 = vmul.f32 1.442695, %v6704_v58 }
0x3375   :  { %v6694_v56 = vpop.xlane.xlu1 %6693  ;;  %v6691_v57 = vpop.xlane.xlu0 %6690 }
0x3376   :  { %v6706_v13 = vsub.f32 %v6674_v28, %v6694_v56  ;;  %11490 = vpow2.f32 %v6713_v43  ;;  %v6705_v51 = vsub.f32 %v6673_v19, %v6691_v57 }
0x3378   :  { %v6719_v7 = vmul.f32 1.442695, %v6706_v13  ;;  %v6717_v43 = vmul.f32 1.442695, %v6705_v51 }
0x3379   :  { %v6697_v34 = vpop.xlane.xlu0 %6696  ;;  %v6700_v59 = vpop.xlane.xlu1 %6699 }
0x337a   :  { %11492 = vpow2.f32 %v6719_v7  ;;  %v6708_v56 = vsub.f32 %v6676_v39, %v6700_v59  ;;  %v6707_v7 = vsub.f32 %v6675_v60, %v6697_v34 }
0x337b   :  { %v13848_v42 = vpop.eup %11486  ;;  %11494 = vpow2.f32 %v6715_v38 }
0x337c   :  { %v11489_v15 = vpop.eup %11488  ;;  %v6728_v36 = vsel %vm2536_vm6, %v13848_v42, 0.0  ;;  %11496 = vpow2.f32 %v6717_v43  ;;  %v6723_v13 = vmul.f32 1.442695, %v6708_v56 }
0x337d   :  { %6729 = vadd.xlane.f32.xlu1 %v6728_v36  ;;  %v11160_v46 = vpop.permute.xlu0 %11159  ;;  %v6725_v52 = vsel %vm2536_vm6, %v11489_v15, 0.0  ;;  %v6721_v36 = vmul.f32 1.442695, %v6707_v7  ;;  %v11165_v57 = vpop.permute.xlu1 %11164 }
0x337e   :  { %v11162_v53 = vunpack.i.h.bf16 %v11160_v46  ;;  %6726 = vadd.xlane.f32.xlu0 %v6725_v52  ;;  %v11161_v48 = vunpack.i.l.bf16 %v11160_v46  ;;  %11498 = vpow2.f32 %v6723_v13 }
0x337f   :  { %11500 = vpow2.f32 %v6721_v36  ;;  %v306_v36 = vld [vmem:[%s14440_s0] sm:$0xff] }
0x3380   :  { %v13853_v14 = vpop.eup %11490  ;;  %v10695_v28 = vpack.c.bf16 %v11162_v53, %v11161_v48  ;;  %v11167_v48 = vunpack.i.h.bf16 %v11165_v57 }
0x3381   :  { %v6731_v40 = vsel %vm2536_vm6, %v13853_v14, 0.0 }
0x3382   :  { %6732 = vadd.xlane.f32.xlu1 %v6731_v40  ;;  %10697 = vmatprep.subr.msk.bf16.mxu1 %vm12216_vm5, %v10695_v28 }
0x3384   :  { %v13859_v10 = vpop.eup %11492 }
0x3385   :  { %v6740_v29 = vsel %vm2536_vm6, %v13859_v10, 0.0  ;;  %v13868_v46 = vpop.eup %11494 }
0x3386   :  { %6741 = vadd.xlane.f32.xlu1 %v6740_v29  ;;  %v6734_v52 = vsel %vm2536_vm6, %v13868_v46, 0.0 }
0x3394   :  { %11169 = vrot.lane.b32.xlu0 %v13453_v5, %s11685_s6 }
0x3397   :  { %6918 = vrot.lane.b32.xlu1 %v13427_v17, %s11687_s16  ;;  %v13872_v17 = vpop.eup %11496 }
0x3398   :  { %v6737_v44 = vsel %vm2536_vm6, %v13872_v17, 0.0  ;;  %v13876_v19 = vpop.eup %11498 }
0x3399   :  { %v6746_v39 = vsel %vm2536_vm6, %v13876_v19, 0.0  ;;  %v13880_v60 = vpop.eup %11500 }
0x339a   :  { %v6743_v54 = vsel %vm2536_vm6, %v13880_v60, 0.0 }
0x33b3   :  { %6735 = vadd.xlane.f32.xlu0 %v6734_v52  ;;  %v307_v52 = vld [vmem:[%s14440_s0 + $0x8] sm:$0xff] }
0x33b7   :  { %6738 = vadd.xlane.f32.xlu0 %v6737_v44 }
0x33bb   :  { %6747 = vadd.xlane.f32.xlu1 %v6746_v39 }
0x33bf   :  { %6744 = vadd.xlane.f32.xlu1 %v6743_v54 }
0x33cd   :  { %11174 = vrot.lane.b32.xlu0 %v13465_v2, %s11685_s6  ;;  %s11694_s6 = smov [#allocation3]  }
0x33ce   :  { %s8316_s15 = sshll.u32 %s11694_s6, 4  ;;  %s8317_s15 = int_to_ptr.vmem [resolvable:$true] %s8316_s15 }
0x33cf   :  { %p11619_p1 = scmp.lt.s32.totalorder %s8317_s15, %s8317_s15 }
0x33d0   :  { %6922 = vrot.lane.b32.xlu1 %v13439_v63, %s11687_s16 }
0x33d1   :  { %6920 = vrot.lane.b32.xlu0 %v13425_v45, %s11687_s16 }
0x33d4   :  { %6926 = vrot.lane.b32.xlu1 %v13449_v3, %s11687_s16 }
0x33d5   :  { %6924 = vrot.lane.b32.xlu0 %v13437_v37, %s11687_s16  ;;  %v11166_v37 = vunpack.i.l.bf16 %v11165_v57  ;;  %v10743_v57 = vpack.c.bf16 %v307_v52, %v306_v36 }
0x33d8   :  { %6930 = vrot.lane.b32.xlu1 %v13459_v41, %s11687_s16 }
0x33d9   :  { %6928 = vrot.lane.b32.xlu0 %v13447_v27, %s11687_s16  ;;  %v10701_v27 = vpack.c.bf16 %v11167_v48, %v11166_v37 }
0x33dd   :  { %6932 = vrot.lane.b32.xlu0 %v13457_v24, %s11687_s16  ;;  %s11614_s16 = scalar_lea.vmem %s8317_s15, 1024 }
0x33de   :  { %p11615_p0 = scmp.ne.s32.totalorder %s8317_s15, %s11614_s16  ;;  %p11620_p2 = scmp.lt.s32.totalorder %s11614_s16, %s11614_s16 }
0x33e0   :  { %p11621_p3 = por %p11620_p2, %p11619_p1 }
0x33e2   :  { %p11622_p4 = pnand %p11621_p3, %p11615_p0 }
0x340a   :  { %v6730_v63 = vpop.xlane.xlu1 %6729 }
0x340b   :  { %11502 = vrcp.f32 %v6730_v63  ;;  %v6727_v34 = vpop.xlane.xlu0 %6726 }
0x340c   :  { %11504 = vrcp.f32 %v6727_v34 }
0x340f   :  { %v6733_v45 = vpop.xlane.xlu1 %6732  ;;  %v11170_v29 = vpop.permute.xlu0 %11169 }
0x3410   :  { %11506 = vrcp.f32 %v6733_v45  ;;  %v11172_v38 = vunpack.i.h.bf16 %v11170_v29  ;;  %v11171_v51 = vunpack.i.l.bf16 %v11170_v29  ;;  %v8159_v29 = vld [vmem:[#allocation2 + $0x8] sm:$0xff] }
0x3415   :  { %v11503_v3 = vpop.eup %11502 }
0x3416   :  { %v11505_v53 = vpop.eup %11504  ;;  %v6752_v41 = vmul.f32 %v11503_v3, %v13848_v42  ;;  %v10707_v42 = vpack.c.bf16 %v11172_v38, %v11171_v51 }
0x3417   :  { %v6750_v40 = vmul.f32 %v11505_v53, %v11489_v15  ;;  %v6742_v15 = vpop.xlane.xlu1 %6741 }
0x3419   :  { %10041 = vmatprep.mubr.msk.f32.mxu1 %vm2536_vm6, %v6750_v40 }
0x341a   :  { %10042 = vmatmul.mubr.msk.f32.vlgmr.msra.gmra.mrb[122].mxu1 %vm2536_vm6, %v6752_v41  ;;  %v11507_v24 = vpop.eup %11506 }
0x341b   :  { %10700 = vmatpush3.bf16.xpose.msk.msra.mxu1 %vm12216_vm5, %v10695_v28  ;;  %v6754_v58 = vmul.f32 %v11507_v24, %v13853_v14  ;;  %v6919_v59 = vpop.permute.xlu1 %6918 }
0x341c   :  { %10703 = vmatprep.subr.msk.bf16.mxu1 %vm12216_vm5, %v10701_v27 }
0x341d   :  { %10044 = vmatprep.mubr.msk.f32.mxu1 %vm2536_vm6, %v6754_v58 }
0x3423   :  { %10706 = vmatpush3.bf16.xpose.msk.msra.mxu1 %vm12216_vm5, %v10701_v27  ;;  %v309_v27 = vld [vmem:[%s14440_s0 + $0x18] sm:$0xff] }
0x3424   :  { %10709 = vmatprep.subr.msk.bf16.mxu1 %vm12216_vm5, %v10707_v42 }
0x342b   :  { %10712 = vmatpush3.bf16.xpose.msk.msra.mxu1 %vm12216_vm5, %v10707_v42 }
0x3440   :  { %v6736_v28 = vpop.xlane.xlu0 %6735 }
0x3441   :  { %11508 = vrcp.f32 %v6736_v28 }
0x3442   :  { %11510 = vrcp.f32 %v6742_v15 }
0x3444   :  { %v6739_v14 = vpop.xlane.xlu0 %6738 }
0x3445   :  { %11512 = vrcp.f32 %v6739_v14 }
0x3448   :  { %v11175_v43 = vpop.permute.xlu0 %11174  ;;  %v6748_v56 = vpop.xlane.xlu1 %6747 }
0x3449   :  { %v11177_v13 = vunpack.i.h.bf16 %v11175_v43  ;;  %v11176_v7 = vunpack.i.l.bf16 %v11175_v43  ;;  %11514 = vrcp.f32 %v6748_v56 }
0x344b   :  { %v11509_v44 = vpop.eup %11508  ;;  %v10713_v39 = vpack.c.bf16 %v11177_v13, %v11176_v7 }
0x344c   :  { %v6756_v54 = vmul.f32 %v11509_v44, %v13868_v46  ;;  %v6745_v63 = vpop.xlane.xlu1 %6744  ;;  %v11511_v34 = vpop.eup %11510 }
0x344d   :  { %10715 = vmatprep.subr.msk.bf16.mxu1 %vm12216_vm5, %v10713_v39  ;;  %11516 = vrcp.f32 %v6745_v63  ;;  %v6760_v46 = vmul.f32 %v11511_v34, %v13859_v10  ;;  %v6921_v37 = vpop.permute.xlu0 %6920  ;;  %v10747_v10 = vpack.c.bf16 %v309_v27, %v308_v16  ;;  %v11607_v63 = vld [vmem:[%s14439_s9] sm:$0xff]  ;;  %v11609_v16 = vld [vmem:[%s14439_s9 + $0x10] sm:$0xff] }
0x344e   :  { %10045 = vmatmul.mubr.msk.f32.gmra.mrb[124].mxu1 %vm2536_vm6, %v6756_v54  ;;  %v11606_v54 = vld [vmem:[%s14439_s9 + $0x8] sm:$0xff] }
0x344f   :  { %v11513_v45 = vpop.eup %11512  ;;  %10718 = vmatpush3.bf16.xpose.msk.msra.mxu1 %vm12216_vm5, %v10713_v39 }
0x3450   :  { %v6758_v3 = vmul.f32 %v11513_v45, %v13872_v17  ;;  %10744 = vmatprep.subr.bf16.mxu1 %v10743_v57  ;;  %v6923_v24 = vpop.permute.xlu1 %6922 }
0x3451   :  { %v6925_v17 = vpop.permute.xlu0 %6924 }
0x3452   :  { %10047 = vmatprep.mubr.msk.f32.mxu1 %vm2536_vm6, %v6758_v3 }
0x3453   :  { %10048 = vmatmul.mubr.msk.f32.gmra.mrb[126].mxu1 %vm2536_vm6, %v6760_v46  ;;  %v11515_v53 = vpop.eup %11514 }
0x3454   :  { %v6764_v41 = vmul.f32 %v11515_v53, %v13876_v19  ;;  %v8158_v19 = vld [vmem:[#allocation2] sm:$0xff] }
0x3455   :  { %v13937_v58 = vpack.c.bf16 %v8159_v29, %v8158_v19  ;;  %v6929_v38 = vpop.permute.xlu0 %6928 }
0x3457   :  { %v11517_v48 = vpop.eup %11516 }
0x3458   :  { %v6762_v40 = vmul.f32 %v11517_v48, %v13880_v60  ;;  %v6927_v60 = vpop.permute.xlu1 %6926 }
0x3459   :  { %v6933_v42 = vpop.permute.xlu0 %6932 }
0x345a   :  { %10050 = vmatprep.mubr.msk.f32.mxu1 %vm2536_vm6, %v6762_v40  ;;  %v11608_v40 = vld [vmem:[%s14439_s9 + $0x18] sm:$0xff] }
0x345b   :  { %10051 = vmatmul.mubr.msk.f32.gmra.mrb[128].mxu1 %vm2536_vm6, %v6764_v41 }
0x345c   :  { %10069 = vmatprep.mubr.msk.f32.mxu1 %vm1334_vm2, %v6919_v59  ;;  %v6931_v51 = vpop.permute.xlu1 %6930 }
0x345f   :  { %10070 = vmatmul.mubr.msk.f32.vlgmr.msra.gmra.mrb[130].mxu1 %vm1334_vm2, %v6921_v37 }
0x3460   :  { %10746 = vmatpush3.bf16.msra.mxu1 %v10743_v57  ;;  %10072 = vmatprep.mubr.msk.f32.mxu1 %vm1334_vm2, %v6923_v24 }
0x3461   :  { %10748 = vmatprep.subr.bf16.mxu1 %v10747_v10 }
0x3463   :  { %10073 = vmatmul.mubr.msk.f32.gmra.mrb[132].mxu1 %vm1334_vm2, %v6925_v17 }
0x3464   :  { %10750 = vmatpush3.bf16.msra.mxu1 %v10747_v10  ;;  %10075 = vmatprep.mubr.msk.f32.mxu1 %vm1334_vm2, %v6927_v60 }
0x3465   :  { %10760 = vmatprep.subr.bf16.mxu1 %v13937_v58 }
0x3467   :  { %10076 = vmatmul.mubr.msk.f32.gmra.mrb[134].mxu1 %vm1334_vm2, %v6929_v38  ;;  %v11610_v38 = vld [vmem:[%s14439_s9 + $0x28] sm:$0xff] }
0x3468   :  { %10078 = vmatprep.mubr.msk.f32.mxu1 %vm1334_vm2, %v6931_v51 }
0x346b   :  { %10079 = vmatmul.mubr.msk.f32.gmra.mrb[136].mxu1 %vm1334_vm2, %v6933_v42  ;;  %v11611_v42 = vld [vmem:[%s14439_s9 + $0x20] sm:$0xff] }
0x34ed   :  { %v13944_v15 = vpop.f32.mrb[122].mxu1 }
0x34ee   :  { %v13946_v28 = vpop.f32.mrb[123].mxu1 }
0x3521   :  { %v13948_v14 = vpop.f32.mrb[124].mxu1 }
0x3522   :  { %v13950_v59 = vpop.f32.mrb[125].mxu1 }
0x3526   :  { %v13952_v43 = vpop.f32.mrb[126].mxu1 }
0x3527   :  { %v13954_v56 = vpop.f32.mrb[127].mxu1 }
0x352e   :  { %v13956_v13 = vpop.f32.mrb[128].mxu1 }
0x352f   :  { %v13958_v7 = vpop.f32.mrb[129].mxu1 }
0x3532   :  { %v10071_v36 = vpop.f32.mrb[130].mxu1 }
0x3533   :  { %v7088_v52 = vmul.f32 0.35355338, %v10071_v36  ;;  %v7048_v44 = vpop.f32.mrb[131].mxu1 }
0x3534   :  { %v7087_v39 = vmul.f32 0.35355338, %v7048_v44 }
0x3535   :  { %v7096_v57 = vadd.f32 %v11606_v54, %v7088_v52 }
0x3536   :  { %v7095_v34 = vadd.f32 %v11607_v63, %v7087_v39  ;;  %v10074_v45 = vpop.f32.mrb[132].mxu1 }
0x3537   :  { %v7090_v3 = vmul.f32 0.35355338, %v10074_v45  ;;  %v7058_v46 = vpop.f32.mrb[133].mxu1  ;;  %v7106_v53 = vsel %vm2536_vm6, %v7096_v57, -inf }
0x3538   :  { %v7089_v48 = vmul.f32 0.35355338, %v7058_v46  ;;  %7107 = vmax.xlane.f32.xlu0 %v7106_v53  ;;  %v7103_v37 = vsel %vm2536_vm6, %v7095_v34, -inf  ;;  %v11613_v53 = vld [vmem:[%s14439_s9 + $0x30] sm:$0xff] }
0x3539   :  { %v7098_v41 = vadd.f32 %v11608_v40, %v7090_v3  ;;  %7104 = vmax.xlane.f32.xlu1 %v7103_v37  ;;  %v11612_v3 = vld [vmem:[%s14439_s9 + $0x38] sm:$0xff] }
0x353a   :  { %v7097_v27 = vadd.f32 %v11609_v16, %v7089_v48  ;;  %v10077_v24 = vpop.f32.mrb[134].mxu1 }
0x353b   :  { %v7092_v10 = vmul.f32 0.35355338, %v10077_v24  ;;  %v7068_v17 = vpop.f32.mrb[135].mxu1  ;;  %v7112_v29 = vsel %vm2536_vm6, %v7098_v41, -inf }
0x353c   :  { %v7091_v60 = vmul.f32 0.35355338, %v7068_v17  ;;  %v7109_v19 = vsel %vm2536_vm6, %v7097_v27, -inf }
0x353d   :  { %v7100_v51 = vadd.f32 %v11610_v38, %v7092_v10  ;;  %7113 = vmax.xlane.f32.xlu1 %v7112_v29  ;;  %7110 = vmax.xlane.f32.xlu0 %v7109_v19 }
0x353e   :  { %v7099_v36 = vadd.f32 %v11611_v42, %v7091_v60  ;;  %v10080_v52 = vpop.f32.mrb[136].mxu1 }
0x353f   :  { %v7094_v44 = vmul.f32 0.35355338, %v10080_v52  ;;  %v7078_v39 = vpop.f32.mrb[137].mxu1  ;;  %v7118_v54 = vsel %vm2536_vm6, %v7100_v51, -inf }
0x3540   :  { %v7093_v63 = vmul.f32 0.35355338, %v7078_v39  ;;  %v7115_v45 = vsel %vm2536_vm6, %v7099_v36, -inf }
0x3541   :  { %v7102_v46 = vadd.f32 %v11612_v3, %v7094_v44  ;;  %7119 = vmax.xlane.f32.xlu1 %v7118_v54  ;;  %7116 = vmax.xlane.f32.xlu0 %v7115_v45 }
0x3542   :  { %v7101_v48 = vadd.f32 %v11613_v53, %v7093_v63 }
0x3543   :  { %v7124_v37 = vsel %vm2536_vm6, %v7102_v46, -inf }
0x3544   :  { %v7121_v40 = vsel %vm2536_vm6, %v7101_v48, -inf }
0x3545   :  { %7125 = vmax.xlane.f32.xlu1 %v7124_v37  ;;  %7122 = vmax.xlane.f32.xlu0 %v7121_v40 }
0x355b   :  { %11179 = vrot.lane.b32.xlu0 %v13433_v47, %s11690_s22 }
0x35c5   :  { %v7108_v16 = vpop.xlane.xlu0 %7107 }
0x35c6   :  { %v7128_v24 = vsub.f32 %v7096_v57, %v7108_v16  ;;  %v7105_v10 = vpop.xlane.xlu1 %7104 }
0x35c7   :  { %v7127_v17 = vsub.f32 %v7095_v34, %v7105_v10 }
0x35c8   :  { %v7137_v29 = vmul.f32 1.442695, %v7128_v24 }
0x35c9   :  { %v7135_v60 = vmul.f32 1.442695, %v7127_v17 }
0x35ca   :  { %11518 = vpow2.f32 %v7137_v29  ;;  %v7114_v19 = vpop.xlane.xlu1 %7113  ;;  %v7111_v38 = vpop.xlane.xlu0 %7110 }
0x35cb   :  { %11520 = vpow2.f32 %v7135_v60  ;;  %v7130_v42 = vsub.f32 %v7098_v41, %v7114_v19  ;;  %v7129_v52 = vsub.f32 %v7097_v27, %v7111_v38 }
0x35cd   :  { %v7141_v44 = vmul.f32 1.442695, %v7130_v42  ;;  %v7139_v39 = vmul.f32 1.442695, %v7129_v52 }
0x35ce   :  { %v7120_v54 = vpop.xlane.xlu1 %7119  ;;  %v7117_v63 = vpop.xlane.xlu0 %7116 }
0x35cf   :  { %11522 = vpow2.f32 %v7141_v44  ;;  %v7132_v45 = vsub.f32 %v7100_v51, %v7120_v54  ;;  %v7131_v3 = vsub.f32 %v7099_v36, %v7117_v63 }
0x35d0   :  { %11524 = vpow2.f32 %v7139_v39 }
0x35d1   :  { %v7145_v47 = vmul.f32 1.442695, %v7132_v45  ;;  %v7143_v57 = vmul.f32 1.442695, %v7131_v3 }
0x35d2   :  { %v7126_v53 = vpop.xlane.xlu1 %7125  ;;  %v7123_v34 = vpop.xlane.xlu0 %7122 }
0x35d3   :  { %11526 = vpow2.f32 %v7145_v47  ;;  %v7134_v37 = vsub.f32 %v7102_v46, %v7126_v53  ;;  %v7133_v40 = vsub.f32 %v7101_v48, %v7123_v34 }
0x35d4   :  { %v13978_v16 = vpop.eup %11518  ;;  %11528 = vpow2.f32 %v7143_v57 }
0x35d5   :  { %v11521_v41 = vpop.eup %11520  ;;  %v7149_v27 = vmul.f32 1.442695, %v7134_v37  ;;  %v7147_v24 = vmul.f32 1.442695, %v7133_v40  ;;  %v7154_v10 = vsel %vm2536_vm6, %v13978_v16, 0.0 }
0x35d6   :  { %7155 = vadd.xlane.f32.xlu1 %v7154_v10  ;;  %v11180_v51 = vpop.permute.xlu0 %11179  ;;  %v7151_v36 = vsel %vm2536_vm6, %v11521_v41, 0.0 }
0x35d7   :  { %11530 = vpow2.f32 %v7149_v27  ;;  %v11182_v17 = vunpack.i.h.bf16 %v11180_v51  ;;  %v11181_v29 = vunpack.i.l.bf16 %v11180_v51  ;;  %7152 = vadd.xlane.f32.xlu0 %v7151_v36 }
0x35d8   :  { %11532 = vpow2.f32 %v7147_v24 }
0x35d9   :  { %v13983_v60 = vpop.eup %11522  ;;  %v10719_v46 = vpack.c.bf16 %v11182_v17, %v11181_v29 }
0x35da   :  { %v13985_v48 = vpop.eup %11524  ;;  %v7160_v19 = vsel %vm2536_vm6, %v13983_v60, 0.0 }
0x35db   :  { %7161 = vadd.xlane.f32.xlu1 %v7160_v19  ;;  %v7157_v38 = vsel %vm2536_vm6, %v13985_v48, 0.0  ;;  %10720 = vmatprep.subr.bf16.mxu0 %v10719_v46  ;;  %v298_v19 = vld [vmem:[%s14441_s14 + $0x8] sm:$0xff] }
0x35dc   :  { %7158 = vadd.xlane.f32.xlu0 %v7157_v38  ;;  %10722 = vmatpush3.bf16.msra.mxu0 %v10719_v46  ;;  %v299_v38 = vld [vmem:[%s14441_s14 + $0x10] sm:$0xff] }
0x35dd   :  { %v13991_v42 = vpop.eup %11526 }
0x35de   :  { %v13993_v52 = vpop.eup %11528  ;;  %v7166_v44 = vsel %vm2536_vm6, %v13991_v42, 0.0 }
0x35df   :  { %7167 = vadd.xlane.f32.xlu1 %v7166_v44  ;;  %v7163_v39 = vsel %vm2536_vm6, %v13993_v52, 0.0  ;;  %v300_v44 = vld [vmem:[%s14441_s14 + $0x18] sm:$0xff] }
0x35e0   :  { %7164 = vadd.xlane.f32.xlu0 %v7163_v39  ;;  %v10739_v39 = vpack.c.bf16 %v300_v44, %v299_v38 }
0x35e1   :  { %v13999_v54 = vpop.eup %11530 }
0x35e2   :  { %v7172_v63 = vsel %vm2536_vm6, %v13999_v54, 0.0  ;;  %v14003_v45 = vpop.eup %11532 }
0x35e3   :  { %7173 = vadd.xlane.f32.xlu1 %v7172_v63  ;;  %v7169_v3 = vsel %vm2536_vm6, %v14003_v45, 0.0 }
0x35e7   :  { %7170 = vadd.xlane.f32.xlu1 %v7169_v3 }
0x35f6   :  { %11189 = vrot.lane.b32.xlu0 %v13453_v5, %s11690_s22 }
0x35f8   :  { %11184 = vrot.lane.b32.xlu1 %v13443_v1, %s11690_s22 }
0x35fa   :  { %11194 = vrot.lane.b32.xlu0 %v13465_v2, %s11690_s22 }
0x35fc   :  { %7352 = vrot.lane.b32.xlu1 %v13811_v12, %s11691_s23 }
0x35fe   :  { %7354 = vrot.lane.b32.xlu0 %v13809_v11, %s11691_s23 }
0x3600   :  { %7384 = vrot.lane.b32.xlu1 %v13946_v28, %s11692_s26 }
0x3602   :  { %7386 = vrot.lane.b32.xlu0 %v13944_v15, %s11692_s26 }
0x3604   :  { %7356 = vrot.lane.b32.xlu1 %v13815_v62, %s11691_s23 }
0x3606   :  { %7358 = vrot.lane.b32.xlu0 %v13813_v23, %s11691_s23 }
0x3608   :  { %7388 = vrot.lane.b32.xlu1 %v13950_v59, %s11692_s26 }
0x360a   :  { %7390 = vrot.lane.b32.xlu0 %v13948_v14, %s11692_s26 }
0x360c   :  { %7360 = vrot.lane.b32.xlu1 %v13819_v49, %s11691_s23 }
0x360e   :  { %7362 = vrot.lane.b32.xlu0 %v13817_v9, %s11691_s23 }
0x3610   :  { %7392 = vrot.lane.b32.xlu1 %v13954_v56, %s11692_s26 }
0x3612   :  { %7394 = vrot.lane.b32.xlu0 %v13952_v43, %s11692_s26 }
0x3614   :  { %7364 = vrot.lane.b32.xlu1 %v13823_v61, %s11691_s23 }
0x3616   :  { %7366 = vrot.lane.b32.xlu0 %v13821_v26, %s11691_s23 }
0x3618   :  { %7396 = vrot.lane.b32.xlu1 %v13958_v7, %s11692_s26 }
0x361a   :  { %7398 = vrot.lane.b32.xlu0 %v13956_v13, %s11692_s26 }
0x3663   :  { %v7156_v1 = vpop.xlane.xlu1 %7155 }
0x3664   :  { %v7153_v5 = vpop.xlane.xlu0 %7152 }
0x3665   :  { %11534 = vrcp.f32 %v7153_v5 }
0x3666   :  { %11536 = vrcp.f32 %v7156_v1 }
0x3668   :  { %v7162_v2 = vpop.xlane.xlu1 %7161 }
0x3669   :  { %v7159_v11 = vpop.xlane.xlu0 %7158 }
0x366a   :  { %11538 = vrcp.f32 %v7159_v11 }
0x366b   :  { %11540 = vrcp.f32 %v7162_v2 }
0x366c   :  { %v7168_v12 = vpop.xlane.xlu1 %7167 }
0x366d   :  { %v7165_v23 = vpop.xlane.xlu0 %7164 }
0x366e   :  { %11542 = vrcp.f32 %v7165_v23 }
0x366f   :  { %v11535_v62 = vpop.eup %11534  ;;  %11544 = vrcp.f32 %v7168_v12 }
0x3670   :  { %v7174_v9 = vpop.xlane.xlu1 %7173  ;;  %v7176_v49 = vmul.f32 %v11535_v62, %v11521_v41  ;;  %v11537_v34 = vpop.eup %11536 }
0x3671   :  { %v11190_v61 = vpop.permute.xlu0 %11189  ;;  %v7178_v40 = vmul.f32 %v11537_v34, %v13978_v16 }
0x3672   :  { %10097 = vmatprep.mubr.msk.f32.mxu0 %vm2536_vm6, %v7176_v49  ;;  %v11192_v28 = vunpack.i.h.bf16 %v11190_v61  ;;  %v11191_v14 = vunpack.i.l.bf16 %v11190_v61 }
0x3674   :  { %v7171_v26 = vpop.xlane.xlu1 %7170  ;;  %v10727_v7 = vpack.c.bf16 %v11192_v28, %v11191_v14  ;;  %v11539_v37 = vpop.eup %11538 }
0x3675   :  { %v11195_v56 = vpop.permute.xlu0 %11194  ;;  %11546 = vrcp.f32 %v7171_v26  ;;  %v11541_v41 = vpop.eup %11540  ;;  %v7180_v27 = vmul.f32 %v11539_v37, %v13985_v48  ;;  %v297_v48 = vld [vmem:[%s14441_s14] sm:$0xff] }
0x3676   :  { %v11197_v47 = vunpack.i.h.bf16 %v11195_v56  ;;  %v11196_v57 = vunpack.i.l.bf16 %v11195_v56  ;;  %11548 = vrcp.f32 %v7174_v9  ;;  %v7182_v10 = vmul.f32 %v11541_v41, %v13983_v60 }
0x3678   :  { %v11185_v15 = vpop.permute.xlu1 %11184  ;;  %v10731_v53 = vpack.c.bf16 %v11197_v47, %v11196_v57  ;;  %v11543_v24 = vpop.eup %11542 }
0x3679   :  { %v11187_v59 = vunpack.i.h.bf16 %v11185_v15  ;;  %v11186_v43 = vunpack.i.l.bf16 %v11185_v15  ;;  %v11545_v51 = vpop.eup %11544  ;;  %v7184_v36 = vmul.f32 %v11543_v24, %v13993_v52  ;;  %v10735_v52 = vpack.c.bf16 %v298_v19, %v297_v48  ;;  %v7355_v11 = vpop.permute.xlu0 %7354 }
0x367a   :  { %v7186_v16 = vmul.f32 %v11545_v51, %v13991_v42 }
0x367b   :  { %v10723_v13 = vpack.c.bf16 %v11187_v59, %v11186_v43 }
0x367c   :  { %v7353_v12 = vpop.permute.xlu1 %7352 }
0x367d   :  { %10724 = vmatprep.subr.bf16.mxu0 %v10723_v13  ;;  %v7387_v23 = vpop.permute.xlu0 %7386  ;;  %v7440_v47 = vsel %vm1334_vm2, %v13663_v18, %v7353_v12 }
0x367e   :  { %10726 = vmatpush3.bf16.msra.mxu0 %v10723_v13 }
0x367f   :  { %10728 = vmatprep.subr.bf16.mxu0 %v10727_v7  ;;  %v11547_v17 = vpop.eup %11546 }
0x3680   :  { %v11549_v29 = vpop.eup %11548  ;;  %v7188_v46 = vmul.f32 %v11547_v17, %v14003_v45  ;;  %v7385_v62 = vpop.permute.xlu1 %7384 }
0x3681   :  { %v7190_v60 = vmul.f32 %v11549_v29, %v13999_v54  ;;  %v7359_v9 = vpop.permute.xlu0 %7358  ;;  %v7448_v34 = vsel %vm2012_vm3, %v7440_v47, %v7385_v62 }
0x3682   :  { %10730 = vmatpush3.bf16.msra.mxu0 %v10727_v7 }
0x3683   :  { %10732 = vmatprep.subr.bf16.mxu0 %v10731_v53 }
0x3684   :  { %v7357_v49 = vpop.permute.xlu1 %7356 }
0x3685   :  { %v7391_v61 = vpop.permute.xlu0 %7390  ;;  %v7442_v24 = vsel %vm1334_vm2, %v13667_v55, %v7357_v49 }
0x3686   :  { %10734 = vmatpush3.bf16.msra.mxu0 %v10731_v53  ;;  %v7441_v53 = vsel %vm1334_vm2, %v13661_v30, %v7355_v11  ;;  %v7443_v30 = vsel %vm1334_vm2, %v13665_v22, %v7359_v9 }
0x3687   :  { %10736 = vmatprep.subr.bf16.mxu0 %v10735_v52 }
0x3688   :  { %v7389_v26 = vpop.permute.xlu1 %7388 }
0x3689   :  { %10098 = vmatmul.mubr.msk.f32.vlgmr.msra.gmra.mrb[122].mxu0 %vm2536_vm6, %v7178_v40  ;;  %v7363_v15 = vpop.permute.xlu0 %7362  ;;  %v7449_v40 = vsel %vm2012_vm3, %v7441_v53, %v7387_v23 }
0x368a   :  { %10100 = vmatprep.mubr.msk.f32.mxu0 %vm2536_vm6, %v7180_v27  ;;  %10738 = vmatpush3.bf16.msra.mxu0 %v10735_v52  ;;  %v7445_v22 = vsel %vm1334_vm2, %v13669_v32, %v7363_v15 }
0x368b   :  { %10740 = vmatprep.subr.bf16.mxu0 %v10739_v39 }
0x368c   :  { %v7361_v28 = vpop.permute.xlu1 %7360 }
0x368d   :  { %10101 = vmatmul.mubr.msk.f32.gmra.mrb[124].mxu0 %vm2536_vm6, %v7182_v10  ;;  %v7395_v14 = vpop.permute.xlu0 %7394  ;;  %v7450_v10 = vsel %vm2012_vm3, %v7442_v24, %v7389_v26  ;;  %v7444_v55 = vsel %vm1334_vm2, %v13671_v21, %v7361_v28 }
0x368e   :  { %10103 = vmatprep.mubr.msk.f32.mxu0 %vm2536_vm6, %v7184_v36  ;;  %10742 = vmatpush3.bf16.msra.mxu0 %v10739_v39  ;;  %v7451_v36 = vsel %vm2012_vm3, %v7443_v30, %v7391_v61  ;;  %v7453_v48 = vsel %vm2012_vm3, %v7445_v22, %v7395_v14 }
0x3690   :  { %v7393_v59 = vpop.permute.xlu1 %7392 }
0x3691   :  { %10104 = vmatmul.mubr.msk.f32.gmra.mrb[126].mxu0 %vm2536_vm6, %v7186_v16  ;;  %v7367_v43 = vpop.permute.xlu0 %7366 }
0x3692   :  { %10106 = vmatprep.mubr.msk.f32.mxu0 %vm2536_vm6, %v7188_v46  ;;  %v7452_v46 = vsel %vm2012_vm3, %v7444_v55, %v7393_v59  ;;  %v7447_v32 = vsel %vm1334_vm2, %v13673_v4, %v7367_v43 }
0x3694   :  { %v7365_v56 = vpop.permute.xlu1 %7364 }
0x3695   :  { %10107 = vmatmul.mubr.msk.f32.gmra.mrb[128].mxu0 %vm2536_vm6, %v7190_v60  ;;  %v7399_v13 = vpop.permute.xlu0 %7398  ;;  %v7446_v21 = vsel %vm1334_vm2, %v13675_v35, %v7365_v56  ;;  %v8683_v35 = vld [vmem:[%s14442_s19] ss:$0 sm:$0xff] }
0x3698   :  { %v7397_v7 = vpop.permute.xlu1 %7396 }
0x3699   :  { %v7454_v44 = vsel %vm2012_vm3, %v7446_v21, %v7397_v7 }
0x375c   :  { %v10099_v42 = vpop.f32.mrb[122].mxu0 }
0x375d   :  { %7418 = vrot.lane.b32.xlu0 %v10099_v42, %s11693_s28  ;;  %v7305_v63 = vpop.f32.mrb[123].mxu0  ;;  %v7455_v42 = vsel %vm2012_vm3, %v7447_v32, %v7399_v13 }
0x375e   :  { %7416 = vrot.lane.b32.xlu1 %v7305_v63, %s11693_s28 }
0x3760   :  { %v10102_v45 = vpop.f32.mrb[124].mxu0 }
0x3761   :  { %7422 = vrot.lane.b32.xlu0 %v10102_v45, %s11693_s28  ;;  %v7315_v54 = vpop.f32.mrb[125].mxu0 }
0x3762   :  { %7420 = vrot.lane.b32.xlu1 %v7315_v54, %s11693_s28 }
0x3764   :  { %v10105_v3 = vpop.f32.mrb[126].mxu0 }
0x3765   :  { %7426 = vrot.lane.b32.xlu0 %v10105_v3, %s11693_s28  ;;  %v7325_v1 = vpop.f32.mrb[127].mxu0 }
0x3766   :  { %7424 = vrot.lane.b32.xlu1 %v7325_v1, %s11693_s28 }
0x3768   :  { %v10108_v5 = vpop.f32.mrb[128].mxu0 }
0x3769   :  { %7430 = vrot.lane.b32.xlu0 %v10108_v5, %s11693_s28  ;;  %v7335_v2 = vpop.f32.mrb[129].mxu0 }
0x376a   :  { %7428 = vrot.lane.b32.xlu1 %v7335_v2, %s11693_s28 }
0x37cf   :  { %v7419_v57 = vpop.permute.xlu0 %7418 }
0x37d0   :  { %v7417_v37 = vpop.permute.xlu1 %7416  ;;  %v7457_v27 = vsel %vm2014_vm4, %v7449_v40, %v7419_v57 }
0x37d1   :  { %v7456_v41 = vsel %vm2014_vm4, %v7448_v34, %v7417_v37 }
0x37d2   :  { %10117 = vmatprep.mubr.msk.f32.mxu0 %vm322_vm0, %v7456_v41 }
0x37d3   :  { %10118 = vmatmul.mubr.msk.f32.vlgmr.msra.gmra.mrb[130].mxu0 %vm322_vm0, %v7457_v27  ;;  %v7423_v18 = vpop.permute.xlu0 %7422 }
0x37d4   :  { %v7421_v51 = vpop.permute.xlu1 %7420  ;;  %v7459_v16 = vsel %vm2014_vm4, %v7451_v36, %v7423_v18 }
0x37d5   :  { %v7458_v17 = vsel %vm2014_vm4, %v7450_v10, %v7421_v51 }
0x37d6   :  { %10120 = vmatprep.mubr.msk.f32.mxu0 %vm322_vm0, %v7458_v17 }
0x37d7   :  { %10121 = vmatmul.mubr.msk.f32.gmra.mrb[132].mxu0 %vm322_vm0, %v7459_v16  ;;  %v7427_v29 = vpop.permute.xlu0 %7426 }
0x37d8   :  { %v7425_v60 = vpop.permute.xlu1 %7424  ;;  %v7461_v38 = vsel %vm2014_vm4, %v7453_v48, %v7427_v29 }
0x37d9   :  { %v7460_v19 = vsel %vm2014_vm4, %v7452_v46, %v7425_v60 }
0x37da   :  { %10123 = vmatprep.mubr.msk.f32.mxu0 %vm322_vm0, %v7460_v19 }
0x37db   :  { %10124 = vmatmul.mubr.msk.f32.gmra.mrb[134].mxu0 %vm322_vm0, %v7461_v38  ;;  %v7431_v52 = vpop.permute.xlu0 %7430 }
0x37dc   :  { %v7429_v39 = vpop.permute.xlu1 %7428  ;;  %v7463_v45 = vsel %vm2014_vm4, %v7455_v42, %v7431_v52 }
0x37dd   :  { %v7462_v63 = vsel %vm2014_vm4, %v7454_v44, %v7429_v39 }
0x37de   :  { %10126 = vmatprep.mubr.msk.f32.mxu0 %vm322_vm0, %v7462_v63 }
0x37df   :  { %10127 = vmatmul.mubr.msk.f32.gmra.mrb[136].mxu0 %vm322_vm0, %v7463_v45 }
0x38a6   :  { %v10119_v54 = vpop.f32.mrb[130].mxu0 }
0x38a7   :  { %v7566_v3 = vadd.f32 %v10119_v54, %v8683_v35  ;;  %v7560_v1 = vpop.f32.mrb[131].mxu0 }
0x38a8   :  { %v7561_v5 = vadd.f32 %v8683_v35, %v7560_v1 }
0x38a9   :  { %v7600_v4 = vadd.f32 %v7566_v3, %v13380_v31 }
0x38aa   :  { %v7599_v2 = vadd.f32 %v7561_v5, %v13382_v20  ;;  %v10122_v11 = vpop.f32.mrb[132].mxu0 }
0x38ab   :  { %v7576_v12 = vadd.f32 %v10122_v11, %v8683_v35  ;;  %v7570_v23 = vpop.f32.mrb[133].mxu0  ;;  %v7610_v62 = vsel %vm322_vm0, %v7600_v4, 0.0 }
0x38ac   :  { %v7571_v9 = vadd.f32 %v8683_v35, %v7570_v23  ;;  %7611 = vadd.xlane.f32.xlu0 %v7610_v62  ;;  %v7607_v49 = vsel %vm322_vm0, %v7599_v2, 0.0  ;;  %v311_v62 = vld [vmem:[%s11884_s17] sm:$0xff] }
0x38ad   :  { %v7602_v61 = vadd.f32 %v7576_v12, %v13392_v33  ;;  %7608 = vadd.xlane.f32.xlu1 %v7607_v49  ;;  %v313_v49 = vld [vmem:[%s11884_s17 + $0x10] sm:$0xff] }
0x38ae   :  { %v7601_v26 = vadd.f32 %v7571_v9, %v13394_v0  ;;  %v10125_v15 = vpop.f32.mrb[134].mxu0  ;;  %v312_v9 = vld [vmem:[%s11884_s17 + $0x8] sm:$0xff] }
0x38af   :  { %v7586_v28 = vadd.f32 %v10125_v15, %v8683_v35  ;;  %v7580_v14 = vpop.f32.mrb[135].mxu0  ;;  %v7616_v31 = vsel %vm322_vm0, %v7602_v61, 0.0 }
0x38b0   :  { %v7581_v20 = vadd.f32 %v8683_v35, %v7580_v14  ;;  %v7613_v59 = vsel %vm322_vm0, %v7601_v26, 0.0 }
0x38b1   :  { %v7604_v43 = vadd.f32 %v7586_v28, %v13404_v50  ;;  %7614 = vadd.xlane.f32.xlu0 %v7613_v59  ;;  %7617 = vadd.xlane.f32.xlu1 %v7616_v31 }
0x38b2   :  { %v7603_v56 = vadd.f32 %v7581_v20, %v13406_v8  ;;  %v10128_v13 = vpop.f32.mrb[136].mxu0 }
0x38b3   :  { %v7596_v7 = vadd.f32 %v10128_v13, %v8683_v35  ;;  %v7590_v33 = vpop.f32.mrb[137].mxu0  ;;  %v7622_v47 = vsel %vm322_vm0, %v7604_v43, 0.0 }
0x38b4   :  { %v7591_v0 = vadd.f32 %v8683_v35, %v7590_v33  ;;  %v7619_v57 = vsel %vm322_vm0, %v7603_v56, 0.0 }
0x38b5   :  { %v7606_v53 = vadd.f32 %v7596_v7, %v13416_v6  ;;  %7620 = vadd.xlane.f32.xlu0 %v7619_v57  ;;  %7623 = vadd.xlane.f32.xlu1 %v7622_v47 }
0x38b6   :  { %v7605_v34 = vadd.f32 %v7591_v0, %v13418_v25 }
0x38b7   :  { %v7628_v50 = vsel %vm322_vm0, %v7606_v53, 0.0 }
0x38b8   :  { %v7625_v37 = vsel %vm322_vm0, %v7605_v34, 0.0 }
0x38b9   :  { %7626 = vadd.xlane.f32.xlu0 %v7625_v37  ;;  %7629 = vadd.xlane.f32.xlu1 %v7628_v50 }
0x3939   :  { %v7612_v8 = vpop.xlane.xlu0 %7611 }
0x393a   :  { %v7633_v40 = vmul.f32 0.03125, %v7612_v8  ;;  %v7609_v41 = vpop.xlane.xlu1 %7608 }
0x393b   :  { %v7632_v27 = vmul.f32 0.03125, %v7609_v41 }
0x393c   :  { %v14129_v24 = vsub.f32 %v7600_v4, %v7633_v40 }
0x393d   :  { %v14131_v18 = vsub.f32 %v7599_v2, %v7632_v27 }
0x393e   :  { %v7615_v30 = vpop.xlane.xlu0 %7614  ;;  %v7618_v6 = vpop.xlane.xlu1 %7617  ;;  %v7649_v10 = vmul.f32 %v14129_v24, %v14129_v24 }
0x393f   :  { %v7634_v25 = vmul.f32 0.03125, %v7615_v30  ;;  %v7635_v51 = vmul.f32 0.03125, %v7618_v6  ;;  %v7648_v36 = vmul.f32 %v14131_v18, %v14131_v18 }
0x3940   :  { %v7659_v17 = vsel %vm322_vm0, %v7649_v10, 0.0  ;;  %v8692_v10 = vld [vmem:[%s14443_s24] ss:$0 sm:$0xff] }
0x3941   :  { %v14138_v16 = vsub.f32 %v7601_v26, %v7634_v25  ;;  %v14140_v55 = vsub.f32 %v7602_v61, %v7635_v51  ;;  %7660 = vadd.xlane.f32.xlu1 %v7659_v17  ;;  %v7656_v29 = vsel %vm322_vm0, %v7648_v36, 0.0  ;;  %v10751_v61 = vpack.c.bf16 %v312_v9, %v311_v62  ;;  %v314_v26 = vld [vmem:[%s11884_s17 + $0x18] sm:$0xff]  ;;  %s14444_s17 = sld [smem:[#allocation23_spill]] }
0x3942   :  { %v7621_v22 = vpop.xlane.xlu0 %7620  ;;  %7657 = vadd.xlane.f32.xlu0 %v7656_v29  ;;  %v7624_v46 = vpop.xlane.xlu1 %7623  ;;  %v10755_v15 = vpack.c.bf16 %v314_v26, %v313_v49 }
0x3943   :  { %v7636_v60 = vmul.f32 0.03125, %v7621_v22  ;;  %v7637_v48 = vmul.f32 0.03125, %v7624_v46  ;;  %v7650_v19 = vmul.f32 %v14138_v16, %v14138_v16  ;;  %v7651_v38 = vmul.f32 %v14140_v55, %v14140_v55  ;;  %10752 = vmatprep.subr.bf16.mxu0 %v10751_v61 }
0x3944   :  { %10754 = vmatpush3.bf16.msra.mxu0 %v10751_v61 }
0x3945   :  { %v14147_v21 = vsub.f32 %v7603_v56, %v7636_v60  ;;  %v14149_v52 = vsub.f32 %v7604_v43, %v7637_v48  ;;  %v7662_v32 = vsel %vm322_vm0, %v7650_v19, 0.0  ;;  %v7665_v44 = vsel %vm322_vm0, %v7651_v38, 0.0  ;;  %10756 = vmatprep.subr.bf16.mxu0 %v10755_v15 }
0x3946   :  { %v7627_v39 = vpop.xlane.xlu0 %7626  ;;  %7663 = vadd.xlane.f32.xlu0 %v7662_v32  ;;  %7666 = vadd.xlane.f32.xlu1 %v7665_v44  ;;  %v7630_v42 = vpop.xlane.xlu1 %7629  ;;  %v8161_v32 = vld [vmem:[#allocation2 + $0x18] sm:$0xff] }
0x3947   :  { %v7638_v63 = vmul.f32 0.03125, %v7627_v39  ;;  %v7639_v45 = vmul.f32 0.03125, %v7630_v42  ;;  %v7652_v35 = vmul.f32 %v14147_v21, %v14147_v21  ;;  %v7653_v54 = vmul.f32 %v14149_v52, %v14149_v52  ;;  %v8693_v22 = vld [vmem:[%s14444_s17] ss:$0 sm:$0xff] }
0x3948   :  { %10758 = vmatpush3.bf16.msra.mxu0 %v10755_v15  ;;  %v8164_v15 = vld [vmem:[#allocation2 + $0x30] sm:$0xff] }
0x3949   :  { %v14157_v3 = vsub.f32 %v7605_v34, %v7638_v63  ;;  %v14159_v1 = vsub.f32 %v7606_v53, %v7639_v45  ;;  %v7668_v5 = vsel %vm322_vm0, %v7652_v35, 0.0  ;;  %v7671_v4 = vsel %vm322_vm0, %v7653_v54, 0.0 }
0x394a   :  { %7669 = vadd.xlane.f32.xlu0 %v7668_v5  ;;  %7672 = vadd.xlane.f32.xlu1 %v7671_v4 }
0x394b   :  { %v7654_v2 = vmul.f32 %v14157_v3, %v14157_v3  ;;  %v7655_v11 = vmul.f32 %v14159_v1, %v14159_v1 }
0x394d   :  { %v7674_v12 = vsel %vm322_vm0, %v7654_v2, 0.0  ;;  %v7677_v23 = vsel %vm322_vm0, %v7655_v11, 0.0  ;;  %v8162_v11 = vld [vmem:[#allocation2 + $0x20] sm:$0xff] }
0x394e   :  { %7675 = vadd.xlane.f32.xlu0 %v7674_v12  ;;  %7678 = vadd.xlane.f32.xlu1 %v7677_v23 }
0x39ce   :  { %v7661_v28 = vpop.xlane.xlu1 %7660 }
0x39cf   :  { %v7681_v14 = vmul.f32 0.03125, %v7661_v28  ;;  %v7658_v31 = vpop.xlane.xlu0 %7657 }
0x39d0   :  { %v7680_v20 = vmul.f32 0.03125, %v7658_v31 }
0x39d1   :  { %v7689_v59 = vadd.f32 1e-05, %v7681_v14 }
0x39d2   :  { %v7688_v43 = vadd.f32 1e-05, %v7680_v20 }
0x39d3   :  { %11550 = vrsqrt.f32 %v7689_v59  ;;  %v7664_v56 = vpop.xlane.xlu0 %7663  ;;  %v7667_v13 = vpop.xlane.xlu1 %7666 }
0x39d4   :  { %11552 = vrsqrt.f32 %v7688_v43  ;;  %v7682_v7 = vmul.f32 0.03125, %v7664_v56  ;;  %v7683_v33 = vmul.f32 0.03125, %v7667_v13 }
0x39d6   :  { %v7690_v47 = vadd.f32 1e-05, %v7682_v7  ;;  %v7691_v0 = vadd.f32 1e-05, %v7683_v33 }
0x39d7   :  { %v7670_v57 = vpop.xlane.xlu0 %7669  ;;  %v7673_v53 = vpop.xlane.xlu1 %7672 }
0x39d8   :  { %11554 = vrsqrt.f32 %v7690_v47  ;;  %v7684_v34 = vmul.f32 0.03125, %v7670_v57  ;;  %v7685_v50 = vmul.f32 0.03125, %v7673_v53 }
0x39d9   :  { %11556 = vrsqrt.f32 %v7691_v0 }
0x39da   :  { %v7692_v37 = vadd.f32 1e-05, %v7684_v34  ;;  %v7693_v8 = vadd.f32 1e-05, %v7685_v50 }
0x39db   :  { %v7676_v40 = vpop.xlane.xlu0 %7675  ;;  %v7679_v41 = vpop.xlane.xlu1 %7678 }
0x39dc   :  { %11558 = vrsqrt.f32 %v7692_v37  ;;  %v7686_v27 = vmul.f32 0.03125, %v7676_v40  ;;  %v7687_v30 = vmul.f32 0.03125, %v7679_v41 }
0x39dd   :  { %v11551_v6 = vpop.eup %11550  ;;  %11560 = vrsqrt.f32 %v7693_v8 }
0x39de   :  { %v11553_v25 = vpop.eup %11552  ;;  %v7705_v51 = vmul.f32 %v11551_v6, %v14129_v24  ;;  %v7694_v36 = vadd.f32 1e-05, %v7686_v27  ;;  %v7695_v17 = vadd.f32 1e-05, %v7687_v30 }
0x39df   :  { %v7704_v29 = vmul.f32 %v11553_v25, %v14131_v18  ;;  %v8160_v18 = vld [vmem:[#allocation2 + $0x10] sm:$0xff] }
0x39e0   :  { %v7719_v46 = vmul.f32 %v8692_v10, %v7705_v51  ;;  %11562 = vrsqrt.f32 %v7694_v36  ;;  %v10763_v45 = vpack.c.bf16 %v8161_v32, %v8160_v18 }
0x39e1   :  { %11564 = vrsqrt.f32 %v7695_v17  ;;  %v7718_v60 = vmul.f32 %v8692_v10, %v7704_v29 }
0x39e2   :  { %v11555_v48 = vpop.eup %11554  ;;  %v14180_v39 = vadd.f32 %v8693_v22, %v7719_v46 }
0x39e3   :  { %v11557_v19 = vpop.eup %11556  ;;  %v14177_v38 = vadd.f32 %v8693_v22, %v7718_v60  ;;  %v7706_v44 = vmul.f32 %v11555_v48, %v14138_v16  ;;  %v8163_v16 = vld [vmem:[#allocation2 + $0x28] sm:$0xff] }
0x39e4   :  { %v7707_v24 = vmul.f32 %v11557_v19, %v14140_v55 }
0x39e5   :  { %10137 = vmatprep.mubr.msk.f32.mxu1 %vm322_vm0, %v14177_v38  ;;  %v7720_v42 = vmul.f32 %v8692_v10, %v7706_v44 }
0x39e6   :  { %v11559_v63 = vpop.eup %11558  ;;  %10138 = vmatmul.mubr.msk.f32.vlgmr.msra.gmra.mrb[138].mxu1 %vm322_vm0, %v14180_v39  ;;  %v7721_v35 = vmul.f32 %v8692_v10, %v7707_v24  ;;  %v8703_v24 = vld [vmem:[%s11889_s13] ss:$0 sm:$0xff]  ;;  %s14446_s13 = sld [smem:[#allocation24_spill]] }
0x39e7   :  { %v11561_v54 = vpop.eup %11560  ;;  %10762 = vmatpush3.bf16.msra.mxu1 %v13937_v58  ;;  %v14188_v5 = vadd.f32 %v8693_v22, %v7720_v42  ;;  %v7708_v4 = vmul.f32 %v11559_v63, %v14147_v21  ;;  %v10767_v58 = vpack.c.bf16 %v8163_v16, %v8162_v11  ;;  %v8165_v21 = vld [vmem:[#allocation2 + $0x38] sm:$0xff] }
0x39e8   :  { %10764 = vmatprep.subr.bf16.mxu1 %v10763_v45  ;;  %v14191_v55 = vadd.f32 %v8693_v22, %v7721_v35  ;;  %v7709_v2 = vmul.f32 %v11561_v54, %v14149_v52  ;;  %v10771_v14 = vpack.c.bf16 %v8165_v21, %v8164_v15 }
0x39e9   :  { %10140 = vmatprep.mubr.msk.f32.mxu1 %vm322_vm0, %v14188_v5  ;;  %v7722_v12 = vmul.f32 %v8692_v10, %v7708_v4 }
0x39ea   :  { %v11563_v23 = vpop.eup %11562  ;;  %10141 = vmatmul.mubr.msk.f32.gmra.mrb[140].mxu1 %vm322_vm0, %v14191_v55  ;;  %v7723_v62 = vmul.f32 %v8692_v10, %v7709_v2 }
0x39eb   :  { %v11565_v9 = vpop.eup %11564  ;;  %10766 = vmatpush3.bf16.msra.mxu1 %v10763_v45  ;;  %v14198_v49 = vadd.f32 %v8693_v22, %v7722_v12  ;;  %v7710_v61 = vmul.f32 %v11563_v23, %v14157_v3 }
0x39ec   :  { %10768 = vmatprep.subr.bf16.mxu1 %v10767_v58  ;;  %v14201_v52 = vadd.f32 %v8693_v22, %v7723_v62  ;;  %v7711_v26 = vmul.f32 %v11565_v9, %v14159_v1  ;;  %v8694_v1 = vld [vmem:[%s11879_s3] ss:$0 sm:$0xff]  ;;  %s14445_s3 = sld [smem:[#allocation8_spill]] }
0x39ed   :  { %10143 = vmatprep.mubr.msk.f32.mxu1 %vm322_vm0, %v14198_v49  ;;  %v7724_v28 = vmul.f32 %v8692_v10, %v7710_v61 }
0x39ee   :  { %10144 = vmatmul.mubr.msk.f32.gmra.mrb[142].mxu1 %vm322_vm0, %v14201_v52  ;;  %v7725_v31 = vmul.f32 %v8692_v10, %v7711_v26 }
0x39ef   :  { %10770 = vmatpush3.bf16.msra.mxu1 %v10767_v58  ;;  %v14208_v20 = vadd.f32 %v8693_v22, %v7724_v28 }
0x39f0   :  { %10772 = vmatprep.subr.bf16.mxu1 %v10771_v14  ;;  %v14210_v3 = vadd.f32 %v8693_v22, %v7725_v31 }
0x39f1   :  { %10146 = vmatprep.mubr.msk.f32.mxu1 %vm322_vm0, %v14208_v20 }
0x39f2   :  { %10147 = vmatmul.mubr.msk.f32.gmra.mrb[144].mxu1 %vm322_vm0, %v14210_v3  ;;  %v191_v29 = vld [vmem:[%s14445_s3] sm:$0xff]  ;;  %v192_v22 = vld [vmem:[%s14445_s3 + $0x8] sm:$0xff]  ;;  %v193_v46 = vld [vmem:[%s14445_s3 + $0x10] sm:$0xff] }
0x39f3   :  { %10774 = vmatpush3.bf16.msra.mxu1 %v10771_v14  ;;  %10185 = vmatprep.mubr.msk.f32.mxu1 %vm2536_vm6, %v191_v29  ;;  %v194_v60 = vld [vmem:[%s14445_s3 + $0x18] sm:$0xff]  ;;  %v195_v48 = vld [vmem:[%s14445_s3 + $0x20] sm:$0xff]  ;;  %v196_v19 = vld [vmem:[%s14445_s3 + $0x28] sm:$0xff] }
0x39f4   :  { %v197_v32 = vld [vmem:[%s14445_s3 + $0x30] sm:$0xff]  ;;  %v198_v44 = vld [vmem:[%s14445_s3 + $0x38] sm:$0xff] }
0x39f6   :  { %10186 = vmatmul.mubr.msk.f32.vlgmr.msra.gmra.mrb[146].mxu1 %vm2536_vm6, %v192_v22 }
0x39f7   :  { %10188 = vmatprep.mubr.msk.f32.mxu1 %vm2536_vm6, %v193_v46 }
0x39fa   :  { %10189 = vmatmul.mubr.msk.f32.gmra.mrb[148].mxu1 %vm2536_vm6, %v194_v60 }
0x39fb   :  { %10191 = vmatprep.mubr.msk.f32.mxu1 %vm2536_vm6, %v195_v48 }
0x39fe   :  { %10192 = vmatmul.mubr.msk.f32.gmra.mrb[150].mxu1 %vm2536_vm6, %v196_v19 }
0x39ff   :  { %10194 = vmatprep.mubr.msk.f32.mxu1 %vm2536_vm6, %v197_v32 }
0x3a02   :  { %10195 = vmatmul.mubr.msk.f32.gmra.mrb[152].mxu1 %vm2536_vm6, %v198_v44 }
0x3ab9   :  { %v10139_v59 = vpop.f32.mrb[138].mxu1 }
0x3aba   :  { %v7842_v43 = vadd.f32 %v10139_v59, %v8694_v1  ;;  %v7836_v56 = vpop.f32.mrb[139].mxu1 }
0x3abb   :  { %v7837_v13 = vadd.f32 %v8694_v1, %v7836_v56 }
0x3abc   :  { %v7876_v47 = vmax.f32 %v7842_v43, 0.0 }
0x3abd   :  { %v7875_v7 = vmax.f32 %v7837_v13, 0.0  ;;  %v10142_v33 = vpop.f32.mrb[140].mxu1 }
0x3abe   :  { %v7852_v0 = vadd.f32 %v10142_v33, %v8694_v1  ;;  %v7846_v57 = vpop.f32.mrb[141].mxu1 }
0x3abf   :  { %v7847_v53 = vadd.f32 %v8694_v1, %v7846_v57  ;;  %10157 = vmatprep.mubr.msk.f32.mxu0 %vm322_vm0, %v7875_v7 }
0x3ac0   :  { %10158 = vmatmul.mubr.msk.f32.vlgmr.msra.gmra.mrb[138].mxu0 %vm322_vm0, %v7876_v47  ;;  %v7878_v37 = vmax.f32 %v7852_v0, 0.0 }
0x3ac1   :  { %v7877_v34 = vmax.f32 %v7847_v53, 0.0  ;;  %v10145_v50 = vpop.f32.mrb[142].mxu1 }
0x3ac2   :  { %v7862_v8 = vadd.f32 %v10145_v50, %v8694_v1  ;;  %v7856_v40 = vpop.f32.mrb[143].mxu1 }
0x3ac3   :  { %v7857_v41 = vadd.f32 %v8694_v1, %v7856_v40  ;;  %10160 = vmatprep.mubr.msk.f32.mxu0 %vm322_vm0, %v7877_v34 }
0x3ac4   :  { %10161 = vmatmul.mubr.msk.f32.gmra.mrb[140].mxu0 %vm322_vm0, %v7878_v37  ;;  %v7880_v6 = vmax.f32 %v7862_v8, 0.0 }
0x3ac5   :  { %v7879_v27 = vmax.f32 %v7857_v41, 0.0  ;;  %v10148_v30 = vpop.f32.mrb[144].mxu1 }
0x3ac6   :  { %v7872_v10 = vadd.f32 %v10148_v30, %v8694_v1  ;;  %v7866_v25 = vpop.f32.mrb[145].mxu1 }
0x3ac7   :  { %v7867_v51 = vadd.f32 %v8694_v1, %v7866_v25  ;;  %10163 = vmatprep.mubr.msk.f32.mxu0 %vm322_vm0, %v7879_v27 }
0x3ac8   :  { %10164 = vmatmul.mubr.msk.f32.gmra.mrb[142].mxu0 %vm322_vm0, %v7880_v6  ;;  %v7882_v17 = vmax.f32 %v7872_v10, 0.0 }
0x3ac9   :  { %v7881_v36 = vmax.f32 %v7867_v51, 0.0 }
0x3acb   :  { %10166 = vmatprep.mubr.msk.f32.mxu0 %vm322_vm0, %v7881_v36 }
0x3acc   :  { %10167 = vmatmul.mubr.msk.f32.gmra.mrb[144].mxu0 %vm322_vm0, %v7882_v17 }
0x3b93   :  { %v10159_v18 = vpop.f32.mrb[138].mxu0 }
0x3b94   :  { %v7985_v42 = vadd.f32 %v10159_v18, %v8703_v24  ;;  %v7979_v63 = vpop.f32.mrb[139].mxu0 }
0x3b95   :  { %v7980_v45 = vadd.f32 %v8703_v24, %v7979_v63 }
0x3b96   :  { %v8019_v35 = vadd.f32 %v7985_v42, %v14180_v39 }
0x3b97   :  { %v8018_v54 = vadd.f32 %v7980_v45, %v14177_v38  ;;  %v10162_v16 = vpop.f32.mrb[140].mxu0 }
0x3b98   :  { %v7995_v4 = vadd.f32 %v10162_v16, %v8703_v24  ;;  %v7989_v2 = vpop.f32.mrb[141].mxu0  ;;  %v8029_v11 = vsel %vm322_vm0, %v8019_v35, 0.0 }
0x3b99   :  { %v7990_v12 = vadd.f32 %v8703_v24, %v7989_v2  ;;  %8030 = vadd.xlane.f32.xlu1 %v8029_v11  ;;  %v8026_v23 = vsel %vm322_vm0, %v8018_v54, 0.0  ;;  %v10187_v2 = vpop.f32.mrb[146].mxu1 }
0x3b9a   :  { %v8021_v58 = vadd.f32 %v7995_v4, %v14191_v55  ;;  %8027 = vadd.xlane.f32.xlu0 %v8026_v23  ;;  %v8256_v11 = vpop.f32.mrb[147].mxu1 }
0x3b9b   :  { %v8020_v62 = vadd.f32 %v7990_v12, %v14188_v5  ;;  %v10165_v9 = vpop.f32.mrb[142].mxu0  ;;  %v14298_v12 = vpop.f32.mrb[148].mxu1 }
0x3b9c   :  { %v8005_v21 = vadd.f32 %v10165_v9, %v8703_v24  ;;  %v7999_v61 = vpop.f32.mrb[143].mxu0  ;;  %v8035_v39 = vsel %vm322_vm0, %v8021_v58, 0.0  ;;  %v14300_v23 = vpop.f32.mrb[149].mxu1 }
0x3b9d   :  { %v8000_v38 = vadd.f32 %v8703_v24, %v7999_v61  ;;  %8036 = vadd.xlane.f32.xlu1 %v8035_v39  ;;  %v8032_v26 = vsel %vm322_vm0, %v8020_v62, 0.0 }
0x3b9e   :  { %v8023_v15 = vadd.f32 %v8005_v21, %v14201_v52  ;;  %8033 = vadd.xlane.f32.xlu0 %v8032_v26 }
0x3b9f   :  { %v8022_v28 = vadd.f32 %v8000_v38, %v14198_v49  ;;  %v10168_v14 = vpop.f32.mrb[144].mxu0 }
0x3ba0   :  { %v8015_v31 = vadd.f32 %v10168_v14, %v8703_v24  ;;  %v8009_v55 = vpop.f32.mrb[145].mxu0  ;;  %v8041_v1 = vsel %vm322_vm0, %v8023_v15, 0.0 }
0x3ba1   :  { %v8010_v5 = vadd.f32 %v8703_v24, %v8009_v55  ;;  %8042 = vadd.xlane.f32.xlu1 %v8041_v1  ;;  %v8038_v59 = vsel %vm322_vm0, %v8022_v28, 0.0 }
0x3ba2   :  { %v8025_v43 = vadd.f32 %v8015_v31, %v14210_v3  ;;  %8039 = vadd.xlane.f32.xlu0 %v8038_v59 }
0x3ba3   :  { %v8024_v56 = vadd.f32 %v8010_v5, %v14208_v20 }
0x3ba4   :  { %v8047_v13 = vsel %vm322_vm0, %v8025_v43, 0.0 }
0x3ba5   :  { %8048 = vadd.xlane.f32.xlu1 %v8047_v13  ;;  %v8044_v52 = vsel %vm322_vm0, %v8024_v56, 0.0 }
0x3ba6   :  { %8045 = vadd.xlane.f32.xlu0 %v8044_v52 }
0x3c26   :  { %v8031_v49 = vpop.xlane.xlu1 %8030 }
0x3c27   :  { %v8051_v7 = vmul.f32 0.03125, %v8031_v49  ;;  %v8028_v33 = vpop.xlane.xlu0 %8027 }
0x3c28   :  { %v8050_v47 = vmul.f32 0.03125, %v8028_v33 }
0x3c29   :  { %v14258_v0 = vsub.f32 %v8019_v35, %v8051_v7 }
0x3c2a   :  { %v14260_v57 = vsub.f32 %v8018_v54, %v8050_v47  ;;  %v8037_v53 = vpop.xlane.xlu1 %8036 }
0x3c2b   :  { %v8053_v34 = vmul.f32 0.03125, %v8037_v53  ;;  %v8034_v3 = vpop.xlane.xlu0 %8033  ;;  %v8067_v20 = vmul.f32 %v14258_v0, %v14258_v0 }
0x3c2c   :  { %v8052_v50 = vmul.f32 0.03125, %v8034_v3  ;;  %v8066_v37 = vmul.f32 %v14260_v57, %v14260_v57 }
0x3c2d   :  { %v14266_v8 = vsub.f32 %v8021_v58, %v8053_v34  ;;  %v8077_v40 = vsel %vm322_vm0, %v8067_v20, 0.0  ;;  %v14302_v58 = vpop.f32.mrb[150].mxu1 }
0x3c2e   :  { %v14269_v41 = vsub.f32 %v8020_v62, %v8052_v50  ;;  %8078 = vadd.xlane.f32.xlu1 %v8077_v40  ;;  %v8043_v27 = vpop.xlane.xlu1 %8042  ;;  %v8074_v30 = vsel %vm322_vm0, %v8066_v37, 0.0  ;;  %v14304_v62 = vpop.f32.mrb[151].mxu1  ;;  %v8712_v50 = vld [vmem:[%s14446_s13] ss:$0 sm:$0xff] }
0x3c2f   :  { %v8055_v6 = vmul.f32 0.03125, %v8043_v27  ;;  %v8040_v10 = vpop.xlane.xlu0 %8039  ;;  %8075 = vadd.xlane.f32.xlu0 %v8074_v30  ;;  %v8069_v25 = vmul.f32 %v14266_v8, %v14266_v8  ;;  %v14306_v9 = vpop.f32.mrb[152].mxu1  ;;  %v8713_v30 = vld [vmem:[%s14447_s30] ss:$0 sm:$0xff] }
0x3c30   :  { %v8054_v51 = vmul.f32 0.03125, %v8040_v10  ;;  %v8068_v36 = vmul.f32 %v14269_v41, %v14269_v41  ;;  %v14308_v21 = vpop.f32.mrb[153].mxu1 }
0x3c31   :  { %v14276_v17 = vsub.f32 %v8023_v15, %v8055_v6  ;;  %v8083_v29 = vsel %vm322_vm0, %v8069_v25, 0.0 }
0x3c32   :  { %v14279_v22 = vsub.f32 %v8022_v28, %v8054_v51  ;;  %8084 = vadd.xlane.f32.xlu1 %v8083_v29  ;;  %v8049_v46 = vpop.xlane.xlu1 %8048  ;;  %v8080_v60 = vsel %vm322_vm0, %v8068_v36, 0.0 }
0x3c33   :  { %v8057_v48 = vmul.f32 0.03125, %v8049_v46  ;;  %8081 = vadd.xlane.f32.xlu0 %v8080_v60  ;;  %v8046_v19 = vpop.xlane.xlu0 %8045  ;;  %v8071_v32 = vmul.f32 %v14276_v17, %v14276_v17 }
0x3c34   :  { %v8056_v44 = vmul.f32 0.03125, %v8046_v19  ;;  %v8070_v24 = vmul.f32 %v14279_v22, %v14279_v22 }
0x3c35   :  { %v14286_v18 = vsub.f32 %v8025_v43, %v8057_v48  ;;  %v8089_v42 = vsel %vm322_vm0, %v8071_v32, 0.0 }
0x3c36   :  { %v14289_v63 = vsub.f32 %v8024_v56, %v8056_v44  ;;  %8090 = vadd.xlane.f32.xlu1 %v8089_v42  ;;  %v8086_v45 = vsel %vm322_vm0, %v8070_v24, 0.0 }
0x3c37   :  { %8087 = vadd.xlane.f32.xlu0 %v8086_v45  ;;  %v8073_v35 = vmul.f32 %v14286_v18, %v14286_v18 }
0x3c38   :  { %v8072_v54 = vmul.f32 %v14289_v63, %v14289_v63 }
0x3c39   :  { %v8095_v16 = vsel %vm322_vm0, %v8073_v35, 0.0 }
0x3c3a   :  { %8096 = vadd.xlane.f32.xlu1 %v8095_v16  ;;  %v8092_v4 = vsel %vm322_vm0, %v8072_v54, 0.0 }
0x3c3b   :  { %8093 = vadd.xlane.f32.xlu0 %v8092_v4 }
0x3cbb   :  { %v8079_v61 = vpop.xlane.xlu1 %8078 }
0x3cbc   :  { %v8099_v39 = vmul.f32 0.03125, %v8079_v61  ;;  %v8076_v38 = vpop.xlane.xlu0 %8075 }
0x3cbd   :  { %v8098_v26 = vmul.f32 0.03125, %v8076_v38 }
0x3cbe   :  { %v8107_v15 = vadd.f32 1e-05, %v8099_v39 }
0x3cbf   :  { %v8106_v28 = vadd.f32 1e-05, %v8098_v26  ;;  %v8085_v14 = vpop.xlane.xlu1 %8084 }
0x3cc0   :  { %11566 = vrsqrt.f32 %v8107_v15  ;;  %v8101_v31 = vmul.f32 0.03125, %v8085_v14  ;;  %v8082_v55 = vpop.xlane.xlu0 %8081 }
0x3cc1   :  { %11568 = vrsqrt.f32 %v8106_v28  ;;  %v8100_v1 = vmul.f32 0.03125, %v8082_v55 }
0x3cc2   :  { %v8109_v5 = vadd.f32 1e-05, %v8101_v31 }
0x3cc3   :  { %v8108_v59 = vadd.f32 1e-05, %v8100_v1  ;;  %v8091_v43 = vpop.xlane.xlu1 %8090 }
0x3cc4   :  { %11570 = vrsqrt.f32 %v8109_v5  ;;  %v8103_v56 = vmul.f32 0.03125, %v8091_v43  ;;  %v8088_v13 = vpop.xlane.xlu0 %8087 }
0x3cc5   :  { %11572 = vrsqrt.f32 %v8108_v59  ;;  %v8102_v52 = vmul.f32 0.03125, %v8088_v13 }
0x3cc6   :  { %v8111_v49 = vadd.f32 1e-05, %v8103_v56 }
0x3cc7   :  { %v8110_v7 = vadd.f32 1e-05, %v8102_v52  ;;  %v8097_v33 = vpop.xlane.xlu1 %8096 }
0x3cc8   :  { %11574 = vrsqrt.f32 %v8111_v49  ;;  %v8105_v47 = vmul.f32 0.03125, %v8097_v33  ;;  %v8094_v53 = vpop.xlane.xlu0 %8093 }
0x3cc9   :  { %11576 = vrsqrt.f32 %v8110_v7  ;;  %v8104_v34 = vmul.f32 0.03125, %v8094_v53 }
0x3cca   :  { %v11567_v3 = vpop.eup %11566  ;;  %v8113_v20 = vadd.f32 1e-05, %v8105_v47 }
0x3ccb   :  { %v11569_v37 = vpop.eup %11568  ;;  %v8112_v40 = vadd.f32 1e-05, %v8104_v34  ;;  %v8123_v27 = vmul.f32 %v11567_v3, %v14258_v0 }
0x3ccc   :  { %11578 = vrsqrt.f32 %v8113_v20  ;;  %v8122_v6 = vmul.f32 %v11569_v37, %v14260_v57 }
0x3ccd   :  { %11580 = vrsqrt.f32 %v8112_v40  ;;  %v8137_v10 = vmul.f32 %v8712_v50, %v8123_v27 }
0x3cce   :  { %v11571_v25 = vpop.eup %11570  ;;  %v8136_v51 = vmul.f32 %v8712_v50, %v8122_v6 }
0x3ccf   :  { %v11573_v36 = vpop.eup %11572  ;;  %v8151_v29 = vadd.f32 %v8713_v30, %v8137_v10  ;;  %v8125_v46 = vmul.f32 %v11571_v25, %v14266_v8 }
0x3cd0   :  { %v8150_v60 = vadd.f32 %v8713_v30, %v8136_v51  ;;  %v8124_v48 = vmul.f32 %v11573_v36, %v14269_v41 }
0x3cd1   :  { %v8296_v19 = vadd.f32 %v10187_v2, %v8151_v29  ;;  %v8139_v32 = vmul.f32 %v8712_v50, %v8125_v46 }
0x3cd2   :  { %v11575_v44 = vpop.eup %11574  ;;  %v8295_v24 = vadd.f32 %v8256_v11, %v8150_v60  ;;  %v8138_v0 = vmul.f32 %v8712_v50, %v8124_v48 }
0x3cd3   :  { %v11577_v42 = vpop.eup %11576  ;;  %8304 = vst.msk [vmem:[#allocation3 + $0x8] sm:$0xff] %vm322_vm0, %v8296_v19  ;;  %v8153_v57 = vadd.f32 %v8713_v30, %v8139_v32  ;;  %v8127_v45 = vmul.f32 %v11575_v44, %v14276_v17 }
0x3cd4   :  { %8303 = vst.msk [vmem:[#allocation3] sm:$0xff] %vm322_vm0, %v8295_v24  ;;  %v8152_v35 = vadd.f32 %v8713_v30, %v8138_v0  ;;  %v8126_v54 = vmul.f32 %v11577_v42, %v14279_v22 }
0x3cd5   :  { %v8298_v8 = vadd.f32 %v14298_v12, %v8153_v57  ;;  %v8141_v16 = vmul.f32 %v8712_v50, %v8127_v45 }
0x3cd6   :  { %v11579_v41 = vpop.eup %11578  ;;  %v8297_v4 = vadd.f32 %v14300_v23, %v8152_v35  ;;  %v8140_v2 = vmul.f32 %v8712_v50, %v8126_v54 }
0x3cd7   :  { %v11581_v11 = vpop.eup %11580  ;;  %8306 = vst.msk [vmem:[#allocation3 + $0x18] sm:$0xff] %vm322_vm0, %v8298_v8  ;;  %v8155_v61 = vadd.f32 %v8713_v30, %v8141_v16  ;;  %v8129_v39 = vmul.f32 %v11579_v41, %v14286_v18 }
0x3cd8   :  { %8305 = vst.msk [vmem:[#allocation3 + $0x10] sm:$0xff] %vm322_vm0, %v8297_v4  ;;  %v8154_v17 = vadd.f32 %v8713_v30, %v8140_v2  ;;  %v8128_v38 = vmul.f32 %v11581_v11, %v14289_v63 }
0x3cd9   :  { %v8300_v22 = vadd.f32 %v14302_v58, %v8155_v61  ;;  %v8143_v26 = vmul.f32 %v8712_v50, %v8129_v39 }
0x3cda   :  { %v8299_v12 = vadd.f32 %v14304_v62, %v8154_v17  ;;  %v8142_v15 = vmul.f32 %v8712_v50, %v8128_v38 }
0x3cdb   :  { %8308 = vst.msk [vmem:[#allocation3 + $0x28] sm:$0xff] %vm322_vm0, %v8300_v22  ;;  %v8157_v23 = vadd.f32 %v8713_v30, %v8143_v26 }
0x3cdc   :  { %8307 = vst.msk [vmem:[#allocation3 + $0x20] sm:$0xff] %vm322_vm0, %v8299_v12  ;;  %v8156_v28 = vadd.f32 %v8713_v30, %v8142_v15 }
0x3cdd   :  { %v8302_v18 = vadd.f32 %v14306_v9, %v8157_v23 }
0x3cde   :  { %v8301_v14 = vadd.f32 %v14308_v21, %v8156_v28 }
0x3cdf   :  { %8310 = vst.msk [vmem:[#allocation3 + $0x38] sm:$0xff] %vm322_vm0, %v8302_v18 }
0x3ce0   :  { %8309 = vst.msk [vmem:[#allocation3 + $0x30] sm:$0xff] %vm322_vm0, %v8301_v14 }
0x3ce1   :  { %11625 = shalt.err (!%p11622_p4)
}
0x3ce2   :  { %s11626_s8 = scalar_lea.hbm %s11894_s21, 1024 }
0x3ce3   :  { %p11627_p5 = scmp.ne.s32.totalorder %s11894_s21, %s11626_s8  ;;  %p11630_p6 = scmp.lt.u32.totalorder %s11626_s8, %s11894_s21 }
0x3ce5   :  { %p11632_p7 = pnand %p11630_p6, %p11627_p5 }
0x3ce7   :  { %11635 = shalt.err (!%p11632_p7)
}
0x3ce8   :  { %s11695_s18 = smov 128  }
0x3ce9   :  { %8322 = dma.vmem_to_hbm [thread:$0]  %s8317_s15, 1024, %s11894_s21, [#allocation4], %s11695_s18, %s11695_s18, %s11691_s23  }
0x3cea   :  { %11636 = dma.done.wait [#allocation4], 1024  }
0x3ceb   :  { %11637 = vsyncadd [#allocation4], 4294966272 }
0x3cec   :  { %8326 = vsyncpa [#allocation4], 1 }

</bundles_post_ra>
